<compile_context>
chip_gen: v6e
topology: v6e:2x2x1
jax: 0.10.0
libtpu: 0.0.40
codegen_flags: <defaults>
</compile_context>

<pallas_src>
import functools

import jax
import jax.numpy as jnp
from jax.experimental import pallas as pl
from jax.experimental.pallas import tpu as pltpu

BN_EPS = 1e-5


# ---------------------------------------------------------------------------
# Fused BasicBlock kernel (one grid step = one image)
# ---------------------------------------------------------------------------
def _basic_block_kernel(*refs, cin, cout, ho, wo, stride, has_proj):
    if has_proj:
        xs_ref, w1_ref, b1_ref, w2_ref, b2_ref, wsc_ref, bsc_ref, out_ref, l1p_ref = refs
    else:
        xs_ref, w1_ref, b1_ref, w2_ref, b2_ref, out_ref, l1p_ref = refs
        wsc_ref = bsc_ref = None

    s = stride
    mo = ho * wo
    xs = xs_ref[0]                                    # (s*s*cin, Hs, Ws) bf16, VMEM

    def im2col(src, nchan, from_parity_planes):
        """(9*nchan, ho*wo) columns from static unit-stride slices of a VMEM value."""
        cols = []
        for i in range(3):
            for j in range(3):
                if from_parity_planes:                # tap of the (strided) padded input
                    p = (i % s) * s + (j % s)
                    c0, di, dj = p * nchan, i // s, j // s
                else:                                 # tap of the padded left1 scratch
                    c0, di, dj = 0, i, j
                t = src[c0:c0 + nchan, di:di + ho, dj:dj + wo]
                cols.append(t.reshape(nchan, mo))
        return jnp.concatenate(cols, axis=0)

    # ---- conv1 (3x3, stride s, pad 1) + BN + ReLU -------------------------------
    cols1 = im2col(xs, cin, True)                                     # (9*cin, mo) bf16
    y1 = jnp.dot(w1_ref[...], cols1, preferred_element_type=jnp.float32)
    y1 = jnp.maximum(y1 + b1_ref[...], 0.0)                           # (cout, mo) f32

    # ---- stash ReLU'd activation into a zero-padded VMEM scratch for conv2 ------
    l1p_ref[...] = jnp.zeros_like(l1p_ref)
    l1p_ref[:, 1:ho + 1, 1:wo + 1] = y1.reshape(cout, ho, wo).astype(l1p_ref.dtype)

    # ---- conv2 (3x3, stride 1, pad 1) + BN ---------------------------------------
    cols2 = im2col(l1p_ref[...], cout, False)                         # (9*cout, mo) bf16
    y2 = jnp.dot(w2_ref[...], cols2, preferred_element_type=jnp.float32) + b2_ref[...]

    # ---- shortcut: identity, or 1x1-conv(stride)+BN; both read the "center tap" --
    pc = (1 % s) * s + (1 % s)
    d = 1 // s
    xc = xs[pc * cin:(pc + 1) * cin, d:d + ho, d:d + wo].reshape(cin, mo)
    if has_proj:
        sc = jnp.dot(wsc_ref[...], xc, preferred_element_type=jnp.float32) + bsc_ref[...]
    else:
        sc = xc.astype(jnp.float32)                                   # cin == cout here

    out_ref[0] = jnp.maximum(y2 + sc, 0.0).astype(out_ref.dtype)


# ---------------------------------------------------------------------------
# Wrapper: layout prep (1x data movement) + single pallas_call per block
# ---------------------------------------------------------------------------
def _make_tap_planes(x_bf16_nchw, stride):
    """Zero-pad (pad=1) and split into stride*stride parity planes (no replication)."""
    B, C, H, W = x_bf16_nchw.shape
    xp = jnp.pad(x_bf16_nchw, ((0, 0), (0, 0), (1, 1), (1, 1)))
    s = stride
    if s == 1:
        return xp, H + 2, W + 2
    Hp = -(-(H + 2) // s) * s
    Wp = -(-(W + 2) // s) * s
    if (Hp, Wp) != (H + 2, W + 2):
        xp = jnp.pad(xp, ((0, 0), (0, 0), (0, Hp - (H + 2)), (0, Wp - (W + 2))))
    planes = [xp[:, :, rp::s, cp::s] for rp in range(s) for cp in range(s)]
    return jnp.concatenate(planes, axis=1), Hp // s, Wp // s          # (B, s*s*C, Hs, Ws)


def basic_block_forward(p, x_nchw):
    """Fused BasicBlock forward (eval-mode BN).  Input/output NCHW; output bf16."""
    stride, cin, cout = p["stride"], p["cin"], p["cout"]
    B, C, H, W = x_nchw.shape
    assert C == cin
    has_proj = "wscm" in p

    xs, hs, ws = _make_tap_planes(x_nchw.astype(jnp.bfloat16), stride)
    ho = (H + 2 - 3) // stride + 1
    wo = (W + 2 - 3) // stride + 1
    mo = ho * wo
    nplanes = stride * stride

    kernel = functools.partial(_basic_block_kernel, cin=cin, cout=cout,
                               ho=ho, wo=wo, stride=stride, has_proj=has_proj)

    in_specs = [
        pl.BlockSpec((1, nplanes * cin, hs, ws), lambda b: (b, 0, 0, 0)),  # input planes
        pl.BlockSpec((cout, 9 * cin), lambda b: (0, 0)),                   # conv1 weights
        pl.BlockSpec((cout, 1), lambda b: (0, 0)),                         # conv1 BN shift
        pl.BlockSpec((cout, 9 * cout), lambda b: (0, 0)),                  # conv2 weights
        pl.BlockSpec((cout, 1), lambda b: (0, 0)),                         # conv2 BN shift
    ]
    args = [xs, p["w1m"], p["b1"], p["w2m"], p["b2"]]
    if has_proj:
        in_specs += [pl.BlockSpec((cout, cin), lambda b: (0, 0)),          # 1x1 sc weights
                     pl.BlockSpec((cout, 1), lambda b: (0, 0))]            # sc BN shift
        args += [p["wscm"], p["bsc"]]

    out = pl.pallas_call(
        kernel,
        out_shape=jax.ShapeDtypeStruct((B, cout, mo), jnp.bfloat16),
        grid_spec=pltpu.PrefetchScalarGridSpec(
            num_scalar_prefetch=0,
            grid=(B,),
            in_specs=in_specs,
            out_specs=pl.BlockSpec((1, cout, mo), lambda b: (b, 0, 0)),
            scratch_shapes=[pltpu.VMEM((cout, ho + 2, wo + 2), jnp.bfloat16)],
        ),
        compiler_params=pltpu.CompilerParams(dimension_semantics=("parallel",)),
    )(*args)
    # (B, cout, ho*wo) row-major == NCHW; reshape only.
    return out.reshape(B, cout, ho, wo)


# ---------------------------------------------------------------------------
# Parameters (deterministic synthetic weights; BN folded once, offline)
# ---------------------------------------------------------------------------
def _he_conv(key, cout, cin, k):
    fan_in = cin * k * k
    return jax.random.normal(key, (cout, cin, k, k), jnp.float32) * (2.0 / fan_in) ** 0.5


def _make_bn(key, c):
    kg, kb, km, kv = jax.random.split(key, 4)
    return {"gamma": jax.random.uniform(kg, (c,), jnp.float32, 0.5, 1.5),
            "beta": 0.1 * jax.random.normal(kb, (c,), jnp.float32),
            "mean": 0.1 * jax.random.normal(km, (c,), jnp.float32),
            "var": jax.random.uniform(kv, (c,), jnp.float32, 0.5, 1.5)}


def _fold_conv_bn(w_oihw, bn):
    scale = bn["gamma"] / jnp.sqrt(bn["var"] + BN_EPS)
    shift = bn["beta"] - bn["mean"] * scale
    co, ci, kh, kw = w_oihw.shape
    # K ordering = (tap_i, tap_j, cin), matching the kernel's im2col rows.
    wm = jnp.transpose(w_oihw, (0, 2, 3, 1)).reshape(co, kh * kw * ci)
    wm = (wm * scale[:, None]).astype(jnp.bfloat16)
    return wm, shift.reshape(co, 1).astype(jnp.float32)


def make_basic_block_params(key, inchannel, outchannel, stride):
    kw1, kw2, kws, kb1, kb2, kbs = jax.random.split(key, 6)
    p = {"stride": stride, "cin": inchannel, "cout": outchannel,
         "w1": _he_conv(kw1, outchannel, inchannel, 3),
         "w2": _he_conv(kw2, outchannel, outchannel, 3),
         "bn1": _make_bn(kb1, outchannel), "bn2": _make_bn(kb2, outchannel)}
    p["w1m"], p["b1"] = _fold_conv_bn(p["w1"], p["bn1"])
    p["w2m"], p["b2"] = _fold_conv_bn(p["w2"], p["bn2"])
    if stride != 1 or inchannel != outchannel:
        p["wsc"] = _he_conv(kws, outchannel, inchannel, 1)
        p["bnsc"] = _make_bn(kbs, outchannel)
        p["wscm"], p["bsc"] = _fold_conv_bn(p["wsc"], p["bnsc"])
    return p


# ---------------------------------------------------------------------------
# Pure-JAX f32 reference (uses the real BN statistics)
# ---------------------------------------------------------------------------
def _conv_ref(x, w, stride, pad):
    return jax.lax.conv_general_dilated(
        x, w, (stride, stride), ((pad, pad), (pad, pad)),
        dimension_numbers=("NCHW", "OIHW", "NCHW"))


def _bn_ref(y, bn):
    s = bn["gamma"] / jnp.sqrt(bn["var"] + BN_EPS)
    b = bn["beta"] - bn["mean"] * s
    return y * s[None, :, None, None] + b[None, :, None, None]


def basic_block_reference(p, x):
    s = p["stride"]
    y = jnp.maximum(_bn_ref(_conv_ref(x, p["w1"], s, 1), p["bn1"]), 0.0)
    y = _bn_ref(_conv_ref(y, p["w2"], 1, 1), p["bn2"])
    sc = _bn_ref(_conv_ref(x, p["wsc"], s, 0), p["bnsc"]) if "wsc" in p else x
    return jnp.maximum(y + sc, 0.0)


# ---------------------------------------------------------------------------
if __name__ == "__main__":
    key = jax.random.PRNGKey(0)
    kx, kb1, kb2 = jax.random.split(key, 3)

    # Small shapes consistent with the module: batch=2, 4 channels, 16x16 spatial.
    x = jax.random.normal(kx, (2, 4, 16, 16), jnp.float32)
    p_ident = make_basic_block_params(kb1, 4, 4, stride=1)   # identity shortcut
    p_proj = make_basic_block_params(kb2, 4, 8, stride=2)    # 1x1-conv + BN shortcut

    @jax.jit
    def fwd(xx):
        y = basic_block_forward(p_ident, xx)                 # one fused pallas_call
        y = basic_block_forward(p_proj, y)                   # one fused pallas_call
        return y.astype(jnp.float32)                         # promote only at the consumer

    y = jax.block_until_ready(fwd(x))
    assert y.shape == (2, 8, 8, 8), y.shape
    assert bool(jnp.all(jnp.isfinite(y)))

    # Tolerance check vs f32 reference (bf16 MXU operands give small, bounded drift).
    ref = basic_block_reference(p_proj, basic_block_reference(p_ident, x))
    err = float(jnp.max(jnp.abs(y - ref)))
    den = float(jnp.max(jnp.abs(ref))) + 1e-6
    assert err <= 5e-2 * den + 1e-3, (err, den)

    print("KERNEL_OK")
</pallas_src>

<mosaic_0001>
module attributes {stable_mosaic.version = 11 : i64} {
  func.func @_basic_block_kernel(%arg0: i32, %arg1: memref<1x4x18x18xbf16, #tpu.memory_space<vmem>>, %arg2: memref<4x36xbf16, #tpu.memory_space<vmem>>, %arg3: memref<4x1xf32, #tpu.memory_space<vmem>>, %arg4: memref<4x36xbf16, #tpu.memory_space<vmem>>, %arg5: memref<4x1xf32, #tpu.memory_space<vmem>>, %arg6: memref<1x4x256xbf16, #tpu.memory_space<vmem>>, %arg7: memref<4x18x18xbf16, #tpu.memory_space<vmem>>) attributes {dimension_semantics = [#tpu.dimension_semantics<parallel>], iteration_bounds = array<i64: 2>, scalar_prefetch = 0 : i64, scratch_operands = 1 : i64, tpu.core_type = #tpu.core_type<tc>, window_params = [{transform_indices = @transform_0, window_bounds = array<i64: 1, 4, 18, 18>}, {pipeline_mode = #tpu.pipeline_mode<synchronous>, transform_indices = @transform_1, window_bounds = array<i64: 4, 36>}, {pipeline_mode = #tpu.pipeline_mode<synchronous>, transform_indices = @transform_2, window_bounds = array<i64: 4, 1>}, {pipeline_mode = #tpu.pipeline_mode<synchronous>, transform_indices = @transform_3, window_bounds = array<i64: 4, 36>}, {pipeline_mode = #tpu.pipeline_mode<synchronous>, transform_indices = @transform_4, window_bounds = array<i64: 4, 1>}, {transform_indices = @transform_5, window_bounds = array<i64: 1, 4, 256>}]} {
    %c0 = arith.constant 0 : index
    %c0_0 = arith.constant 0 : index
    %c0_1 = arith.constant 0 : index
    %c0_2 = arith.constant 0 : index
    %0 = vector.load %arg1[%c0, %c0_0, %c0_1, %c0_2] : memref<1x4x18x18xbf16, #tpu.memory_space<vmem>>, vector<1x4x18x18xbf16>
    %1 = vector.shape_cast %0 : vector<1x4x18x18xbf16> to vector<4x18x18xbf16>
    %2 = vector.extract_strided_slice %1 {offsets = [0, 0, 0], sizes = [4, 16, 16], strides = [1, 1, 1]} : vector<4x18x18xbf16> to vector<4x16x16xbf16>
    %3 = vector.shape_cast %2 : vector<4x16x16xbf16> to vector<4x256xbf16>
    %4 = vector.extract_strided_slice %1 {offsets = [0, 0, 1], sizes = [4, 16, 16], strides = [1, 1, 1]} : vector<4x18x18xbf16> to vector<4x16x16xbf16>
    %5 = vector.shape_cast %4 : vector<4x16x16xbf16> to vector<4x256xbf16>
    %6 = vector.extract_strided_slice %1 {offsets = [0, 0, 2], sizes = [4, 16, 16], strides = [1, 1, 1]} : vector<4x18x18xbf16> to vector<4x16x16xbf16>
    %7 = vector.shape_cast %6 : vector<4x16x16xbf16> to vector<4x256xbf16>
    %8 = vector.extract_strided_slice %1 {offsets = [0, 1, 0], sizes = [4, 16, 16], strides = [1, 1, 1]} : vector<4x18x18xbf16> to vector<4x16x16xbf16>
    %9 = vector.shape_cast %8 : vector<4x16x16xbf16> to vector<4x256xbf16>
    %10 = vector.extract_strided_slice %1 {offsets = [0, 1, 1], sizes = [4, 16, 16], strides = [1, 1, 1]} : vector<4x18x18xbf16> to vector<4x16x16xbf16>
    %11 = vector.shape_cast %10 : vector<4x16x16xbf16> to vector<4x256xbf16>
    %12 = vector.extract_strided_slice %1 {offsets = [0, 1, 2], sizes = [4, 16, 16], strides = [1, 1, 1]} : vector<4x18x18xbf16> to vector<4x16x16xbf16>
    %13 = vector.shape_cast %12 : vector<4x16x16xbf16> to vector<4x256xbf16>
    %14 = vector.extract_strided_slice %1 {offsets = [0, 2, 0], sizes = [4, 16, 16], strides = [1, 1, 1]} : vector<4x18x18xbf16> to vector<4x16x16xbf16>
    %15 = vector.shape_cast %14 : vector<4x16x16xbf16> to vector<4x256xbf16>
    %16 = vector.extract_strided_slice %1 {offsets = [0, 2, 1], sizes = [4, 16, 16], strides = [1, 1, 1]} : vector<4x18x18xbf16> to vector<4x16x16xbf16>
    %17 = vector.shape_cast %16 : vector<4x16x16xbf16> to vector<4x256xbf16>
    %18 = vector.extract_strided_slice %1 {offsets = [0, 2, 2], sizes = [4, 16, 16], strides = [1, 1, 1]} : vector<4x18x18xbf16> to vector<4x16x16xbf16>
    %19 = vector.shape_cast %18 : vector<4x16x16xbf16> to vector<4x256xbf16>
    %20 = tpu.concatenate %3, %5, %7, %9, %11, %13, %15, %17, %19 in 0 : vector<4x256xbf16>, vector<4x256xbf16>, vector<4x256xbf16>, vector<4x256xbf16>, vector<4x256xbf16>, vector<4x256xbf16>, vector<4x256xbf16>, vector<4x256xbf16>, vector<4x256xbf16> -> vector<36x256xbf16>
    %c0_3 = arith.constant 0 : index
    %c0_4 = arith.constant 0 : index
    %21 = vector.load %arg2[%c0_3, %c0_4] : memref<4x36xbf16, #tpu.memory_space<vmem>>, vector<4x36xbf16>
    %cst = arith.constant dense<0.000000e+00> : vector<4x256xf32>
    %22 = tpu.matmul %21, %20, %cst {dimension_numbers = #tpu.dot_dimension_numbers<[1], [0], [0], [1], [0, 0, 1, 1], [], []>} : vector<4x36xbf16>, vector<36x256xbf16>, vector<4x256xf32> -> vector<4x256xf32>
    %c0_5 = arith.constant 0 : index
    %c0_6 = arith.constant 0 : index
    %23 = vector.load %arg3[%c0_5, %c0_6] : memref<4x1xf32, #tpu.memory_space<vmem>>, vector<4x1xf32>
    %24 = vector.broadcast %23 : vector<4x1xf32> to vector<4x256xf32>
    %25 = arith.addf %22, %24 : vector<4x256xf32>
    %cst_7 = arith.constant 0.000000e+00 : f32
    %26 = vector.broadcast %cst_7 : f32 to vector<4x256xf32>
    %27 = arith.maximumf %25, %26 : vector<4x256xf32>
    %cst_8 = arith.constant 0.000000e+00 : bf16
    %28 = vector.broadcast %cst_8 : bf16 to vector<4x18x18xbf16>
    %c0_9 = arith.constant 0 : index
    %c0_10 = arith.constant 0 : index
    %c0_11 = arith.constant 0 : index
    %29 = vector.load %arg7[%c0_9, %c0_10, %c0_11] : memref<4x18x18xbf16, #tpu.memory_space<vmem>>, vector<4x18x18xbf16>
    tpu.vector_store %arg7[%c0_9, %c0_10, %c0_11], %28 {strides = array<i32>} : memref<4x18x18xbf16, #tpu.memory_space<vmem>>, vector<4x18x18xbf16>,
    %30 = vector.shape_cast %27 : vector<4x256xf32> to vector<4x16x16xf32>
    %31 = arith.truncf %30 : vector<4x16x16xf32> to vector<4x16x16xbf16>
    %c0_12 = arith.constant 0 : index
    %c1 = arith.constant 1 : index
    %c1_13 = arith.constant 1 : index
    %32 = vector.load %arg7[%c0_12, %c1, %c1_13] : memref<4x18x18xbf16, #tpu.memory_space<vmem>>, vector<4x16x16xbf16>
    tpu.vector_store %arg7[%c0_12, %c1, %c1_13], %31 {strides = array<i32>} : memref<4x18x18xbf16, #tpu.memory_space<vmem>>, vector<4x16x16xbf16>,
    %c0_14 = arith.constant 0 : index
    %c0_15 = arith.constant 0 : index
    %c0_16 = arith.constant 0 : index
    %33 = vector.load %arg7[%c0_14, %c0_15, %c0_16] : memref<4x18x18xbf16, #tpu.memory_space<vmem>>, vector<4x18x18xbf16>
    %34 = vector.extract_strided_slice %33 {offsets = [0, 0, 0], sizes = [4, 16, 16], strides = [1, 1, 1]} : vector<4x18x18xbf16> to vector<4x16x16xbf16>
    %35 = vector.shape_cast %34 : vector<4x16x16xbf16> to vector<4x256xbf16>
    %36 = vector.extract_strided_slice %33 {offsets = [0, 0, 1], sizes = [4, 16, 16], strides = [1, 1, 1]} : vector<4x18x18xbf16> to vector<4x16x16xbf16>
    %37 = vector.shape_cast %36 : vector<4x16x16xbf16> to vector<4x256xbf16>
    %38 = vector.extract_strided_slice %33 {offsets = [0, 0, 2], sizes = [4, 16, 16], strides = [1, 1, 1]} : vector<4x18x18xbf16> to vector<4x16x16xbf16>
    %39 = vector.shape_cast %38 : vector<4x16x16xbf16> to vector<4x256xbf16>
    %40 = vector.extract_strided_slice %33 {offsets = [0, 1, 0], sizes = [4, 16, 16], strides = [1, 1, 1]} : vector<4x18x18xbf16> to vector<4x16x16xbf16>
    %41 = vector.shape_cast %40 : vector<4x16x16xbf16> to vector<4x256xbf16>
    %42 = vector.extract_strided_slice %33 {offsets = [0, 1, 1], sizes = [4, 16, 16], strides = [1, 1, 1]} : vector<4x18x18xbf16> to vector<4x16x16xbf16>
    %43 = vector.shape_cast %42 : vector<4x16x16xbf16> to vector<4x256xbf16>
    %44 = vector.extract_strided_slice %33 {offsets = [0, 1, 2], sizes = [4, 16, 16], strides = [1, 1, 1]} : vector<4x18x18xbf16> to vector<4x16x16xbf16>
    %45 = vector.shape_cast %44 : vector<4x16x16xbf16> to vector<4x256xbf16>
    %46 = vector.extract_strided_slice %33 {offsets = [0, 2, 0], sizes = [4, 16, 16], strides = [1, 1, 1]} : vector<4x18x18xbf16> to vector<4x16x16xbf16>
    %47 = vector.shape_cast %46 : vector<4x16x16xbf16> to vector<4x256xbf16>
    %48 = vector.extract_strided_slice %33 {offsets = [0, 2, 1], sizes = [4, 16, 16], strides = [1, 1, 1]} : vector<4x18x18xbf16> to vector<4x16x16xbf16>
    %49 = vector.shape_cast %48 : vector<4x16x16xbf16> to vector<4x256xbf16>
    %50 = vector.extract_strided_slice %33 {offsets = [0, 2, 2], sizes = [4, 16, 16], strides = [1, 1, 1]} : vector<4x18x18xbf16> to vector<4x16x16xbf16>
    %51 = vector.shape_cast %50 : vector<4x16x16xbf16> to vector<4x256xbf16>
    %52 = tpu.concatenate %35, %37, %39, %41, %43, %45, %47, %49, %51 in 0 : vector<4x256xbf16>, vector<4x256xbf16>, vector<4x256xbf16>, vector<4x256xbf16>, vector<4x256xbf16>, vector<4x256xbf16>, vector<4x256xbf16>, vector<4x256xbf16>, vector<4x256xbf16> -> vector<36x256xbf16>
    %c0_17 = arith.constant 0 : index
    %c0_18 = arith.constant 0 : index
    %53 = vector.load %arg4[%c0_17, %c0_18] : memref<4x36xbf16, #tpu.memory_space<vmem>>, vector<4x36xbf16>
    %cst_19 = arith.constant dense<0.000000e+00> : vector<4x256xf32>
    %54 = tpu.matmul %53, %52, %cst_19 {dimension_numbers = #tpu.dot_dimension_numbers<[1], [0], [0], [1], [0, 0, 1, 1], [], []>} : vector<4x36xbf16>, vector<36x256xbf16>, vector<4x256xf32> -> vector<4x256xf32>
    %c0_20 = arith.constant 0 : index
    %c0_21 = arith.constant 0 : index
    %55 = vector.load %arg5[%c0_20, %c0_21] : memref<4x1xf32, #tpu.memory_space<vmem>>, vector<4x1xf32>
    %56 = vector.broadcast %55 : vector<4x1xf32> to vector<4x256xf32>
    %57 = arith.addf %54, %56 : vector<4x256xf32>
    %58 = vector.extract_strided_slice %1 {offsets = [0, 1, 1], sizes = [4, 16, 16], strides = [1, 1, 1]} : vector<4x18x18xbf16> to vector<4x16x16xbf16>
    %59 = vector.shape_cast %58 : vector<4x16x16xbf16> to vector<4x256xbf16>
    %60 = arith.extf %59 : vector<4x256xbf16> to vector<4x256xf32>
    %61 = arith.addf %57, %60 : vector<4x256xf32>
    %cst_22 = arith.constant 0.000000e+00 : f32
    %62 = vector.broadcast %cst_22 : f32 to vector<4x256xf32>
    %63 = arith.maximumf %61, %62 : vector<4x256xf32>
    %64 = arith.truncf %63 : vector<4x256xf32> to vector<4x256xbf16>
    %c0_23 = arith.constant 0 : index
    %c0_24 = arith.constant 0 : index
    %c0_25 = arith.constant 0 : index
    %65 = vector.load %arg6[%c0_23, %c0_24, %c0_25] : memref<1x4x256xbf16, #tpu.memory_space<vmem>>, vector<1x4x256xbf16>
    %66 = vector.shape_cast %65 : vector<1x4x256xbf16> to vector<4x256xbf16>
    %67 = vector.shape_cast %64 : vector<4x256xbf16> to vector<1x4x256xbf16>
    tpu.vector_store %arg6[%c0_23, %c0_24, %c0_25], %67 {strides = array<i32>} : memref<1x4x256xbf16, #tpu.memory_space<vmem>>, vector<1x4x256xbf16>,
    return
  }
  func.func @transform_0(%arg0: i32) -> (i32, i32, i32, i32) {
    %c0_i32 = arith.constant 0 : i32
    %c0_i32_0 = arith.constant 0 : i32
    %c0_i32_1 = arith.constant 0 : i32
    %c0_i32_2 = arith.constant 0 : i32
    return %arg0, %c0_i32, %c0_i32_0, %c0_i32_1 : i32, i32, i32, i32
  }
  func.func @transform_1(%arg0: i32) -> (i32, i32) {
    %c0_i32 = arith.constant 0 : i32
    %c0_i32_0 = arith.constant 0 : i32
    %c0_i32_1 = arith.constant 0 : i32
    return %c0_i32, %c0_i32_0 : i32, i32
  }
  func.func @transform_2(%arg0: i32) -> (i32, i32) {
    %c0_i32 = arith.constant 0 : i32
    %c0_i32_0 = arith.constant 0 : i32
    %c0_i32_1 = arith.constant 0 : i32
    return %c0_i32, %c0_i32_0 : i32, i32
  }
  func.func @transform_3(%arg0: i32) -> (i32, i32) {
    %c0_i32 = arith.constant 0 : i32
    %c0_i32_0 = arith.constant 0 : i32
    %c0_i32_1 = arith.constant 0 : i32
    return %c0_i32, %c0_i32_0 : i32, i32
  }
  func.func @transform_4(%arg0: i32) -> (i32, i32) {
    %c0_i32 = arith.constant 0 : i32
    %c0_i32_0 = arith.constant 0 : i32
    %c0_i32_1 = arith.constant 0 : i32
    return %c0_i32, %c0_i32_0 : i32, i32
  }
  func.func @transform_5(%arg0: i32) -> (i32, i32, i32) {
    %c0_i32 = arith.constant 0 : i32
    %c0_i32_0 = arith.constant 0 : i32
    %c0_i32_1 = arith.constant 0 : i32
    return %arg0, %c0_i32, %c0_i32_0 : i32, i32, i32
  }
}

module attributes {stable_mosaic.version = 11 : i64} {
  func.func @_basic_block_kernel(%arg0: i32, %arg1: memref<1x16x9x9xbf16, #tpu.memory_space<vmem>>, %arg2: memref<8x36xbf16, #tpu.memory_space<vmem>>, %arg3: memref<8x1xf32, #tpu.memory_space<vmem>>, %arg4: memref<8x72xbf16, #tpu.memory_space<vmem>>, %arg5: memref<8x1xf32, #tpu.memory_space<vmem>>, %arg6: memref<8x4xbf16, #tpu.memory_space<vmem>>, %arg7: memref<8x1xf32, #tpu.memory_space<vmem>>, %arg8: memref<1x8x64xbf16, #tpu.memory_space<vmem>>, %arg9: memref<8x10x10xbf16, #tpu.memory_space<vmem>>) attributes {dimension_semantics = [#tpu.dimension_semantics<parallel>], iteration_bounds = array<i64: 2>, scalar_prefetch = 0 : i64, scratch_operands = 1 : i64, tpu.core_type = #tpu.core_type<tc>, window_params = [{transform_indices = @transform_0, window_bounds = array<i64: 1, 16, 9, 9>}, {pipeline_mode = #tpu.pipeline_mode<synchronous>, transform_indices = @transform_1, window_bounds = array<i64: 8, 36>}, {pipeline_mode = #tpu.pipeline_mode<synchronous>, transform_indices = @transform_2, window_bounds = array<i64: 8, 1>}, {pipeline_mode = #tpu.pipeline_mode<synchronous>, transform_indices = @transform_3, window_bounds = array<i64: 8, 72>}, {pipeline_mode = #tpu.pipeline_mode<synchronous>, transform_indices = @transform_4, window_bounds = array<i64: 8, 1>}, {pipeline_mode = #tpu.pipeline_mode<synchronous>, transform_indices = @transform_5, window_bounds = array<i64: 8, 4>}, {pipeline_mode = #tpu.pipeline_mode<synchronous>, transform_indices = @transform_6, window_bounds = array<i64: 8, 1>}, {transform_indices = @transform_7, window_bounds = array<i64: 1, 8, 64>}]} {
    %c0 = arith.constant 0 : index
    %c0_0 = arith.constant 0 : index
    %c0_1 = arith.constant 0 : index
    %c0_2 = arith.constant 0 : index
    %0 = vector.load %arg1[%c0, %c0_0, %c0_1, %c0_2] : memref<1x16x9x9xbf16, #tpu.memory_space<vmem>>, vector<1x16x9x9xbf16>
    %1 = vector.shape_cast %0 : vector<1x16x9x9xbf16> to vector<16x9x9xbf16>
    %2 = vector.extract_strided_slice %1 {offsets = [0, 0, 0], sizes = [4, 8, 8], strides = [1, 1, 1]} : vector<16x9x9xbf16> to vector<4x8x8xbf16>
    %3 = vector.shape_cast %2 : vector<4x8x8xbf16> to vector<4x64xbf16>
    %4 = vector.extract_strided_slice %1 {offsets = [4, 0, 0], sizes = [4, 8, 8], strides = [1, 1, 1]} : vector<16x9x9xbf16> to vector<4x8x8xbf16>
    %5 = vector.shape_cast %4 : vector<4x8x8xbf16> to vector<4x64xbf16>
    %6 = vector.extract_strided_slice %1 {offsets = [0, 0, 1], sizes = [4, 8, 8], strides = [1, 1, 1]} : vector<16x9x9xbf16> to vector<4x8x8xbf16>
    %7 = vector.shape_cast %6 : vector<4x8x8xbf16> to vector<4x64xbf16>
    %8 = vector.extract_strided_slice %1 {offsets = [8, 0, 0], sizes = [4, 8, 8], strides = [1, 1, 1]} : vector<16x9x9xbf16> to vector<4x8x8xbf16>
    %9 = vector.shape_cast %8 : vector<4x8x8xbf16> to vector<4x64xbf16>
    %10 = vector.extract_strided_slice %1 {offsets = [12, 0, 0], sizes = [4, 8, 8], strides = [1, 1, 1]} : vector<16x9x9xbf16> to vector<4x8x8xbf16>
    %11 = vector.shape_cast %10 : vector<4x8x8xbf16> to vector<4x64xbf16>
    %12 = vector.extract_strided_slice %1 {offsets = [8, 0, 1], sizes = [4, 8, 8], strides = [1, 1, 1]} : vector<16x9x9xbf16> to vector<4x8x8xbf16>
    %13 = vector.shape_cast %12 : vector<4x8x8xbf16> to vector<4x64xbf16>
    %14 = vector.extract_strided_slice %1 {offsets = [0, 1, 0], sizes = [4, 8, 8], strides = [1, 1, 1]} : vector<16x9x9xbf16> to vector<4x8x8xbf16>
    %15 = vector.shape_cast %14 : vector<4x8x8xbf16> to vector<4x64xbf16>
    %16 = vector.extract_strided_slice %1 {offsets = [4, 1, 0], sizes = [4, 8, 8], strides = [1, 1, 1]} : vector<16x9x9xbf16> to vector<4x8x8xbf16>
    %17 = vector.shape_cast %16 : vector<4x8x8xbf16> to vector<4x64xbf16>
    %18 = vector.extract_strided_slice %1 {offsets = [0, 1, 1], sizes = [4, 8, 8], strides = [1, 1, 1]} : vector<16x9x9xbf16> to vector<4x8x8xbf16>
    %19 = vector.shape_cast %18 : vector<4x8x8xbf16> to vector<4x64xbf16>
    %20 = tpu.concatenate %3, %5, %7, %9, %11, %13, %15, %17, %19 in 0 : vector<4x64xbf16>, vector<4x64xbf16>, vector<4x64xbf16>, vector<4x64xbf16>, vector<4x64xbf16>, vector<4x64xbf16>, vector<4x64xbf16>, vector<4x64xbf16>, vector<4x64xbf16> -> vector<36x64xbf16>
    %c0_3 = arith.constant 0 : index
    %c0_4 = arith.constant 0 : index
    %21 = vector.load %arg2[%c0_3, %c0_4] : memref<8x36xbf16, #tpu.memory_space<vmem>>, vector<8x36xbf16>
    %cst = arith.constant dense<0.000000e+00> : vector<8x64xf32>
    %22 = tpu.matmul %21, %20, %cst {dimension_numbers = #tpu.dot_dimension_numbers<[1], [0], [0], [1], [0, 0, 1, 1], [], []>} : vector<8x36xbf16>, vector<36x64xbf16>, vector<8x64xf32> -> vector<8x64xf32>
    %c0_5 = arith.constant 0 : index
    %c0_6 = arith.constant 0 : index
    %23 = vector.load %arg3[%c0_5, %c0_6] : memref<8x1xf32, #tpu.memory_space<vmem>>, vector<8x1xf32>
    %24 = vector.broadcast %23 : vector<8x1xf32> to vector<8x64xf32>
    %25 = arith.addf %22, %24 : vector<8x64xf32>
    %cst_7 = arith.constant 0.000000e+00 : f32
    %26 = vector.broadcast %cst_7 : f32 to vector<8x64xf32>
    %27 = arith.maximumf %25, %26 : vector<8x64xf32>
    %cst_8 = arith.constant 0.000000e+00 : bf16
    %28 = vector.broadcast %cst_8 : bf16 to vector<8x10x10xbf16>
    %c0_9 = arith.constant 0 : index
    %c0_10 = arith.constant 0 : index
    %c0_11 = arith.constant 0 : index
    %29 = vector.load %arg9[%c0_9, %c0_10, %c0_11] : memref<8x10x10xbf16, #tpu.memory_space<vmem>>, vector<8x10x10xbf16>
    tpu.vector_store %arg9[%c0_9, %c0_10, %c0_11], %28 {strides = array<i32>} : memref<8x10x10xbf16, #tpu.memory_space<vmem>>, vector<8x10x10xbf16>,
    %30 = vector.shape_cast %27 : vector<8x64xf32> to vector<8x8x8xf32>
    %31 = arith.truncf %30 : vector<8x8x8xf32> to vector<8x8x8xbf16>
    %c0_12 = arith.constant 0 : index
    %c1 = arith.constant 1 : index
    %c1_13 = arith.constant 1 : index
    %32 = vector.load %arg9[%c0_12, %c1, %c1_13] : memref<8x10x10xbf16, #tpu.memory_space<vmem>>, vector<8x8x8xbf16>
    tpu.vector_store %arg9[%c0_12, %c1, %c1_13], %31 {strides = array<i32>} : memref<8x10x10xbf16, #tpu.memory_space<vmem>>, vector<8x8x8xbf16>,
    %c0_14 = arith.constant 0 : index
    %c0_15 = arith.constant 0 : index
    %c0_16 = arith.constant 0 : index
    %33 = vector.load %arg9[%c0_14, %c0_15, %c0_16] : memref<8x10x10xbf16, #tpu.memory_space<vmem>>, vector<8x10x10xbf16>
    %34 = vector.extract_strided_slice %33 {offsets = [0, 0, 0], sizes = [8, 8, 8], strides = [1, 1, 1]} : vector<8x10x10xbf16> to vector<8x8x8xbf16>
    %35 = vector.shape_cast %34 : vector<8x8x8xbf16> to vector<8x64xbf16>
    %36 = vector.extract_strided_slice %33 {offsets = [0, 0, 1], sizes = [8, 8, 8], strides = [1, 1, 1]} : vector<8x10x10xbf16> to vector<8x8x8xbf16>
    %37 = vector.shape_cast %36 : vector<8x8x8xbf16> to vector<8x64xbf16>
    %38 = vector.extract_strided_slice %33 {offsets = [0, 0, 2], sizes = [8, 8, 8], strides = [1, 1, 1]} : vector<8x10x10xbf16> to vector<8x8x8xbf16>
    %39 = vector.shape_cast %38 : vector<8x8x8xbf16> to vector<8x64xbf16>
    %40 = vector.extract_strided_slice %33 {offsets = [0, 1, 0], sizes = [8, 8, 8], strides = [1, 1, 1]} : vector<8x10x10xbf16> to vector<8x8x8xbf16>
    %41 = vector.shape_cast %40 : vector<8x8x8xbf16> to vector<8x64xbf16>
    %42 = vector.extract_strided_slice %33 {offsets = [0, 1, 1], sizes = [8, 8, 8], strides = [1, 1, 1]} : vector<8x10x10xbf16> to vector<8x8x8xbf16>
    %43 = vector.shape_cast %42 : vector<8x8x8xbf16> to vector<8x64xbf16>
    %44 = vector.extract_strided_slice %33 {offsets = [0, 1, 2], sizes = [8, 8, 8], strides = [1, 1, 1]} : vector<8x10x10xbf16> to vector<8x8x8xbf16>
    %45 = vector.shape_cast %44 : vector<8x8x8xbf16> to vector<8x64xbf16>
    %46 = vector.extract_strided_slice %33 {offsets = [0, 2, 0], sizes = [8, 8, 8], strides = [1, 1, 1]} : vector<8x10x10xbf16> to vector<8x8x8xbf16>
    %47 = vector.shape_cast %46 : vector<8x8x8xbf16> to vector<8x64xbf16>
    %48 = vector.extract_strided_slice %33 {offsets = [0, 2, 1], sizes = [8, 8, 8], strides = [1, 1, 1]} : vector<8x10x10xbf16> to vector<8x8x8xbf16>
    %49 = vector.shape_cast %48 : vector<8x8x8xbf16> to vector<8x64xbf16>
    %50 = vector.extract_strided_slice %33 {offsets = [0, 2, 2], sizes = [8, 8, 8], strides = [1, 1, 1]} : vector<8x10x10xbf16> to vector<8x8x8xbf16>
    %51 = vector.shape_cast %50 : vector<8x8x8xbf16> to vector<8x64xbf16>
    %52 = tpu.concatenate %35, %37, %39, %41, %43, %45, %47, %49, %51 in 0 : vector<8x64xbf16>, vector<8x64xbf16>, vector<8x64xbf16>, vector<8x64xbf16>, vector<8x64xbf16>, vector<8x64xbf16>, vector<8x64xbf16>, vector<8x64xbf16>, vector<8x64xbf16> -> vector<72x64xbf16>
    %c0_17 = arith.constant 0 : index
    %c0_18 = arith.constant 0 : index
    %53 = vector.load %arg4[%c0_17, %c0_18] : memref<8x72xbf16, #tpu.memory_space<vmem>>, vector<8x72xbf16>
    %cst_19 = arith.constant dense<0.000000e+00> : vector<8x64xf32>
    %54 = tpu.matmul %53, %52, %cst_19 {dimension_numbers = #tpu.dot_dimension_numbers<[1], [0], [0], [1], [0, 0, 1, 1], [], []>} : vector<8x72xbf16>, vector<72x64xbf16>, vector<8x64xf32> -> vector<8x64xf32>
    %c0_20 = arith.constant 0 : index
    %c0_21 = arith.constant 0 : index
    %55 = vector.load %arg5[%c0_20, %c0_21] : memref<8x1xf32, #tpu.memory_space<vmem>>, vector<8x1xf32>
    %56 = vector.broadcast %55 : vector<8x1xf32> to vector<8x64xf32>
    %57 = arith.addf %54, %56 : vector<8x64xf32>
    %58 = vector.extract_strided_slice %1 {offsets = [12, 0, 0], sizes = [4, 8, 8], strides = [1, 1, 1]} : vector<16x9x9xbf16> to vector<4x8x8xbf16>
    %59 = vector.shape_cast %58 : vector<4x8x8xbf16> to vector<4x64xbf16>
    %c0_22 = arith.constant 0 : index
    %c0_23 = arith.constant 0 : index
    %60 = vector.load %arg6[%c0_22, %c0_23] : memref<8x4xbf16, #tpu.memory_space<vmem>>, vector<8x4xbf16>
    %cst_24 = arith.constant dense<0.000000e+00> : vector<8x64xf32>
    %61 = tpu.matmul %60, %59, %cst_24 {dimension_numbers = #tpu.dot_dimension_numbers<[1], [0], [0], [1], [0, 0, 1, 1], [], []>} : vector<8x4xbf16>, vector<4x64xbf16>, vector<8x64xf32> -> vector<8x64xf32>
    %c0_25 = arith.constant 0 : index
    %c0_26 = arith.constant 0 : index
    %62 = vector.load %arg7[%c0_25, %c0_26] : memref<8x1xf32, #tpu.memory_space<vmem>>, vector<8x1xf32>
    %63 = vector.broadcast %62 : vector<8x1xf32> to vector<8x64xf32>
    %64 = arith.addf %61, %63 : vector<8x64xf32>
    %65 = arith.addf %57, %64 : vector<8x64xf32>
    %cst_27 = arith.constant 0.000000e+00 : f32
    %66 = vector.broadcast %cst_27 : f32 to vector<8x64xf32>
    %67 = arith.maximumf %65, %66 : vector<8x64xf32>
    %68 = arith.truncf %67 : vector<8x64xf32> to vector<8x64xbf16>
    %c0_28 = arith.constant 0 : index
    %c0_29 = arith.constant 0 : index
    %c0_30 = arith.constant 0 : index
    %69 = vector.load %arg8[%c0_28, %c0_29, %c0_30] : memref<1x8x64xbf16, #tpu.memory_space<vmem>>, vector<1x8x64xbf16>
    %70 = vector.shape_cast %69 : vector<1x8x64xbf16> to vector<8x64xbf16>
    %71 = vector.shape_cast %68 : vector<8x64xbf16> to vector<1x8x64xbf16>
    tpu.vector_store %arg8[%c0_28, %c0_29, %c0_30], %71 {strides = array<i32>} : memref<1x8x64xbf16, #tpu.memory_space<vmem>>, vector<1x8x64xbf16>,
    return
  }
  func.func @transform_0(%arg0: i32) -> (i32, i32, i32, i32) {
    %c0_i32 = arith.constant 0 : i32
    %c0_i32_0 = arith.constant 0 : i32
    %c0_i32_1 = arith.constant 0 : i32
    %c0_i32_2 = arith.constant 0 : i32
    return %arg0, %c0_i32, %c0_i32_0, %c0_i32_1 : i32, i32, i32, i32
  }
  func.func @transform_1(%arg0: i32) -> (i32, i32) {
    %c0_i32 = arith.constant 0 : i32
    %c0_i32_0 = arith.constant 0 : i32
    %c0_i32_1 = arith.constant 0 : i32
    return %c0_i32, %c0_i32_0 : i32, i32
  }
  func.func @transform_2(%arg0: i32) -> (i32, i32) {
    %c0_i32 = arith.constant 0 : i32
    %c0_i32_0 = arith.constant 0 : i32
    %c0_i32_1 = arith.constant 0 : i32
    return %c0_i32, %c0_i32_0 : i32, i32
  }
  func.func @transform_3(%arg0: i32) -> (i32, i32) {
    %c0_i32 = arith.constant 0 : i32
    %c0_i32_0 = arith.constant 0 : i32
    %c0_i32_1 = arith.constant 0 : i32
    return %c0_i32, %c0_i32_0 : i32, i32
  }
  func.func @transform_4(%arg0: i32) -> (i32, i32) {
    %c0_i32 = arith.constant 0 : i32
    %c0_i32_0 = arith.constant 0 : i32
    %c0_i32_1 = arith.constant 0 : i32
    return %c0_i32, %c0_i32_0 : i32, i32
  }
  func.func @transform_5(%arg0: i32) -> (i32, i32) {
    %c0_i32 = arith.constant 0 : i32
    %c0_i32_0 = arith.constant 0 : i32
    %c0_i32_1 = arith.constant 0 : i32
    return %c0_i32, %c0_i32_0 : i32, i32
  }
  func.func @transform_6(%arg0: i32) -> (i32, i32) {
    %c0_i32 = arith.constant 0 : i32
    %c0_i32_0 = arith.constant 0 : i32
    %c0_i32_1 = arith.constant 0 : i32
    return %c0_i32, %c0_i32_0 : i32, i32
  }
  func.func @transform_7(%arg0: i32) -> (i32, i32, i32) {
    %c0_i32 = arith.constant 0 : i32
    %c0_i32_0 = arith.constant 0 : i32
    %c0_i32_1 = arith.constant 0 : i32
    return %arg0, %c0_i32, %c0_i32_0 : i32, i32, i32
  }
}

</mosaic_0001>

<bundles_post_ra>
// kernel: fwd.3
= control target key start
LH: loop header
LB: loop body
LE: loop exit
PB: predicated region body
PF: predicated region fallthrough
CT: control target
= control target key end

     0   :  { %s4149_s24 = smov 0   ;;  %s5730_s0 = inlined_call_operand.vmem [shape: bf16[2,16,9,9], index: 0, kind: input, shape index: {}]   ;;  %s5731_s1 = inlined_call_operand.vmem [shape: bf16[8,36], index: 1, kind: input, shape index: {}]   ;;  %s5732_s2 = inlined_call_operand.vmem [shape: f32[8,1], index: 2, kind: input, shape index: {}]   ;;  %s5733_s3 = inlined_call_operand.vmem [shape: bf16[8,72], index: 3, kind: input, shape index: {}]   ;;  %s5734_s4 = inlined_call_operand.vmem [shape: f32[8,1], index: 4, kind: input, shape index: {}]   ;;  %s5735_s5 = inlined_call_operand.vmem [shape: bf16[8,4], index: 5, kind: input, shape index: {}]   ;;  %s5736_s6 = inlined_call_operand.vmem [shape: f32[8,1], index: 6, kind: input, shape index: {}]   ;;  %s5737_s7 = inlined_call_operand.vmem [shape: bf16[2,8,64], index: 7, kind: output, shape index: {}]  }
   0x1 LB: > { %s3805_s25 = sadd.s32 4294967295, %s4085_s24   ;;  %p3809_p0 = scmp.ge.s32.totalorder %s4085_s24, 1  ;;  %s4085_s24 = sphi %s4149_s24, %s17_s24  }
   0x2   : > { %p237_p1 = scmp.lt.s32.totalorder %s4085_s24, 3 }
   0x4   : > { %p238_p2 = pnand %p3809_p0, %p237_p1 }
   0x6   : > { %241 = sbr.rel (%p238_p2) target bundleno = 1404 (0x57c), region = 48 }
   0xb   : > { %p268_p3 = scmp.lt.s32.totalorder %s3805_s25, 1  ;;  %v4087_v0 = vmov 1983009808   ;;  %v318_v2 = vlaneseq  ;;  %v4088_v3 = vmov 1934713408   ;;  %s4089_s30 = smov 127  }
   0xc   : > { %v316_v1 = vunpack.c.l.s4 %v4087_v0  ;;  %v333_v4 = vunpack.c.l.s4 %v4088_v3  ;;  %vm1113_vm0 = vsmask.f32 3328  ;;  %vm1114_vm1 = vsmask.f32 7440  ;;  %s4090_s8 = smov 8   ;;  %s4091_s9 = smov 16  }
   0xd   : > { %s5772_s25 = smov (!%p268_p3, %s3805_s25), 1  ;;  %v319_v11 = vshrl.u32 %v318_v2, 7  ;;  %vm4221_vm2 = vmor %vm1113_vm0, %vm1114_vm1  ;;  %v5750_v36 = vmov 0  ;;  %s4092_s10 = smov 24   ;;  %vm4098_vm3 = vmmov 0   ;;  %vm417_vm4 = vcmask 64512  }
   0xe   : > { %s3960_s26 = sshll.u32 %s5772_s25, 7  ;;  %v317_v10 = vunpack.c.0.s8 %v316_v1  ;;  %v334_v15 = vunpack.c.0.s8 %v333_v4  ;;  %v5751_v36 = vsel %vm4221_vm2, 4294967295, %v5750_v36  ;;  %s4093_s11 = smov 32   ;;  %vm421_vm5 = vcmask 130048  }
   0xf   : > { %s4163_s29 = scalar_lea.vmem %s5730_s0, %s3960_s26  ;;  %5752 = vst [vmem:[#allocation5_spill] sm:$0xff] %v5751_v36  ;;  %s4094_s12 = smov 40   ;;  %vm424_vm6 = vcmask 195584   ;;  %vm427_vm7 = vcmask 261120   ;;  %vm430_vm8 = vcmask 326656   ;;  %vm433_vm9 = vcmask 392192  }
  0x10   : > { %v4166_v5 = vld [vmem:[%s4163_s29 + $0x50] sm:$0xf]  ;;  %v4169_v6 = vld [vmem:[%s4163_s29 + $0x40] sm:$0xf]  ;;  %v4172_v7 = vld [vmem:[%s4163_s29 + $0x58] sm:$0xf]  ;;  %v4209_v27 = vsub.s32 %v317_v10, %v319_v11  ;;  %v4214_v30 = vsub.s32 %v334_v15, %v319_v11 }
  0x11   : > { %979 = vrot.lane.b32.xlu1 %v4166_v5, %s4089_s30  ;;  %975 = vrot.lane.b32.xlu0 %v4169_v6, %s4089_s30  ;;  %v719_v8 = vpack.i.b16 %v4172_v7, %v4166_v5  ;;  %v4181_v9 = vld [vmem:[%s4163_s29 + $0x48] sm:$0xf]  ;;  %v4189_v14 = vld [vmem:[%s4163_s29] sm:$0xf]  ;;  %s4095_s13 = smov 48   ;;  %s4096_s14 = smov 56  }
  0x12   : > { %v713_v12 = vpack.i.b16 %v4181_v9, %v4169_v6  ;;  %v4186_v13 = vld [vmem:[%s4163_s29 + $0x8] sm:$0xf]  ;;  %v281_v18 = vld [vmem:[%s4163_s29 + $0xc] sm:$0x1]  ;;  %v305_v20 = vshrl.u32 %v4189_v14, 16  ;;  %v1118_v24 = vshll.u32 %v4189_v14, 16 }
  0x13   : > { %v306_v16 = vshrl.u32 %v4186_v13, 16  ;;  %v1130_v17 = vshll.u32 %v4186_v13, 16  ;;  %v304_v19 = vpack.i.b16 %v4186_v13, %v4189_v14  ;;  %v279_v21 = vld [vmem:[%s4163_s29 + $0x4] sm:$0x1]  ;;  %v4199_v22 = vld [vmem:[%s4163_s29 + $0x18] sm:$0xf] }
  0x14   : > { %v285_v26 = vld [vmem:[%s4163_s29 + $0x1c] sm:$0x1]  ;;  %5748 = vst [vmem:[#allocation3_spill] sm:$0xff] %v4209_v27  ;;  %v1136_v28 = vshll.u32 %v281_v18, 16  ;;  %v4212_v29 = vld [vmem:[%s4163_s29 + $0x10] sm:$0xf] }
  0x15   : > { %981 = vrot.lane.b32.xlu1 %v4172_v7, %s4089_s30  ;;  %977 = vrot.lane.b32.xlu0 %v4181_v9, %s4089_s30  ;;  %v1132_v23 = vrot.slane %v1130_v17, 5  ;;  %v1129_v25 = vrot.slane %v306_v16, 4  ;;  %5749 = vst [vmem:[#allocation4_spill] sm:$0xff] %v4214_v30  ;;  %v1120_v31 = vrot.slane %v1118_v24, 5  ;;  %v1117_v33 = vrot.slane %v305_v20, 4  ;;  %s4100_s19 = smov 112  }
  0x16   : > { %v1124_v34 = vshll.u32 %v279_v21, 16  ;;  %v283_v35 = vld [vmem:[%s4163_s29 + $0x14] sm:$0x1]  ;;  %v1138_v37 = vrot.slane %v1136_v28, 5  ;;  %v312_v38 = vshrl.u32 %v4199_v22, 16  ;;  %v1154_v39 = vshll.u32 %v4199_v22, 16 }
  0x17   : > { %v1133_v32 = vor.u32 %v1132_v23, %v1129_v25  ;;  %v1160_v40 = vshll.u32 %v285_v26, 16  ;;  %v298_v41 = vld [vmem:[%s4163_s29 + $0x60] sm:$0xf]  ;;  %v1121_v43 = vor.u32 %v1120_v31, %v1117_v33  ;;  %v311_v45 = vshrl.u32 %v4212_v29, 16  ;;  %v299_v46 = vld [vmem:[%s4163_s29 + $0x68] sm:$0xf] }
  0x18   : > { %v1126_v44 = vrot.slane %v1124_v34, 5  ;;  %v1153_v47 = vrot.slane %v312_v38, 4  ;;  %v1156_v48 = vrot.slane %v1154_v39, 5  ;;  %v1142_v50 = vshll.u32 %v4212_v29, 16  ;;  %v300_v51 = vld [vmem:[%s4163_s29 + $0x70] sm:$0xf] }
  0x19   : > { %575 = vrot.lane.b32.xlu1 %v4186_v13, %s4089_s30  ;;  %573 = vrot.lane.b32.xlu0 %v4189_v14, %s4089_s30  ;;  %v1134_v42 = vrot.slane %v1133_v32, 4  ;;  %v1162_v49 = vrot.slane %v1160_v40, 5  ;;  %v1122_v53 = vrot.slane %v1121_v43, 4  ;;  %v1141_v54 = vrot.slane %v311_v45, 4  ;;  %v301_v59 = vld [vmem:[%s4163_s29 + $0x78] sm:$0xf] }
  0x1a   : > { %v1148_v55 = vshll.u32 %v283_v35, 16  ;;  %v1157_v57 = vor.u32 %v1156_v48, %v1153_v47  ;;  %v1144_v58 = vrot.slane %v1142_v50, 5  ;;  %v844_v60 = vshrl.u32 %v298_v41, 16  ;;  %v4248_v18 = vld [vmem:[%s4163_s29 + $0x20] sm:$0xf]  ;;  %s4101_s20 = smov 120  }
  0x1b   : > { %v1139_v52 = vsel %vm4221_vm2, %v1134_v42, %v1138_v37  ;;  %v1127_v61 = vsel %vm4221_vm2, %v1122_v53, %v1126_v44  ;;  %v845_v63 = vshrl.u32 %v299_v46, 16  ;;  %v850_v0 = vshrl.u32 %v300_v51, 16  ;;  %v4256_v26 = vld [vmem:[%s4163_s29 + $0x28] sm:$0xf]  ;;  %v4266_v34 = vld [vmem:[%s4163_s29 + $0x30] sm:$0xf] }
  0x1c   : > { %v1168_v56 = vshrl.u32 %v1139_v52, 16  ;;  %v1150_v62 = vrot.slane %v1148_v55, 5  ;;  %v1166_v1 = vpack.i.b16 %v1139_v52, %v1127_v61  ;;  %v1167_v2 = vshrl.u32 %v1127_v61, 16  ;;  %v4269_v35 = vld [vmem:[%s4163_s29 + $0x38] sm:$0xf]  ;;  %s4102_s21 = smov 96  }
  0x1d   : > { %1474 = vrot.lane.b32.xlu1 %v1139_v52, %s4089_s30  ;;  %1472 = vrot.lane.b32.xlu0 %v1127_v61, %s4089_s30  ;;  %v1158_v3 = vrot.slane %v1157_v57, 4  ;;  %v1145_v4 = vor.u32 %v1144_v58, %v1141_v54  ;;  %v846_v10 = vpack.i.b16 %v845_v63, %v844_v60  ;;  %v851_v11 = vshrl.u32 %v301_v59, 16  ;;  %v291_v63 = vld [vmem:[%s4163_s29 + $0x34] sm:$0x1]  ;;  %s4103_s22 = smov 104   ;;  %s4104_s23 = smov 80  }
  0x1e   : > { %v843_v15 = vpack.i.b16 %v299_v46, %v298_v41  ;;  %v849_v17 = vpack.i.b16 %v301_v59, %v300_v51  ;;  %v1169_v21 = vpack.i.b16 %v1168_v56, %v1167_v2  ;;  %v4251_v23 = vrot.slane %v1166_v1, %v4209_v27  ;;  %v287_v46 = vld [vmem:[%s4163_s29 + $0x24] sm:$0x1]  ;;  %s4105_s26 = smov 88   ;;  %s4106_s27 = smov 72  }
  0x1f   : > { %v1163_v24 = vsel %vm4221_vm2, %v1158_v3, %v1162_v49  ;;  %v1146_v25 = vrot.slane %v1145_v4, 4  ;;  %v852_v31 = vpack.i.b16 %v851_v11, %v850_v0  ;;  %v4260_v32 = vrot.slane %v846_v10, %v4209_v27  ;;  %v289_v49 = vld [vmem:[%s4163_s29 + $0x2c] sm:$0x1]  ;;  %v293_v3 = vld [vmem:[%s4163_s29 + $0x3c] sm:$0x1]  ;;  %s4107_s28 = smov 1  }
  0x20   : > { %v1174_v28 = vshrl.u32 %v1163_v24, 16  ;;  %v4263_v33 = vrot.slane %v843_v15, %v4209_v27  ;;  %v4272_v37 = vrot.slane %v1169_v21, %v4209_v27  ;;  %v4277_v40 = vrot.slane %v849_v17, %v4209_v27  ;;  %s4108_s29 = smov 126  }
  0x21   : > { %1478 = vrot.lane.b32.xlu1 %v1163_v24, %s4089_s30  ;;  %v1151_v39 = vsel %vm4221_vm2, %v1146_v25, %v1150_v62  ;;  %v442_v41 = vshrl.u32 %v4248_v18, 16  ;;  %v4282_v44 = vrot.slane %v852_v31, %v4209_v27  ;;  %v443_v47 = vshrl.u32 %v4256_v26, 16 }
  0x22   : > { %v1172_v42 = vpack.i.b16 %v1163_v24, %v1151_v39  ;;  %v1173_v43 = vshrl.u32 %v1151_v39, 16  ;;  %1476 = vrot.lane.b32.xlu0 %v1151_v39, %s4089_s30  ;;  %v869_v48 = vcombine.low %v4263_v33, %v4277_v40  ;;  %v448_v50 = vshrl.u32 %v4266_v34, 16 }
  0x23   : > { %v449_v51 = vshrl.u32 %v4269_v35, 16  ;;  %v1295_v52 = vrot.slane %v442_v41, 4  ;;  %v903_v55 = vcombine.low %v4260_v32, %v4282_v44  ;;  %v1296_v56 = vshll.u32 %v4248_v18, 16 }
  0x24   : > { %v1175_v53 = vpack.i.b16 %v1174_v28, %v1173_v43  ;;  %v4294_v54 = vrot.slane %v1172_v42, %v4209_v27  ;;  %v4302_v57 = vrot.slane %v869_v48, %v4214_v30  ;;  %v1302_v58 = vshll.u32 %v287_v46, 16 }
  0x25   : > { %579 = vrot.lane.b32.xlu1 %v4199_v22, %s4089_s30  ;;  %v1307_v59 = vrot.slane %v443_v47, 4  ;;  %v1308_v60 = vshll.u32 %v4256_v26, 16  ;;  %v4311_v62 = vrot.slane %v903_v55, %v4214_v30  ;;  %v1298_v0 = vrot.slane %v1296_v56, 5 }
  0x26   : > { %v4306_v61 = vrot.slane %v1175_v53, %v4209_v27  ;;  %577 = vrot.lane.b32.xlu0 %v4212_v29, %s4089_s30  ;;  %v1314_v1 = vshll.u32 %v289_v49, 16  ;;  %v3977_v2 = vcombine.high %v4302_v57, %v4302_v57  ;;  %v1304_v4 = vrot.slane %v1302_v58, 5 }
  0x27   : > { %v1310_v10 = vrot.slane %v1308_v60, 5  ;;  %v1319_v11 = vrot.slane %v448_v50, 4  ;;  %v3841_v15 = vcombine.low %v4311_v62, %v4311_v62  ;;  %v1299_v21 = vor.u32 %v1298_v0, %v1295_v52 }
  0x28   : > { %v1226_v17 = vcombine.low %v4272_v37, %v4306_v61  ;;  %v1316_v24 = vrot.slane %v1314_v1, 5  ;;  %v1320_v28 = vshll.u32 %v4266_v34, 16  ;;  %v1326_v31 = vshll.u32 %v291_v63, 16 }
  0x29   : > { %v1311_v25 = vor.u32 %v1310_v10, %v1307_v59  ;;  %v1331_v39 = vrot.slane %v449_v51, 4  ;;  %924 = vrot.lane.b32.xlu1 %v3841_v15, %s4090_s8  ;;  %v1300_v43 = vrot.slane %v1299_v21, 4  ;;  %v1332_v46 = vshll.u32 %v4269_v35, 16 }
  0x2a   : > { %929 = vrot.lane.b32.xlu0 %v3977_v2, %s4091_s9  ;;  %v4325_v42 = vrot.slane %v1226_v17, %v4214_v30  ;;  %v1338_v48 = vshll.u32 %v293_v3, 16  ;;  %v1322_v52 = vrot.slane %v1320_v28, 5  ;;  %v1192_v53 = vcombine.low %v4251_v23, %v4294_v54 }
  0x2b   : > { %v1312_v49 = vrot.slane %v1311_v25, 4  ;;  %v1305_v56 = vsel %vm4221_vm2, %v1300_v43, %v1304_v4  ;;  %v1328_v58 = vrot.slane %v1326_v31, 5  ;;  %v1334_v59 = vrot.slane %v1332_v46, 5 }
  0x2c   : > { %v3855_v55 = vcombine.low %v4325_v42, %v4325_v42  ;;  %v1323_v63 = vor.u32 %v1322_v52, %v1319_v11  ;;  %v1345_v0 = vshrl.u32 %v1305_v56, 16  ;;  %v4337_v1 = vrot.slane %v1192_v53, %v4214_v30 }
  0x2d   : > { %v1317_v60 = vsel %vm4221_vm2, %v1312_v49, %v1316_v24  ;;  %v1335_v2 = vor.u32 %v1334_v59, %v1331_v39  ;;  %v1340_v3 = vrot.slane %v1338_v48, 5  ;;  %v444_v21 = vpack.i.b16 %v443_v47, %v442_v41 }
  0x2e   : > { %1247 = vrot.lane.b32.xlu1 %v3855_v55, %s4090_s8  ;;  %v1346_v10 = vshrl.u32 %v1317_v60, 16  ;;  %v1324_v15 = vrot.slane %v1323_v63, 4  ;;  %v3985_v17 = vcombine.high %v4337_v1, %v4337_v1  ;;  %v1344_v4 = vpack.i.b16 %v1317_v60, %v1305_v56 }
  0x2f   : > { %v1336_v25 = vrot.slane %v1335_v2, 4  ;;  %v450_v11 = vpack.i.b16 %v449_v51, %v448_v50  ;;  %v4347_v31 = vrot.slane %v444_v21, %v4209_v27  ;;  %v441_v51 = vpack.i.b16 %v4256_v26, %v4248_v18 }
  0x30   : > { %v1347_v24 = vpack.i.b16 %v1346_v10, %v1345_v0  ;;  %v1329_v28 = vsel %vm4221_vm2, %v1324_v15, %v1328_v58  ;;  %v1361_v47 = vrot.slane %v1344_v4, %v4209_v27  ;;  %v447_v55 = vpack.i.b16 %v4269_v35, %v4266_v34 }
  0x31   : > { %v1341_v39 = vsel %vm4221_vm2, %v1336_v25, %v1340_v3  ;;  %v1351_v43 = vshrl.u32 %v1329_v28, 16  ;;  %v4353_v46 = vrot.slane %v450_v11, %v4209_v27  ;;  %v4370_v59 = vrot.slane %v441_v51, %v4209_v27 }
  0x32   : > { %1252 = vrot.lane.b32.xlu1 %v3985_v17, %s4091_s9  ;;  %v1352_v48 = vshrl.u32 %v1341_v39, 16  ;;  %v1350_v41 = vpack.i.b16 %v1341_v39, %v1329_v28  ;;  %v4357_v50 = vrot.slane %v1347_v24, %v4209_v27  ;;  %v4381_v63 = vrot.slane %v447_v55, %v4209_v27 }
  0x33   : > { %v501_v53 = vcombine.low %v4347_v31, %v4353_v46  ;;  %v4387_v34 = vrot.slane %v719_v8, %v4209_v27  ;;  %v4393_v35 = vrot.slane %v713_v12, %v4209_v27  ;;  %v720_v3 = vshrl.u32 %v4166_v5, 16 }
  0x34   : > { %v1353_v49 = vpack.i.b16 %v1352_v48, %v1351_v43  ;;  %v1369_v52 = vrot.slane %v1350_v41, %v4209_v27  ;;  %v714_v10 = vshrl.u32 %v4169_v6, 16  ;;  %v721_v15 = vshrl.u32 %v4172_v7, 16 }
  0x35   : > { %v4378_v26 = vrot.slane %v501_v53, %v4214_v30  ;;  %v715_v8 = vshrl.u32 %v4181_v9, 16  ;;  %v467_v4 = vcombine.low %v4370_v59, %v4381_v63  ;;  %v307_v5 = vpack.i.b16 %v306_v16, %v305_v20 }
  0x36   : > { %v4367_v56 = vrot.slane %v1353_v49, %v4209_v27  ;;  %v1370_v58 = vcombine.low %v1361_v47, %v1369_v52  ;;  %v1193_v6 = vcombine.high %v4251_v23, %v4294_v54  ;;  %v739_v7 = vcombine.low %v4393_v35, %v4387_v34 }
  0x37   : > { %v3820_v12 = vcombine.low %v4378_v26, %v4378_v26  ;;  %v4419_v9 = vrot.slane %v304_v19, %v4209_v27  ;;  %v3986_v21 = vcombine.high %v4325_v42, %v4325_v42  ;;  %v313_v16 = vpack.i.b16 %v312_v38, %v311_v45 }
  0x38   : > { %v1404_v60 = vcombine.low %v4357_v50, %v4367_v56  ;;  %v4375_v18 = vrot.slane %v1370_v58, %v4214_v30  ;;  %v310_v20 = vpack.i.b16 %v4199_v22, %v4212_v29  ;;  %v722_v23 = vpack.i.b16 %v721_v15, %v720_v3 }
  0x39   : > { %v716_v54 = vpack.i.b16 %v715_v8, %v714_v10  ;;  %v4432_v14 = vrot.slane %v467_v4, %v4214_v30  ;;  %v870_v19 = vcombine.high %v4263_v33, %v4277_v40  ;;  %v3978_v38 = vcombine.high %v4311_v62, %v4311_v62 }
  0x3a   : > { %v1412_v0 = vrot.slane %v1404_v60, %v4214_v30  ;;  %v3989_v2 = vcombine.high %v4375_v18, %v4375_v18  ;;  %v4437_v42 = vrot.slane %v310_v20, %v4209_v27  ;;  %v1207_v45 = vrot.slane %v1193_v6, %v4214_v30 }
  0x3b   : > { %v4443_v22 = vrot.slane %v307_v5, %v4209_v27  ;;  %v1371_v29 = vcombine.high %v1361_v47, %v1369_v52  ;;  %v4447_v25 = vrot.slane %v313_v16, %v4209_v27  ;;  %v4454_v62 = vrot.slane %v722_v23, %v4209_v27 }
  0x3c   : > { %v3862_v17 = vcombine.low %v1412_v0, %v1412_v0  ;;  %1430 = vrot.lane.b32.xlu1 %v3989_v2, %s4091_s9  ;;  %v3990_v13 = vcombine.high %v1412_v0, %v1412_v0  ;;  %v330_v33 = vcombine.low %v4419_v9, %v4437_v42  ;;  %v331_v40 = vcombine.high %v4419_v9, %v4437_v42 }
  0x3d   : > { %v740_v24 = vcombine.high %v4393_v35, %v4387_v34  ;;  %v4459_v11 = vrot.slane %v716_v54, %v4209_v27  ;;  %v3965_v28 = vcombine.high %v4432_v14, %v4432_v14  ;;  %v884_v39 = vrot.slane %v870_v19, %v4214_v30 }
  0x3e   : > { %1425 = vrot.lane.b32.xlu0 %v3862_v17, %s4090_s8  ;;  %v1227_v43 = vcombine.high %v4272_v37, %v4306_v61  ;;  %v3858_v48 = vcombine.low %v1207_v45, %v1207_v45  ;;  %v1385_v41 = vrot.slane %v1371_v29, %v4214_v30  ;;  %v364_v47 = vcombine.low %v4443_v22, %v4447_v25 }
  0x3f   : > { %v774_v51 = vcombine.high %v4459_v11, %v4454_v62  ;;  %v3844_v49 = vcombine.low %v884_v39, %v884_v39  ;;  %v904_v53 = vcombine.high %v4260_v32, %v4282_v44  ;;  %v773_v58 = vcombine.low %v4459_v11, %v4454_v62 }
  0x40   : > { %522 = vrot.lane.b32.xlu1 %v3820_v12, %s4090_s8  ;;  %v1241_v52 = vrot.slane %v1227_v43, %v4214_v30  ;;  %v3865_v37 = vcombine.low %v1385_v41, %v1385_v41  ;;  %v372_v61 = vrot.slane %v364_v47, %v4214_v30  ;;  %v3966_v2 = vcombine.high %v4378_v26, %v4378_v26 }
  0x41   : > { %v918_v0 = vrot.slane %v904_v53, %v4214_v30  ;;  %v781_v3 = vrot.slane %v773_v58, %v4214_v30  ;;  %v1405_v32 = vcombine.high %v4357_v50, %v4367_v56  ;;  %v468_v10 = vcombine.high %v4370_v59, %v4381_v63 }
  0x42   : > { %1257 = vrot.lane.b32.xlu0 %v3986_v21, %s4092_s10  ;;  %v3859_v55 = vcombine.low %v1241_v52, %v1241_v52  ;;  %v3813_v60 = vcombine.low %v372_v61, %v372_v61  ;;  %v3987_v17 = vcombine.high %v1207_v45, %v1207_v45  ;;  %v4499_v50 = vrot.slane %v330_v33, %v4214_v30 }
  0x43   : > { %v3845_v44 = vcombine.low %v918_v0, %v918_v0  ;;  %v3834_v15 = vcombine.low %v781_v3, %v781_v3  ;;  %v1419_v8 = vrot.slane %v1405_v32, %v4214_v30  ;;  %v482_v26 = vrot.slane %v468_v10, %v4214_v30 }
  0x44   : > { %1435 = vrot.lane.b32.xlu1 %v3990_v13, %s4092_s10  ;;  %v4506_v59 = vrot.slane %v739_v7, %v4214_v30  ;;  %v3961_v63 = vcombine.high %v4499_v50, %v4499_v50  ;;  %v3979_v5 = vcombine.high %v884_v39, %v884_v39  ;;  %v502_v6 = vcombine.high %v4347_v31, %v4353_v46 }
  0x45   : > { %v3866_v12 = vcombine.low %v1419_v8, %v1419_v8  ;;  %v3823_v56 = vcombine.low %v482_v26, %v482_v26  ;;  %v3988_v7 = vcombine.high %v1241_v52, %v1241_v52  ;;  %v3991_v21 = vcombine.high %v1385_v41, %v1385_v41 }
  0x46   : > { %934 = vrot.lane.b32.xlu0 %v3978_v38, %s4092_s10  ;;  %v3973_v4 = vcombine.high %v4506_v59, %v4506_v59  ;;  %v516_v16 = vrot.slane %v502_v6, %v4214_v30  ;;  %v3962_v20 = vcombine.high %v372_v61, %v372_v61  ;;  %v3980_v54 = vcombine.high %v918_v0, %v918_v0 }
  0x47   : > { %v4527_v31 = vrot.slane %v331_v40, %v4214_v30  ;;  %v365_v46 = vcombine.high %v4443_v22, %v4447_v25  ;;  %v3974_v13 = vcombine.high %v781_v3, %v781_v3  ;;  %v3992_v45 = vcombine.high %v1419_v8, %v1419_v8 }
  0x48   : > { %527 = vrot.lane.b32.xlu1 %v3965_v28, %s4091_s9  ;;  %v3824_v23 = vcombine.low %v516_v16, %v516_v16  ;;  %v3967_v42 = vcombine.high %v482_v26, %v482_v26  ;;  %v4547_v22 = vrot.slane %v740_v24, %v4214_v30  ;;  %v3968_v25 = vcombine.high %v516_v16, %v516_v16 }
  0x49   : > { %v3816_v19 = vcombine.low %v4527_v31, %v4527_v31  ;;  %v4536_v38 = vrot.slane %v365_v46, %v4214_v30  ;;  %vm436_vm10 = vcmask 457728   ;;  %vm1622_vm11 = vcmask 1041408  }
  0x4a   : > { %1262 = vrot.lane.b32.xlu0 %v3858_v48, %s4093_s11  ;;  %v3837_v29 = vcombine.low %v4547_v22, %v4547_v22  ;;  %vm1625_vm12 = vcmask 1043456   ;;  %vm1628_vm13 = vcmask 1045504   ;;  %vm1646_vm14 = vcmask 293888  }
  0x4b   : > { %v3817_v9 = vcombine.low %v4536_v38, %v4536_v38  ;;  %vm1695_vm15 = vcmask 73728   ;;  %vm1693_vm0 = vcmask 76800   ;;  %vm2019_vm1 = vcmask 65544  }
  0x4c   : > { %939 = vrot.lane.b32.xlu1 %v3844_v49, %s4093_s11 }
  0x4e   : > { %1440 = vrot.lane.b32.xlu0 %v3865_v37, %s4093_s11 }
  0x50   : > { %1267 = vrot.lane.b32.xlu1 %v3859_v55, %s4094_s12 }
  0x52   : > { %385 = vrot.lane.b32.xlu0 %v3813_v60, %s4090_s8 }
  0x54   : > { %532 = vrot.lane.b32.xlu1 %v3966_v2, %s4092_s10 }
  0x56   : > { %944 = vrot.lane.b32.xlu0 %v3845_v44, %s4094_s12 }
  0x58   : > { %794 = vrot.lane.b32.xlu1 %v3834_v15, %s4090_s8 }
  0x5a   : > { %1272 = vrot.lane.b32.xlu0 %v3987_v17, %s4095_s13 }
  0x5c   : > { %1445 = vrot.lane.b32.xlu1 %v3866_v12, %s4094_s12 }
  0x5e   : > { %537 = vrot.lane.b32.xlu0 %v3823_v56, %s4093_s11 }
  0x60   : > { %390 = vrot.lane.b32.xlu1 %v3961_v63, %s4091_s9 }
  0x62   : > { %799 = vrot.lane.b32.xlu0 %v3973_v4, %s4091_s9 }
  0x64   : > { %949 = vrot.lane.b32.xlu1 %v3979_v5, %s4095_s13 }
  0x66   : > { %1277 = vrot.lane.b32.xlu0 %v3988_v7, %s4096_s14 }
  0x68   : > { %1450 = vrot.lane.b32.xlu1 %v3991_v21, %s4095_s13 }
  0x6a   : > { %395 = vrot.lane.b32.xlu0 %v3962_v20, %s4092_s10 }
  0x6c   : > { %542 = vrot.lane.b32.xlu1 %v3824_v23, %s4094_s12 }
  0x6e   : > { %954 = vrot.lane.b32.xlu0 %v3980_v54, %s4096_s14 }
  0x70   : > { %804 = vrot.lane.b32.xlu1 %v3974_v13, %s4092_s10 }
  0x72   : > { %400 = vrot.lane.b32.xlu0 %v3816_v19, %s4093_s11 }
  0x74   : > { %1455 = vrot.lane.b32.xlu1 %v3992_v45, %s4096_s14 }
  0x76   : > { %405 = vrot.lane.b32.xlu0 %v3817_v9, %s4094_s12 }
  0x78   : > { %547 = vrot.lane.b32.xlu1 %v3967_v42, %s4095_s13 }
  0x7c   : > { %809 = vrot.lane.b32.xlu1 %v3837_v29, %s4093_s11 }
  0x80   : > { %552 = vrot.lane.b32.xlu1 %v3968_v25, %s4096_s14 }
  0x83   : > { %v980_v33 = vpop.permute.xlu1 %979  ;;  %v976_v40 = vpop.permute.xlu0 %975 }
  0x84   : > { %v992_v28 = vshrl.u32 %v980_v33, 16  ;;  %v986_v39 = vshrl.u32 %v976_v40, 16 }
  0x87   : > { %v982_v43 = vpop.permute.xlu1 %981  ;;  %v978_v34 = vpop.permute.xlu0 %977 }
  0x88   : > { %v991_v35 = vpack.i.b16 %v982_v43, %v980_v33  ;;  %v993_v24 = vshrl.u32 %v982_v43, 16  ;;  %v985_v48 = vpack.i.b16 %v978_v34, %v976_v40  ;;  %v987_v41 = vshrl.u32 %v978_v34, 16 }
  0x8a   : > { %v994_v47 = vpack.i.b16 %v993_v24, %v992_v28  ;;  %v1010_v49 = vrot.slane %v991_v35, %v4209_v27  ;;  %v988_v52 = vpack.i.b16 %v987_v41, %v986_v39  ;;  %v1002_v37 = vrot.slane %v985_v48, %v4209_v27 }
  0x8b   : > { %v576_v61 = vpop.permute.xlu1 %575  ;;  %v574_v53 = vpop.permute.xlu0 %573 }
  0x8c   : > { %v4558_v55 = vrot.slane %v994_v47, %v4209_v27  ;;  %v1011_v58 = vcombine.low %v1002_v37, %v1010_v49  ;;  %v1012_v60 = vcombine.high %v1002_v37, %v1010_v49  ;;  %v4561_v0 = vrot.slane %v988_v52, %v4209_v27 }
  0x8d   : > { %v585_v4 = vshrl.u32 %v576_v61, 16  ;;  %v584_v5 = vshrl.u32 %v574_v53, 16  ;;  %v583_v7 = vpack.i.b16 %v576_v61, %v574_v53 }
  0x8e   : > { %v4564_v2 = vrot.slane %v1011_v58, %v4214_v30  ;;  %v1026_v3 = vrot.slane %v1012_v60, %v4214_v30  ;;  %v1046_v32 = vcombine.high %v4561_v0, %v4558_v55 }
  0x8f   : > { %v1475_v44 = vpop.permute.xlu1 %1474  ;;  %v1473_v10 = vpop.permute.xlu0 %1472  ;;  %v586_v13 = vpack.i.b16 %v585_v4, %v584_v5  ;;  %v600_v25 = vrot.slane %v583_v7, %v4209_v27 }
  0x90   : > { %v3981_v15 = vcombine.high %v4564_v2, %v4564_v2  ;;  %v3851_v8 = vcombine.low %v1026_v3, %v1026_v3  ;;  %v1060_v17 = vrot.slane %v1046_v32, %v4214_v30  ;;  %v3983_v12 = vcombine.high %v1026_v3, %v1026_v3 }
  0x91   : > { %v1484_v45 = vshrl.u32 %v1475_v44, 16  ;;  %v1482_v9 = vpack.i.b16 %v1475_v44, %v1473_v10  ;;  %v1483_v42 = vshrl.u32 %v1473_v10, 16  ;;  %v634_v24 = vrot.slane %v586_v13, %v4209_v27 }
  0x92   : > { %1071 = vrot.lane.b32.xlu0 %v3981_v15, %s4091_s9  ;;  %1081 = vrot.lane.b32.xlu1 %v3851_v8, %s4093_s11  ;;  %v3852_v56 = vcombine.low %v1060_v17, %v1060_v17  ;;  %v3984_v21 = vcombine.high %v1060_v17, %v1060_v17  ;;  %v1045_v17 = vcombine.low %v4561_v0, %v4558_v55 }
  0x93   : > { %v1479_v26 = vpop.permute.xlu1 %1478  ;;  %v1485_v48 = vpack.i.b16 %v1484_v45, %v1483_v42  ;;  %v1499_v41 = vrot.slane %v1482_v9, %v4209_v27  ;;  %v788_v55 = vrot.slane %v774_v51, %v4214_v30  ;;  %v3964_v42 = vcombine.high %v4536_v38, %v4536_v38 }
  0x94   : > { %v1477_v63 = vpop.permute.xlu0 %1476  ;;  %v1490_v16 = vshrl.u32 %v1479_v26, 16  ;;  %v1053_v4 = vrot.slane %v1045_v17, %v4214_v30 }
  0x95   : > { %v1488_v20 = vpack.i.b16 %v1479_v26, %v1477_v63  ;;  %v1489_v23 = vshrl.u32 %v1477_v63, 16  ;;  %v1533_v60 = vrot.slane %v1485_v48, %v4209_v27 }
  0x96   : > { %1091 = vrot.lane.b32.xlu0 %v3983_v12, %s4095_s13  ;;  %1086 = vrot.lane.b32.xlu1 %v3852_v56, %s4094_s12 }
  0x97   : > { %v580_v6 = vpop.permute.xlu1 %579  ;;  %v1491_v40 = vpack.i.b16 %v1490_v16, %v1489_v23  ;;  %v1507_v28 = vrot.slane %v1488_v20, %v4209_v27  ;;  %v3982_v20 = vcombine.high %v1053_v4, %v1053_v4  ;;  %v3838_v23 = vcombine.low %v788_v55, %v788_v55 }
  0x98   : > { %v591_v54 = vshrl.u32 %v580_v6, 16  ;;  %v578_v46 = vpop.permute.xlu0 %577 }
  0x99   : > { %v589_v19 = vpack.i.b16 %v580_v6, %v578_v46  ;;  %v590_v29 = vshrl.u32 %v578_v46, 16  ;;  %v1509_v52 = vcombine.high %v1499_v41, %v1507_v28  ;;  %v4589_v37 = vrot.slane %v1491_v40, %v4209_v27 }
  0x9a   : > { %1096 = vrot.lane.b32.xlu1 %v3984_v21, %s4096_s14  ;;  %v3848_v6 = vcombine.low %v1053_v4, %v1053_v4  ;;  %v1508_v62 = vcombine.low %v1499_v41, %v1507_v28 }
  0x9b   : > { %v608_v33 = vrot.slane %v589_v19, %v4209_v27  ;;  %v592_v39 = vpack.i.b16 %v591_v54, %v590_v29  ;;  %v4580_v35 = vpop.permute.xlu1 %924  ;;  %v1523_v10 = vrot.slane %v1509_v52, %v4214_v30  ;;  %v1542_v15 = vcombine.low %v1533_v60, %v4589_v37 }
  0x9c   : > { %v4616_v0 = vpop.permute.xlu0 %929  ;;  %v4633_v9 = vrot.slane %v1508_v62, %v4214_v30  ;;  %v1543_v38 = vcombine.high %v1533_v60, %v4589_v37 }
  0x9d   : > { %v609_v43 = vcombine.low %v600_v25, %v608_v33  ;;  %v610_v34 = vcombine.high %v600_v25, %v608_v33  ;;  %v642_v47 = vrot.slane %v592_v39, %v4209_v27  ;;  %v3995_v26 = vcombine.high %v1523_v10, %v1523_v10 }
  0x9e   : > { %v1550_v12 = vrot.slane %v1542_v15, %v4214_v30  ;;  %v3993_v33 = vcombine.high %v4633_v9, %v4633_v9  ;;  %v3872_v39 = vcombine.low %v1523_v10, %v1523_v10  ;;  %v1557_v48 = vrot.slane %v1543_v38, %v4214_v30 }
  0x9f   : > { %v4586_v49 = vrot.slane %v609_v43, %v4214_v30  ;;  %v643_v61 = vcombine.low %v634_v24, %v642_v47  ;;  %v624_v58 = vrot.slane %v610_v34, %v4214_v30  ;;  %v644_v16 = vcombine.high %v634_v24, %v642_v47 }
  0xa0   : > { %v4596_v32 = vpop.permute.xlu1 %1247  ;;  %v3869_v5 = vcombine.low %v1550_v12, %v1550_v12  ;;  %v3994_v21 = vcombine.high %v1550_v12, %v1550_v12  ;;  %v5740_v43 = vmov 0.0   ;;  %v3963_v34 = vcombine.high %v4527_v31, %v4527_v31 }
  0xa1   : > { %v3969_v53 = vcombine.high %v4586_v49, %v4586_v49  ;;  %v651_v3 = vrot.slane %v643_v61, %v4214_v30  ;;  %v3830_v8 = vcombine.low %v624_v58, %v624_v58  ;;  %v3971_v63 = vcombine.high %v624_v58, %v624_v58  ;;  %4017 = vmatprep.subr.bf16.mxu0 %v5740_v43  ;;  %v1640_v58 = vld [vmem:[%s5732_s2] sm:$0xff] }
  0xa2   : > { %v658_v46 = vrot.slane %v644_v16, %v4214_v30  ;;  %4027 = vmatprep.subr.bf16.mxu1 %v5740_v43  ;;  %v3873_v47 = vcombine.low %v1557_v48, %v1557_v48  ;;  %v3996_v61 = vcombine.high %v1557_v48, %v1557_v48  ;;  %v3975_v31 = vcombine.high %v4547_v22, %v4547_v22 }
  0xa3   : > { %669 = vrot.lane.b32.xlu0 %v3969_v53, %s4091_s9  ;;  %v3970_v44 = vcombine.high %v651_v3, %v651_v3  ;;  %v3827_v51 = vcombine.low %v651_v3, %v651_v3  ;;  %4023 = vmatprep.mubr.msk.bf16.mxu0 %vm4098_vm3, %v5740_v43  ;;  %v3976_v3 = vcombine.high %v788_v55, %v788_v55 }
  0xa4   : > { %v4606_v56 = vpop.permute.xlu1 %1252  ;;  %v3972_v19 = vcombine.high %v658_v46, %v658_v46  ;;  %v3831_v45 = vcombine.low %v658_v46, %v658_v46  ;;  %4037 = vmatprep.mubr.msk.bf16.mxu1 %vm4098_vm3, %v5740_v43  ;;  %v1281_v43 = vsel %vm417_vm4, %v4337_v1, %v4596_v32 }
  0xa5   : > { %674 = vrot.lane.b32.xlu1 %v3970_v44, %s4092_s10  ;;  %v5738_v44 = vmov 0  }
  0xa6   : > { %4077 = vset.pattern.permute.xlu1 %v5738_v44  ;;  %4078 = vset.pattern.permute.xlu0 %v5738_v44 }
  0xa7   : > { %679 = vrot.lane.b32.xlu0 %v3830_v8, %s4093_s11 }
  0xa9   : > { %1588 = vrot.lane.b32.xlu1 %v3995_v26, %s4095_s13 }
  0xab   : > { %689 = vrot.lane.b32.xlu0 %v3971_v63, %s4095_s13 }
  0xad   : > { %1563 = vrot.lane.b32.xlu1 %v3869_v5, %s4090_s8 }
  0xae   : > { %v4618_v7 = vpop.permute.xlu1 %1430 }
  0xaf   : > { %1066 = vrot.lane.b32.xlu0 %v3848_v6, %s4090_s8 }
  0xb0   : > { %v4626_v11 = vpop.permute.xlu0 %1425 }
  0xb1   : > { %1573 = vrot.lane.b32.xlu1 %v3994_v21, %s4092_s10 }
  0xb2   : > { %v4622_v54 = vpop.permute.xlu1 %522 }
  0xb3   : > { %1076 = vrot.lane.b32.xlu0 %v3982_v20, %s4092_s10 }
  0xb4   : > { %v4638_v29 = vpop.permute.xlu0 %1257 }
  0xb5   : > { %814 = vrot.lane.b32.xlu1 %v3838_v23, %s4094_s12 }
  0xb6   : > { %v4629_v13 = vpop.permute.xlu1 %1435 }
  0xb7   : > { %664 = vrot.lane.b32.xlu0 %v3827_v51, %s4090_s8 }
  0xb8   : > { %v4649_v28 = vpop.permute.xlu0 %934 }
  0xb9   : > { %694 = vrot.lane.b32.xlu1 %v3972_v19, %s4096_s14 }
  0xba   : > { %v4640_v25 = vpop.permute.xlu1 %527 }
  0xbb   : > { %684 = vrot.lane.b32.xlu0 %v3831_v45, %s4094_s12 }
  0xbc   : > { %v4660_v41 = vpop.permute.xlu0 %1262 }
  0xbd   : > { %415 = vrot.lane.b32.xlu1 %v3964_v42, %s4096_s14 }
  0xbe   : > { %v4646_v40 = vpop.permute.xlu1 %939 }
  0xbf   : > { %1568 = vrot.lane.b32.xlu0 %v3993_v33, %s4091_s9 }
  0xc0   : > { %v4666_v37 = vpop.permute.xlu0 %1440 }
  0xc1   : > { %1643 = vperm.xlu1 %4077, %v1640_v58  }
  0xc2   : > { %v4657_v24 = vpop.permute.xlu1 %1267 }
  0xc3   : > { %1578 = vrot.lane.b32.xlu0 %v3872_v39, %s4093_s11 }
  0xc4   : > { %v4680_v60 = vpop.permute.xlu0 %385 }
  0xc6   : > { %v4663_v52 = vpop.permute.xlu1 %532 }
  0xc7   : > { %410 = vrot.lane.b32.xlu0 %v3963_v34, %s4095_s13 }
  0xc8   : > { %v4688_v10 = vpop.permute.xlu0 %944 }
  0xca   : > { %v4675_v53 = vpop.permute.xlu1 %794 }
  0xcb   : > { %1583 = vrot.lane.b32.xlu0 %v3873_v47, %s4094_s12 }
  0xcc   : > { %v4692_v8 = vpop.permute.xlu0 %1272 }
  0xce   : > { %v4685_v22 = vpop.permute.xlu1 %1445 }
  0xcf   : > { %1593 = vrot.lane.b32.xlu0 %v3996_v61, %s4096_s14 }
  0xd0   : > { %v4696_v26 = vpop.permute.xlu0 %537 }
  0xd2   : > { %v4690_v15 = vpop.permute.xlu1 %390 }
  0xd3   : > { %819 = vrot.lane.b32.xlu0 %v3975_v31, %s4095_s13 }
  0xd4   : > { %v4700_v63 = vpop.permute.xlu0 %799 }
  0xd6   : > { %v4694_v17 = vpop.permute.xlu1 %949 }
  0xd7   : > { %824 = vrot.lane.b32.xlu0 %v3976_v3, %s4096_s14 }
  0xd8   : > { %v4704_v5 = vpop.permute.xlu0 %1277 }
  0xda   : > { %v4698_v12 = vpop.permute.xlu1 %1450 }
  0xdc   : > { %v4708_v55 = vpop.permute.xlu0 %395 }
  0xde   : > { %v4702_v4 = vpop.permute.xlu1 %542 }
  0xe0   : > { %v4712_v16 = vpop.permute.xlu0 %954 }
  0xe2   : > { %v4706_v6 = vpop.permute.xlu1 %804 }
  0xe4   : > { %v4716_v23 = vpop.permute.xlu0 %400 }
  0xe6   : > { %v4710_v21 = vpop.permute.xlu1 %1455 }
  0xe8   : > { %v4720_v62 = vpop.permute.xlu0 %405 }
  0xea   : > { %v4714_v20 = vpop.permute.xlu1 %547 }
  0xee   : > { %v4718_v46 = vpop.permute.xlu1 %809 }
  0xef   : > { %5753 = vst [vmem:[#allocation6_spill] sm:$0xff] %v4718_v46  ;;  %v958_v46 = vsel %vm417_vm4, %v4302_v57, %v4580_v35  ;;  %v556_v35 = vsel %vm417_vm4, %v4432_v14, %v4622_v54 }
  0xf0   : > { %v558_v14 = vsel %vm421_vm5, %v556_v35, %v4640_v25 }
  0xf2   : > { %v4722_v19 = vpop.permute.xlu1 %552 }
  0xf3   : > { %5754 = vst [vmem:[#allocation7_spill] sm:$0xff] %v4722_v19  ;;  %v1283_v19 = vsel %vm421_vm5, %v1281_v43, %v4606_v56 }
 0x104   : > { %v1072_v51 = vpop.permute.xlu0 %1071  ;;  %v1082_v45 = vpop.permute.xlu1 %1081 }
 0x108   : > { %v1092_v42 = vpop.permute.xlu0 %1091  ;;  %v1087_v39 = vpop.permute.xlu1 %1086 }
 0x10c   : > { %v1097_v34 = vpop.permute.xlu1 %1096 }
 0x115   : > { %v670_v33 = vpop.permute.xlu0 %669 }
 0x117   : > { %v675_v47 = vpop.permute.xlu1 %674 }
 0x119   : > { %v4724_v38 = vpop.permute.xlu0 %679 }
 0x11b   : > { %v4728_v58 = vpop.permute.xlu1 %1588 }
 0x11d   : > { %v4726_v48 = vpop.permute.xlu0 %689 }
 0x11e   : > { %5755 = vst [vmem:[#allocation8_spill] sm:$0xff] %v4726_v48 }
 0x11f   : > { %v1564_v36 = vpop.permute.xlu1 %1563 }
 0x120   : > { %v1597_v43 = vsel %vm417_vm4, %v4633_v9, %v1564_v36 }
 0x121   : > { %v1067_v61 = vpop.permute.xlu0 %1066 }
 0x122   : > { %v1100_v44 = vsel %vm417_vm4, %v4564_v2, %v1067_v61  ;;  %v960_v2 = vsel %vm421_vm5, %v958_v46, %v4616_v0 }
 0x123   : > { %v1102_v30 = vsel %vm421_vm5, %v1100_v44, %v1072_v51  ;;  %v1459_v44 = vsel %vm417_vm4, %v4375_v18, %v4626_v11  ;;  %v1285_v51 = vsel %vm424_vm6, %v1283_v19, %v4638_v29  ;;  %v1574_v57 = vpop.permute.xlu1 %1573 }
 0x124   : > { %v1461_v0 = vsel %vm421_vm5, %v1459_v44, %v4618_v7  ;;  %v1287_v29 = vsel %vm427_vm7, %v1285_v51, %v4660_v41 }
 0x125   : > { %v1077_v31 = vpop.permute.xlu0 %1076  ;;  %v5757_v44 = vld [vmem:[#allocation8_spill] sm:$0xff] }
 0x126   : > { %v1104_v48 = vsel %vm424_vm6, %v1102_v30, %v1077_v31  ;;  %v962_v30 = vsel %vm424_vm6, %v960_v2, %v4649_v28  ;;  %v420_v28 = vsel %vm417_vm4, %v4499_v50, %v4680_v60  ;;  %v1289_v50 = vsel %vm430_vm8, %v1287_v29, %v4657_v24 }
 0x127   : > { %v1106_v1 = vsel %vm427_vm7, %v1104_v48, %v1082_v45  ;;  %v964_v54 = vsel %vm427_vm7, %v962_v30, %v4646_v40  ;;  %v423_v25 = vsel %vm421_vm5, %v420_v28, %v4690_v15  ;;  %v815_v60 = vpop.permute.xlu1 %814  ;;  %v1291_v15 = vsel %vm433_vm9, %v1289_v50, %v4692_v8 }
 0x128   : > { %v1108_v56 = vsel %vm430_vm8, %v1106_v1, %v1087_v39  ;;  %v966_v19 = vsel %vm430_vm8, %v964_v54, %v4688_v10  ;;  %v828_v45 = vsel %vm417_vm4, %v4506_v59, %v4675_v53  ;;  %v426_v10 = vsel %vm424_vm6, %v423_v25, %v4708_v55  ;;  %v1639_v25 = vld [vmem:[%s5731_s1] sm:$0xf] }
 0x129   : > { %v665_v3 = vpop.permute.xlu0 %664  ;;  %v1110_v7 = vsel %vm433_vm9, %v1108_v56, %v1092_v42  ;;  %v1293_v55 = vsel %vm436_vm10, %v1291_v15, %v4704_v5  ;;  %v830_v48 = vsel %vm421_vm5, %v828_v45, %v4700_v63  ;;  %v5758_v30 = vmov 0.0   ;;  %v5759_v56 = vld [vmem:[#allocation6_spill] sm:$0xff] }
 0x12a   : > { %v698_v18 = vsel %vm417_vm4, %v4586_v49, %v665_v3  ;;  %v1463_v49 = vsel %vm424_vm6, %v1461_v0, %v4629_v13  ;;  %v560_v13 = vsel %vm424_vm6, %v558_v14, %v4663_v52  ;;  %v1112_v36 = vsel %vm436_vm10, %v1110_v7, %v1097_v34 }
 0x12b   : > { %v700_v41 = vsel %vm421_vm5, %v698_v18, %v670_v33  ;;  %v1465_v9 = vsel %vm427_vm7, %v1463_v49, %v4666_v37  ;;  %v562_v52 = vsel %vm427_vm7, %v560_v13, %v4696_v26  ;;  %v968_v37 = vsel %vm433_vm9, %v966_v19, %v4694_v17  ;;  %v695_v17 = vpop.permute.xlu1 %694 }
 0x12c   : > { %v702_v24 = vsel %vm424_vm6, %v700_v41, %v675_v47  ;;  %v1617_v34 = vrot.slane %v1112_v36, 6  ;;  %v1467_v8 = vsel %vm430_vm8, %v1465_v9, %v4685_v22  ;;  %v429_v26 = vsel %vm427_vm7, %v426_v10, %v4716_v23 }
 0x12d   : > { %v685_v27 = vpop.permute.xlu0 %684  ;;  %v704_v59 = vsel %vm427_vm7, %v702_v24, %v4724_v38  ;;  %v970_v47 = vsel %vm436_vm10, %v968_v37, %v4712_v16  ;;  %v564_v22 = vsel %vm430_vm8, %v562_v52, %v4702_v4  ;;  %v1469_v38 = vsel %vm433_vm9, %v1467_v8, %v4698_v12  ;;  %v5761_v8 = vld [vmem:[#allocation3_spill] sm:$0xff] }
 0x12e   : > { %v706_v5 = vsel %vm430_vm8, %v704_v59, %v685_v27  ;;  %v1633_v31 = vsel %vm1622_vm11, %v970_v47, %v1617_v34  ;;  %v1619_v3 = vrot.slane %v1293_v55, 4  ;;  %v1471_v63 = vsel %vm436_vm10, %v1469_v38, %v4710_v21 }
 0x12f   : > { %v432_v16 = vsel %vm430_vm8, %v429_v26, %v4720_v62  ;;  %v566_v12 = vsel %vm433_vm9, %v564_v22, %v4714_v20  ;;  %v416_v2 = vpop.permute.xlu1 %415  ;;  %v708_v62 = vsel %vm433_vm9, %v706_v5, %v5757_v44  ;;  %v5760_v15 = vmov 0  }
 0x130   : > { %v1635_v51 = vsel %vm1625_vm12, %v1633_v31, %v1619_v3  ;;  %1696 = vst.msk [vmem:[#allocation2 + $0x4] sm:$0x1] %vm1695_vm15, %v5760_v15  ;;  %1698 = vst.msk [vmem:[#allocation2 + $0xc] sm:$0x1] %vm1695_vm15, %v5760_v15 }
 0x131   : > { %v1569_v32 = vpop.permute.xlu0 %1568  ;;  %1700 = vst.msk [vmem:[#allocation2 + $0x14] sm:$0x1] %vm1695_vm15, %v5760_v15  ;;  %1702 = vst.msk [vmem:[#allocation2 + $0x1c] sm:$0x1] %vm1695_vm15, %v5760_v15 }
 0x132   : > { %v1599_v40 = vsel %vm421_vm5, %v1597_v43, %v1569_v32  ;;  %v5756_v32 = vld [vmem:[#allocation7_spill] sm:$0xff]  ;;  %1704 = vst.msk [vmem:[#allocation2 + $0x24] sm:$0x1] %vm1695_vm15, %v5760_v15  ;;  %1706 = vst.msk [vmem:[#allocation2 + $0x2c] sm:$0x1] %vm1695_vm15, %v5760_v15 }
 0x133   : > { %v1601_v42 = vsel %vm424_vm6, %v1599_v40, %v1574_v57  ;;  %v568_v21 = vsel %vm436_vm10, %v566_v12, %v5756_v32  ;;  %v1621_v57 = vrot.slane %v1471_v63, 2  ;;  %1708 = vst.msk [vmem:[#allocation2 + $0x34] sm:$0x1] %vm1695_vm15, %v5760_v15  ;;  %1710 = vst.msk [vmem:[#allocation2 + $0x3c] sm:$0x1] %vm1695_vm15, %v5760_v15 }
 0x134   : > { %v1611_v18 = vrot.slane %v568_v21, 6  ;;  %1694 = vst.msk [vmem:[#allocation2] sm:$0xf] %vm1693_vm0, %v5760_v15  ;;  %1697 = vst.msk [vmem:[#allocation2 + $0x8] sm:$0xf] %vm1693_vm0, %v5760_v15 }
 0x135   : > { %v1579_v11 = vpop.permute.xlu0 %1578  ;;  %1699 = vst.msk [vmem:[#allocation2 + $0x10] sm:$0xf] %vm1693_vm0, %v5760_v15  ;;  %1701 = vst.msk [vmem:[#allocation2 + $0x18] sm:$0xf] %vm1693_vm0, %v5760_v15 }
 0x136   : > { %v1603_v33 = vsel %vm427_vm7, %v1601_v42, %v1579_v11  ;;  %v1637_v11 = vsel %vm1628_vm13, %v1635_v51, %v1621_v57  ;;  %1703 = vst.msk [vmem:[#allocation2 + $0x20] sm:$0xf] %vm1693_vm0, %v5760_v15  ;;  %1705 = vst.msk [vmem:[#allocation2 + $0x28] sm:$0xf] %vm1693_vm0, %v5760_v15 }
 0x137   : > { %1707 = vst.msk [vmem:[#allocation2 + $0x30] sm:$0xf] %vm1693_vm0, %v5760_v15  ;;  %1709 = vst.msk [vmem:[#allocation2 + $0x38] sm:$0xf] %vm1693_vm0, %v5760_v15  ;;  %vm3125_vm0 = vcmask 1042432  }
 0x139   : > { %v411_v46 = vpop.permute.xlu0 %410 }
 0x13a   : > { %v435_v27 = vsel %vm433_vm9, %v432_v16, %v411_v46 }
 0x13b   : > { %v438_v35 = vsel %vm436_vm10, %v435_v27, %v416_v2  ;;  %v5762_v27 = vld [vmem:[#allocation4_spill] sm:$0xff] }
 0x13c   : > { %v1624_v28 = vsel %vm1622_vm11, %v438_v35, %v1611_v18  ;;  %v1644_v40 = vpop.permute.xlu1 %1643 }
 0x13d   : > { %v1584_v39 = vpop.permute.xlu0 %1583 }
 0x13e   : > { %v1605_v53 = vsel %vm430_vm8, %v1603_v33, %v1584_v39 }
 0x13f   : > { %v1607_v23 = vsel %vm433_vm9, %v1605_v53, %v4728_v58  ;;  %v832_v58 = vsel %vm424_vm6, %v830_v48, %v4706_v6  ;;  %v710_v6 = vsel %vm436_vm10, %v708_v62, %v695_v17 }
 0x140   : > { %v834_v0 = vsel %vm427_vm7, %v832_v58, %v5759_v56  ;;  %v1613_v7 = vrot.slane %v710_v6, 4 }
 0x141   : > { %v1594_v61 = vpop.permute.xlu0 %1593  ;;  %v836_v29 = vsel %vm430_vm8, %v834_v0, %v815_v60  ;;  %v3705_v60 = vsel %vm1622_vm11, %v970_v47, 0 }
 0x142   : > { %v1609_v4 = vsel %vm436_vm10, %v1607_v23, %v1594_v61  ;;  %v1627_v41 = vsel %vm1625_vm12, %v1624_v28, %v1613_v7 }
 0x143   : > { %v1650_v1 = vsel %vm1622_vm11, %v1609_v4, 0  ;;  %vm2013_vm11 = vcmask 68616  }
 0x144   : > { %4018 = vmatpush3.bf16.msra.mxu0 %v1650_v1 }
 0x145   : > { %v820_v20 = vpop.permute.xlu0 %819  ;;  %4019 = vmatprep.subr.bf16.mxu0 %v5758_v30 }
 0x146   : > { %v838_v14 = vsel %vm433_vm9, %v836_v29, %v820_v20 }
 0x148   : > { %4020 = vmatpush3.bf16.msra.mxu0 %v1637_v11 }
 0x149   : > { %v825_v54 = vpop.permute.xlu0 %824  ;;  %4021 = vmatprep.subr.bf16.mxu0 %v5758_v30 }
 0x14a   : > { %v840_v49 = vsel %vm436_vm10, %v838_v14, %v825_v54 }
 0x14b   : > { %v1615_v43 = vrot.slane %v840_v49, 2 }
 0x14d   : > { %v1630_v50 = vsel %vm1628_vm13, %v1627_v41, %v1615_v43  ;;  %vm2014_vm13 = vsmask.f32 7938 }
 0x14e   : > { %4022 = vmatpush3.bf16.msra.mxu0 %v1630_v50  ;;  %vm4910_vm15 = vmand %vm2013_vm11, %vm2014_vm13 }
 0x14f   : > { %4041 = vmatprep.subr.bf16.mxu0 %v5758_v30 }
 0x151   : > { %4024 = vmatmul.mubr.msk.bf16.vlgmr.msra.gmra.mxu0 %vm1646_vm14, %v1639_v25 }
 0x152   : > { %4042 = vmatpush3.bf16.msra.mxu0 %v3705_v60  ;;  %4043 = vmatprep.mubr.msk.bf16.mxu0 %vm4098_vm3, %v5758_v30  ;;  %vm2020_vm3 = vsmask.f32 256 }
 0x153   : > { %vm4906_vm14 = vmand %vm2019_vm1, %vm2020_vm3  ;;  %vm3126_vm1 = vcmask 1046532  }
 0x154   : > { %vm4955_vm3 = vmor %vm3125_vm0, %vm3126_vm1 }
 0x211   : > { %v1686_v46 = vpop.f32.mrf.mxu0 }
 0x212   : > { %v1687_v19 = vadd.f32 %v1686_v46, %v1644_v40 }
 0x213   : > { %v4025_v13 = vpop.f32.mrf.mxu0 }
 0x214   : > { %v1692_v36 = vmax.f32 %v1687_v19, 0.0 }
 0x215   : > { %v1689_v9 = vpop.f32.mrf.mxu0 }
 0x216   : > { %1715 = vrot.lane.b32.xlu1 %v1692_v36, %s4100_s19  ;;  %1712 = vrot.lane.b32.xlu0 %v1692_v36, %s4101_s20 }
 0x217   : > { %v4026_v24 = vpop.f32.mrf.mxu0 }
 0x21a   : > { %1721 = vrot.lane.b32.xlu1 %v1692_v36, %s4102_s21  ;;  %1718 = vrot.lane.b32.xlu0 %v1692_v36, %s4103_s22 }
 0x21e   : > { %1727 = vrot.lane.b32.xlu1 %v1692_v36, %s4104_s23  ;;  %1724 = vrot.lane.b32.xlu0 %v1692_v36, %s4105_s26 }
 0x222   : > { %1730 = vrot.lane.b32.xlu0 %v1692_v36, %s4106_s27 }
 0x288   : > { %v1716_v45 = vpop.permute.xlu1 %1715  ;;  %v1713_v10 = vpop.permute.xlu0 %1712 }
 0x289   : > { %v1733_v34 = vcombine.low %v1692_v36, %v1716_v45  ;;  %v1734_v31 = vcombine.high %v1692_v36, %v1716_v45 }
 0x28b   : > { %v1741_v26 = vrot.slane %v1733_v34, %v5761_v8  ;;  %v1748_v21 = vrot.slane %v1734_v31, %v5761_v8 }
 0x28c   : > { %v1722_v42 = vpop.permute.xlu1 %1721  ;;  %v1719_v52 = vpop.permute.xlu0 %1718 }
 0x28d   : > { %v1749_v37 = vcombine.low %v1713_v10, %v1719_v52  ;;  %v1750_v47 = vcombine.high %v1713_v10, %v1719_v52 }
 0x28f   : > { %v1757_v59 = vrot.slane %v1749_v37, %v5761_v8  ;;  %v1764_v4 = vrot.slane %v1750_v47, %v5761_v8 }
 0x290   : > { %v1728_v33 = vpop.permute.xlu1 %1727  ;;  %v1725_v39 = vpop.permute.xlu0 %1724 }
 0x291   : > { %v1765_v53 = vcombine.low %v1722_v42, %v1728_v33  ;;  %v1766_v22 = vcombine.high %v1722_v42, %v1728_v33  ;;  %v1797_v38 = vcombine.low %v1741_v26, %v1757_v59  ;;  %v1798_v5 = vcombine.high %v1741_v26, %v1757_v59 }
 0x292   : > { %v1813_v20 = vcombine.low %v1748_v21, %v1764_v4  ;;  %v1814_v40 = vcombine.high %v1748_v21, %v1764_v4 }
 0x293   : > { %v1773_v61 = vrot.slane %v1765_v53, %v5761_v8  ;;  %v1780_v12 = vrot.slane %v1766_v22, %v5761_v8  ;;  %v1805_v2 = vrot.slane %v1797_v38, %v5762_v27  ;;  %v1812_v1 = vrot.slane %v1798_v5, %v5762_v27 }
 0x294   : > { %v1731_v55 = vpop.permute.xlu0 %1730  ;;  %v1821_v28 = vrot.slane %v1813_v20, %v5762_v27  ;;  %v1828_v42 = vrot.slane %v1814_v40, %v5762_v27 }
 0x295   : > { %v1781_v17 = vcombine.low %v1725_v39, %v1731_v55  ;;  %v1782_v48 = vcombine.high %v1725_v39, %v1731_v55 }
 0x297   : > { %v1789_v23 = vrot.slane %v1781_v17, %v5761_v8  ;;  %v1796_v3 = vrot.slane %v1782_v48, %v5761_v8 }
 0x299   : > { %v1829_v63 = vcombine.low %v1773_v61, %v1789_v23  ;;  %v1830_v16 = vcombine.high %v1773_v61, %v1789_v23  ;;  %v1845_v44 = vcombine.low %v1780_v12, %v1796_v3  ;;  %v1846_v7 = vcombine.high %v1780_v12, %v1796_v3 }
 0x29b   : > { %v1837_v58 = vrot.slane %v1829_v63, %v5762_v27  ;;  %v1844_v32 = vrot.slane %v1830_v16, %v5762_v27  ;;  %v1853_v0 = vrot.slane %v1845_v44, %v5762_v27  ;;  %v1860_v19 = vrot.slane %v1846_v7, %v5762_v27 }
 0x29d   : > { %v1861_v62 = vcombine.low %v1805_v2, %v1837_v58  ;;  %v1862_v51 = vcombine.high %v1805_v2, %v1837_v58  ;;  %v1863_v57 = vcombine.low %v1812_v1, %v1844_v32  ;;  %v1864_v18 = vcombine.high %v1812_v1, %v1844_v32 }
 0x29e   : > { %v1865_v43 = vcombine.low %v1821_v28, %v1853_v0  ;;  %v1866_v36 = vcombine.high %v1821_v28, %v1853_v0  ;;  %v1867_v33 = vcombine.low %v1828_v42, %v1860_v19  ;;  %v1868_v26 = vcombine.high %v1828_v42, %v1860_v19  ;;  %v2016_v0 = vld [vmem:[#allocation2] sm:$0xf]  ;;  %v2028_v28 = vld [vmem:[#allocation2 + $0xc] sm:$0x1] }
 0x29f   : > { %v3997_v35 = vpack.c.bf16 %v1861_v62, %v1861_v62  ;;  %v3998_v56 = vpack.c.bf16 %v1862_v51, %v1862_v51  ;;  %v3999_v29 = vpack.c.bf16 %v1863_v57, %v1863_v57  ;;  %v4000_v49 = vpack.c.bf16 %v1864_v18, %v1864_v18 }
 0x2a0   : > { %v4001_v13 = vpack.c.bf16 %v1865_v43, %v1865_v43  ;;  %v4002_v37 = vpack.c.bf16 %v1866_v36, %v1866_v36  ;;  %v4003_v17 = vpack.c.bf16 %v1867_v33, %v1867_v33  ;;  %v4004_v61 = vpack.c.bf16 %v1868_v26, %v1868_v26  ;;  %v2037_v36 = vld [vmem:[#allocation2 + $0x18] sm:$0xf]  ;;  %v2046_v33 = vld [vmem:[#allocation2 + $0x24] sm:$0x1] }
 0x2a1   : > { %v1902_v6 = vshrl.u32 %v3997_v35, 16  ;;  %v1910_v11 = vshrl.u32 %v3998_v56, 16  ;;  %v1905_v54 = vshll.u32 %v3997_v35, 16  ;;  %v1918_v60 = vshrl.u32 %v3999_v29, 16  ;;  %v2022_v35 = vld [vmem:[#allocation2 + $0x4] sm:$0x1] }
 0x2a2   : > { %v1913_v46 = vshll.u32 %v3998_v56, 16  ;;  %v1926_v10 = vshrl.u32 %v4000_v49, 16  ;;  %v1921_v52 = vshll.u32 %v3999_v29, 16  ;;  %v1934_v53 = vshrl.u32 %v4001_v13, 16 }
 0x2a3   : > { %v1904_v14 = vrot.slane %v1902_v6, 7  ;;  %v1912_v25 = vrot.slane %v1910_v11, 7  ;;  %v1920_v45 = vrot.slane %v1918_v60, 7  ;;  %v1929_v55 = vshll.u32 %v4000_v49, 16 }
 0x2a4   : > { %v1928_v59 = vrot.slane %v1926_v10, 7  ;;  %v1936_v22 = vrot.slane %v1934_v53, 7  ;;  %v1942_v38 = vshrl.u32 %v4002_v37, 16  ;;  %v1937_v5 = vshll.u32 %v4001_v13, 16  ;;  %v2040_v13 = vld [vmem:[#allocation2 + $0x1c] sm:$0x1] }
 0x2a5   : > { %v1908_v41 = vrot.slane %v1904_v14, 4  ;;  %v1907_v50 = vor.u32 %v1905_v54, %v1904_v14  ;;  %v1916_v9 = vrot.slane %v1912_v25, 4  ;;  %v1915_v24 = vor.u32 %v1913_v46, %v1912_v25  ;;  %v2025_v14 = vld [vmem:[#allocation2 + $0x8] sm:$0xf] }
 0x2a6   : > { %v1924_v39 = vrot.slane %v1920_v45, 4  ;;  %v1923_v34 = vor.u32 %v1921_v52, %v1920_v45  ;;  %v1932_v48 = vrot.slane %v1928_v59, 4  ;;  %v1931_v47 = vor.u32 %v1929_v55, %v1928_v59 }
 0x2a7   : > { %1967 = vrot.lane.b32.xlu0 %v1908_v41, %s4107_s28  ;;  %1965 = vrot.lane.b32.xlu1 %v1907_v50, %s4107_s28  ;;  %v1940_v23 = vrot.slane %v1936_v22, 4  ;;  %v1939_v31 = vor.u32 %v1937_v5, %v1936_v22  ;;  %v1944_v3 = vrot.slane %v1942_v38, 7  ;;  %v1950_v63 = vshrl.u32 %v4003_v17, 16  ;;  %v2034_v41 = vld [vmem:[#allocation2 + $0x14] sm:$0x1] }
 0x2a8   : > { %v1945_v16 = vshll.u32 %v4002_v37, 16  ;;  %v1958_v1 = vshrl.u32 %v4004_v61, 16  ;;  %v1953_v58 = vshll.u32 %v4003_v17, 16  ;;  %v1961_v62 = vshll.u32 %v4004_v61, 16  ;;  %v2031_v50 = vld [vmem:[#allocation2 + $0x10] sm:$0xf] }
 0x2a9   : > { %v1948_v4 = vrot.slane %v1944_v3, 4  ;;  %v1952_v2 = vrot.slane %v1950_v63, 7  ;;  %v2052_v61 = vld [vmem:[#allocation2 + $0x2c] sm:$0x1] }
 0x2aa   : > { %v1947_v12 = vor.u32 %v1945_v16, %v1944_v3  ;;  %v1960_v44 = vrot.slane %v1958_v1, 7 }
 0x2ab   : > { %1971 = vrot.lane.b32.xlu0 %v1916_v9, %s4107_s28  ;;  %1969 = vrot.lane.b32.xlu1 %v1915_v24, %s4107_s28  ;;  %v1956_v32 = vrot.slane %v1952_v2, 4  ;;  %v1955_v21 = vor.u32 %v1953_v58, %v1952_v2 }
 0x2ac   : > { %v1964_v51 = vrot.slane %v1960_v44, 4  ;;  %v1963_v57 = vor.u32 %v1961_v62, %v1960_v44 }
 0x2af   : > { %1975 = vrot.lane.b32.xlu0 %v1924_v39, %s4107_s28  ;;  %1973 = vrot.lane.b32.xlu1 %v1923_v34, %s4107_s28  ;;  %v2043_v39 = vld [vmem:[#allocation2 + $0x20] sm:$0xf] }
 0x2b3   : > { %1979 = vrot.lane.b32.xlu0 %v1932_v48, %s4107_s28  ;;  %1977 = vrot.lane.b32.xlu1 %v1931_v47, %s4107_s28 }
 0x2b7   : > { %1983 = vrot.lane.b32.xlu0 %v1940_v23, %s4107_s28  ;;  %1981 = vrot.lane.b32.xlu1 %v1939_v31, %s4107_s28  ;;  %v2049_v23 = vld [vmem:[#allocation2 + $0x28] sm:$0xf] }
 0x2bb   : > { %1987 = vrot.lane.b32.xlu0 %v1948_v4, %s4107_s28  ;;  %1985 = vrot.lane.b32.xlu1 %v1947_v12, %s4107_s28 }
 0x2bf   : > { %1991 = vrot.lane.b32.xlu0 %v1956_v32, %s4107_s28  ;;  %1989 = vrot.lane.b32.xlu1 %v1955_v21, %s4107_s28 }
 0x2c3   : > { %1995 = vrot.lane.b32.xlu0 %v1964_v51, %s4107_s28  ;;  %1993 = vrot.lane.b32.xlu1 %v1963_v57, %s4107_s28 }
 0x319   : > { %v1968_v18 = vpop.permute.xlu0 %1967  ;;  %v1966_v6 = vpop.permute.xlu1 %1965 }
 0x31a   : > { %v2023_v11 = vsel %vm4906_vm14, %v1968_v18, %v2022_v35  ;;  %v2017_v29 = vsel %vm4910_vm15, %v1966_v6, %v2016_v0 }
 0x31b   : > { %2024 = vst [vmem:[#allocation2 + $0x4] sm:$0x1] %v2023_v11  ;;  %2018 = vst [vmem:[#allocation2] sm:$0xf] %v2017_v29  ;;  %v2058_v11 = vld [vmem:[#allocation2 + $0x34] sm:$0x1] }
 0x31c   : > { %v2055_v29 = vld [vmem:[#allocation2 + $0x30] sm:$0xf] }
 0x31d   : > { %v1972_v54 = vpop.permute.xlu0 %1971  ;;  %v1970_v7 = vpop.permute.xlu1 %1969 }
 0x31e   : > { %v2029_v49 = vsel %vm4906_vm14, %v1972_v54, %v2028_v28  ;;  %v2026_v43 = vsel %vm4910_vm15, %v1970_v7, %v2025_v14 }
 0x31f   : > { %2030 = vst [vmem:[#allocation2 + $0xc] sm:$0x1] %v2029_v49  ;;  %2027 = vst [vmem:[#allocation2 + $0x8] sm:$0xf] %v2026_v43 }
 0x321   : > { %v1976_v25 = vpop.permute.xlu0 %1975  ;;  %v1974_v60 = vpop.permute.xlu1 %1973 }
 0x322   : > { %v2035_v40 = vsel %vm4906_vm14, %v1976_v25, %v2034_v41  ;;  %v2032_v46 = vsel %vm4910_vm15, %v1974_v60, %v2031_v50  ;;  %v4926_v19 = vld [vmem:[#allocation2] sm:$0xf]  ;;  %v2068_v34 = vld [vmem:[#allocation2 + $0x4] sm:$0x1] }
 0x323   : > { %2036 = vst [vmem:[#allocation2 + $0x14] sm:$0x1] %v2035_v40  ;;  %2033 = vst [vmem:[#allocation2 + $0x10] sm:$0xf] %v2032_v46  ;;  %2385 = vrot.lane.b32.xlu1 %v4926_v19, %s4108_s29  ;;  %v2545_v45 = vshrl.u32 %v4926_v19, 16  ;;  %v2548_v10 = vshll.u32 %v4926_v19, 16 }
 0x324   : > { %v3927_v31 = vrot.slane %v4926_v19, 9  ;;  %v3130_v3 = vrot.slane %v2068_v34, 5  ;;  %v2554_v12 = vshll.u32 %v2068_v34, 16 }
 0x325   : > { %v1980_v9 = vpop.permute.xlu0 %1979  ;;  %v1978_v24 = vpop.permute.xlu1 %1977  ;;  %v2547_v26 = vrot.slane %v2545_v45, 4  ;;  %v2550_v17 = vrot.slane %v2548_v10, 5 }
 0x326   : > { %v2041_v42 = vsel %vm4906_vm14, %v1980_v9, %v2040_v13  ;;  %v2038_v52 = vsel %vm4910_vm15, %v1978_v24, %v2037_v36  ;;  %v4936_v37 = vld [vmem:[#allocation2 + $0x8] sm:$0xf]  ;;  %v2070_v55 = vld [vmem:[#allocation2 + $0xc] sm:$0x1]  ;;  %v4969_v28 = vsel %vm4955_vm3, %v3927_v31, %v3130_v3  ;;  %v2556_v7 = vrot.slane %v2554_v12, 5 }
 0x327   : > { %2042 = vst [vmem:[#allocation2 + $0x1c] sm:$0x1] %v2041_v42  ;;  %2039 = vst [vmem:[#allocation2 + $0x18] sm:$0xf] %v2038_v52  ;;  %2387 = vrot.lane.b32.xlu0 %v4936_v37, %s4108_s29  ;;  %v2559_v48 = vshrl.u32 %v4936_v37, 16  ;;  %v2562_v47 = vshll.u32 %v4936_v37, 16  ;;  %v2551_v21 = vor.u32 %v2550_v17, %v2547_v26 }
 0x328   : > { %v3928_v16 = vrot.slane %v4936_v37, 9  ;;  %v3134_v4 = vrot.slane %v2070_v55, 5  ;;  %v2568_v51 = vshll.u32 %v2070_v55, 16  ;;  %v2064_v9 = vld [vmem:[#allocation2 + $0x3c] sm:$0x1] }
 0x329   : > { %v1984_v59 = vpop.permute.xlu0 %1983  ;;  %v1982_v53 = vpop.permute.xlu1 %1981  ;;  %v2561_v44 = vrot.slane %v2559_v48, 4  ;;  %v2564_v62 = vrot.slane %v2562_v47, 5  ;;  %v2552_v50 = vrot.slane %v2551_v21, 4  ;;  %v2061_v42 = vld [vmem:[#allocation2 + $0x38] sm:$0xf] }
 0x32a   : > { %v2047_v22 = vsel %vm4906_vm14, %v1984_v59, %v2046_v33  ;;  %v2044_v38 = vsel %vm4910_vm15, %v1982_v53, %v2043_v39  ;;  %v4946_v5 = vld [vmem:[#allocation2 + $0x10] sm:$0xf]  ;;  %v2072_v14 = vld [vmem:[#allocation2 + $0x14] sm:$0x1]  ;;  %v4973_v54 = vsel %vm4955_vm3, %v3928_v16, %v3134_v4  ;;  %v2570_v45 = vrot.slane %v2568_v51, 5 }
 0x32b   : > { %2048 = vst [vmem:[#allocation2 + $0x24] sm:$0x1] %v2047_v22  ;;  %2045 = vst [vmem:[#allocation2 + $0x20] sm:$0xf] %v2044_v38  ;;  %2389 = vrot.lane.b32.xlu1 %v4946_v5, %s4108_s29  ;;  %v2573_v63 = vshrl.u32 %v4946_v5, 16  ;;  %v2576_v2 = vshll.u32 %v4946_v5, 16  ;;  %v2565_v25 = vor.u32 %v2564_v62, %v2561_v44 }
 0x32c   : > { %v3929_v52 = vrot.slane %v4946_v5, 9  ;;  %v3138_v33 = vrot.slane %v2072_v14, 5  ;;  %v2582_v55 = vshll.u32 %v2072_v14, 16 }
 0x32d   : > { %v1988_v1 = vpop.permute.xlu0 %1987  ;;  %v1986_v58 = vpop.permute.xlu1 %1985  ;;  %v2575_v18 = vrot.slane %v2573_v63, 4  ;;  %v2578_v6 = vrot.slane %v2576_v2, 5  ;;  %v2566_v47 = vrot.slane %v2565_v25, 4  ;;  %v5003_v2 = vsel %vm4221_vm2, %v2552_v50, %v2556_v7 }
 0x32e   : > { %v2053_v57 = vsel %vm4906_vm14, %v1988_v1, %v2052_v61  ;;  %v2050_v35 = vsel %vm4910_vm15, %v1986_v58, %v2049_v23  ;;  %v4963_v0 = vld [vmem:[#allocation2 + $0x18] sm:$0xf]  ;;  %v2074_v41 = vld [vmem:[#allocation2 + $0x1c] sm:$0x1]  ;;  %v5007_v56 = vsel %vm4955_vm3, %v3929_v52, %v3138_v33  ;;  %v2584_v21 = vrot.slane %v2582_v55, 5 }
 0x32f   : > { %2054 = vst [vmem:[#allocation2 + $0x2c] sm:$0x1] %v2053_v57  ;;  %2051 = vst [vmem:[#allocation2 + $0x28] sm:$0xf] %v2050_v35  ;;  %2391 = vrot.lane.b32.xlu0 %v4963_v0, %s4108_s29  ;;  %v2587_v60 = vshrl.u32 %v4963_v0, 16  ;;  %v2590_v40 = vshll.u32 %v4963_v0, 16  ;;  %v2579_v24 = vor.u32 %v2578_v6, %v2575_v18  ;;  %v5016_v57 = vsel %vm4221_vm2, %v2566_v47, %v2570_v45 }
 0x330   : > { %v3930_v59 = vrot.slane %v4963_v0, 9  ;;  %v3142_v53 = vrot.slane %v2074_v41, 5  ;;  %v2596_v1 = vshll.u32 %v2074_v41, 16 }
 0x331   : > { %v1992_v49 = vpop.permute.xlu0 %1991  ;;  %v1990_v43 = vpop.permute.xlu1 %1989  ;;  %v2589_v38 = vrot.slane %v2587_v60, 4  ;;  %v2592_v61 = vrot.slane %v2590_v40, 5  ;;  %v2580_v63 = vrot.slane %v2579_v24, 4 }
 0x332   : > { %v2059_v46 = vsel %vm4906_vm14, %v1992_v49, %v2058_v11  ;;  %v2056_v13 = vsel %vm4910_vm15, %v1990_v43, %v2055_v29  ;;  %v4981_v36 = vld [vmem:[#allocation2 + $0x20] sm:$0xf]  ;;  %v2076_v34 = vld [vmem:[#allocation2 + $0x24] sm:$0x1]  ;;  %v5011_v58 = vsel %vm4955_vm3, %v3930_v59, %v3142_v53  ;;  %v5032_v50 = vrot.slane %v2596_v1, 5 }
 0x333   : > { %2060 = vst [vmem:[#allocation2 + $0x34] sm:$0x1] %v2059_v46  ;;  %2057 = vst [vmem:[#allocation2 + $0x30] sm:$0xf] %v2056_v13  ;;  %2393 = vrot.lane.b32.xlu1 %v4981_v36, %s4108_s29  ;;  %v2083_v10 = vcombine.low %v4926_v19, %v4981_v36  ;;  %v2601_v39 = vshrl.u32 %v4981_v36, 16  ;;  %v2604_v26 = vshll.u32 %v4981_v36, 16  ;;  %v2593_v35 = vor.u32 %v2592_v61, %v2589_v38 }
 0x334   : > { %v2610_v20 = vshll.u32 %v2076_v34, 16  ;;  %v3931_v62 = vrot.slane %v4981_v36, 9  ;;  %v3146_v29 = vrot.slane %v2076_v34, 5  ;;  %v5026_v14 = vsel %vm4221_vm2, %v2580_v63, %v2584_v21 }
 0x335   : > { %v1996_v17 = vpop.permute.xlu0 %1995  ;;  %v1994_v48 = vpop.permute.xlu1 %1993  ;;  %v2603_v22 = vrot.slane %v2601_v39, 4  ;;  %v2606_v16 = vrot.slane %v2604_v26, 5  ;;  %v5020_v6 = vrot.slane %v2083_v10, %v5761_v8  ;;  %v2594_v24 = vrot.slane %v2593_v35, 4 }
 0x336   : > { %v2065_v23 = vsel %vm4906_vm14, %v1996_v17, %v2064_v9  ;;  %v2062_v31 = vsel %vm4910_vm15, %v1994_v48, %v2061_v42  ;;  %v4995_v3 = vld [vmem:[#allocation2 + $0x28] sm:$0xf]  ;;  %v2078_v51 = vld [vmem:[#allocation2 + $0x2c] sm:$0x1]  ;;  %v2612_v41 = vrot.slane %v2610_v20, 5  ;;  %v5049_v33 = vsel %vm4955_vm3, %v3931_v62, %v3146_v29 }
 0x337   : > { %2066 = vst [vmem:[#allocation2 + $0x3c] sm:$0x1] %v2065_v23  ;;  %2063 = vst [vmem:[#allocation2 + $0x38] sm:$0xf] %v2062_v31  ;;  %2395 = vrot.lane.b32.xlu0 %v4995_v3, %s4108_s29  ;;  %v2117_v4 = vcombine.low %v4936_v37, %v4995_v3  ;;  %v2607_v44 = vor.u32 %v2606_v16, %v2603_v22  ;;  %v2615_v18 = vshrl.u32 %v4995_v3, 16  ;;  %v3932_v60 = vrot.slane %v4995_v3, 9 }
 0x338   : > { %v3150_v40 = vrot.slane %v2078_v51, 5  ;;  %v2618_v13 = vshll.u32 %v4995_v3, 16 }
 0x339   : > { %v2608_v7 = vrot.slane %v2607_v44, 4  ;;  %v2617_v10 = vrot.slane %v2615_v18, 4  ;;  %v5043_v42 = vrot.slane %v2117_v4, %v5761_v8 }
 0x33a   : > { %v5022_v11 = vld [vmem:[#allocation2 + $0x30] sm:$0xf]  ;;  %v2080_v43 = vld [vmem:[#allocation2 + $0x34] sm:$0x1]  ;;  %v2620_v38 = vrot.slane %v2618_v13, 5  ;;  %v5079_v35 = vsel %vm4955_vm3, %v3932_v60, %v3150_v40 }
 0x33b   : > { %2397 = vrot.lane.b32.xlu1 %v5022_v11, %s4108_s29  ;;  %v2091_v49 = vcombine.low %v4946_v5, %v5022_v11  ;;  %v2629_v25 = vshrl.u32 %v5022_v11, 16  ;;  %v2632_v46 = vshll.u32 %v5022_v11, 16  ;;  %v5040_v9 = vsel %vm4221_vm2, %v2608_v7, %v2612_v41 }
 0x33c   : > { %v2638_v59 = vshll.u32 %v2080_v43, 16  ;;  %v3933_v55 = vrot.slane %v5022_v11, 9  ;;  %v3154_v48 = vrot.slane %v2080_v43, 5  ;;  %v2664_v47 = vcombine.low %v5003_v2, %v5040_v9 }
 0x33d   : > { %v2631_v45 = vrot.slane %v2629_v25, 4  ;;  %v2634_v34 = vrot.slane %v2632_v46, 5  ;;  %v2098_v61 = vrot.slane %v2091_v49, %v5761_v8  ;;  %v2621_v1 = vor.u32 %v2620_v38, %v2617_v10 }
 0x33e   : > { %v5045_v52 = vld [vmem:[#allocation2 + $0x38] sm:$0xf]  ;;  %v2082_v39 = vld [vmem:[#allocation2 + $0x3c] sm:$0x1]  ;;  %v2640_v20 = vrot.slane %v2638_v59, 5  ;;  %v2671_v18 = vrot.slane %v2664_v47, %v5761_v8  ;;  %v3202_v10 = vcombine.low %v4973_v54, %v5079_v35 }
 0x33f   : > { %2226 = vrot.lane.b32.xlu1 %v4926_v19, %s4089_s30  ;;  %2399 = vrot.lane.b32.xlu0 %v5045_v52, %s4108_s29  ;;  %v2125_v53 = vcombine.low %v4963_v0, %v5045_v52  ;;  %v3934_v26 = vrot.slane %v5045_v52, 9  ;;  %v3158_v17 = vrot.slane %v2082_v39, 5  ;;  %v2635_v22 = vor.u32 %v2634_v34, %v2631_v45 }
 0x340   : > { %v2624_v19 = vshll.u32 %v2078_v51, 16  ;;  %v2643_v23 = vshrl.u32 %v5045_v52, 16  ;;  %v2646_v31 = vshll.u32 %v5045_v52, 16  ;;  %v2652_v62 = vshll.u32 %v2082_v39, 16 }
 0x341   : > { %v2132_v63 = vrot.slane %v2125_v53, %v5761_v8  ;;  %v5067_v16 = vsel %vm4955_vm3, %v3934_v26, %v3158_v17  ;;  %v2636_v4 = vrot.slane %v2635_v22, 4  ;;  %v5075_v51 = vsel %vm4955_vm3, %v3933_v55, %v3154_v48 }
 0x342   : > { %v2645_v21 = vrot.slane %v2643_v23, 4  ;;  %v2648_v44 = vrot.slane %v2646_v31, 5  ;;  %v2622_v29 = vrot.slane %v2621_v1, 4  ;;  %v2626_v7 = vrot.slane %v2624_v19, 5 }
 0x343   : > { %2230 = vrot.lane.b32.xlu1 %v4946_v5, %s4089_s30  ;;  %2228 = vrot.lane.b32.xlu0 %v4936_v37, %s4089_s30  ;;  %v5084_v5 = vsel %vm4221_vm2, %v2636_v4, %v2640_v20  ;;  %v3210_v43 = vcombine.low %v5011_v58, %v5067_v16  ;;  %v2654_v41 = vrot.slane %v2652_v62, 5  ;;  %v2099_v32 = vcombine.low %v5020_v6, %v2098_v61 }
 0x344   : > { %v2672_v37 = vcombine.low %v5026_v14, %v5084_v5  ;;  %v2649_v49 = vor.u32 %v2648_v44, %v2645_v21  ;;  %v2133_v25 = vcombine.low %v5043_v42, %v2132_v63  ;;  %v5099_v40 = vsel %vm4221_vm2, %v2622_v29, %v2626_v7 }
 0x345   : > { %v2100_v13 = vcombine.high %v5020_v6, %v2098_v61  ;;  %v3168_v45 = vcombine.low %v4969_v28, %v5049_v33  ;;  %v5114_v39 = vsel %vm4221_vm2, %v2594_v24, %v5032_v50  ;;  %v3176_v53 = vcombine.low %v5007_v56, %v5075_v51 }
 0x346   : > { %v2679_v60 = vrot.slane %v2672_v37, %v5761_v8  ;;  %v2650_v46 = vrot.slane %v2649_v49, 4  ;;  %v5121_v59 = vrot.slane %v2133_v25, %v5762_v27  ;;  %v5134_v12 = vrot.slane %v3210_v43, %v5761_v8 }
 0x347   : > { %2234 = vrot.lane.b32.xlu1 %v4981_v36, %s4089_s30  ;;  %2232 = vrot.lane.b32.xlu0 %v4963_v0, %s4089_s30  ;;  %v2698_v36 = vcombine.low %v5016_v57, %v5099_v40  ;;  %v5109_v0 = vrot.slane %v2099_v32, %v5762_v27  ;;  %v2114_v22 = vrot.slane %v2100_v13, %v5762_v27 }
 0x348   : > { %v2680_v34 = vcombine.low %v2671_v18, %v2679_v60  ;;  %v5118_v6 = vsel %vm4221_vm2, %v2650_v46, %v2654_v41  ;;  %v2681_v55 = vcombine.high %v2671_v18, %v2679_v60  ;;  %v2149_v24 = vcombine.high %v5121_v59, %v5760_v15 }
 0x349   : > { %v2706_v26 = vcombine.low %v5114_v39, %v5118_v6  ;;  %v2115_v17 = vcombine.high %v5109_v0, %v5760_v15  ;;  %v2705_v50 = vrot.slane %v2698_v36, %v5761_v8  ;;  %v2155_v19 = vshrl.u32 %v5121_v59, 16 }
 0x34a   : > { %v5140_v48 = vrot.slane %v2680_v34, %v5762_v27  ;;  %v2161_v61 = vshrl.u32 %v2149_v24, 16  ;;  %v2695_v23 = vrot.slane %v2681_v55, %v5762_v27  ;;  %v5166_v18 = vrot.slane %v3176_v53, %v5761_v8 }
 0x34b   : > { %2238 = vrot.lane.b32.xlu1 %v5022_v11, %s4089_s30  ;;  %2236 = vrot.lane.b32.xlu0 %v4995_v3, %s4089_s30  ;;  %v2713_v47 = vrot.slane %v2706_v26, %v5761_v8  ;;  %v2134_v11 = vcombine.high %v5043_v42, %v2132_v63  ;;  %v2160_v38 = vshrl.u32 %v2115_v17, 16  ;;  %v2154_v3 = vshrl.u32 %v5109_v0, 16 }
 0x34c   : > { %v5157_v63 = vpack.i.b16 %v2149_v24, %v2115_v17  ;;  %v5169_v37 = vrot.slane %v3202_v10, %v5761_v8  ;;  %v2696_v49 = vcombine.high %v5140_v48, %v5760_v15  ;;  %v5184_v41 = vrot.slane %v3168_v45, %v5761_v8 }
 0x34d   : > { %v2714_v31 = vcombine.low %v2705_v50, %v2713_v47  ;;  %v2715_v4 = vcombine.high %v2705_v50, %v2713_v47  ;;  %v2148_v20 = vrot.slane %v2134_v11, %v5762_v27  ;;  %v5153_v1 = vpack.i.b16 %v2161_v61, %v2160_v38 }
 0x34e   : > { %v5155_v42 = vpack.i.b16 %v2155_v19, %v2154_v3  ;;  %v3218_v32 = vcombine.low %v5169_v37, %v5134_v12  ;;  %v2747_v25 = vshrl.u32 %v2695_v23, 16  ;;  %v3184_v10 = vcombine.low %v5184_v41, %v5166_v18 }
 0x34f   : > { %3462 = vrot.lane.b32.xlu1 %v4969_v28, %s4108_s29  ;;  %2240 = vrot.lane.b32.xlu0 %v5045_v52, %s4089_s30  ;;  %v5160_v21 = vrot.slane %v2714_v31, %v5762_v27  ;;  %v2729_v44 = vrot.slane %v2715_v4, %v5762_v27  ;;  %v5163_v62 = vpack.i.b16 %v2148_v20, %v2114_v22  ;;  %v2735_v52 = vshrl.u32 %v5140_v48, 16 }
 0x350   : > { %v2697_v34 = vcombine.high %v2695_v23, %v5760_v15  ;;  %v5203_v45 = vrot.slane %v3218_v32, %v5762_v27  ;;  %v2741_v26 = vshrl.u32 %v2696_v49, 16  ;;  %v5208_v50 = vrot.slane %v3184_v10, %v5762_v27 }
 0x351   : > { %v5172_v29 = vpack.i.b16 %v2729_v44, %v2695_v23  ;;  %v2736_v7 = vshrl.u32 %v5160_v21, 16  ;;  %v2730_v43 = vcombine.high %v5160_v21, %v5760_v15  ;;  %v2748_v60 = vshrl.u32 %v2729_v44, 16 }
 0x352   : > { %v2731_v53 = vcombine.high %v2729_v44, %v5760_v15  ;;  %v2753_v24 = vshrl.u32 %v2697_v34, 16  ;;  %v3238_v61 = vpack.i.b16 %v5203_v45, %v5208_v50  ;;  %v2153_v3 = vpack.i.b16 %v5121_v59, %v5109_v0 }
 0x353   : > { %3466 = vrot.lane.b32.xlu1 %v5007_v56, %s4108_s29  ;;  %3464 = vrot.lane.b32.xlu0 %v4973_v54, %s4108_s29  ;;  %v5188_v46 = vpack.i.b16 %v2736_v7, %v2735_v52  ;;  %v5190_v13 = vpack.i.b16 %v2730_v43, %v2696_v49  ;;  %v5194_v36 = vpack.i.b16 %v2748_v60, %v2747_v25  ;;  %v2742_v17 = vshrl.u32 %v2730_v43, 16 }
 0x354   : > { %v5205_v55 = vpack.i.b16 %v2731_v53, %v2697_v34  ;;  %v2754_v47 = vshrl.u32 %v2731_v53, 16  ;;  %v2734_v19 = vpack.i.b16 %v5160_v21, %v5140_v48  ;;  %v2166_v23 = vshrl.u32 %v2114_v22, 16 }
 0x355   : > { %v5210_v11 = vpack.i.b16 %v2742_v17, %v2741_v26  ;;  %v2167_v31 = vshrl.u32 %v2148_v20, 16  ;;  %v2116_v4 = vcombine.high %v2114_v22, %v5760_v15  ;;  %v2150_v44 = vcombine.high %v2148_v20, %v5760_v15 }
 0x356   : > { %v5216_v38 = vpack.i.b16 %v2754_v47, %v2753_v24  ;;  %vm3701_vm2 = vcmask 31744   ;;  %v3200_v22 = vcombine.high %v5208_v50, %v5760_v15  ;;  %v3907_v20 = vcombine.low %v5190_v13, %v5190_v13 }
 0x357   : > { %3470 = vrot.lane.b32.xlu1 %v5049_v33, %s4108_s29  ;;  %3468 = vrot.lane.b32.xlu0 %v5011_v58, %s4108_s29  ;;  %v5230_v52 = vpack.i.b16 %v2167_v31, %v2166_v23  ;;  %v5232_v7 = vpack.i.b16 %v2150_v44, %v2116_v4  ;;  %v2172_v49 = vshrl.u32 %v2116_v4, 16  ;;  %v2173_v43 = vshrl.u32 %v2150_v44, 16 }
 0x358   : > { %v3911_v10 = vcombine.low %v5205_v55, %v5205_v55  ;;  %v3908_v47 = vcombine.low %v5210_v11, %v5210_v11 }
 0x359   : > { %v5234_v32 = vpack.i.b16 %v2173_v43, %v2172_v49 }
 0x35b   : > { %3474 = vrot.lane.b32.xlu1 %v5075_v51, %s4108_s29  ;;  %3472 = vrot.lane.b32.xlu0 %v5079_v35, %s4108_s29 }
 0x35f   : > { %3303 = vrot.lane.b32.xlu1 %v4969_v28, %s4089_s30  ;;  %3476 = vrot.lane.b32.xlu0 %v5067_v16, %s4108_s29  ;;  %v3694_v28 = vld [vmem:[%s5735_s5] sm:$0xf] }
 0x360   : > { %4044 = vmatmul.mubr.msk.bf16.vlgmr.msra.gmra.mxu0 %vm3701_vm2, %v3694_v28  ;;  %v3912_v28 = vcombine.low %v5216_v38, %v5216_v38 }
 0x363   : > { %3307 = vrot.lane.b32.xlu1 %v5007_v56, %s4089_s30  ;;  %3305 = vrot.lane.b32.xlu0 %v4973_v54, %s4089_s30  ;;  %v3240_v54 = vshrl.u32 %v5203_v45, 16  ;;  %v3887_v56 = vcombine.low %v5153_v1, %v5153_v1 }
 0x367   : > { %3311 = vrot.lane.b32.xlu1 %v5049_v33, %s4089_s30  ;;  %3309 = vrot.lane.b32.xlu0 %v5011_v58, %s4089_s30  ;;  %v3185_v33 = vcombine.high %v5184_v41, %v5166_v18 }
 0x36b   : > { %3315 = vrot.lane.b32.xlu1 %v5075_v51, %s4089_s30  ;;  %3313 = vrot.lane.b32.xlu0 %v5079_v35, %s4089_s30  ;;  %v3885_v51 = vcombine.low %v5155_v42, %v5155_v42  ;;  %v3909_v35 = vcombine.low %v5172_v29, %v5172_v29 }
 0x36f   : > { %2958 = vrot.lane.b32.xlu1 %v5003_v2, %s4108_s29  ;;  %3317 = vrot.lane.b32.xlu0 %v5067_v16, %s4089_s30 }
 0x373   : > { %2962 = vrot.lane.b32.xlu1 %v5026_v14, %s4108_s29  ;;  %2960 = vrot.lane.b32.xlu0 %v5016_v57, %s4108_s29 }
 0x377   : > { %2966 = vrot.lane.b32.xlu1 %v5040_v9, %s4108_s29  ;;  %2964 = vrot.lane.b32.xlu0 %v5114_v39, %s4108_s29 }
 0x37b   : > { %2970 = vrot.lane.b32.xlu1 %v5084_v5, %s4108_s29  ;;  %2968 = vrot.lane.b32.xlu0 %v5099_v40, %s4108_s29 }
 0x37f   : > { %2799 = vrot.lane.b32.xlu1 %v5003_v2, %s4089_s30  ;;  %2972 = vrot.lane.b32.xlu0 %v5118_v6, %s4108_s29  ;;  %v3239_v2 = vshrl.u32 %v5208_v50, 16 }
 0x381   : > { %v3241_v58 = vpack.i.b16 %v3240_v54, %v3239_v2 }
 0x383   : > { %2803 = vrot.lane.b32.xlu1 %v5026_v14, %s4089_s30  ;;  %2801 = vrot.lane.b32.xlu0 %v5016_v57, %s4089_s30  ;;  %v3219_v57 = vcombine.high %v5169_v37, %v5134_v12  ;;  %v3888_v14 = vcombine.low %v5163_v62, %v5163_v62  ;;  %v3234_v12 = vcombine.high %v5203_v45, %v5760_v15 }
 0x384   : > { %v3910_v37 = vcombine.low %v5194_v36, %v5194_v36  ;;  %v3245_v36 = vshrl.u32 %v3200_v22, 16 }
 0x385   : > { %v3233_v16 = vrot.slane %v3219_v57, %v5762_v27  ;;  %v3244_v42 = vpack.i.b16 %v3234_v12, %v3200_v22  ;;  %v3246_v26 = vshrl.u32 %v3234_v12, 16 }
 0x387   : > { %2807 = vrot.lane.b32.xlu1 %v5040_v9, %s4089_s30  ;;  %2805 = vrot.lane.b32.xlu0 %v5114_v39, %s4089_s30  ;;  %v3935_v9 = vcombine.low %v3241_v58, %v3241_v58  ;;  %v3886_v39 = vcombine.low %v5157_v63, %v5157_v63  ;;  %v3252_v62 = vshrl.u32 %v3233_v16, 16  ;;  %v3936_v29 = vcombine.low %v3244_v42, %v3244_v42 }
 0x388   : > { %v3235_v25 = vcombine.high %v3233_v16, %v5760_v15  ;;  %v3247_v31 = vpack.i.b16 %v3246_v26, %v3245_v36 }
 0x38a   : > { %v3258_v4 = vshrl.u32 %v3235_v25, 16  ;;  %v3937_v54 = vcombine.low %v3247_v31, %v3247_v31 }
 0x38b   : > { %2811 = vrot.lane.b32.xlu1 %v5084_v5, %s4089_s30  ;;  %2809 = vrot.lane.b32.xlu0 %v5099_v40, %s4089_s30  ;;  %v3199_v5 = vrot.slane %v3185_v33, %v5762_v27  ;;  %v3906_v40 = vcombine.low %v5188_v46, %v5188_v46 }
 0x38d   : > { %v3251_v63 = vshrl.u32 %v3199_v5, 16  ;;  %v3201_v60 = vcombine.high %v3199_v5, %v5760_v15 }
 0x38f   : > { %2813 = vrot.lane.b32.xlu0 %v5118_v6, %s4089_s30  ;;  %2185 = vrot.lane.b32.xlu1 %v3887_v56, %s4092_s10  ;;  %v3250_v6 = vpack.i.b16 %v3233_v16, %v3199_v5  ;;  %v3253_v41 = vpack.i.b16 %v3252_v62, %v3251_v63  ;;  %v3256_v53 = vpack.i.b16 %v3235_v25, %v3201_v60  ;;  %v3257_v55 = vshrl.u32 %v3201_v60, 16 }
 0x391   : > { %v3938_v1 = vcombine.low %v3250_v6, %v3250_v6  ;;  %v3939_v34 = vcombine.low %v3253_v41, %v3253_v41  ;;  %v3940_v23 = vcombine.low %v3256_v53, %v3256_v53  ;;  %v3259_v2 = vpack.i.b16 %v3258_v4, %v3257_v55 }
 0x393   : > { %2189 = vrot.lane.b32.xlu0 %v3888_v14, %s4093_s11  ;;  %3262 = vrot.lane.b32.xlu1 %v3935_v9, %s4090_s8  ;;  %v3941_v33 = vcombine.low %v3259_v2, %v3259_v2 }
 0x395   : > { %v2386_v18 = vpop.permute.xlu1 %2385 }
 0x397   : > { %2177 = vrot.lane.b32.xlu0 %v3885_v51, %s4090_s8  ;;  %2770 = vrot.lane.b32.xlu1 %v3909_v35, %s4093_s11 }
 0x399   : > { %v2388_v46 = vpop.permute.xlu0 %2387 }
 0x39b   : > { %2758 = vrot.lane.b32.xlu1 %v3906_v40, %s4090_s8  ;;  %2181 = vrot.lane.b32.xlu0 %v3886_v39, %s4091_s9 }
 0x39d   : > { %v2390_v13 = vpop.permute.xlu1 %2389 }
 0x39f   : > { %2762 = vrot.lane.b32.xlu1 %v3907_v20, %s4091_s9  ;;  %3274 = vrot.lane.b32.xlu0 %v3938_v1, %s4093_s11 }
 0x3a1   : > { %v2392_v17 = vpop.permute.xlu0 %2391 }
 0x3a3   : > { %2774 = vrot.lane.b32.xlu1 %v3910_v37, %s4094_s12  ;;  %3266 = vrot.lane.b32.xlu0 %v3936_v29, %s4091_s9 }
 0x3a5   : > { %v2394_v24 = vpop.permute.xlu1 %2393 }
 0x3a6   : > { %v2409_v44 = vcombine.low %v2386_v18, %v2394_v24 }
 0x3a7   : > { %2778 = vrot.lane.b32.xlu1 %v3911_v10, %s4095_s13  ;;  %3278 = vrot.lane.b32.xlu0 %v3939_v34, %s4094_s12 }
 0x3a8   : > { %v2416_v11 = vrot.slane %v2409_v44, %v5761_v8 }
 0x3a9   : > { %v2396_v49 = vpop.permute.xlu0 %2395 }
 0x3aa   : > { %v2443_v58 = vcombine.low %v2388_v46, %v2396_v49 }
 0x3ab   : > { %2766 = vrot.lane.b32.xlu1 %v3908_v47, %s4092_s10  ;;  %3282 = vrot.lane.b32.xlu0 %v3940_v23, %s4095_s13 }
 0x3ac   : > { %v2450_v38 = vrot.slane %v2443_v58, %v5761_v8 }
 0x3ad   : > { %v2398_v43 = vpop.permute.xlu1 %2397 }
 0x3ae   : > { %v2417_v56 = vcombine.low %v2390_v13, %v2398_v43 }
 0x3af   : > { %2782 = vrot.lane.b32.xlu1 %v3912_v28, %s4096_s14  ;;  %3270 = vrot.lane.b32.xlu0 %v3937_v54, %s4092_s10 }
 0x3b0   : > { %v2424_v57 = vrot.slane %v2417_v56, %v5761_v8 }
 0x3b1   : > { %v2400_v14 = vpop.permute.xlu0 %2399  ;;  %v2227_v9 = vpop.permute.xlu1 %2226 }
 0x3b2   : > { %v2425_v16 = vcombine.low %v2416_v11, %v2424_v57  ;;  %v2451_v51 = vcombine.low %v2392_v17, %v2400_v14  ;;  %v2426_v35 = vcombine.high %v2416_v11, %v2424_v57 }
 0x3b3   : > { %3286 = vrot.lane.b32.xlu0 %v3941_v33, %s4096_s14 }
 0x3b4   : > { %v2458_v5 = vrot.slane %v2451_v51, %v5761_v8  ;;  %v5344_v6 = vrot.slane %v2425_v16, %v5762_v27  ;;  %v2440_v20 = vrot.slane %v2426_v35, %v5762_v27 }
 0x3b5   : > { %v2229_v40 = vpop.permute.xlu0 %2228  ;;  %v2231_v39 = vpop.permute.xlu1 %2230 }
 0x3b6   : > { %v2459_v12 = vcombine.low %v2450_v38, %v2458_v5  ;;  %v2460_v22 = vcombine.high %v2450_v38, %v2458_v5  ;;  %v2480_v37 = vshrl.u32 %v5344_v6, 16  ;;  %v5362_v26 = vcombine.high %v5344_v6, %v5760_v15 }
 0x3b7   : > { %v2492_v28 = vshrl.u32 %v2440_v20, 16  ;;  %v5380_v38 = vcombine.high %v2440_v20, %v5760_v15 }
 0x3b8   : > { %v5348_v1 = vrot.slane %v2459_v12, %v5762_v27  ;;  %v2474_v42 = vrot.slane %v2460_v22, %v5762_v27 }
 0x3b9   : > { %v2233_v62 = vpop.permute.xlu0 %2232  ;;  %v2235_v63 = vpop.permute.xlu1 %2234 }
 0x3ba   : > { %v2491_v18 = vpack.i.b16 %v2474_v42, %v2440_v20  ;;  %v2481_v29 = vshrl.u32 %v5348_v1, 16  ;;  %v2250_v41 = vcombine.low %v2227_v9, %v2235_v63  ;;  %v2479_v25 = vpack.i.b16 %v5348_v1, %v5344_v6  ;;  %v3695_v6 = vld [vmem:[%s5736_s6] sm:$0xff] }
 0x3bb   : > { %v5357_v13 = vcombine.high %v5348_v1, %v5760_v15  ;;  %v2493_v17 = vshrl.u32 %v2474_v42, 16  ;;  %v5370_v54 = vcombine.high %v2474_v42, %v5760_v15 }
 0x3bc   : > { %v3902_v60 = vcombine.low %v2491_v18, %v2491_v18  ;;  %v2482_v46 = vpack.i.b16 %v2481_v29, %v2480_v37  ;;  %v2257_v36 = vrot.slane %v2250_v41, %v5761_v8 }
 0x3bd   : > { %v2237_v10 = vpop.permute.xlu0 %2236  ;;  %v2239_v34 = vpop.permute.xlu1 %2238  ;;  %v2485_v31 = vpack.i.b16 %v5357_v13, %v5362_v26  ;;  %v2494_v58 = vpack.i.b16 %v2493_v17, %v2492_v28 }
 0x3be   : > { %v2258_v53 = vcombine.low %v2231_v39, %v2239_v34  ;;  %2515 = vrot.lane.b32.xlu0 %v3902_v60, %s4093_s11  ;;  %v2284_v24 = vcombine.low %v2229_v40, %v2237_v10  ;;  %v3899_v23 = vcombine.low %v2482_v46, %v2482_v46  ;;  %v2497_v39 = vpack.i.b16 %v5370_v54, %v5380_v38 }
 0x3bf   : > { %v3900_v11 = vcombine.low %v2485_v31, %v2485_v31  ;;  %v3903_v40 = vcombine.low %v2494_v58, %v2494_v58 }
 0x3c0   : > { %v2265_v47 = vrot.slane %v2258_v53, %v5761_v8  ;;  %v2291_v2 = vrot.slane %v2284_v24, %v5761_v8  ;;  %v3904_v46 = vcombine.low %v2497_v39, %v2497_v39 }
 0x3c1   : > { %v2241_v4 = vpop.permute.xlu0 %2240  ;;  %v3463_v55 = vpop.permute.xlu1 %3462 }
 0x3c2   : > { %v2266_v44 = vcombine.low %v2257_v36, %v2265_v47  ;;  %v2267_v49 = vcombine.high %v2257_v36, %v2265_v47  ;;  %v2292_v43 = vcombine.low %v2233_v62, %v2241_v4  ;;  %2503 = vrot.lane.b32.xlu0 %v3899_v23, %s4090_s8 }
 0x3c4   : > { %v2299_v56 = vrot.slane %v2292_v43, %v5761_v8  ;;  %v5375_v57 = vrot.slane %v2266_v44, %v5762_v27  ;;  %v2281_v14 = vrot.slane %v2267_v49, %v5762_v27 }
 0x3c5   : > { %v3465_v9 = vpop.permute.xlu0 %3464  ;;  %v3467_v33 = vpop.permute.xlu1 %3466 }
 0x3c6   : > { %v2300_v16 = vcombine.low %v2291_v2, %v2299_v56  ;;  %v2301_v51 = vcombine.high %v2291_v2, %v2299_v56  ;;  %2507 = vrot.lane.b32.xlu0 %v3900_v11, %s4091_s9  ;;  %v2333_v42 = vshrl.u32 %v2281_v14, 16  ;;  %v2321_v62 = vshrl.u32 %v5375_v57, 16 }
 0x3c7   : > { %v2283_v37 = vcombine.high %v2281_v14, %v5760_v15  ;;  %v5401_v24 = vcombine.high %v5375_v57, %v5760_v15 }
 0x3c8   : > { %v5383_v35 = vrot.slane %v2300_v16, %v5762_v27  ;;  %v2315_v5 = vrot.slane %v2301_v51, %v5762_v27 }
 0x3c9   : > { %v3469_v12 = vpop.permute.xlu0 %3468  ;;  %v3471_v22 = vpop.permute.xlu1 %3470  ;;  %v2339_v44 = vshrl.u32 %v2283_v37, 16 }
 0x3ca   : > { %2519 = vrot.lane.b32.xlu0 %v3903_v40, %s4094_s12  ;;  %v2332_v63 = vpack.i.b16 %v2315_v5, %v2281_v14  ;;  %v2334_v18 = vshrl.u32 %v2315_v5, 16  ;;  %v2322_v20 = vshrl.u32 %v5383_v35, 16  ;;  %v5394_v29 = vcombine.high %v5383_v35, %v5760_v15 }
 0x3cb   : > { %v2317_v41 = vcombine.high %v2315_v5, %v5760_v15  ;;  %v2320_v60 = vpack.i.b16 %v5383_v35, %v5375_v57  ;;  %v3486_v31 = vcombine.low %v3463_v55, %v3471_v22 }
 0x3cc   : > { %v3895_v10 = vcombine.low %v2332_v63, %v2332_v63  ;;  %v2335_v34 = vpack.i.b16 %v2334_v18, %v2333_v42  ;;  %v2323_v53 = vpack.i.b16 %v2322_v20, %v2321_v62  ;;  %v2326_v43 = vpack.i.b16 %v5394_v29, %v5401_v24 }
 0x3cd   : > { %v3473_v36 = vpop.permute.xlu0 %3472  ;;  %v3475_v17 = vpop.permute.xlu1 %3474  ;;  %v5403_v47 = vpack.i.b16 %v2317_v41, %v2283_v37  ;;  %v2340_v23 = vshrl.u32 %v2317_v41, 16  ;;  %v3493_v55 = vrot.slane %v3486_v31, %v5761_v8  ;;  %v2487_v20 = vshrl.u32 %v5357_v13, 16 }
 0x3ce   : > { %v3494_v4 = vcombine.low %v3467_v33, %v3475_v17  ;;  %2523 = vrot.lane.b32.xlu0 %v3904_v46, %s4095_s13  ;;  %2356 = vrot.lane.b32.xlu1 %v3895_v10, %s4093_s11  ;;  %v3520_v49 = vcombine.low %v3465_v9, %v3473_v36  ;;  %v3896_v2 = vcombine.low %v2335_v34, %v2335_v34  ;;  %v2486_v34 = vshrl.u32 %v5362_v26, 16 }
 0x3cf   : > { %v3892_v56 = vcombine.low %v2323_v53, %v2323_v53  ;;  %v5410_v11 = vpack.i.b16 %v2340_v23, %v2339_v44  ;;  %v3893_v5 = vcombine.low %v2326_v43, %v2326_v43 }
 0x3d0   : > { %v3501_v28 = vrot.slane %v3494_v4, %v5761_v8  ;;  %v3527_v9 = vrot.slane %v3520_v49, %v5761_v8  ;;  %v2488_v31 = vpack.i.b16 %v2487_v20, %v2486_v34 }
 0x3d1   : > { %v3477_v58 = vpop.permute.xlu0 %3476  ;;  %v3304_v14 = vpop.permute.xlu1 %3303 }
 0x3d2   : > { %v3528_v33 = vcombine.low %v3469_v12, %v3477_v58  ;;  %2360 = vrot.lane.b32.xlu0 %v3896_v2, %s4094_s12  ;;  %2344 = vrot.lane.b32.xlu1 %v3892_v56, %s4090_s8  ;;  %v3503_v16 = vcombine.high %v3493_v55, %v3501_v28  ;;  %v3502_v40 = vcombine.low %v3493_v55, %v3501_v28 }
 0x3d3   : > { %v3901_v58 = vcombine.low %v2488_v31, %v2488_v31  ;;  %v2328_v31 = vshrl.u32 %v5394_v29, 16 }
 0x3d4   : > { %v3535_v51 = vrot.slane %v3528_v33, %v5761_v8  ;;  %v5419_v63 = vrot.slane %v3503_v16, %v5762_v27  ;;  %v5429_v37 = vrot.slane %v3502_v40, %v5762_v27 }
 0x3d5   : > { %v3306_v39 = vpop.permute.xlu0 %3305  ;;  %v3308_v22 = vpop.permute.xlu1 %3307 }
 0x3d6   : > { %v3536_v42 = vcombine.low %v3527_v9, %v3535_v51  ;;  %v3537_v62 = vcombine.high %v3527_v9, %v3535_v51  ;;  %2348 = vrot.lane.b32.xlu1 %v3893_v5, %s4091_s9  ;;  %v3518_v44 = vcombine.high %v5429_v37, %v5760_v15  ;;  %v3519_v33 = vcombine.high %v5419_v63, %v5760_v15 }
 0x3d8   : > { %v5422_v12 = vrot.slane %v3536_v42, %v5762_v27  ;;  %v5425_v18 = vrot.slane %v3537_v62, %v5762_v27 }
 0x3d9   : > { %v3310_v41 = vpop.permute.xlu0 %3309  ;;  %v3312_v46 = vpop.permute.xlu1 %3311 }
 0x3da   : > { %v3568_v10 = vpack.i.b16 %v5425_v18, %v5419_v63  ;;  %v3552_v53 = vcombine.high %v5422_v12, %v5760_v15  ;;  %v3556_v36 = vpack.i.b16 %v5422_v12, %v5429_v37  ;;  %v3327_v17 = vcombine.low %v3304_v14, %v3312_v46 }
 0x3db   : > { %v3553_v26 = vcombine.high %v5425_v18, %v5760_v15 }
 0x3dc   : > { %v3952_v23 = vcombine.low %v3568_v10, %v3568_v10  ;;  %v3562_v43 = vpack.i.b16 %v3552_v53, %v3518_v44  ;;  %v3334_v28 = vrot.slane %v3327_v17, %v5761_v8  ;;  %v3564_v40 = vshrl.u32 %v3552_v53, 16 }
 0x3dd   : > { %v3314_v13 = vpop.permute.xlu0 %3313  ;;  %v3316_v4 = vpop.permute.xlu1 %3315  ;;  %v3574_v5 = vpack.i.b16 %v3553_v26, %v3519_v33  ;;  %v3563_v10 = vshrl.u32 %v3518_v44, 16 }
 0x3de   : > { %v3335_v49 = vcombine.low %v3308_v22, %v3316_v4  ;;  %3592 = vrot.lane.b32.xlu0 %v3952_v23, %s4093_s11  ;;  %v3361_v2 = vcombine.low %v3306_v39, %v3314_v13  ;;  %v3950_v51 = vcombine.low %v3562_v43, %v3562_v43 }
 0x3df   : > { %v3565_v23 = vpack.i.b16 %v3564_v40, %v3563_v10 }
 0x3e0   : > { %v3342_v56 = vrot.slane %v3335_v49, %v5761_v8  ;;  %v3368_v22 = vrot.slane %v3361_v2, %v5761_v8 }
 0x3e1   : > { %v3318_v14 = vpop.permute.xlu0 %3317  ;;  %v2959_v55 = vpop.permute.xlu1 %2958 }
 0x3e2   : > { %v3343_v9 = vcombine.low %v3334_v28, %v3342_v56  ;;  %v3369_v16 = vcombine.low %v3310_v41, %v3318_v14  ;;  %2511 = vrot.lane.b32.xlu0 %v3901_v58, %s4092_s10  ;;  %v3344_v42 = vcombine.high %v3334_v28, %v3342_v56  ;;  %v3954_v41 = vcombine.low %v3574_v5, %v3574_v5 }
 0x3e3   : > { %v2327_v28 = vshrl.u32 %v5401_v24, 16  ;;  %v2499_v58 = vshrl.u32 %v5370_v54, 16  ;;  %v3576_v14 = vshrl.u32 %v3553_v26, 16  ;;  %v3575_v54 = vshrl.u32 %v3519_v33, 16 }
 0x3e4   : > { %v5450_v39 = vrot.slane %v3343_v9, %v5762_v27  ;;  %v3376_v62 = vrot.slane %v3369_v16, %v5761_v8  ;;  %v5456_v53 = vrot.slane %v3344_v42, %v5762_v27  ;;  %v3951_v16 = vcombine.low %v3565_v23, %v3565_v23 }
 0x3e5   : > { %v2961_v20 = vpop.permute.xlu0 %2960  ;;  %v2963_v46 = vpop.permute.xlu1 %2962  ;;  %v2329_v56 = vpack.i.b16 %v2328_v31, %v2327_v28  ;;  %v2498_v42 = vshrl.u32 %v5380_v38, 16  ;;  %v3577_v28 = vpack.i.b16 %v3576_v14, %v3575_v54 }
 0x3e6   : > { %v3377_v34 = vcombine.low %v3368_v22, %v3376_v62  ;;  %v3378_v17 = vcombine.high %v3368_v22, %v3376_v62  ;;  %3584 = vrot.lane.b32.xlu0 %v3950_v51, %s4091_s9  ;;  %v5460_v13 = vcombine.high %v5450_v39, %v5760_v15 }
 0x3e7   : > { %v3894_v23 = vcombine.low %v2329_v56, %v2329_v56 }
 0x3e8   : > { %v5463_v4 = vrot.slane %v3377_v34, %v5762_v27  ;;  %v5466_v44 = vrot.slane %v3378_v17, %v5762_v27  ;;  %v3404_v5 = vshrl.u32 %v5460_v13, 16  ;;  %v2500_v34 = vpack.i.b16 %v2499_v58, %v2498_v42 }
 0x3e9   : > { %v2965_v49 = vpop.permute.xlu0 %2964  ;;  %v2967_v43 = vpop.permute.xlu1 %2966  ;;  %v3558_v17 = vshrl.u32 %v5422_v12, 16  ;;  %v3955_v58 = vcombine.low %v3577_v28, %v3577_v28 }
 0x3ea   : > { %v3393_v29 = vcombine.high %v5463_v4, %v5760_v15  ;;  %3600 = vrot.lane.b32.xlu0 %v3954_v41, %s4095_s13  ;;  %v3409_v2 = vpack.i.b16 %v5466_v44, %v5456_v53  ;;  %v2982_v26 = vcombine.low %v2959_v55, %v2967_v43  ;;  %v3905_v33 = vcombine.low %v2500_v34, %v2500_v34 }
 0x3eb   : > { %v3399_v14 = vshrl.u32 %v5463_v4, 16  ;;  %v5770_v12 = vpack.i.b16 %v5463_v4, %v5450_v39 }
 0x3ec   : > { %v3945_v51 = vcombine.low %v3409_v2, %v3409_v2  ;;  %v3405_v24 = vshrl.u32 %v3393_v29, 16  ;;  %v5489_v55 = vrot.slane %v2982_v26, %v5761_v8  ;;  %v3570_v26 = vshrl.u32 %v5425_v18, 16 }
 0x3ed   : > { %v2969_v40 = vpop.permute.xlu0 %2968  ;;  %v2971_v22 = vpop.permute.xlu1 %2970 }
 0x3ee   : > { %v2990_v62 = vcombine.low %v2963_v46, %v2971_v22  ;;  %3588 = vrot.lane.b32.xlu0 %v3951_v16, %s4092_s10  ;;  %3433 = vrot.lane.b32.xlu1 %v3945_v51, %s4093_s11  ;;  %v3406_v10 = vpack.i.b16 %v3405_v24, %v3404_v5  ;;  %v3016_v41 = vcombine.low %v2961_v20, %v2969_v40  ;;  %v3557_v46 = vshrl.u32 %v5429_v37, 16 }
 0x3ef   : > { %v3398_v24 = vshrl.u32 %v5450_v39, 16 }
 0x3f0   : > { %v3944_v31 = vcombine.low %v3406_v10, %v3406_v10  ;;  %v5483_v2 = vrot.slane %v2990_v62, %v5761_v8  ;;  %v3559_v20 = vpack.i.b16 %v3558_v17, %v3557_v46  ;;  %v5492_v43 = vrot.slane %v3016_v41, %v5761_v8 }
 0x3f1   : > { %v2973_v9 = vpop.permute.xlu0 %2972  ;;  %v2800_v38 = vpop.permute.xlu1 %2799  ;;  %v3400_v42 = vpack.i.b16 %v3399_v14, %v3398_v24  ;;  %v3569_v46 = vshrl.u32 %v5419_v63, 16  ;;  %v3410_v63 = vshrl.u32 %v5456_v53, 16 }
 0x3f2   : > { %v3024_v16 = vcombine.low %v2965_v49, %v2973_v9  ;;  %2352 = vrot.lane.b32.xlu1 %v3894_v23, %s4092_s10  ;;  %3429 = vrot.lane.b32.xlu0 %v3944_v31, %s4092_s10  ;;  %v2998_v49 = vcombine.low %v5489_v55, %v5483_v2  ;;  %v3949_v22 = vcombine.low %v3559_v20, %v3559_v20  ;;  %v3411_v20 = vshrl.u32 %v5466_v44, 16 }
 0x3f3   : > { %v3942_v41 = vcombine.low %v3400_v42, %v3400_v42  ;;  %v3403_v23 = vpack.i.b16 %v3393_v29, %v5460_v13  ;;  %v2999_v45 = vcombine.high %v5489_v55, %v5483_v2 }
 0x3f4   : > { %v5495_v56 = vrot.slane %v3024_v16, %v5761_v8  ;;  %v5509_v62 = vrot.slane %v2998_v49, %v5762_v27 }
 0x3f5   : > { %v2802_v9 = vpop.permute.xlu0 %2801  ;;  %v2804_v51 = vpop.permute.xlu1 %2803  ;;  %v3943_v49 = vcombine.low %v3403_v23, %v3403_v23  ;;  %v3013_v59 = vrot.slane %v2999_v45, %v5762_v27 }
 0x3f6   : > { %v3032_v5 = vcombine.low %v5492_v43, %v5495_v56  ;;  %2527 = vrot.lane.b32.xlu1 %v3905_v33, %s4096_s14  ;;  %3604 = vrot.lane.b32.xlu0 %v3955_v58, %s4096_s14  ;;  %v3571_v33 = vpack.i.b16 %v3570_v26, %v3569_v46 }
 0x3f8   : > { %v5506_v40 = vrot.slane %v3032_v5, %v5762_v27  ;;  %v3953_v29 = vcombine.low %v3571_v33, %v3571_v33 }
 0x3f9   : > { %v2806_v10 = vpop.permute.xlu0 %2805  ;;  %v2808_v54 = vpop.permute.xlu1 %2807 }
 0x3fa   : > { %3580 = vrot.lane.b32.xlu1 %v3949_v22, %s4090_s8  ;;  %v3052_v34 = vpack.i.b16 %v5506_v40, %v5509_v62  ;;  %v2823_v17 = vcombine.low %v2800_v38, %v2808_v54  ;;  %v3412_v54 = vpack.i.b16 %v3411_v20, %v3410_v63 }
 0x3fc   : > { %v2830_v58 = vrot.slane %v2823_v17, %v5761_v8  ;;  %v3946_v20 = vcombine.low %v3412_v54, %v3412_v54  ;;  %v3054_v54 = vshrl.u32 %v5506_v40, 16 }
 0x3fd   : > { %v2810_v31 = vpop.permute.xlu0 %2809  ;;  %v2812_v28 = vpop.permute.xlu1 %2811 }
 0x3fe   : > { %v2831_v16 = vcombine.low %v2804_v51, %v2812_v28  ;;  %3421 = vrot.lane.b32.xlu1 %v3942_v41, %s4090_s8  ;;  %v2857_v18 = vcombine.low %v2802_v9, %v2810_v31  ;;  %v3394_v51 = vcombine.high %v5466_v44, %v5760_v15  ;;  %v3360_v41 = vcombine.high %v5456_v53, %v5760_v15 }
 0x400   : > { %v2838_v14 = vrot.slane %v2831_v16, %v5761_v8  ;;  %v2864_v22 = vrot.slane %v2857_v18, %v5761_v8  ;;  %v3415_v28 = vpack.i.b16 %v3394_v51, %v3360_v41  ;;  %v3417_v46 = vshrl.u32 %v3394_v51, 16 }
 0x401   : > { %v2814_v38 = vpop.permute.xlu0 %2813  ;;  %v2186_v5 = vpop.permute.xlu1 %2185 }
 0x402   : > { %v2839_v24 = vcombine.low %v2830_v58, %v2838_v14  ;;  %v2865_v13 = vcombine.low %v2806_v10, %v2814_v38  ;;  %3425 = vrot.lane.b32.xlu1 %v3943_v49, %s4091_s9  ;;  %v2840_v42 = vcombine.high %v2830_v58, %v2838_v14  ;;  %v3416_v58 = vshrl.u32 %v3360_v41, 16 }
 0x403   : > { %v3947_v55 = vcombine.low %v3415_v28, %v3415_v28 }
 0x404   : > { %v2872_v9 = vrot.slane %v2865_v13, %v5761_v8  ;;  %v5530_v10 = vrot.slane %v2839_v24, %v5762_v27  ;;  %v3033_v8 = vcombine.high %v5492_v43, %v5495_v56  ;;  %v2854_v16 = vrot.slane %v2840_v42, %v5762_v27 }
 0x405   : > { %v2190_v26 = vpop.permute.xlu0 %2189  ;;  %v3263_v17 = vpop.permute.xlu1 %3262  ;;  %v3418_v38 = vpack.i.b16 %v3417_v46, %v3416_v58  ;;  %v3048_v46 = vcombine.high %v5506_v40, %v5760_v15 }
 0x406   : > { %v2873_v23 = vcombine.low %v2864_v22, %v2872_v9  ;;  %v2874_v31 = vcombine.high %v2864_v22, %v2872_v9  ;;  %v3290_v44 = vsel %vm417_vm4, %v3238_v61, %v3263_v17  ;;  %3596 = vrot.lane.b32.xlu1 %v3953_v29, %s4094_s12  ;;  %v2894_v18 = vshrl.u32 %v5530_v10, 16 }
 0x407   : > { %v3047_v49 = vrot.slane %v3033_v8, %v5762_v27  ;;  %v2855_v22 = vcombine.high %v5530_v10, %v5760_v15  ;;  %v3948_v9 = vcombine.low %v3418_v38, %v3418_v38  ;;  %v2906_v8 = vshrl.u32 %v2854_v16, 16 }
 0x408   : > { %v5541_v53 = vrot.slane %v2873_v23, %v5762_v27  ;;  %v2888_v33 = vrot.slane %v2874_v31, %v5762_v27 }
 0x409   : > { %v2178_v50 = vpop.permute.xlu0 %2177  ;;  %v5546_v61 = vpop.permute.xlu1 %2770  ;;  %v3064_v27 = vpack.i.b16 %v3047_v49, %v3013_v59 }
 0x40a   : > { %v2205_v43 = vsel %vm417_vm4, %v2153_v3, %v2178_v50  ;;  %3437 = vrot.lane.b32.xlu1 %v3946_v20, %s4094_s12  ;;  %v2905_v56 = vpack.i.b16 %v2888_v33, %v2854_v16  ;;  %v2895_v14 = vshrl.u32 %v5541_v53, 16  ;;  %v2893_v2 = vpack.i.b16 %v5541_v53, %v5530_v10 }
 0x40b   : > { %v2889_v0 = vcombine.high %v5541_v53, %v5760_v15  ;;  %v2907_v23 = vshrl.u32 %v2888_v33, 16  ;;  %v3923_v28 = vcombine.low %v3064_v27, %v3064_v27 }
 0x40c   : > { %v3916_v24 = vcombine.low %v2905_v56, %v2905_v56  ;;  %v2896_v13 = vpack.i.b16 %v2895_v14, %v2894_v18  ;;  %v3014_v56 = vcombine.high %v5509_v62, %v5760_v15  ;;  %v2856_v14 = vcombine.high %v2854_v16, %v5760_v15 }
 0x40d   : > { %v2182_v3 = vpop.permute.xlu0 %2181  ;;  %v2759_v63 = vpop.permute.xlu1 %2758  ;;  %v2899_v41 = vpack.i.b16 %v2889_v0, %v2855_v22  ;;  %v2908_v50 = vpack.i.b16 %v2907_v23, %v2906_v8 }
 0x40e   : > { %v2207_v29 = vsel %vm421_vm5, %v2205_v43, %v2182_v3  ;;  %v2786_v51 = vsel %vm417_vm4, %v2734_v19, %v2759_v63  ;;  %3441 = vrot.lane.b32.xlu1 %v3947_v55, %s4095_s13  ;;  %2929 = vrot.lane.b32.xlu0 %v3916_v24, %s4093_s11  ;;  %v3913_v17 = vcombine.low %v2896_v13, %v2896_v13  ;;  %v3066_v55 = vshrl.u32 %v3047_v49, 16 }
 0x40f   : > { %v2209_v42 = vsel %vm424_vm6, %v2207_v29, %v2186_v5  ;;  %v3053_v5 = vshrl.u32 %v5509_v62, 16  ;;  %v3914_v20 = vcombine.low %v2899_v41, %v2899_v41  ;;  %v3058_v38 = vpack.i.b16 %v3048_v46, %v3014_v56 }
 0x410   : > { %v5573_v48 = vsel %vm427_vm7, %v2209_v42, %v2190_v26  ;;  %v2890_v26 = vcombine.high %v2888_v33, %v5760_v15  ;;  %v3917_v13 = vcombine.low %v2908_v50, %v2908_v50  ;;  %v2901_v63 = vshrl.u32 %v2889_v0, 16 }
 0x411   : > { %v3275_v21 = vpop.permute.xlu0 %3274  ;;  %v2763_v19 = vpop.permute.xlu1 %2762  ;;  %v3055_v45 = vpack.i.b16 %v3054_v54, %v3053_v5  ;;  %v3921_v27 = vcombine.low %v3058_v38, %v3058_v38  ;;  %v2912_v5 = vshrl.u32 %v2856_v14, 16 }
 0x412   : > { %v2788_v31 = vsel %vm421_vm5, %v2786_v51, %v2763_v19  ;;  %3445 = vrot.lane.b32.xlu1 %v3948_v9, %s4096_s14  ;;  %2917 = vrot.lane.b32.xlu0 %v3913_v17, %s4090_s8  ;;  %v2911_v3 = vpack.i.b16 %v2890_v26, %v2856_v14  ;;  %v3065_v51 = vshrl.u32 %v3013_v59, 16  ;;  %v3049_v9 = vcombine.high %v3047_v49, %v5760_v15 }
 0x413   : > { %v3920_v24 = vcombine.low %v3055_v45, %v3055_v45  ;;  %v2913_v17 = vshrl.u32 %v2890_v26, 16  ;;  %v3015_v19 = vcombine.high %v3013_v59, %v5760_v15  ;;  %v3060_v49 = vshrl.u32 %v3048_v46, 16 }
 0x414   : > { %v3067_v42 = vpack.i.b16 %v3066_v55, %v3065_v51  ;;  %v3918_v54 = vcombine.low %v2911_v3, %v2911_v3  ;;  %v3890_v51 = vcombine.low %v5232_v7, %v5232_v7 }
 0x415   : > { %v3267_v58 = vpop.permute.xlu0 %3266  ;;  %v2775_v43 = vpop.permute.xlu1 %2774  ;;  %v3070_v8 = vpack.i.b16 %v3049_v9, %v3015_v19  ;;  %v2914_v50 = vpack.i.b16 %v2913_v17, %v2912_v5 }
 0x416   : > { %v3292_v18 = vsel %vm421_vm5, %v3290_v44, %v3267_v58  ;;  %3088 = vrot.lane.b32.xlu1 %v3923_v28, %s4093_s11  ;;  %2921 = vrot.lane.b32.xlu0 %v3914_v20, %s4091_s9  ;;  %v2900_v44 = vshrl.u32 %v2855_v22, 16  ;;  %v3924_v20 = vcombine.low %v3067_v42, %v3067_v42  ;;  %v3897_v42 = vcombine.low %v5403_v47, %v5403_v47 }
 0x417   : > { %v3925_v38 = vcombine.low %v3070_v8, %v3070_v8  ;;  %v3919_v55 = vcombine.low %v2914_v50, %v2914_v50 }
 0x418   : > { %v2902_v16 = vpack.i.b16 %v2901_v63, %v2900_v44  ;;  %v3071_v63 = vshrl.u32 %v3015_v19, 16 }
 0x419   : > { %v3279_v33 = vpop.permute.xlu0 %3278  ;;  %v2779_v29 = vpop.permute.xlu1 %2778 }
 0x41a   : > { %3076 = vrot.lane.b32.xlu1 %v3920_v24, %s4090_s8  ;;  %2933 = vrot.lane.b32.xlu0 %v3917_v13, %s4094_s12  ;;  %v3915_v45 = vcombine.low %v2902_v16, %v2902_v16 }
 0x41d   : > { %v3283_v41 = vpop.permute.xlu0 %3282  ;;  %v2767_v23 = vpop.permute.xlu1 %2766 }
 0x41e   : > { %v2790_v0 = vsel %vm424_vm6, %v2788_v31, %v2767_v23  ;;  %3080 = vrot.lane.b32.xlu1 %v3921_v27, %s4091_s9  ;;  %2937 = vrot.lane.b32.xlu0 %v3918_v54, %s4095_s13  ;;  %v3891_v54 = vcombine.low %v5234_v32, %v5234_v32 }
 0x41f   : > { %v2792_v22 = vsel %vm427_vm7, %v2790_v0, %v5546_v61  ;;  %v3059_v61 = vshrl.u32 %v3014_v56, 16 }
 0x420   : > { %v2794_v28 = vsel %vm430_vm8, %v2792_v22, %v2775_v43  ;;  %v3072_v43 = vshrl.u32 %v3049_v9, 16  ;;  %v3898_v9 = vcombine.low %v5410_v11, %v5410_v11  ;;  %v5634_v47 = vpop.f32.mrf.mxu0  ;;  %v3642_v11 = vld [vmem:[%s5734_s4] sm:$0xff] }
 0x421   : > { %v3271_v26 = vpop.permute.xlu0 %3270  ;;  %v2796_v15 = vsel %vm433_vm9, %v2794_v28, %v2779_v29  ;;  %v2783_v59 = vpop.permute.xlu1 %2782  ;;  %v3061_v24 = vpack.i.b16 %v3060_v49, %v3059_v61 }
 0x422   : > { %v3294_v31 = vsel %vm424_vm6, %v3292_v18, %v3271_v26  ;;  %v5601_v58 = vsel %vm436_vm10, %v2796_v15, %v2783_v59  ;;  %3092 = vrot.lane.b32.xlu1 %v3924_v20, %s4094_s12  ;;  %2925 = vrot.lane.b32.xlu0 %v3915_v45, %s4092_s10  ;;  %v3073_v29 = vpack.i.b16 %v3072_v43, %v3071_v63  ;;  %v4045_v1 = vpop.f32.mrf.mxu0 }
 0x423   : > { %v3296_v46 = vsel %vm427_vm7, %v3294_v31, %v3275_v21  ;;  %v3922_v56 = vcombine.low %v3061_v24, %v3061_v24  ;;  %v3889_v21 = vcombine.low %v5230_v52, %v5230_v52  ;;  %v3624_v61 = vrot.slane %v5601_v58, 4 }
 0x424   : > { %v3298_v14 = vsel %vm430_vm8, %v3296_v46, %v3279_v33  ;;  %v3926_v33 = vcombine.low %v3073_v29, %v3073_v29 }
 0x425   : > { %v3287_v13 = vpop.permute.xlu0 %3286  ;;  %v3300_v3 = vsel %vm433_vm9, %v3298_v14, %v3283_v41 }
 0x426   : > { %v5609_v18 = vsel %vm436_vm10, %v3300_v3, %v3287_v13  ;;  %3096 = vrot.lane.b32.xlu1 %v3925_v38, %s4095_s13  ;;  %2941 = vrot.lane.b32.xlu0 %v3919_v55, %s4096_s14 }
 0x42a   : > { %3084 = vrot.lane.b32.xlu1 %v3922_v56, %s4092_s10  ;;  %2193 = vrot.lane.b32.xlu0 %v3889_v21, %s4094_s12 }
 0x42e   : > { %3100 = vrot.lane.b32.xlu1 %v3926_v33, %s4096_s14  ;;  %2197 = vrot.lane.b32.xlu0 %v3890_v51, %s4095_s13 }
 0x430   : > { %v2516_v44 = vpop.permute.xlu0 %2515 }
 0x432   : > { %2364 = vrot.lane.b32.xlu1 %v3897_v42, %s4095_s13  ;;  %3645 = vperm.xlu0 %4078, %v3642_v11   ;;  %s3812_s13 = sshll.u32 %s5772_s25, 2 }
 0x433   : > { %s276_s18 = scalar_lea.vmem %s5737_s7, %s3812_s13 }
 0x434   : > { %v2504_v52 = vpop.permute.xlu0 %2503 }
 0x435   : > { %v2531_v27 = vsel %vm417_vm4, %v2479_v25, %v2504_v52  ;;  %v3744_v25 = vpop.f32.mrf.mxu0 }
 0x436   : > { %2368 = vrot.lane.b32.xlu1 %v3898_v9, %s4096_s14 }
 0x437   : > { %v4046_v17 = vpop.f32.mrf.mxu0 }
 0x438   : > { %v2508_v7 = vpop.permute.xlu0 %2507 }
 0x439   : > { %v2533_v16 = vsel %vm421_vm5, %v2531_v27, %v2508_v7 }
 0x43a   : > { %2201 = vrot.lane.b32.xlu1 %v3891_v54, %s4096_s14 }
 0x43c   : > { %v2520_v32 = vpop.permute.xlu0 %2519 }
 0x43e   : > { %3698 = vperm.xlu1 %4077, %v3695_v6  }
 0x440   : > { %v2357_v41 = vpop.permute.xlu1 %2356  ;;  %v2524_v0 = vpop.permute.xlu0 %2523 }
 0x444   : > { %v2345_v23 = vpop.permute.xlu1 %2344  ;;  %v2361_v8 = vpop.permute.xlu0 %2360 }
 0x445   : > { %v2372_v19 = vsel %vm417_vm4, %v2320_v60, %v2345_v23 }
 0x448   : > { %v2349_v5 = vpop.permute.xlu1 %2348 }
 0x449   : > { %v2374_v22 = vsel %vm421_vm5, %v2372_v19, %v2349_v5 }
 0x450   : > { %v3593_v49 = vpop.permute.xlu0 %3592 }
 0x454   : > { %v2512_v28 = vpop.permute.xlu0 %2511 }
 0x455   : > { %v2535_v20 = vsel %vm424_vm6, %v2533_v16, %v2512_v28 }
 0x456   : > { %v2537_v45 = vsel %vm427_vm7, %v2535_v20, %v2516_v44 }
 0x457   : > { %v2539_v50 = vsel %vm430_vm8, %v2537_v45, %v2520_v32 }
 0x458   : > { %v2541_v26 = vsel %vm433_vm9, %v2539_v50, %v2524_v0  ;;  %v3585_v59 = vpop.permute.xlu0 %3584 }
 0x45c   : > { %v3601_v46 = vpop.permute.xlu0 %3600 }
 0x460   : > { %v3434_v15 = vpop.permute.xlu1 %3433  ;;  %v3589_v24 = vpop.permute.xlu0 %3588 }
 0x464   : > { %v2353_v57 = vpop.permute.xlu1 %2352  ;;  %v3430_v56 = vpop.permute.xlu0 %3429 }
 0x465   : > { %v2376_v35 = vsel %vm424_vm6, %v2374_v22, %v2353_v57 }
 0x466   : > { %v2378_v60 = vsel %vm427_vm7, %v2376_v35, %v2357_v41 }
 0x467   : > { %v5655_v31 = vsel %vm430_vm8, %v2378_v60, %v2361_v8 }
 0x468   : > { %v2528_v43 = vpop.permute.xlu1 %2527  ;;  %v3605_v44 = vpop.permute.xlu0 %3604 }
 0x469   : > { %v2543_v14 = vsel %vm436_vm10, %v2541_v26, %v2528_v43 }
 0x46a   : > { %v5660_v38 = vsel %vm1625_vm12, %v2543_v14, %v3624_v61 }
 0x46c   : > { %v3581_v55 = vpop.permute.xlu1 %3580 }
 0x46d   : > { %v3608_v13 = vsel %vm417_vm4, %v3556_v36, %v3581_v55 }
 0x46e   : > { %v3610_v63 = vsel %vm421_vm5, %v3608_v13, %v3585_v59 }
 0x46f   : > { %v3612_v58 = vsel %vm424_vm6, %v3610_v63, %v3589_v24 }
 0x470   : > { %v3422_v3 = vpop.permute.xlu1 %3421  ;;  %v3614_v29 = vsel %vm427_vm7, %v3612_v58, %v3593_v49 }
 0x471   : > { %v3449_v37 = vsel %vm417_vm4, %v5770_v12, %v3422_v3 }
 0x474   : > { %v3426_v21 = vpop.permute.xlu1 %3425 }
 0x475   : > { %v3451_v52 = vsel %vm421_vm5, %v3449_v37, %v3426_v21 }
 0x476   : > { %v3453_v7 = vsel %vm424_vm6, %v3451_v52, %v3430_v56 }
 0x477   : > { %v3455_v11 = vsel %vm427_vm7, %v3453_v7, %v3434_v15 }
 0x478   : > { %v3597_v33 = vpop.permute.xlu1 %3596 }
 0x479   : > { %v3616_v51 = vsel %vm430_vm8, %v3614_v29, %v3597_v33 }
 0x47a   : > { %v3618_v42 = vsel %vm433_vm9, %v3616_v51, %v3601_v46  ;;  %v3641_v51 = vld [vmem:[%s5733_s3] sm:$0xf] }
 0x47b   : > { %v3620_v36 = vsel %vm436_vm10, %v3618_v42, %v3605_v44 }
 0x47c   : > { %v3438_v9 = vpop.permute.xlu1 %3437  ;;  %v3652_v27 = vsel %vm1625_vm12, %v3620_v36, 0 }
 0x47d   : > { %4028 = vmatpush3.bf16.msra.mxu1 %v3652_v27  ;;  %v3457_v39 = vsel %vm430_vm8, %v3455_v11, %v3438_v9 }
 0x47e   : > { %4029 = vmatprep.subr.bf16.mxu1 %v5758_v30 }
 0x480   : > { %v2930_v54 = vpop.permute.xlu0 %2929  ;;  %v3442_v16 = vpop.permute.xlu1 %3441 }
 0x481   : > { %v3459_v4 = vsel %vm433_vm9, %v3457_v39, %v3442_v16 }
 0x484   : > { %v2918_v6 = vpop.permute.xlu0 %2917  ;;  %v3446_v1 = vpop.permute.xlu1 %3445 }
 0x485   : > { %v3461_v25 = vsel %vm436_vm10, %v3459_v4, %v3446_v1  ;;  %v2945_v28 = vsel %vm417_vm4, %v2893_v2, %v2918_v6 }
 0x486   : > { %v3628_v17 = vrot.slane %v3461_v25, 4 }
 0x488   : > { %v2922_v32 = vpop.permute.xlu0 %2921  ;;  %v3089_v41 = vpop.permute.xlu1 %3088  ;;  %v3639_v23 = vsel %vm1625_vm12, %v5609_v18, %v3628_v17 }
 0x489   : > { %4030 = vmatpush3.bf16.msra.mxu1 %v3639_v23  ;;  %v2947_v20 = vsel %vm421_vm5, %v2945_v28, %v2922_v32 }
 0x48a   : > { %4031 = vmatprep.subr.bf16.mxu1 %v5758_v30 }
 0x48c   : > { %v2934_v19 = vpop.permute.xlu0 %2933  ;;  %v3077_v0 = vpop.permute.xlu1 %3076 }
 0x48d   : > { %v3104_v26 = vsel %vm417_vm4, %v3052_v34, %v3077_v0  ;;  %vm3648_vm4 = vcmask 588800  }
 0x490   : > { %v2938_v5 = vpop.permute.xlu0 %2937  ;;  %v3081_v22 = vpop.permute.xlu1 %3080 }
 0x491   : > { %v3106_v15 = vsel %vm421_vm5, %v3104_v26, %v3081_v22  ;;  %vm3750_vm5 = vcmask 519168  }
 0x494   : > { %v2926_v8 = vpop.permute.xlu0 %2925  ;;  %v3093_v49 = vpop.permute.xlu1 %3092 }
 0x495   : > { %v2949_v45 = vsel %vm424_vm6, %v2947_v20, %v2926_v8 }
 0x496   : > { %v2951_v18 = vsel %vm427_vm7, %v2949_v45, %v2930_v54 }
 0x497   : > { %v2953_v57 = vsel %vm430_vm8, %v2951_v18, %v2934_v19 }
 0x498   : > { %v3097_v50 = vpop.permute.xlu1 %3096  ;;  %v2942_v10 = vpop.permute.xlu0 %2941  ;;  %v2955_v60 = vsel %vm433_vm9, %v2953_v57, %v2938_v5 }
 0x499   : > { %v2957_v34 = vsel %vm436_vm10, %v2955_v60, %v2942_v10 }
 0x49c   : > { %v3085_v59 = vpop.permute.xlu1 %3084  ;;  %v2194_v43 = vpop.permute.xlu0 %2193 }
 0x49d   : > { %v3108_v53 = vsel %vm424_vm6, %v3106_v15, %v3085_v59  ;;  %v2213_v56 = vsel %vm430_vm8, %v5573_v48, %v2194_v43 }
 0x49e   : > { %v3110_v2 = vsel %vm427_vm7, %v3108_v53, %v3089_v41 }
 0x49f   : > { %v3112_v35 = vsel %vm430_vm8, %v3110_v2, %v3093_v49 }
 0x4a0   : > { %v3114_v61 = vsel %vm433_vm9, %v3112_v35, %v3097_v50  ;;  %v3101_v46 = vpop.permute.xlu1 %3100  ;;  %v2198_v3 = vpop.permute.xlu0 %2197 }
 0x4a1   : > { %v3116_v40 = vsel %vm436_vm10, %v3114_v61, %v3101_v46  ;;  %v2215_v21 = vsel %vm433_vm9, %v2213_v56, %v2198_v3 }
 0x4a2   : > { %v3626_v62 = vrot.slane %v3116_v40, 4 }
 0x4a4   : > { %v2365_v14 = vpop.permute.xlu1 %2364  ;;  %v3636_v55 = vsel %vm1625_vm12, %v2957_v34, %v3626_v62 }
 0x4a5   : > { %4032 = vmatpush3.bf16.msra.mxu1 %v3636_v55  ;;  %v2382_v24 = vsel %vm433_vm9, %v5655_v31, %v2365_v14 }
 0x4a6   : > { %4033 = vmatprep.subr.bf16.mxu1 %v5758_v30 }
 0x4a8   : > { %v2369_v13 = vpop.permute.xlu1 %2368 }
 0x4a9   : > { %v2384_v63 = vsel %vm436_vm10, %v2382_v24, %v2369_v13  ;;  %4034 = vmatpush3.bf16.msra.mxu1 %v5660_v38 }
 0x4aa   : > { %4035 = vmatprep.subr.bf16.mxu1 %v5758_v30  ;;  %v3622_v58 = vrot.slane %v2384_v63, 4 }
 0x4ac   : > { %v2202_v29 = vpop.permute.xlu1 %2201 }
 0x4ad   : > { %v2217_v33 = vsel %vm436_vm10, %v2215_v21, %v2202_v29  ;;  %v3646_v38 = vpop.permute.xlu0 %3645 }
 0x4ae   : > { %v3630_v31 = vsel %vm1625_vm12, %v2217_v33, %v3622_v58 }
 0x4af   : > { %4036 = vmatpush3.bf16.msra.mxu1 %v3630_v31 }
 0x4b2   : > { %4038 = vmatmul.mubr.msk.bf16.vlgmr.msra.gmra.mxu1 %vm3648_vm4, %v3641_v51 }
 0x4b9   : > { %v3699_v30 = vpop.permute.xlu1 %3698 }
 0x4ba   : > { %v3742_v48 = vadd.f32 %v5634_v47, %v3699_v30 }
 0x572   : > { %v3688_v44 = vpop.f32.mrf.mxu1 }
 0x573   : > { %v3689_v42 = vadd.f32 %v3688_v44, %v3646_v38 }
 0x574   : > { %v4039_v12 = vpop.f32.mrf.mxu1 }
 0x575   : > { %v3747_v37 = vadd.f32 %v3742_v48, %v3689_v42 }
 0x576   : > { %v3691_v36 = vpop.f32.mrf.mxu1 }
 0x577   : > { %v3748_v52 = vmax.f32 %v3747_v37, 0.0 }
 0x578   : > { %v4040_v9 = vpop.f32.mrf.mxu1 }
 0x579   : > { %v3749_v27 = vpack.c.bf16 %v3748_v52, %v3748_v52 }
 0x57b   : > { %3751 = vst.msk [vmem:[%s276_s18] sm:$0xf] %vm3750_vm5, %v3749_v27 }
 0x57c PF: > { %s17_s24 = sadd.s32 1, %s4085_s24  }
 0x57d   : > { %p14_p4 = scmp.ge.s32.totalorder %s17_s24, 4  }
 0x57f   :  { %16 = sbr.rel (!%p14_p4) target bundleno = 1 (0x1), region = 78 }

// kernel: fwd.2
= control target key start
LH: loop header
LB: loop body
LE: loop exit
PB: predicated region body
PF: predicated region fallthrough
CT: control target
= control target key end

     0   :  { %s6550_s18 = smov 0   ;;  %s9909_s0 = inlined_call_operand.vmem [shape: bf16[2,4,18,18], index: 0, kind: input, shape index: {}]   ;;  %s9910_s1 = inlined_call_operand.vmem [shape: bf16[4,36], index: 1, kind: input, shape index: {}]   ;;  %s9911_s2 = inlined_call_operand.vmem [shape: f32[4,1], index: 2, kind: input, shape index: {}]   ;;  %s9912_s3 = inlined_call_operand.vmem [shape: bf16[4,36], index: 3, kind: input, shape index: {}]   ;;  %s9913_s4 = inlined_call_operand.vmem [shape: f32[4,1], index: 4, kind: input, shape index: {}]   ;;  %s9914_s5 = inlined_call_operand.vmem [shape: bf16[2,4,256], index: 5, kind: output, shape index: {}]  }
   0x1 LB: > { %s6031_s19 = sadd.s32 4294967295, %s6505_s18   ;;  %p6035_p0 = scmp.ge.s32.totalorder %s6505_s18, 1  ;;  %s6505_s18 = sphi %s6550_s18, %s15_s18  }
   0x2   : > { %p187_p1 = scmp.lt.s32.totalorder %s6505_s18, 3 }
   0x4   : > { %p188_p2 = pnand %p6035_p0, %p187_p1 }
   0x6   : > { %191 = sbr.rel (%p188_p2) target bundleno = 1736 (0x6c8), region = 40 }
   0xb   : > { %p215_p3 = scmp.lt.s32.totalorder %s6031_s19, 1  ;;  %vm1966_vm0 = vcmask 1042432   ;;  %vm1967_vm1 = vcmask 1046532   ;;  %v9994_v0 = vmov 0  ;;  %vm1065_vm3 = vsmask.f32 3328 }
   0xc   : > { %vm6566_vm2 = vmor %vm1966_vm0, %vm1967_vm1  ;;  %vm1066_vm4 = vsmask.f32 7440  ;;  %s6507_s24 = smov 126   ;;  %v10001_v33 = vmov 0  ;;  %s6508_s25 = smov 127   ;;  %vm468_vm6 = vcmask 130048  }
   0xd   : > { %s10268_s19 = smov (!%p215_p3, %s6031_s19), 1  ;;  %v9995_v0 = vsel %vm6566_vm2, 4294967295, %v9994_v0  ;;  %vm6631_vm5 = vmor %vm1065_vm3, %vm1066_vm4  ;;  %s6511_s26 = smov 16   ;;  %vm472_vm7 = vcmask 261120   ;;  %vm478_vm8 = vcmask 523264   ;;  %vm475_vm9 = vcmask 392192  }
   0xe   : > { %s6468_s20 = smul.u32 48, %s10268_s19  ;;  %9996 = vst [vmem:[#allocation3_spill] sm:$0xff] %v9995_v0  ;;  %v10002_v33 = vsel %vm6631_vm5, 4294967295, %v10001_v33  ;;  %s6512_s27 = smov 32   ;;  %vm481_vm10 = vcmask 654336   ;;  %vm484_vm11 = vcmask 785408  }
   0xf   : > { %10003 = vst [vmem:[#allocation8_spill] sm:$0xff] %v10002_v33  ;;  %s6513_s28 = smov 48   ;;  %s6514_s29 = smov 64   ;;  %vm487_vm12 = vcmask 916480   ;;  %vm2833_vm13 = vcmask 1041408   ;;  %vm2838_vm14 = vcmask 1043456  }
  0x10   : > { %s6564_s23 = scalar_lea.vmem %s9909_s0, %s6468_s20  ;;  %s6515_s30 = smov 96   ;;  %vm9978_vm15 = vcmask 1045504   ;;  %vm9977_vm0 = vcmask 293888   ;;  %vm2922_vm1 = vcmask 142336   ;;  %vm2925_vm3 = vcmask 139264  }
  0x11   : > { %v6571_v1 = vld [vmem:[%s6564_s23 + $0x4] sm:$0xf]  ;;  %v228_v2 = vld [vmem:[%s6564_s23 + $0x8] sm:$0x1]  ;;  %v6575_v3 = vld [vmem:[%s6564_s23] sm:$0xf] }
  0x12   : > { %9997 = vst [vmem:[#allocation4_spill] sm:$0xff] %v6571_v1  ;;  %v1971_v4 = vrot.slane %v6571_v1, 5  ;;  %v1974_v5 = vrot.slane %v228_v2, 5  ;;  %v6123_v6 = vrot.slane %v6575_v3, 9  ;;  %v6580_v7 = vld [vmem:[%s6564_s23 + $0x1c] sm:$0xf] }
  0x13   : > { %9998 = vst [vmem:[#allocation5_spill] sm:$0xff] %v6580_v7  ;;  %v9918_v8 = vshrl.u32 %v6571_v1, 16  ;;  %v6584_v9 = vld [vmem:[%s6564_s23 + $0x20] sm:$0x1]  ;;  %v9916_v10 = vshrl.u32 %v6580_v7, 16  ;;  %v1115_v11 = vshll.u32 %v6580_v7, 16 }
  0x14   : > { %v1075_v12 = vshll.u32 %v6571_v1, 16  ;;  %v1084_v13 = vshll.u32 %v228_v2, 16  ;;  %v1973_v14 = vrot.slane %v1971_v4, 4  ;;  %v6591_v15 = vsel %vm6566_vm2, %v6123_v6, %v1971_v4  ;;  %v6597_v18 = vld [vmem:[%s6564_s23 + $0x28] sm:$0xf]  ;;  %s6516_s6 = smov 80  }
  0x15   : > { %v1124_v16 = vshll.u32 %v6584_v9, 16  ;;  %v1080_v17 = vrot.slane %v9918_v8, 4  ;;  %9999 = vst [vmem:[#allocation6_spill] sm:$0xff] %v6597_v18  ;;  %2533 = vrot.lane.b32.xlu0 %v6591_v15, %s6507_s24  ;;  %v6601_v19 = vrot.slane %v1115_v11, 5  ;;  %v1120_v20 = vrot.slane %v9916_v10, 4  ;;  %s6517_s7 = smov 112  }
  0x16   : > { %v6605_v21 = vrot.slane %v1075_v12, 5  ;;  %v6608_v22 = vld [vmem:[%s6564_s23 + $0x2c] sm:$0x1]  ;;  %v6612_v23 = vsel %vm6566_vm2, %v1973_v14, %v1974_v5  ;;  %v9915_v25 = vshrl.u32 %v6597_v18, 16  ;;  %v6616_v26 = vld [vmem:[%s6564_s23 + $0x10] sm:$0xf] }
  0x17   : > { %v1126_v24 = vrot.slane %v1124_v16, 5  ;;  %10000 = vst [vmem:[#allocation7_spill] sm:$0xff] %v6616_v26  ;;  %2535 = vrot.lane.b32.xlu1 %v6612_v23, %s6507_s24  ;;  %v1121_v27 = vor.u32 %v1120_v20, %v6601_v19  ;;  %v1086_v29 = vrot.slane %v1084_v13, 5  ;;  %v1135_v30 = vshll.u32 %v6597_v18, 16  ;;  %v6624_v31 = vld [vmem:[%s6564_s23 + $0x14] sm:$0x1] }
  0x18   : > { %v1081_v28 = vor.u32 %v1080_v17, %v6605_v21  ;;  %v6627_v32 = vld [vmem:[%s6564_s23 + $0xc] sm:$0xf]  ;;  %v1140_v34 = vrot.slane %v9915_v25, 4  ;;  %v1144_v35 = vshll.u32 %v6608_v22, 16  ;;  %v9917_v36 = vshrl.u32 %v6616_v26, 16  ;;  %s6519_s12 = smov 1  }
  0x19   : > { %v1095_v37 = vshll.u32 %v6616_v26, 16  ;;  %v1122_v38 = vrot.slane %v1121_v27, 4  ;;  %v6640_v40 = vrot.slane %v1135_v30, 5  ;;  %v1104_v41 = vshll.u32 %v6624_v31, 16  ;;  %v6656_v50 = vld [vmem:[%s6564_s23 + $0x24] sm:$0xf] }
  0x1a   : > { %v1082_v39 = vrot.slane %v1081_v28, 4  ;;  %v1146_v42 = vrot.slane %v1144_v35, 5  ;;  %v1100_v44 = vrot.slane %v9917_v36, 4  ;;  %v242_v45 = vshrl.u32 %v6627_v32, 16  ;;  %v6659_v51 = vld [vmem:[%s6564_s23 + $0x18] sm:$0xf] }
  0x1b   : > { %v1097_v43 = vrot.slane %v1095_v37, 5  ;;  %v6648_v46 = vsel %vm6631_vm5, %v1122_v38, %v1126_v24  ;;  %v1141_v48 = vor.u32 %v1140_v34, %v6640_v40  ;;  %v1106_v49 = vrot.slane %v1104_v41, 5  ;;  %s6315_s17 = sshll.u32 %s10268_s19, 2 }
  0x1c   : > { %v6652_v47 = vsel %vm6631_vm5, %v1082_v39, %v1086_v29  ;;  %v1169_v52 = vshrl.u32 %v6648_v46, 16  ;;  %1696 = vrot.lane.b32.xlu1 %v6648_v46, %s6507_s24  ;;  %v1089_v55 = vrot.slane %v242_v45, 4  ;;  %v1090_v57 = vshll.u32 %v6627_v32, 16  ;;  %s224_s22 = scalar_lea.vmem %s9914_s5, %s6315_s17 }
  0x1d   : > { %v1163_v53 = vshrl.u32 %v6652_v47, 16  ;;  %1688 = vrot.lane.b32.xlu0 %v6652_v47, %s6507_s24  ;;  %v1101_v54 = vor.u32 %v1100_v44, %v1097_v43  ;;  %v1142_v56 = vrot.slane %v1141_v48, 4  ;;  %v241_v58 = vshrl.u32 %v6575_v3, 16 }
  0x1e   : > { %v1070_v59 = vshll.u32 %v6575_v3, 16  ;;  %v248_v61 = vshrl.u32 %v6656_v50, 16  ;;  %v1130_v62 = vshll.u32 %v6656_v50, 16  ;;  %v247_v63 = vshrl.u32 %v6659_v51, 16 }
  0x1f   : > { %v1102_v60 = vrot.slane %v1101_v54, 4  ;;  %v6675_v2 = vsel %vm6631_vm5, %v1142_v56, %v1146_v42  ;;  %v1092_v4 = vrot.slane %v1090_v57, 5  ;;  %v1069_v5 = vrot.slane %v241_v58, 4 }
  0x20   : > { %v1072_v6 = vrot.slane %v1070_v59, 5  ;;  %v1170_v12 = vshrl.u32 %v6675_v2, 16  ;;  %1700 = vrot.lane.b32.xlu1 %v6675_v2, %s6507_s24  ;;  %v6686_v14 = vpack.i.b16 %v242_v45, %v241_v58  ;;  %v1129_v28 = vrot.slane %v248_v61, 4 }
  0x21   : > { %v6684_v13 = vsel %vm6631_vm5, %v1102_v60, %v1106_v49  ;;  %v1093_v20 = vor.u32 %v1092_v4, %v1089_v55  ;;  %v1132_v29 = vrot.slane %v1130_v62, 5  ;;  %v6697_v38 = vpack.i.b16 %v248_v61, %v247_v63 }
  0x22   : > { %10004 = vst [vmem:[#allocation9_spill] sm:$0xff] %v6686_v14  ;;  %v1164_v17 = vshrl.u32 %v6684_v13, 16  ;;  %1692 = vrot.lane.b32.xlu0 %v6684_v13, %s6507_s24  ;;  %v1073_v24 = vor.u32 %v1072_v6, %v1069_v5  ;;  %v6693_v27 = vpack.i.b16 %v1170_v12, %v1169_v52  ;;  %v1109_v42 = vrot.slane %v247_v63, 4 }
  0x23   : > { %v1094_v34 = vrot.slane %v1093_v20, 4  ;;  %v1133_v37 = vor.u32 %v1132_v29, %v1129_v28  ;;  %10005 = vst [vmem:[#allocation10_spill] sm:$0xff] %v6697_v38  ;;  %v1110_v44 = vshll.u32 %v6659_v51, 16  ;;  %v1985_v56 = vrot.slane %v6580_v7, 5 }
  0x24   : > { %v6695_v30 = vpack.i.b16 %v1164_v17, %v1163_v53  ;;  %v1074_v35 = vrot.slane %v1073_v24, 4  ;;  %v1981_v53 = vrot.slane %v6624_v31, 5  ;;  %v2012_v59 = vshrl.u32 %v6612_v23, 16 }
  0x25   : > { %v6701_v39 = vsel %vm6631_vm5, %v1094_v34, %v1097_v43  ;;  %v1134_v49 = vrot.slane %v1133_v37, 4  ;;  %v1112_v52 = vrot.slane %v1110_v44, 5  ;;  %v6124_v60 = vrot.slane %v6627_v32, 9 }
  0x26   : > { %10006 = vst [vmem:[#allocation11_spill] sm:$0xff] %v6701_v39  ;;  %v6706_v41 = vsel %vm6631_vm5, %v1074_v35, %v6605_v21  ;;  %v1152_v45 = vshrl.u32 %v6701_v39, 16  ;;  %1690 = vrot.lane.b32.xlu1 %v6701_v39, %s6507_s24  ;;  %v1978_v21 = vrot.slane %v6616_v26, 5  ;;  %v1987_v62 = vrot.slane %v1985_v56, 4 }
  0x27   : > { %10007 = vst [vmem:[#allocation12_spill] sm:$0xff] %v6706_v41  ;;  %1686 = vrot.lane.b32.xlu0 %v6706_v41, %s6507_s24  ;;  %v1151_v48 = vshrl.u32 %v6706_v41, 16  ;;  %v6724_v55 = vsel %vm6631_vm5, %v1134_v49, %v6640_v40  ;;  %v1113_v57 = vor.u32 %v1112_v52, %v1109_v42  ;;  %v1988_v63 = vrot.slane %v6584_v9, 5 }
  0x28   : > { %10008 = vst [vmem:[#allocation13_spill] sm:$0xff] %v6724_v55  ;;  %v1980_v58 = vrot.slane %v1978_v21, 4  ;;  %v1158_v40 = vshrl.u32 %v6724_v55, 16  ;;  %v1992_v12 = vrot.slane %v6597_v18, 5  ;;  %v6752_v24 = vsel %vm6566_vm2, %v6124_v60, %v1978_v21 }
  0x29   : > { %v6719_v54 = vpack.i.b16 %v1152_v45, %v1151_v48  ;;  %v1114_v61 = vrot.slane %v1113_v57, 4  ;;  %v6125_v28 = vrot.slane %v6659_v51, 9  ;;  %v1995_v34 = vrot.slane %v6608_v22, 5 }
  0x2a   : > { %1698 = vrot.lane.b32.xlu1 %v6724_v55, %s6507_s24  ;;  %v1982_v31 = vsel %vm6566_vm2, %v1980_v58, %v1981_v53  ;;  %v1994_v29 = vrot.slane %v1992_v12, 4  ;;  %v6126_v44 = vrot.slane %v6656_v50, 9  ;;  %v6509_v45 = vmov 1983009808  }
  0x2b   : > { %v2013_v4 = vshrl.u32 %v1982_v31, 16  ;;  %v2011_v5 = vpack.i.b16 %v1982_v31, %v6612_v23  ;;  %v6739_v6 = vsel %vm6631_vm5, %v1114_v61, %v6601_v19  ;;  %v1989_v19 = vsel %vm6566_vm2, %v1987_v62, %v1988_v63 }
  0x2c   : > { %10009 = vst [vmem:[#allocation14_spill] sm:$0xff] %v6739_v6  ;;  %v1157_v20 = vshrl.u32 %v6739_v6, 16  ;;  %1694 = vrot.lane.b32.xlu0 %v6739_v6, %s6507_s24  ;;  %v6765_v37 = vsel %vm6566_vm2, %v6125_v28, %v1985_v56  ;;  %v1996_v42 = vsel %vm6566_vm2, %v1994_v29, %v1995_v34  ;;  %v6775_v22 = vsel %vm6566_vm2, %v6126_v44, %v1992_v12 }
  0x2d   : > { %v6748_v9 = vpack.i.b16 %v2013_v4, %v2012_v59  ;;  %v264_v48 = vunpack.c.l.s4 %v6509_v45  ;;  %v266_v49 = vlaneseq  ;;  %v2017_v53 = vpack.i.b16 %v1996_v42, %v1989_v19 }
  0x2e   : > { %2539 = vrot.lane.b32.xlu1 %v1982_v31, %s6507_s24  ;;  %v6758_v35 = vpack.i.b16 %v1158_v40, %v1157_v20  ;;  %v2018_v59 = vshrl.u32 %v1989_v19, 16  ;;  %v2019_v60 = vshrl.u32 %v1996_v42, 16  ;;  %v2000_v61 = vshrl.u32 %v6591_v15, 16 }
  0x2f   : > { %v265_v52 = vunpack.c.0.s8 %v264_v48  ;;  %v267_v21 = vshrl.u32 %v266_v49, 7  ;;  %v2006_v62 = vshrl.u32 %v6765_v37, 16  ;;  %v2007_v63 = vshrl.u32 %v6775_v22, 16 }
  0x30   : > { %2537 = vrot.lane.b32.xlu0 %v6752_v24, %s6507_s24  ;;  %v2020_v40 = vpack.i.b16 %v2019_v60, %v2018_v59  ;;  %v6510_v4 = vmov 1934713408   ;;  %v1999_v44 = vpack.i.b16 %v6752_v24, %v6591_v15  ;;  %v2005_v45 = vpack.i.b16 %v6775_v22, %v6765_v37 }
  0x31   : > { %v6794_v56 = vsub.s32 %v265_v52, %v267_v21  ;;  %v2008_v20 = vpack.i.b16 %v2007_v63, %v2006_v62  ;;  %vm3140_vm4 = vsmask.f32 256 }
  0x32   : > { %2543 = vrot.lane.b32.xlu1 %v1989_v19, %s6507_s24 }
  0x33   : > { %10010 = vst [vmem:[#allocation15_spill] sm:$0xff] %v6794_v56  ;;  %v6804_v57 = vrot.slane %v2017_v53, %v6794_v56  ;;  %v6845_v28 = vrot.slane %v2020_v40, %v6794_v56  ;;  %v6868_v52 = vrot.slane %v1999_v44, %v6794_v56 }
  0x34   : > { %2541 = vrot.lane.b32.xlu0 %v6765_v37, %s6507_s24 }
  0x35   : > { %10014 = vst [vmem:[#allocation19_spill] sm:$0xff] %v6868_v52 }
  0x36   : > { %2547 = vrot.lane.b32.xlu1 %v1996_v42, %s6507_s24 }
  0x38   : > { %2545 = vrot.lane.b32.xlu0 %v6775_v22, %s6507_s24 }
  0x3a   : > { %1414 = vrot.lane.b32.xlu1 %v6684_v13, %s6508_s25 }
  0x3c   : > { %1410 = vrot.lane.b32.xlu0 %v6652_v47, %s6508_s25 }
  0x3e   : > { %1422 = vrot.lane.b32.xlu1 %v6675_v2, %s6508_s25 }
  0x40   : > { %1418 = vrot.lane.b32.xlu0 %v6648_v46, %s6508_s25 }
  0x42   : > { %2263 = vrot.lane.b32.xlu1 %v1982_v31, %s6508_s25  ;;  %v2001_v31 = vshrl.u32 %v6752_v24, 16 }
  0x44   : > { %2259 = vrot.lane.b32.xlu0 %v6612_v23, %s6508_s25  ;;  %v6801_v23 = vrot.slane %v2011_v5, %v6794_v56  ;;  %v281_v5 = vunpack.c.l.s4 %v6510_v4  ;;  %v2002_v12 = vpack.i.b16 %v2001_v31, %v2000_v61 }
  0x46   : > { %2271 = vrot.lane.b32.xlu1 %v1996_v42, %s6508_s25  ;;  %v2105_v58 = vcombine.low %v6801_v23, %v6804_v57  ;;  %v282_v29 = vunpack.c.0.s8 %v281_v5  ;;  %v6848_v34 = vrot.slane %v2002_v12, %v6794_v56  ;;  %v6851_v42 = vrot.slane %v2008_v20, %v6794_v56 }
  0x48   : > { %2267 = vrot.lane.b32.xlu0 %v1989_v19, %s6508_s25  ;;  %v6842_v19 = vrot.slane %v6748_v9, %v6794_v56  ;;  %10011 = vst [vmem:[#allocation16_spill] sm:$0xff] %v6848_v34  ;;  %10012 = vst [vmem:[#allocation17_spill] sm:$0xff] %v6851_v42  ;;  %v6863_v48 = vsub.s32 %v282_v29, %v267_v21  ;;  %v2071_v49 = vcombine.low %v6848_v34, %v6851_v42 }
  0x4a   : > { %1412 = vrot.lane.b32.xlu1 %v6701_v39, %s6508_s25  ;;  %v2139_v9 = vcombine.low %v6842_v19, %v6845_v28  ;;  %10013 = vst [vmem:[#allocation18_spill] sm:$0xff] %v6863_v48  ;;  %v6886_v21 = vrot.slane %v2105_v58, %v6863_v48 }
  0x4c   : > { %1408 = vrot.lane.b32.xlu0 %v6706_v41, %s6508_s25  ;;  %10016 = vst [vmem:[#allocation21_spill] sm:$0xff] %v6886_v21 }
  0x4e   : > { %1420 = vrot.lane.b32.xlu1 %v6724_v55, %s6508_s25 }
  0x50   : > { %1416 = vrot.lane.b32.xlu0 %v6739_v6, %s6508_s25 }
  0x52   : > { %2261 = vrot.lane.b32.xlu1 %v6752_v24, %s6508_s25  ;;  %v2147_v24 = vrot.slane %v2139_v9, %v6863_v48 }
  0x54   : > { %2257 = vrot.lane.b32.xlu0 %v6591_v15, %s6508_s25  ;;  %v6871_v15 = vrot.slane %v2005_v45, %v6794_v56  ;;  %v6369_v58 = vcombine.high %v2147_v24, %v2147_v24 }
  0x56   : > { %2269 = vrot.lane.b32.xlu1 %v6775_v22, %s6508_s25  ;;  %10015 = vst [vmem:[#allocation20_spill] sm:$0xff] %v6871_v15  ;;  %v6134_v22 = vcombine.low %v2147_v24, %v2147_v24  ;;  %v2037_v53 = vcombine.low %v6868_v52, %v6871_v15 }
  0x58   : > { %2265 = vrot.lane.b32.xlu0 %v6765_v37, %s6508_s25  ;;  %v6879_v37 = vrot.slane %v2071_v49, %v6863_v48 }
  0x5a   : > { %519 = vrot.lane.b32.xlu1 %v6616_v26, %s6508_s25 }
  0x5c   : > { %515 = vrot.lane.b32.xlu0 %v6571_v1, %s6508_s25 }
  0x5e   : > { %527 = vrot.lane.b32.xlu1 %v6597_v18, %s6508_s25 }
  0x60   : > { %523 = vrot.lane.b32.xlu0 %v6580_v7, %s6508_s25 }
  0x62   : > { %517 = vrot.lane.b32.xlu1 %v6627_v32, %s6508_s25 }
  0x64   : > { %513 = vrot.lane.b32.xlu0 %v6575_v3, %s6508_s25 }
  0x66   : > { %525 = vrot.lane.b32.xlu1 %v6656_v50, %s6508_s25 }
  0x68   : > { %521 = vrot.lane.b32.xlu0 %v6659_v51, %s6508_s25 }
  0x6a   : > { %795 = vrot.lane.b32.xlu1 %v6616_v26, %s6507_s24 }
  0x6c   : > { %791 = vrot.lane.b32.xlu0 %v6571_v1, %s6507_s24 }
  0x6e   : > { %803 = vrot.lane.b32.xlu1 %v6597_v18, %s6507_s24 }
  0x70   : > { %799 = vrot.lane.b32.xlu0 %v6580_v7, %s6507_s24 }
  0x72   : > { %793 = vrot.lane.b32.xlu1 %v6627_v32, %s6507_s24  ;;  %v6127_v32 = vcombine.low %v6879_v37, %v6879_v37 }
  0x74   : > { %789 = vrot.lane.b32.xlu0 %v6575_v3, %s6507_s24  ;;  %v6368_v3 = vcombine.high %v6886_v21, %v6886_v21 }
  0x76   : > { %801 = vrot.lane.b32.xlu1 %v6656_v50, %s6507_s24  ;;  %v6898_v50 = vrot.slane %v2037_v53, %v6863_v48 }
  0x78   : > { %797 = vrot.lane.b32.xlu0 %v6659_v51, %s6507_s24  ;;  %10017 = vst [vmem:[#allocation22_spill] sm:$0xff] %v6898_v50  ;;  %v6364_v51 = vcombine.high %v6898_v50, %v6898_v50 }
  0x7a   : > { %2195 = vrot.lane.b32.xlu1 %v6134_v22, %s6511_s26 }
  0x7c   : > { %2200 = vrot.lane.b32.xlu0 %v6368_v3, %s6512_s27 }
  0x7e   : > { %2160 = vrot.lane.b32.xlu1 %v6127_v32, %s6511_s26 }
  0x80   : > { %2165 = vrot.lane.b32.xlu0 %v6364_v51, %s6512_s27 }
  0x82   : > { %2205 = vrot.lane.b32.xlu1 %v6369_v58, %s6513_s28 }
  0x87   : > { %v6906_v59 = vpop.permute.xlu0 %2533 }
  0x89   : > { %v2536_v60 = vpop.permute.xlu1 %2535 }
  0x8a   : > { %v2564_v17 = vshrl.u32 %v2536_v60, 16 }
  0x8e   : > { %v6908_v61 = vpop.permute.xlu1 %1696 }
  0x8f   : > { %v6910_v31 = vpop.permute.xlu0 %1688 }
  0x92   : > { %v6914_v63 = vpop.permute.xlu1 %1700 }
  0x94   : > { %v6916_v40 = vpop.permute.xlu0 %1692 }
  0x98   : > { %v6918_v4 = vpop.permute.xlu1 %1690 }
  0x99   : > { %v6920_v5 = vpop.permute.xlu0 %1686  ;;  %v1706_v20 = vshrl.u32 %v6918_v4, 16 }
  0x9a   : > { %v1705_v29 = vshrl.u32 %v6920_v5, 16 }
  0x9c   : > { %v6922_v12 = vpop.permute.xlu1 %1698  ;;  %v1707_v49 = vpack.i.b16 %v1706_v20, %v1705_v29 }
  0x9d   : > { %v1712_v44 = vshrl.u32 %v6922_v12, 16 }
  0x9e   : > { %v6927_v45 = vpop.permute.xlu0 %1694  ;;  %v6933_v3 = vrot.slane %v1707_v49, %v6794_v56 }
  0x9f   : > { %v1711_v24 = vshrl.u32 %v6927_v45, 16 }
  0xa0   : > { %v2540_v9 = vpop.permute.xlu1 %2539 }
  0xa1   : > { %v1713_v22 = vpack.i.b16 %v1712_v44, %v1711_v24  ;;  %v2565_v51 = vshrl.u32 %v2540_v9, 16  ;;  %v2563_v43 = vpack.i.b16 %v2540_v9, %v2536_v60 }
  0xa2   : > { %v6930_v53 = vpop.permute.xlu0 %2537 }
  0xa3   : > { %v6936_v58 = vrot.slane %v1713_v22, %v6794_v56  ;;  %v2566_v29 = vpack.i.b16 %v2565_v51, %v2564_v17  ;;  %v6943_v8 = vrot.slane %v2563_v43, %v6794_v56 }
  0xa4   : > { %v2544_v32 = vpop.permute.xlu1 %2543 }
  0xa5   : > { %v2570_v44 = vshrl.u32 %v2544_v32, 16  ;;  %10018 = vst [vmem:[#allocation23_spill] sm:$0xff] %v6943_v8  ;;  %v6953_v9 = vrot.slane %v2566_v29, %v6794_v56 }
  0xa6   : > { %v6940_v10 = vpop.permute.xlu0 %2541 }
  0xa7   : > { %v2558_v51 = vshrl.u32 %v6940_v10, 16 }
  0xa8   : > { %v2548_v20 = vpop.permute.xlu1 %2547 }
  0xa9   : > { %v2569_v24 = vpack.i.b16 %v2548_v20, %v2544_v32  ;;  %v2571_v36 = vshrl.u32 %v2548_v20, 16 }
  0xaa   : > { %v6948_v62 = vpop.permute.xlu0 %2545 }
  0xab   : > { %v2572_v49 = vpack.i.b16 %v2571_v36, %v2570_v44  ;;  %v6946_v22 = vrot.slane %v2569_v24, %v6794_v56  ;;  %v2553_v36 = vshrl.u32 %v6930_v53, 16  ;;  %v2559_v20 = vshrl.u32 %v6948_v62, 16 }
  0xac   : > { %v6950_v60 = vpop.permute.xlu1 %1414  ;;  %v2552_v24 = vshrl.u32 %v6906_v59, 16 }
  0xad   : > { %10019 = vst [vmem:[#allocation24_spill] sm:$0xff] %v6946_v22  ;;  %v2657_v17 = vcombine.low %v6943_v8, %v6946_v22  ;;  %v6960_v43 = vrot.slane %v2572_v49, %v6794_v56  ;;  %v2560_v25 = vpack.i.b16 %v2559_v20, %v2558_v51 }
  0xae   : > { %v6971_v16 = vpop.permute.xlu0 %1410  ;;  %v2554_v49 = vpack.i.b16 %v2553_v36, %v2552_v24 }
  0xaf   : > { %v6966_v44 = vrot.slane %v2657_v17, %v6863_v48  ;;  %v6978_v33 = vrot.slane %v2560_v25, %v6794_v56  ;;  %v2691_v50 = vcombine.low %v6953_v9, %v6960_v43 }
  0xb0   : > { %v6973_v32 = vpop.permute.xlu1 %1422  ;;  %v6984_v29 = vrot.slane %v2554_v49, %v6794_v56 }
  0xb1   : > { %10020 = vst [vmem:[#allocation25_spill] sm:$0xff] %v6966_v44  ;;  %v6384_v11 = vcombine.high %v6966_v44, %v6966_v44  ;;  %10021 = vst [vmem:[#allocation26_spill] sm:$0xff] %v6978_v33 }
  0xb2   : > { %v6980_v0 = vpop.permute.xlu0 %1418  ;;  %10022 = vst [vmem:[#allocation27_spill] sm:$0xff] %v6984_v29 }
  0xb3   : > { %2752 = vrot.lane.b32.xlu1 %v6384_v11, %s6512_s27 }
  0xb4   : > { %v2264_v17 = vpop.permute.xlu1 %2263 }
  0xb5   : > { %v2289_v36 = vshrl.u32 %v2264_v17, 16 }
  0xb6   : > { %v2260_v51 = vpop.permute.xlu0 %2259 }
  0xb7   : > { %v2288_v24 = vshrl.u32 %v2260_v51, 16  ;;  %v2287_v21 = vpack.i.b16 %v2264_v17, %v2260_v51 }
  0xb8   : > { %v2272_v20 = vpop.permute.xlu1 %2271 }
  0xb9   : > { %v2295_v44 = vshrl.u32 %v2272_v20, 16  ;;  %v2290_v55 = vpack.i.b16 %v2289_v36, %v2288_v24  ;;  %v6989_v11 = vrot.slane %v2287_v21, %v6794_v56  ;;  %v10026_v24 = vpack.i.b16 %v6675_v2, %v6648_v46 }
  0xba   : > { %v2268_v6 = vpop.permute.xlu0 %2267  ;;  %v1704_v2 = vpack.i.b16 %v6918_v4, %v6920_v5 }
  0xbb   : > { %v2293_v41 = vpack.i.b16 %v2272_v20, %v2268_v6  ;;  %v2294_v39 = vshrl.u32 %v2268_v6, 16  ;;  %v6997_v17 = vrot.slane %v2290_v55, %v6794_v56  ;;  %v7017_v6 = vrot.slane %v10026_v24, %v6794_v56 }
  0xbc   : > { %v1413_v25 = vpop.permute.xlu1 %1412 }
  0xbd   : > { %v2296_v38 = vpack.i.b16 %v2295_v44, %v2294_v39  ;;  %v6992_v49 = vrot.slane %v2293_v41, %v6794_v56  ;;  %v1428_v14 = vshrl.u32 %v1413_v25, 16  ;;  %10023 = vst [vmem:[#allocation28_spill] sm:$0xff] %v6997_v17  ;;  %v1710_v41 = vpack.i.b16 %v6922_v12, %v6927_v45 }
  0xbe   : > { %v1409_v34 = vpop.permute.xlu0 %1408 }
  0xbf   : > { %v2381_v51 = vcombine.low %v6989_v11, %v6992_v49  ;;  %v7004_v39 = vrot.slane %v2296_v38, %v6794_v56  ;;  %v1427_v21 = vshrl.u32 %v1409_v34, 16  ;;  %v1426_v20 = vpack.i.b16 %v1413_v25, %v1409_v34 }
  0xc0   : > { %v1421_v42 = vpop.permute.xlu1 %1420  ;;  %v10027_v38 = vpack.i.b16 %v6684_v13, %v6652_v47  ;;  %v2699_v34 = vrot.slane %v2691_v50, %v6863_v48  ;;  %v7033_v47 = vrot.slane %v1710_v41, %v6794_v56 }
  0xc1   : > { %10024 = vst [vmem:[#allocation29_spill] sm:$0xff] %v7004_v39  ;;  %v1434_v36 = vshrl.u32 %v1421_v42, 16  ;;  %v7011_v55 = vrot.slane %v2381_v51, %v6863_v48  ;;  %v2415_v25 = vcombine.low %v6997_v17, %v7004_v39  ;;  %v1429_v51 = vpack.i.b16 %v1428_v14, %v1427_v21 }
  0xc2   : > { %v7023_v12 = vrot.slane %v10027_v38, %v6794_v56  ;;  %v1417_v45 = vpop.permute.xlu0 %1416  ;;  %v7036_v13 = vrot.slane %v1426_v20, %v6794_v56  ;;  %v1444_v14 = vpack.i.b16 %v6973_v32, %v6980_v0  ;;  %v6162_v38 = vcombine.low %v2699_v34, %v2699_v34 }
  0xc3   : > { %10025 = vst [vmem:[#allocation30_spill] sm:$0xff] %v7011_v55  ;;  %v1432_v44 = vpack.i.b16 %v1421_v42, %v1417_v45  ;;  %v1433_v7 = vshrl.u32 %v1417_v45, 16  ;;  %v6376_v46 = vcombine.high %v7011_v55, %v7011_v55  ;;  %v7047_v5 = vrot.slane %v1429_v51, %v6794_v56 }
  0xc4   : > { %v2262_v18 = vpop.permute.xlu1 %2261  ;;  %10028 = vst [vmem:[#allocation31_spill] sm:$0xff] %v7036_v13  ;;  %v7058_v20 = vrot.slane %v1704_v2, %v6794_v56  ;;  %v1722_v51 = vpack.i.b16 %v6914_v63, %v6908_v61  ;;  %v7072_v55 = vrot.slane %v1444_v14, %v6794_v56 }
  0xc5   : > { %v1435_v24 = vpack.i.b16 %v1434_v36, %v1433_v7  ;;  %v7039_v50 = vrot.slane %v1432_v44, %v6794_v56  ;;  %2476 = vrot.lane.b32.xlu1 %v6376_v46, %s6512_s27  ;;  %v2277_v42 = vshrl.u32 %v2262_v18, 16  ;;  %v7055_v44 = vrot.slane %v2415_v25, %v6863_v48 }
  0xc6   : > { %v2258_v21 = vpop.permute.xlu0 %2257  ;;  %v1438_v36 = vpack.i.b16 %v6950_v60, %v6971_v16  ;;  %v1716_v25 = vpack.i.b16 %v6916_v40, %v6910_v31  ;;  %v1742_v2 = vcombine.low %v7058_v20, %v7033_v47 }
  0xc7   : > { %10029 = vst [vmem:[#allocation32_spill] sm:$0xff] %v7039_v50  ;;  %v7052_v41 = vrot.slane %v1435_v24, %v6794_v56  ;;  %10030 = vst [vmem:[#allocation33_spill] sm:$0xff] %v7055_v44  ;;  %v2276_v46 = vshrl.u32 %v2258_v21, 16  ;;  %v2275_v7 = vpack.i.b16 %v2262_v18, %v2258_v21  ;;  %v6148_v18 = vcombine.low %v7055_v44, %v7055_v44 }
  0xc8   : > { %v2270_v45 = vpop.permute.xlu1 %2269  ;;  %v7079_v21 = vrot.slane %v1438_v36, %v6794_v56  ;;  %v6385_v36 = vcombine.high %v2699_v34, %v2699_v34 }
  0xc9   : > { %2747 = vrot.lane.b32.xlu1 %v6162_v38, %s6511_s26  ;;  %v2283_v24 = vshrl.u32 %v2270_v45, 16  ;;  %v2278_v26 = vpack.i.b16 %v2277_v42, %v2276_v46  ;;  %v7082_v38 = vrot.slane %v1722_v51, %v6794_v56  ;;  %v7085_v4 = vrot.slane %v2275_v7, %v6794_v56 }
  0xca   : > { %v2266_v39 = vpop.permute.xlu0 %2265  ;;  %v1532_v42 = vcombine.low %v7079_v21, %v7072_v55  ;;  %v7101_v7 = vrot.slane %v1742_v2, %v6863_v48 }
  0xcb   : > { %v2281_v1 = vpack.i.b16 %v2270_v45, %v2266_v39  ;;  %v2282_v52 = vshrl.u32 %v2266_v39, 16  ;;  %v7092_v39 = vrot.slane %v1716_v25, %v6794_v56  ;;  %v2557_v25 = vpack.i.b16 %v6948_v62, %v6940_v10 }
  0xcc   : > { %v7074_v17 = vpop.permute.xlu1 %519  ;;  %10034 = vst [vmem:[#allocation37_spill] sm:$0xff] %v7101_v7  ;;  %v7126_v22 = vrot.slane %v1532_v42, %v6863_v48 }
  0xcd   : > { %10031 = vst [vmem:[#allocation34_spill] sm:$0xff] %v7074_v17  ;;  %v2284_v14 = vpack.i.b16 %v2283_v24, %v2282_v52  ;;  %v7088_v15 = vrot.slane %v2281_v1, %v6794_v56  ;;  %2471 = vrot.lane.b32.xlu1 %v6148_v18, %s6511_s26  ;;  %v7104_v52 = vrot.slane %v2278_v26, %v6794_v56  ;;  %v545_v24 = vshrl.u32 %v7074_v17, 16 }
  0xce   : > { %v7096_v45 = vpop.permute.xlu0 %515  ;;  %v1811_v18 = vcombine.high %v7092_v39, %v7082_v38  ;;  %10038 = vst [vmem:[#allocation41_spill] sm:$0xff] %v7126_v22  ;;  %v7132_v2 = vrot.slane %v2557_v25, %v6794_v56  ;;  %v6352_v42 = vcombine.high %v7126_v22, %v7126_v22  ;;  %v7155_v22 = vrot.slane %v6719_v54, %v6794_v56 }
  0xcf   : > { %10032 = vst [vmem:[#allocation35_spill] sm:$0xff] %v7096_v45  ;;  %10035 = vst [vmem:[#allocation38_spill] sm:$0xff] %v7104_v52  ;;  %v7109_v51 = vrot.slane %v2284_v14, %v6794_v56  ;;  %v544_v34 = vshrl.u32 %v7096_v45, 16  ;;  %v2551_v14 = vpack.i.b16 %v6930_v53, %v6906_v59  ;;  %v1464_v53 = vcombine.low %v7036_v13, %v7039_v50 }
  0xd0   : > { %v7098_v46 = vpop.permute.xlu1 %527  ;;  %v1776_v54 = vcombine.low %v6933_v3, %v6936_v58 }
  0xd1   : > { %10033 = vst [vmem:[#allocation36_spill] sm:$0xff] %v7098_v46  ;;  %10036 = vst [vmem:[#allocation39_spill] sm:$0xff] %v7109_v51  ;;  %2757 = vrot.lane.b32.xlu1 %v6385_v36, %s6513_s28  ;;  %v551_v26 = vshrl.u32 %v7098_v46, 16  ;;  %v546_v62 = vpack.i.b16 %v545_v24, %v544_v34  ;;  %v6356_v36 = vcombine.high %v7101_v7, %v7101_v7 }
  0xd2   : > { %v7123_v1 = vpop.permute.xlu0 %523  ;;  %v7136_v59 = vrot.slane %v2551_v14, %v6794_v56  ;;  %v7143_v24 = vrot.slane %v1811_v18, %v6863_v48  ;;  %v7165_v13 = vrot.slane %v1464_v53, %v6863_v48  ;;  %v7177_v46 = vrot.slane %v6758_v35, %v6794_v56 }
  0xd3   : > { %10037 = vst [vmem:[#allocation40_spill] sm:$0xff] %v7123_v1  ;;  %v550_v8 = vshrl.u32 %v7123_v1, 16  ;;  %v7146_v25 = vrot.slane %v546_v62, %v6794_v56  ;;  %v1723_v53 = vshrl.u32 %v6908_v61, 16  ;;  %v1724_v61 = vshrl.u32 %v6914_v63, 16 }
  0xd4   : > { %v518_v10 = vpop.permute.xlu1 %517  ;;  %10041 = vst [vmem:[#allocation44_spill] sm:$0xff] %v7165_v13 }
  0xd5   : > { %v552_v44 = vpack.i.b16 %v551_v26, %v550_v8  ;;  %1870 = vrot.lane.b32.xlu1 %v6356_v36, %s6512_s27  ;;  %10039 = vst [vmem:[#allocation42_spill] sm:$0xff] %v7146_v25  ;;  %v533_v26 = vshrl.u32 %v518_v10, 16  ;;  %v2589_v36 = vcombine.low %v7136_v59, %v7132_v2 }
  0xd6   : > { %v514_v34 = vpop.permute.xlu0 %513 }
  0xd7   : > { %v7149_v8 = vrot.slane %v552_v44, %v6794_v56  ;;  %v531_v14 = vpack.i.b16 %v518_v10, %v514_v34  ;;  %v532_v50 = vshrl.u32 %v514_v34, 16  ;;  %v6119_v10 = vcombine.low %v7143_v24, %v7143_v24 }
  0xd8   : > { %v526_v7 = vpop.permute.xlu1 %525  ;;  %v7183_v1 = vrot.slane %v2589_v36, %v6863_v48 }
  0xd9   : > { %10040 = vst [vmem:[#allocation43_spill] sm:$0xff] %v7149_v8  ;;  %1627 = vrot.lane.b32.xlu1 %v6352_v42, %s6512_s27  ;;  %v671_v62 = vcombine.low %v7146_v25, %v7149_v8  ;;  %v539_v44 = vshrl.u32 %v526_v7, 16  ;;  %v7168_v34 = vrot.slane %v531_v14, %v6794_v56  ;;  %v534_v45 = vpack.i.b16 %v533_v26, %v532_v50 }
  0xda   : > { %v522_v17 = vpop.permute.xlu0 %521  ;;  %v1743_v14 = vcombine.high %v7058_v20, %v7033_v47  ;;  %10043 = vst [vmem:[#allocation46_spill] sm:$0xff] %v7183_v1  ;;  %v6348_v47 = vcombine.high %v7165_v13, %v7165_v13  ;;  %v7197_v20 = vrot.slane %v1776_v54, %v6863_v48  ;;  %v6380_v54 = vcombine.high %v7183_v1, %v7183_v1 }
  0xdb   : > { %v7173_v42 = vrot.slane %v671_v62, %v6863_v48  ;;  %v537_v8 = vpack.i.b16 %v526_v7, %v522_v17  ;;  %v538_v25 = vshrl.u32 %v522_v17, 16  ;;  %v2623_v17 = vcombine.low %v6984_v29, %v6978_v33 }
  0xdc   : > { %v796_v18 = vpop.permute.xlu1 %795  ;;  %v7212_v13 = vrot.slane %v1743_v14, %v6863_v48  ;;  %v6109_v1 = vcombine.low %v7197_v20, %v7197_v20  ;;  %v6365_v14 = vcombine.high %v6879_v37, %v6879_v37 }
  0xdd   : > { %10042 = vst [vmem:[#allocation45_spill] sm:$0xff] %v7173_v42  ;;  %1915 = vrot.lane.b32.xlu1 %v6119_v10, %s6514_s29  ;;  %v6060_v50 = vcombine.low %v7173_v42, %v7173_v42  ;;  %v540_v7 = vpack.i.b16 %v539_v44, %v538_v25  ;;  %v7191_v35 = vrot.slane %v537_v8, %v6794_v56  ;;  %v821_v26 = vshrl.u32 %v796_v18, 16 }
  0xde   : > { %v792_v36 = vpop.permute.xlu0 %791  ;;  %v7201_v10 = vrot.slane %v534_v45, %v6794_v56  ;;  %v1718_v44 = vshrl.u32 %v6916_v40, 16  ;;  %v2631_v45 = vrot.slane %v2623_v17, %v6863_v48  ;;  %v1717_v40 = vshrl.u32 %v6910_v31, 16 }
  0xdf   : > { %727 = vrot.lane.b32.xlu0 %v6060_v50, %s6511_s26  ;;  %v7206_v8 = vrot.slane %v540_v7, %v6794_v56  ;;  %v819_v63 = vpack.i.b16 %v796_v18, %v792_v36  ;;  %v820_v42 = vshrl.u32 %v792_v36, 16  ;;  %v2347_v7 = vcombine.low %v7104_v52, %v7109_v51 }
  0xe0   : > { %v804_v62 = vpop.permute.xlu1 %803  ;;  %v1725_v25 = vpack.i.b16 %v1724_v61, %v1723_v53  ;;  %v1719_v33 = vpack.i.b16 %v1718_v44, %v1717_v40  ;;  %v1446_v31 = vshrl.u32 %v6973_v32, 16  ;;  %v1445_v53 = vshrl.u32 %v6980_v0, 16 }
  0xe1   : > { %1592 = vrot.lane.b32.xlu1 %v6348_v47, %s6512_s27  ;;  %v827_v18 = vshrl.u32 %v804_v62, 16  ;;  %v822_v17 = vpack.i.b16 %v821_v26, %v820_v42  ;;  %v7229_v50 = vrot.slane %v819_v63, %v6794_v56  ;;  %v6112_v61 = vcombine.low %v7212_v13, %v7212_v13 }
  0xe2   : > { %v800_v36 = vpop.permute.xlu0 %799  ;;  %v6155_v37 = vcombine.low %v2631_v45, %v2631_v45  ;;  %v7237_v29 = vrot.slane %v2347_v7, %v6863_v48  ;;  %v1439_v63 = vshrl.u32 %v6971_v16, 16  ;;  %v2313_v0 = vcombine.low %v7085_v4, %v7088_v15 }
  0xe3   : > { %2717 = vrot.lane.b32.xlu0 %v6380_v54, %s6512_s27  ;;  %v825_v51 = vpack.i.b16 %v804_v62, %v800_v36  ;;  %v826_v52 = vshrl.u32 %v800_v36, 16  ;;  %v1440_v62 = vshrl.u32 %v6950_v60, 16  ;;  %v7263_v54 = vrot.slane %v1725_v25, %v6794_v56 }
  0xe4   : > { %v7225_v47 = vpop.permute.xlu1 %793  ;;  %v1810_v7 = vcombine.low %v7092_v39, %v7082_v38  ;;  %v1447_v36 = vpack.i.b16 %v1446_v31, %v1445_v53  ;;  %v7283_v39 = vrot.slane %v2313_v0, %v6863_v48 }
  0xe5   : > { %1865 = vrot.lane.b32.xlu1 %v6109_v1, %s6511_s26  ;;  %v828_v42 = vpack.i.b16 %v827_v18, %v826_v52  ;;  %v7240_v26 = vrot.slane %v825_v51, %v6794_v56  ;;  %v7254_v52 = vrot.slane %v822_v17, %v6794_v56  ;;  %v809_v51 = vshrl.u32 %v7225_v47, 16 }
  0xe6   : > { %v7246_v32 = vpop.permute.xlu0 %789  ;;  %v7268_v18 = vrot.slane %v1719_v33, %v6794_v56  ;;  %v6141_v17 = vcombine.low %v7237_v29, %v7237_v29  ;;  %v1441_v33 = vpack.i.b16 %v1440_v62, %v1439_v63  ;;  %10044 = vst [vmem:[#allocation47_spill] sm:$0xff] %v7283_v39 }
  0xe7   : > { %2712 = vrot.lane.b32.xlu0 %v6155_v37, %s6511_s26  ;;  %v7259_v16 = vrot.slane %v828_v42, %v6794_v56  ;;  %v808_v40 = vshrl.u32 %v7246_v32, 16  ;;  %v2590_v42 = vcombine.high %v7136_v59, %v7132_v2  ;;  %v7292_v37 = vrot.slane %v1447_v36, %v6794_v56 }
  0xe8   : > { %v7248_v44 = vpop.permute.xlu1 %801  ;;  %v1844_v60 = vcombine.low %v7268_v18, %v7263_v54  ;;  %v6381_v2 = vcombine.high %v2631_v45, %v2631_v45  ;;  %v603_v59 = vcombine.low %v7201_v10, %v7206_v8  ;;  %v7301_v0 = vrot.slane %v1441_v33, %v6794_v56 }
  0xe9   : > { %1880 = vrot.lane.b32.xlu1 %v6112_v61, %s6514_s29  ;;  %v815_v25 = vshrl.u32 %v7248_v44, 16  ;;  %v810_v31 = vpack.i.b16 %v809_v51, %v808_v40  ;;  %v7287_v61 = vrot.slane %v1810_v7, %v6863_v48  ;;  %v7298_v63 = vrot.slane %v2590_v42, %v6863_v48 }
  0xea   : > { %v7279_v38 = vpop.permute.xlu0 %797  ;;  %v6372_v51 = vcombine.high %v7283_v39, %v7283_v39  ;;  %v1852_v40 = vrot.slane %v1844_v60, %v6863_v48  ;;  %v7317_v36 = vrot.slane %v603_v59, %v6863_v48  ;;  %v1533_v59 = vcombine.high %v7079_v21, %v7072_v55 }
  0xeb   : > { %2436 = vrot.lane.b32.xlu0 %v6141_v17, %s6511_s26  ;;  %v814_v53 = vshrl.u32 %v7279_v38, 16  ;;  %10045 = vst [vmem:[#allocation48_spill] sm:$0xff] %v7287_v61  ;;  %v7307_v7 = vrot.slane %v810_v31, %v6794_v56  ;;  %v1566_v17 = vcombine.low %v7301_v0, %v7292_v37  ;;  %v6158_v33 = vcombine.low %v7298_v63, %v7298_v63 }
  0xec   : > { %v6116_v60 = vcombine.low %v1852_v40, %v1852_v40  ;;  %v6053_v31 = vcombine.low %v7317_v36, %v7317_v36  ;;  %v2140_v21 = vcombine.high %v6842_v19, %v6845_v28  ;;  %v6362_v19 = vcombine.high %v7143_v24, %v7143_v24 }
  0xed   : > { %2170 = vrot.lane.b32.xlu1 %v6365_v14, %s6513_s28  ;;  %v816_v62 = vpack.i.b16 %v815_v25, %v814_v53  ;;  %v6360_v14 = vcombine.high %v7287_v61, %v7287_v61  ;;  %v947_v25 = vcombine.low %v7254_v52, %v7259_v16  ;;  %v1574_v53 = vrot.slane %v1566_v17, %v6863_v48 }
  0xee   : > { %v7345_v17 = vrot.slane %v1533_v59, %v6863_v48  ;;  %v6357_v28 = vcombine.high %v7197_v20, %v7197_v20 }
  0xef   : > { %2722 = vrot.lane.b32.xlu0 %v6381_v2, %s6513_s28  ;;  %v7310_v45 = vrot.slane %v816_v62, %v6794_v56  ;;  %v7333_v2 = vrot.slane %v947_v25, %v6863_v48  ;;  %v6102_v62 = vcombine.low %v1574_v53, %v1574_v53  ;;  %v6361_v25 = vcombine.high %v1852_v40, %v1852_v40 }
  0xf0   : > { %v7362_v40 = vrot.slane %v2140_v21, %v6863_v48  ;;  %v6353_v24 = vcombine.high %v1574_v53, %v1574_v53  ;;  %v7402_v21 = vrot.slane %v6693_v27, %v6794_v56 }
  0xf1   : > { %2441 = vrot.lane.b32.xlu1 %v6372_v51, %s6512_s27  ;;  %v6074_v51 = vcombine.low %v7333_v2, %v7333_v2 }
  0xf2   : > { %v6138_v59 = vcombine.low %v7362_v40, %v7362_v40 }
  0xf3   : > { %1905 = vrot.lane.b32.xlu0 %v6360_v14, %s6512_s27  ;;  %v1498_v14 = vcombine.low %v7047_v5, %v7052_v41 }
  0xf5   : > { %2727 = vrot.lane.b32.xlu1 %v6158_v33, %s6514_s29  ;;  %v7349_v55 = vrot.slane %v1498_v14, %v6863_v48  ;;  %v6494_v33 = vld [vmem:[%s6564_s23 + $0x28] sm:$0xf] }
  0xf7   : > { %1900 = vrot.lane.b32.xlu0 %v6116_v60, %s6511_s26  ;;  %v6105_v60 = vcombine.low %v7345_v17, %v7345_v17 }
  0xf9   : > { %692 = vrot.lane.b32.xlu1 %v6053_v31, %s6511_s26  ;;  %v6095_v31 = vcombine.low %v7349_v55, %v7349_v55 }
  0xfb   : > { %1622 = vrot.lane.b32.xlu0 %v6102_v62, %s6511_s26  ;;  %v1845_v62 = vcombine.high %v7268_v18, %v7263_v54  ;;  %v10048_v18 = vcombine.high %v6801_v23, %v6804_v57  ;;  %v10051_v23 = vld [vmem:[#allocation35_spill] sm:$0xff]  ;;  %v10052_v57 = vld [vmem:[#allocation34_spill] sm:$0xff] }
  0xfd   : > { %1003 = vrot.lane.b32.xlu1 %v6074_v51, %s6511_s26  ;;  %v10046_v51 = vcombine.high %v6989_v11, %v6992_v49  ;;  %v1859_v20 = vrot.slane %v1845_v62, %v6863_v48  ;;  %v10047_v11 = vcombine.high %v6953_v9, %v6960_v43  ;;  %v7398_v53 = vrot.slane %v10048_v18, %v6863_v48 }
  0xfe   : > { %v879_v9 = vcombine.low %v7307_v7, %v7310_v45 }
  0xff   : > { %1910 = vrot.lane.b32.xlu0 %v6361_v25, %s6513_s28  ;;  %v7379_v14 = vrot.slane %v10046_v51, %v6863_v48  ;;  %v569_v25 = vcombine.low %v7168_v34, %v7191_v35  ;;  %v7392_v49 = vrot.slane %v10047_v11, %v6863_v48  ;;  %v6120_v43 = vcombine.low %v1859_v20, %v1859_v20 }
 0x101   : > { %1637 = vrot.lane.b32.xlu1 %v6105_v60, %s6514_s29  ;;  %v6151_v54 = vcombine.low %v7379_v14, %v7379_v14  ;;  %v7406_v60 = vrot.slane %v6695_v30, %v6794_v56  ;;  %v6166_v27 = vcombine.low %v7392_v49, %v7392_v49  ;;  %v6137_v30 = vcombine.low %v7398_v53, %v7398_v53 }
 0x102   : > { %v7421_v62 = vrot.slane %v569_v25, %v6863_v48 }
 0x103   : > { %1587 = vrot.lane.b32.xlu0 %v6095_v31, %s6511_s26  ;;  %v10049_v31 = vld [vmem:[#allocation40_spill] sm:$0xff]  ;;  %v1290_v51 = vcombine.low %v7406_v60, %v7402_v21 }
 0x104   : > { %10053 = vst [vmem:[#allocation40_spill] sm:$0xff] %v7421_v62  ;;  %v6324_v25 = vcombine.high %v7421_v62, %v7421_v62  ;;  %v10065_v62 = vld [vmem:[#allocation7_spill] sm:$0xff] }
 0x105   : > { %1925 = vrot.lane.b32.xlu1 %v6362_v19, %s6515_s30  ;;  %v10050_v19 = vld [vmem:[#allocation36_spill] sm:$0xff]  ;;  %v7439_v18 = vrot.slane %v1290_v51, %v6863_v48 }
 0x107   : > { %1875 = vrot.lane.b32.xlu0 %v6357_v28, %s6513_s28  ;;  %v549_v28 = vpack.i.b16 %v10050_v19, %v10049_v31  ;;  %v10054_v19 = vld [vmem:[#allocation33_spill] sm:$0xff]  ;;  %v6088_v51 = vcombine.low %v7439_v18, %v7439_v18 }
 0x109   : > { %2215 = vrot.lane.b32.xlu1 %v6138_v59, %s6516_s6  ;;  %v543_v59 = vpack.i.b16 %v10052_v57, %v10051_v23  ;;  %v10056_v23 = vld [vmem:[#allocation24_spill] sm:$0xff] }
 0x10b   : > { %1632 = vrot.lane.b32.xlu0 %v6353_v24, %s6513_s28  ;;  %v7426_v24 = vrot.slane %v549_v28, %v6794_v56  ;;  %v7433_v11 = vrot.slane %v543_v59, %v6794_v56  ;;  %v6377_v28 = vcombine.high %v10054_v19, %v10054_v19 }
 0x10d   : > { %2486 = vrot.lane.b32.xlu1 %v6151_v54, %s6514_s29  ;;  %v7430_v54 = vrot.slane %v879_v9, %v6863_v48  ;;  %v637_v31 = vcombine.low %v7433_v11, %v7426_v24 }
 0x10f   : > { %1920 = vrot.lane.b32.xlu0 %v6120_v43, %s6516_s6  ;;  %v6067_v9 = vcombine.low %v7430_v54, %v7430_v54  ;;  %v10055_v43 = vld [vmem:[#allocation23_spill] sm:$0xff] }
 0x110   : > { %v10057_v57 = vcombine.high %v10055_v43, %v10056_v23  ;;  %v7475_v23 = vpop.permute.xlu1 %2195 }
 0x111   : > { %2767 = vrot.lane.b32.xlu1 %v6166_v27, %s6516_s6  ;;  %v1567_v27 = vcombine.high %v7301_v0, %v7292_v37  ;;  %10061 = vst [vmem:[#allocation35_spill] sm:$0xff] %v7475_v23  ;;  %v6493_v0 = vld [vmem:[%s6564_s23 + $0x1c] sm:$0xf] }
 0x112   : > { %v2672_v59 = vrot.slane %v10057_v57, %v6863_v48  ;;  %v6349_v57 = vcombine.high %v7349_v55, %v7349_v55  ;;  %v258_v1 = vpack.i.b16 %v6494_v33, %v6493_v0 }
 0x113   : > { %2210 = vrot.lane.b32.xlu0 %v6137_v30, %s6514_s29  ;;  %v7463_v19 = vrot.slane %v1567_v27, %v6863_v48  ;;  %v10062_v27 = vcombine.high %v6933_v3, %v6936_v58  ;;  %v10067_v3 = vld [vmem:[#allocation5_spill] sm:$0xff] }
 0x114   : > { %v6165_v30 = vcombine.low %v2672_v59, %v2672_v59  ;;  %v10068_v58 = vshrl.u32 %v10067_v3, 16  ;;  %v10077_v3 = vld [vmem:[#allocation26_spill] sm:$0xff] }
 0x115   : > { %697 = vrot.lane.b32.xlu1 %v6324_v25, %s6512_s27  ;;  %v7459_v25 = vrot.slane %v637_v31, %v6863_v48  ;;  %v6106_v31 = vcombine.low %v7463_v19, %v7463_v19 }
 0x117   : > { %2481 = vrot.lane.b32.xlu0 %v6377_v28, %s6513_s28  ;;  %10058 = vst [vmem:[#allocation36_spill] sm:$0xff] %v7459_v25  ;;  %v6328_v37 = vcombine.high %v7459_v25, %v7459_v25  ;;  %v10059_v28 = vld [vmem:[#allocation20_spill] sm:$0xff]  ;;  %v10066_v25 = vshrl.u32 %v10065_v62, 16  ;;  %v7511_v62 = vrot.slane %v258_v1, %v6794_v56 }
 0x119   : > { %968 = vrot.lane.b32.xlu1 %v6067_v9, %s6511_s26  ;;  %v10060_v9 = vld [vmem:[#allocation19_spill] sm:$0xff] }
 0x11a   : > { %v2038_v43 = vcombine.high %v10060_v9, %v10059_v28  ;;  %v6363_v28 = vcombine.high %v1859_v20, %v1859_v20  ;;  %v10063_v9 = vld [vmem:[#allocation4_spill] sm:$0xff]  ;;  %v6370_v20 = vcombine.high %v7398_v53, %v7398_v53 }
 0x11b   : > { %2762 = vrot.lane.b32.xlu0 %v6165_v30, %s6514_s29  ;;  %v7484_v30 = vrot.slane %v10062_v27, %v6863_v48  ;;  %v10064_v55 = vshrl.u32 %v10063_v9, 16  ;;  %v10069_v27 = vld [vmem:[#allocation6_spill] sm:$0xff] }
 0x11c   : > { %v10070_v23 = vshrl.u32 %v10069_v27, 16 }
 0x11d   : > { %1346 = vrot.lane.b32.xlu1 %v6088_v51, %s6511_s26  ;;  %v6491_v51 = vld [vmem:[%s6564_s23 + $0x4] sm:$0xf]  ;;  %v255_v39 = vpack.i.b16 %v10066_v25, %v10064_v55  ;;  %v6113_v33 = vcombine.low %v7484_v30, %v7484_v30  ;;  %v7513_v25 = vpop.permute.xlu1 %2160 }
 0x11e   : > { %v261_v61 = vpack.i.b16 %v10070_v23, %v10068_v58  ;;  %10071 = vst [vmem:[#allocation34_spill] sm:$0xff] %v7513_v25  ;;  %v10072_v23 = vld [vmem:[#allocation28_spill] sm:$0xff] }
 0x11f   : > { %732 = vrot.lane.b32.xlu0 %v6328_v37, %s6512_s27  ;;  %v6492_v37 = vld [vmem:[%s6564_s23 + $0x10] sm:$0xf]  ;;  %v7525_v53 = vrot.slane %v255_v39, %v6794_v56  ;;  %v6373_v39 = vcombine.high %v7237_v29, %v7237_v29 }
 0x120   : > { %v252_v42 = vpack.i.b16 %v6492_v37, %v6491_v51 }
 0x121   : > { %1642 = vrot.lane.b32.xlu1 %v6106_v31, %s6516_s6  ;;  %v7492_v31 = vrot.slane %v2038_v43, %v6863_v48  ;;  %v7538_v55 = vpop.permute.xlu1 %2205 }
 0x122   : > { %v7508_v0 = vrot.slane %v252_v42, %v6794_v56  ;;  %v7528_v42 = vrot.slane %v261_v61, %v6794_v56  ;;  %10075 = vst [vmem:[#allocation33_spill] sm:$0xff] %v7538_v55  ;;  %v10076_v61 = vld [vmem:[#allocation27_spill] sm:$0xff]  ;;  %v6497_v55 = vld [vmem:[%s6564_s23 + $0x24] sm:$0xf] }
 0x123   : > { %1597 = vrot.lane.b32.xlu0 %v6349_v57, %s6513_s28  ;;  %v6130_v43 = vcombine.low %v7492_v31, %v7492_v31  ;;  %v10073_v57 = vld [vmem:[#allocation29_spill] sm:$0xff]  ;;  %v10078_v58 = vcombine.high %v10076_v61, %v10077_v3  ;;  %v10083_v3 = vcombine.low %v7023_v12, %v7017_v6 }
 0x124   : > { %v10074_v51 = vcombine.high %v10072_v23, %v10073_v57  ;;  %v346_v1 = vcombine.low %v7508_v0, %v7511_v62  ;;  %v380_v9 = vcombine.low %v7525_v53, %v7528_v42 }
 0x125   : > { %1930 = vrot.lane.b32.xlu1 %v6363_v28, %s6517_s7  ;;  %v7547_v27 = vrot.slane %v10078_v58, %v6863_v48  ;;  %v7589_v58 = vrot.slane %v10083_v3, %v6863_v48 }
 0x126   : > { %v7522_v37 = vrot.slane %v10074_v51, %v6863_v48  ;;  %v7556_v23 = vrot.slane %v380_v9, %v6863_v48  ;;  %v7563_v51 = vpop.permute.xlu1 %2752  ;;  %v10081_v9 = vld [vmem:[#allocation45_spill] sm:$0xff] }
 0x127   : > { %1885 = vrot.lane.b32.xlu0 %v6113_v33, %s6516_s6  ;;  %v7550_v33 = vrot.slane %v346_v1, %v6863_v48  ;;  %v6159_v29 = vcombine.low %v7547_v27, %v7547_v27  ;;  %10084 = vst [vmem:[#allocation19_spill] sm:$0xff] %v7589_v58 }
 0x128   : > { %v6152_v28 = vcombine.low %v7522_v37, %v7522_v37 }
 0x129   : > { %2220 = vrot.lane.b32.xlu1 %v6370_v20, %s6515_s30  ;;  %10079 = vst [vmem:[#allocation23_spill] sm:$0xff] %v7550_v33  ;;  %v638_v20 = vcombine.high %v7433_v11, %v7426_v24  ;;  %v6320_v57 = vcombine.high %v7550_v33, %v7550_v33  ;;  %v6046_v24 = vcombine.low %v7556_v23, %v7556_v23 }
 0x12b   : > { %2175 = vrot.lane.b32.xlu0 %v6130_v43, %s6514_s29  ;;  %v6386_v43 = vcombine.high %v2672_v59, %v2672_v59  ;;  %v7569_v11 = vrot.slane %v638_v20, %v6863_v48  ;;  %v913_v59 = vcombine.low %v7229_v50, %v7240_v26 }
 0x12d   : > { %2491 = vrot.lane.b32.xlu1 %v6152_v28, %s6516_s6  ;;  %v6063_v28 = vcombine.low %v7569_v11, %v7569_v11  ;;  %v7583_v61 = vrot.slane %v913_v59, %v6863_v48  ;;  %v10086_v59 = vld [vmem:[#allocation32_spill] sm:$0xff] }
 0x12f   : > { %2446 = vrot.lane.b32.xlu0 %v6373_v39, %s6513_s28  ;;  %v6329_v39 = vcombine.high %v10081_v9, %v10081_v9  ;;  %10082 = vst [vmem:[#allocation20_spill] sm:$0xff] %v7583_v61 }
 0x131   : > { %2772 = vrot.lane.b32.xlu1 %v6386_v43, %s6515_s30  ;;  %v6337_v43 = vcombine.high %v7333_v2, %v7333_v2  ;;  %v10090_v2 = vld [vmem:[#allocation16_spill] sm:$0xff] }
 0x133   : > { %2732 = vrot.lane.b32.xlu0 %v6159_v29, %s6516_s6  ;;  %v6336_v29 = vcombine.high %v7583_v61, %v7583_v61  ;;  %v6495_v61 = vld [vmem:[%s6564_s23] sm:$0xf] }
 0x135   : > { %441 = vrot.lane.b32.xlu1 %v6320_v57, %s6512_s27  ;;  %v6344_v57 = vcombine.high %v7589_v58, %v7589_v58  ;;  %v6496_v58 = vld [vmem:[%s6564_s23 + $0xc] sm:$0xf] }
 0x136   : > { %v240_v25 = vpack.i.b16 %v6496_v58, %v6495_v61  ;;  %v6366_v61 = vcombine.high %v7492_v31, %v7492_v31  ;;  %v7632_v58 = vpop.permute.xlu0 %2200 }
 0x137   : > { %v7574_v1 = vpop.permute.xlu1 %2476  ;;  %436 = vrot.lane.b32.xlu0 %v6046_v24, %s6511_s26  ;;  %v10085_v24 = vld [vmem:[#allocation31_spill] sm:$0xff]  ;;  %10091 = vst [vmem:[#allocation7_spill] sm:$0xff] %v7632_v58 }
 0x138   : > { %10080 = vst [vmem:[#allocation24_spill] sm:$0xff] %v7574_v1  ;;  %v6498_v1 = vld [vmem:[%s6564_s23 + $0x18] sm:$0xf] }
 0x139   : > { %742 = vrot.lane.b32.xlu1 %v6063_v28, %s6514_s29  ;;  %v10087_v28 = vcombine.high %v10085_v24, %v10086_v59  ;;  %v246_v24 = vpack.i.b16 %v6497_v55, %v6498_v1  ;;  %v7635_v55 = vrot.slane %v240_v25, %v6794_v56 }
 0x13b   : > { %v7591_v20 = vpop.permute.xlu1 %2747  ;;  %737 = vrot.lane.b32.xlu0 %v6329_v39, %s6513_s28  ;;  %v7605_v9 = vrot.slane %v10087_v28, %v6863_v48  ;;  %v10089_v39 = vld [vmem:[#allocation17_spill] sm:$0xff]  ;;  %v7638_v1 = vrot.slane %v246_v24, %v6794_v56  ;;  %v10097_v24 = vld [vmem:[#allocation10_spill] sm:$0xff] }
 0x13c   : > { %v2072_v33 = vcombine.high %v10090_v2, %v10089_v39  ;;  %v10094_v39 = vld [vmem:[#allocation39_spill] sm:$0xff] }
 0x13d   : > { %1013 = vrot.lane.b32.xlu1 %v6337_v43, %s6513_s28  ;;  %v6098_v43 = vcombine.low %v7605_v9, %v7605_v9 }
 0x13e   : > { %v7625_v28 = vrot.slane %v2072_v33, %v6863_v48 }
 0x13f   : > { %v7607_v3 = vpop.permute.xlu1 %2471  ;;  %1008 = vrot.lane.b32.xlu0 %v6336_v29, %s6512_s27  ;;  %v6354_v29 = vcombine.high %v7345_v17, %v7345_v17 }
 0x140   : > { %10088 = vst [vmem:[#allocation4_spill] sm:$0xff] %v7607_v3  ;;  %v6131_v33 = vcombine.low %v7625_v28, %v7625_v28 }
 0x141   : > { %1351 = vrot.lane.b32.xlu1 %v6344_v57, %s6512_s27  ;;  %v6358_v57 = vcombine.high %v7212_v13, %v7212_v13  ;;  %v10093_v13 = vld [vmem:[#allocation38_spill] sm:$0xff] }
 0x142   : > { %v10095_v2 = vcombine.high %v10093_v13, %v10094_v39  ;;  %v278_v13 = vcombine.low %v7635_v55, %v7638_v1 }
 0x143   : > { %v7619_v59 = vpop.permute.xlu1 %2757  ;;  %1602 = vrot.lane.b32.xlu0 %v6098_v43, %s6514_s29  ;;  %v10096_v43 = vld [vmem:[#allocation9_spill] sm:$0xff] }
 0x144   : > { %v7649_v31 = vrot.slane %v10095_v2, %v6863_v48  ;;  %v7653_v25 = vrot.slane %v10096_v43, %v6794_v56  ;;  %v7673_v43 = vpop.permute.xlu0 %2165 }
 0x145   : > { %1647 = vrot.lane.b32.xlu1 %v6354_v29, %s6515_s30  ;;  %v7657_v29 = vrot.slane %v10097_v24, %v6794_v56  ;;  %10100 = vst [vmem:[#allocation28_spill] sm:$0xff] %v7673_v43  ;;  %v6383_v43 = vcombine.high %v7547_v27, %v7547_v27 }
 0x146   : > { %v6145_v2 = vcombine.low %v7649_v31, %v7649_v31 }
 0x147   : > { %v7640_v17 = vpop.permute.xlu1 %1870  ;;  %1890 = vrot.lane.b32.xlu0 %v6358_v57, %s6515_s30  ;;  %v10098_v57 = vcombine.high %v7085_v4, %v7088_v15  ;;  %v807_v15 = vpack.i.b16 %v7225_v47, %v7246_v32  ;;  %v813_v4 = vpack.i.b16 %v7248_v44, %v7279_v38  ;;  %v10102_v32 = vld [vmem:[#allocation11_spill] sm:$0xff]  ;;  %v10103_v44 = vld [vmem:[#allocation12_spill] sm:$0xff] }
 0x148   : > { %10092 = vst [vmem:[#allocation5_spill] sm:$0xff] %v7640_v17  ;;  %v10104_v38 = vpack.i.b16 %v10102_v32, %v10103_v44  ;;  %v6382_v32 = vcombine.high %v7298_v63, %v7298_v63 }
 0x149   : > { %2185 = vrot.lane.b32.xlu1 %v6366_v61, %s6515_s30  ;;  %v7664_v17 = vrot.slane %v10098_v57, %v6863_v48  ;;  %v312_v61 = vcombine.low %v7653_v25, %v7657_v29  ;;  %v7711_v27 = vrot.slane %v813_v4, %v6794_v56 }
 0x14b   : > { %v7668_v39 = vpop.permute.xlu1 %1627  ;;  %2180 = vrot.lane.b32.xlu0 %v6131_v33, %s6516_s6  ;;  %v6144_v24 = vcombine.low %v7664_v17, %v7664_v17  ;;  %v7685_v33 = vrot.slane %v278_v13, %v6863_v48  ;;  %v7693_v47 = vrot.slane %v312_v61, %v6863_v48  ;;  %v10106_v13 = vld [vmem:[#allocation14_spill] sm:$0xff] }
 0x14c   : > { %10099 = vst [vmem:[#allocation6_spill] sm:$0xff] %v7668_v39  ;;  %v10105_v39 = vld [vmem:[#allocation13_spill] sm:$0xff] }
 0x14d   : > { %2456 = vrot.lane.b32.xlu1 %v6145_v2, %s6516_s6  ;;  %10101 = vst [vmem:[#allocation29_spill] sm:$0xff] %v7685_v33  ;;  %v7699_v2 = vrot.slane %v10104_v38, %v6794_v56  ;;  %v10107_v58 = vpack.i.b16 %v10105_v39, %v10106_v13  ;;  %v6316_v44 = vcombine.high %v7685_v33, %v7685_v33 }
 0x14e   : > { %v10110_v39 = vcombine.high %v7168_v34, %v7191_v35  ;;  %v6325_v35 = vcombine.high %v7317_v36, %v7317_v36 }
 0x14f   : > { %v7687_v57 = vpop.permute.xlu1 %1915  ;;  %2451 = vrot.lane.b32.xlu0 %v6144_v24, %s6514_s29  ;;  %v7705_v3 = vrot.slane %v10107_v58, %v6794_v56  ;;  %v7708_v24 = vrot.slane %v807_v15, %v6794_v56  ;;  %v6039_v58 = vcombine.low %v7693_v47, %v7693_v47 }
 0x151   : > { %2742 = vrot.lane.b32.xlu1 %v6383_v43, %s6517_s7  ;;  %v7714_v61 = vpop.permute.xlu0 %727  ;;  %v7729_v43 = vrot.slane %v10110_v39, %v6863_v48  ;;  %v845_v15 = vcombine.low %v7708_v24, %v7711_v27  ;;  %v1188_v4 = vcombine.low %v7699_v2, %v7705_v3 }
 0x152   : > { %10108 = vst [vmem:[#allocation27_spill] sm:$0xff] %v7714_v61 }
 0x153   : > { %v7720_v38 = vpop.permute.xlu1 %1592  ;;  %2737 = vrot.lane.b32.xlu0 %v6382_v32, %s6515_s30  ;;  %v6056_v32 = vcombine.low %v7729_v43, %v7729_v43  ;;  %v7749_v39 = vrot.slane %v845_v15, %v6863_v48 }
 0x154   : > { %10109 = vst [vmem:[#allocation26_spill] sm:$0xff] %v7720_v38 }
 0x155   : > { %v7733_v63 = vpop.permute.xlu0 %2717  ;;  %406 = vrot.lane.b32.xlu1 %v6316_v44, %s6512_s27  ;;  %10111 = vst [vmem:[#allocation45_spill] sm:$0xff] %v7749_v39  ;;  %v7752_v44 = vrot.slane %v1188_v4, %v6863_v48  ;;  %v6332_v15 = vcombine.high %v7749_v39, %v7749_v39 }
 0x157   : > { %v7738_v13 = vpop.permute.xlu1 %1865  ;;  %401 = vrot.lane.b32.xlu0 %v6039_v58, %s6511_s26  ;;  %10112 = vst [vmem:[#allocation31_spill] sm:$0xff] %v7752_v44  ;;  %v6333_v58 = vcombine.high %v7430_v54, %v7430_v54  ;;  %v6340_v4 = vcombine.high %v7752_v44, %v7752_v44 }
 0x159   : > { %v7743_v34 = vpop.permute.xlu0 %2712  ;;  %707 = vrot.lane.b32.xlu1 %v6056_v32, %s6514_s29  ;;  %v10114_v32 = vcombine.low %v7155_v22, %v7177_v46 }
 0x15b   : > { %v7754_v56 = vpop.permute.xlu1 %1880  ;;  %702 = vrot.lane.b32.xlu0 %v6325_v35, %s6513_s28  ;;  %v7763_v33 = vrot.slane %v10114_v32, %v6863_v48 }
 0x15c   : > { %10113 = vst [vmem:[#allocation32_spill] sm:$0xff] %v7754_v56  ;;  %v6367_v56 = vcombine.high %v7625_v28, %v7625_v28 }
 0x15d   : > { %v7765_v36 = vpop.permute.xlu0 %2436  ;;  %978 = vrot.lane.b32.xlu1 %v6333_v58, %s6513_s28  ;;  %v6081_v54 = vcombine.low %v7763_v33, %v7763_v33  ;;  %v10115_v58 = vcombine.high %v7047_v5, %v7052_v41  ;;  %v347_v5 = vcombine.high %v7508_v0, %v7511_v62  ;;  %v6379_v0 = vcombine.high %v7522_v37, %v7522_v37 }
 0x15e   : > { %v6371_v62 = vcombine.high %v7362_v40, %v7362_v40  ;;  %v6378_v37 = vcombine.high %v7379_v14, %v7379_v14  ;;  %v6330_v40 = vcombine.high %v7569_v11, %v7569_v11  ;;  %v6387_v14 = vcombine.high %v7392_v49, %v7392_v49 }
 0x15f   : > { %v7772_v35 = vpop.permute.xlu1 %2170  ;;  %973 = vrot.lane.b32.xlu0 %v6332_v15, %s6512_s27  ;;  %v7784_v32 = vrot.slane %v10115_v58, %v6863_v48  ;;  %v6350_v15 = vcombine.high %v7605_v9, %v7605_v9  ;;  %v6359_v9 = vcombine.high %v7484_v30, %v7484_v30  ;;  %v7809_v58 = vrot.slane %v347_v5, %v6863_v48 }
 0x161   : > { %v7777_v61 = vpop.permute.xlu0 %2722  ;;  %1316 = vrot.lane.b32.xlu1 %v6340_v4, %s6512_s27  ;;  %v6099_v4 = vcombine.low %v7784_v32, %v7784_v32 }
 0x163   : > { %v7786_v39 = vpop.permute.xlu1 %2441  ;;  %1311 = vrot.lane.b32.xlu0 %v6081_v54, %s6511_s26 }
 0x165   : > { %v7791_v44 = vpop.permute.xlu0 %1905  ;;  %1612 = vrot.lane.b32.xlu1 %v6350_v15, %s6515_s30 }
 0x167   : > { %v7800_v41 = vpop.permute.xlu1 %2727  ;;  %1607 = vrot.lane.b32.xlu0 %v6099_v4, %s6516_s6 }
 0x169   : > { %v7803_v54 = vpop.permute.xlu0 %1900  ;;  %2190 = vrot.lane.b32.xlu1 %v6367_v56, %s6517_s7  ;;  %v6049_v56 = vcombine.low %v7809_v58, %v7809_v58 }
 0x16b   : > { %v7811_v15 = vpop.permute.xlu1 %692  ;;  %1895 = vrot.lane.b32.xlu0 %v6359_v9, %s6517_s7  ;;  %v10118_v9 = vcombine.high %v7254_v52, %v7259_v16  ;;  %v6321_v16 = vcombine.high %v7556_v23, %v7556_v23 }
 0x16c   : > { %10116 = vst [vmem:[#allocation17_spill] sm:$0xff] %v7811_v15 }
 0x16d   : > { %v7818_v28 = vpop.permute.xlu0 %1622  ;;  %2501 = vrot.lane.b32.xlu1 %v6379_v0, %s6517_s7  ;;  %v7840_v0 = vrot.slane %v10118_v9, %v6863_v48 }
 0x16f   : > { %v7823_v30 = vpop.permute.xlu1 %1003  ;;  %2225 = vrot.lane.b32.xlu0 %v6371_v62, %s6517_s7  ;;  %v6078_v52 = vcombine.low %v7840_v0, %v7840_v0 }
 0x170   : > { %10117 = vst [vmem:[#allocation16_spill] sm:$0xff] %v7823_v30  ;;  %v10123_v30 = vcombine.high %v7229_v50, %v7240_v26  ;;  %v6345_v26 = vcombine.high %v7439_v18, %v7439_v18 }
 0x171   : > { %v7826_v4 = vpop.permute.xlu0 %1910  ;;  %451 = vrot.lane.b32.xlu1 %v6049_v56, %s6514_s29  ;;  %v10119_v56 = vcombine.high %v7023_v12, %v7017_v6  ;;  %v10120_v6 = vld [vmem:[#allocation42_spill] sm:$0xff]  ;;  %v10121_v12 = vld [vmem:[#allocation43_spill] sm:$0xff] }
 0x172   : > { %v10122_v9 = vcombine.high %v10120_v6, %v10121_v12  ;;  %v928_v38 = vrot.slane %v10123_v30, %v6863_v48 }
 0x173   : > { %v7831_v5 = vpop.permute.xlu1 %1637  ;;  %2496 = vrot.lane.b32.xlu0 %v6378_v37, %s6515_s30  ;;  %v7851_v37 = vrot.slane %v10119_v56, %v6863_v48 }
 0x174   : > { %v686_v56 = vrot.slane %v10122_v9, %v6863_v48 }
 0x175   : > { %v7842_v62 = vpop.permute.xlu0 %1587  ;;  %752 = vrot.lane.b32.xlu1 %v6330_v40, %s6515_s30  ;;  %v6091_v49 = vcombine.low %v7851_v37, %v7851_v37 }
 0x177   : > { %v7853_v11 = vpop.permute.xlu1 %1925  ;;  %2777 = vrot.lane.b32.xlu0 %v6387_v14, %s6517_s7  ;;  %v381_v14 = vcombine.high %v7525_v53, %v7528_v42  ;;  %v6375_v53 = vcombine.high %v7649_v31, %v7649_v31  ;;  %v1291_v31 = vcombine.high %v7406_v60, %v7402_v21  ;;  %v6374_v60 = vcombine.high %v7664_v17, %v7664_v17 }
 0x178   : > { %v10126_v17 = vcombine.high %v7201_v10, %v7206_v8  ;;  %v279_v8 = vcombine.high %v7635_v55, %v7638_v1 }
 0x179   : > { %v7860_v40 = vpop.permute.xlu0 %1875  ;;  %1023 = vrot.lane.b32.xlu1 %v6078_v52, %s6516_s6  ;;  %v6064_v52 = vcombine.low %v686_v56, %v686_v56  ;;  %v7882_v6 = vrot.slane %v381_v14, %v6863_v48  ;;  %v6331_v14 = vcombine.high %v686_v56, %v686_v56  ;;  %v1305_v18 = vrot.slane %v1291_v31, %v6863_v48 }
 0x17b   : > { %v7871_v15 = vpop.permute.xlu1 %2215  ;;  %446 = vrot.lane.b32.xlu0 %v6321_v16, %s6513_s28  ;;  %v6077_v16 = vcombine.low %v928_v38, %v928_v38  ;;  %v6092_v56 = vcombine.low %v1305_v18, %v1305_v18 }
 0x17d   : > { %v7874_v23 = vpop.permute.xlu0 %1632  ;;  %1361 = vrot.lane.b32.xlu1 %v6091_v49, %s6514_s29  ;;  %v6050_v49 = vcombine.low %v7882_v6, %v7882_v6 }
 0x17f   : > { %v7884_v12 = vpop.permute.xlu1 %2486  ;;  %747 = vrot.lane.b32.xlu0 %v6064_v52, %s6516_s6 }
 0x181   : > { %v7889_v42 = vpop.permute.xlu0 %1920  ;;  %2466 = vrot.lane.b32.xlu1 %v6375_v53, %s6517_s7  ;;  %v6355_v53 = vcombine.high %v7463_v19, %v7463_v19  ;;  %v6317_v19 = vcombine.high %v7693_v47, %v7693_v47 }
 0x183   : > { %v7894_v50 = vpop.permute.xlu1 %2767  ;;  %1018 = vrot.lane.b32.xlu0 %v6077_v16, %s6514_s29 }
 0x185   : > { %v7899_v30 = vpop.permute.xlu0 %2210  ;;  %456 = vrot.lane.b32.xlu1 %v6050_v49, %s6516_s6  ;;  %v6338_v49 = vcombine.high %v928_v38, %v928_v38  ;;  %v6322_v38 = vcombine.high %v7809_v58, %v7809_v58  ;;  %v10127_v58 = vcombine.high %v7155_v22, %v7177_v46  ;;  %v6341_v22 = vcombine.high %v7763_v33, %v7763_v33 }
 0x186   : > { %v6351_v33 = vcombine.high %v7784_v32, %v7784_v32  ;;  %v6326_v32 = vcombine.high %v7729_v43, %v7729_v43 }
 0x187   : > { %v7904_v9 = vpop.permute.xlu1 %697  ;;  %1356 = vrot.lane.b32.xlu0 %v6345_v26, %s6513_s28  ;;  %v846_v26 = vcombine.high %v7708_v24, %v7711_v27  ;;  %v1237_v10 = vrot.slane %v10127_v58, %v6863_v48 }
 0x188   : > { %10124 = vst [vmem:[#allocation38_spill] sm:$0xff] %v7904_v9 }
 0x189   : > { %v7907_v52 = vpop.permute.xlu0 %2481  ;;  %757 = vrot.lane.b32.xlu1 %v6331_v14, %s6517_s7  ;;  %v860_v27 = vrot.slane %v846_v26, %v6863_v48 }
 0x18b   : > { %v7913_v16 = vpop.permute.xlu1 %968  ;;  %1652 = vrot.lane.b32.xlu0 %v6355_v53, %s6517_s7  ;;  %v7937_v53 = vrot.slane %v10126_v17, %v6863_v48  ;;  %v293_v17 = vrot.slane %v279_v8, %v6863_v48 }
 0x18c   : > { %10125 = vst [vmem:[#allocation39_spill] sm:$0xff] %v7913_v16 }
 0x18d   : > { %v7916_v21 = vpop.permute.xlu0 %2762  ;;  %1028 = vrot.lane.b32.xlu1 %v6338_v49, %s6515_s30  ;;  %v6057_v49 = vcombine.low %v7937_v53, %v7937_v53  ;;  %v6318_v55 = vcombine.high %v293_v17, %v293_v17 }
 0x18f   : > { %v7923_v14 = vpop.permute.xlu1 %1346  ;;  %2461 = vrot.lane.b32.xlu0 %v6374_v60, %s6515_s30 }
 0x191   : > { %v7928_v31 = vpop.permute.xlu0 %732  ;;  %1366 = vrot.lane.b32.xlu1 %v6092_v56, %s6516_s6  ;;  %v6334_v56 = vcombine.high %v860_v27, %v860_v27 }
 0x193   : > { %v7939_v24 = vpop.permute.xlu1 %1642  ;;  %411 = vrot.lane.b32.xlu0 %v6317_v19, %s6513_s28  ;;  %v6070_v19 = vcombine.low %v860_v27, %v860_v27  ;;  %v10128_v27 = vcombine.high %v7307_v7, %v7310_v45  ;;  %v1189_v45 = vcombine.high %v7699_v2, %v7705_v3 }
 0x195   : > { %v7943_v47 = vpop.permute.xlu0 %1597  ;;  %461 = vrot.lane.b32.xlu1 %v6322_v38, %s6515_s30  ;;  %v6085_v38 = vcombine.low %v1237_v10, %v1237_v10 }
 0x197   : > { %v7954_v60 = vpop.permute.xlu1 %1930  ;;  %712 = vrot.lane.b32.xlu0 %v6057_v49, %s6516_s6  ;;  %v894_v49 = vrot.slane %v10128_v27, %v6863_v48 }
 0x199   : > { %v7957_v26 = vpop.permute.xlu0 %1885  ;;  %993 = vrot.lane.b32.xlu1 %v6334_v56, %s6515_s30  ;;  %v6335_v56 = vcombine.high %v894_v49, %v894_v49  ;;  %v6071_v3 = vcombine.low %v894_v49, %v894_v49 }
 0x19b   : > { %v7961_v9 = vpop.permute.xlu1 %2220  ;;  %983 = vrot.lane.b32.xlu0 %v6070_v19, %s6514_s29  ;;  %v6042_v19 = vcombine.low %v293_v17, %v293_v17  ;;  %v6343_v17 = vcombine.high %v1237_v10, %v1237_v10 }
 0x19d   : > { %v7966_v46 = vpop.permute.xlu0 %2175  ;;  %1331 = vrot.lane.b32.xlu1 %v6085_v38, %s6516_s6 }
 0x19f   : > { %v7969_v1 = vpop.permute.xlu1 %2491  ;;  %1321 = vrot.lane.b32.xlu0 %v6341_v22, %s6513_s28  ;;  %v6347_v22 = vcombine.high %v1305_v18, %v1305_v18  ;;  %v1203_v18 = vrot.slane %v1189_v45, %v6863_v48 }
 0x1a1   : > { %v7976_v58 = vpop.permute.xlu0 %2446  ;;  %426 = vrot.lane.b32.xlu1 %v6318_v55, %s6515_s30  ;;  %v6084_v43 = vcombine.low %v1203_v18, %v1203_v18 }
 0x1a3   : > { %v7981_v8 = vpop.permute.xlu1 %2772  ;;  %1617 = vrot.lane.b32.xlu0 %v6351_v33, %s6517_s7  ;;  %v313_v33 = vcombine.high %v7653_v25, %v7657_v29 }
 0x1a5   : > { %v7984_v38 = vpop.permute.xlu0 %2732  ;;  %998 = vrot.lane.b32.xlu1 %v6335_v56, %s6517_s7  ;;  %v327_v10 = vrot.slane %v313_v33, %v6863_v48 }
 0x1a7   : > { %v7987_v7 = vpop.permute.xlu1 %441  ;;  %416 = vrot.lane.b32.xlu0 %v6042_v19, %s6514_s29  ;;  %v6043_v45 = vcombine.low %v327_v10, %v327_v10 }
 0x1a8   : > { %10129 = vst [vmem:[#allocation9_spill] sm:$0xff] %v7987_v7 }
 0x1a9   : > { %v7992_v55 = vpop.permute.xlu0 %436  ;;  %1376 = vrot.lane.b32.xlu1 %v6347_v22, %s6517_s7 }
 0x1aa   : > { %10130 = vst [vmem:[#allocation10_spill] sm:$0xff] %v7992_v55 }
 0x1ab   : > { %v7997_v27 = vpop.permute.xlu1 %742  ;;  %717 = vrot.lane.b32.xlu0 %v6326_v32, %s6515_s30  ;;  %v6327_v32 = vcombine.high %v7937_v53, %v7937_v53  ;;  %v6323_v53 = vcombine.high %v7882_v6, %v7882_v6  ;;  %v6319_v6 = vcombine.high %v327_v10, %v327_v10 }
 0x1ac   : > { %10131 = vst [vmem:[#allocation11_spill] sm:$0xff] %v7997_v27 }
 0x1ad   : > { %v8003_v56 = vpop.permute.xlu0 %737  ;;  %1341 = vrot.lane.b32.xlu1 %v6343_v17, %s6517_s7 }
 0x1af   : > { %v8006_v2 = vpop.permute.xlu1 %1013  ;;  %988 = vrot.lane.b32.xlu0 %v6071_v3, %s6516_s6  ;;  %v6339_v3 = vcombine.high %v7840_v0, %v7840_v0  ;;  %v6342_v0 = vcombine.high %v1203_v18, %v1203_v18  ;;  %v2865_v18 = vld [vmem:[%s9911_s2] sm:$0xf] }
 0x1b0   : > { %10132 = vst [vmem:[#allocation12_spill] sm:$0xff] %v8006_v2  ;;  %v9975_v2 = vmov 0  }
 0x1b1   : > { %v8010_v19 = vpop.permute.xlu0 %1008  ;;  %2911 = vmatprep.mubr.bf16.mxu0 %v9975_v2  ;;  %6490 = vset.pattern.permute.xlu0 %v9975_v2 }
 0x1b2   : > { %5947 = vmatprep.mubr.bf16.mxu1 %v9975_v2 }
 0x1b3   : > { %v8012_v22 = vpop.permute.xlu1 %1351  ;;  %1326 = vrot.lane.b32.xlu0 %v6084_v43, %s6514_s29 }
 0x1b4   : > { %10133 = vst [vmem:[#allocation13_spill] sm:$0xff] %v8012_v22 }
 0x1b5   : > { %v8015_v25 = vpop.permute.xlu0 %1602 }
 0x1b7   : > { %v8017_v29 = vpop.permute.xlu1 %1647  ;;  %421 = vrot.lane.b32.xlu0 %v6043_v45, %s6516_s6  ;;  %v6346_v45 = vcombine.high %v7851_v37, %v7851_v37 }
 0x1b9   : > { %v8020_v49 = vpop.permute.xlu0 %1890 }
 0x1bb   : > { %v8024_v17 = vpop.permute.xlu1 %2185  ;;  %722 = vrot.lane.b32.xlu0 %v6327_v32, %s6517_s7 }
 0x1bd   : > { %v8027_v33 = vpop.permute.xlu0 %2180 }
 0x1bf   : > { %v8031_v43 = vpop.permute.xlu1 %2456  ;;  %1033 = vrot.lane.b32.xlu0 %v6339_v3, %s6517_s7 }
 0x1c1   : > { %v8036_v48 = vpop.permute.xlu0 %2451 }
 0x1c3   : > { %v2743_v7 = vpop.permute.xlu1 %2742  ;;  %1371 = vrot.lane.b32.xlu0 %v6346_v45, %s6515_s30 }
 0x1c5   : > { %v2738_v32 = vpop.permute.xlu0 %2737 }
 0x1c7   : > { %466 = vrot.lane.b32.xlu0 %v6323_v53, %s6517_s7  ;;  %v8042_v16 = vpop.permute.xlu1 %406 }
 0x1c8   : > { %10134 = vst [vmem:[#allocation14_spill] sm:$0xff] %v8042_v16 }
 0x1c9   : > { %v8047_v37 = vpop.permute.xlu0 %401 }
 0x1ca   : > { %10135 = vst [vmem:[#allocation42_spill] sm:$0xff] %v8047_v37 }
 0x1cb   : > { %1336 = vrot.lane.b32.xlu0 %v6342_v0, %s6515_s30  ;;  %v8050_v3 = vpop.permute.xlu1 %707 }
 0x1cc   : > { %10136 = vst [vmem:[#allocation43_spill] sm:$0xff] %v8050_v3 }
 0x1cd   : > { %v8052_v45 = vpop.permute.xlu0 %702 }
 0x1ce   : > { %10137 = vst [vmem:[#allocation49_spill] sm:$0xff] %v8052_v45 }
 0x1cf   : > { %431 = vrot.lane.b32.xlu0 %v6319_v6, %s6517_s7  ;;  %v8055_v53 = vpop.permute.xlu1 %978 }
 0x1d0   : > { %10138 = vst [vmem:[#allocation50_spill] sm:$0xff] %v8055_v53  ;;  %v10142_v53 = vld [vmem:[#allocation46_spill] sm:$0xff] }
 0x1d1   : > { %v8060_v16 = vpop.permute.xlu0 %973  ;;  %v2781_v45 = vsel %vm468_vm6, %v10142_v53, %v7743_v34 }
 0x1d2   : > { %10139 = vst [vmem:[#allocation51_spill] sm:$0xff] %v8060_v16  ;;  %v10143_v16 = vld [vmem:[#allocation25_spill] sm:$0xff] }
 0x1d3   : > { %v8062_v2 = vpop.permute.xlu1 %1316  ;;  %2868 = vperm.xlu0 %6490, %v2865_v18   ;;  %v2796_v18 = vsel %vm468_vm6, %v10143_v16, %v7591_v20 }
 0x1d4   : > { %10140 = vst [vmem:[#allocation52_spill] sm:$0xff] %v8062_v2  ;;  %v2783_v2 = vsel %vm472_vm7, %v2781_v45, %v7733_v63  ;;  %v2798_v55 = vsel %vm472_vm7, %v2796_v18, %v7563_v51  ;;  %v10146_v18 = vld [vmem:[#allocation21_spill] sm:$0xff] }
 0x1d5   : > { %v8064_v37 = vpop.permute.xlu0 %1311  ;;  %v2785_v22 = vsel %vm475_vm9, %v2783_v2, %v7777_v61  ;;  %v2800_v20 = vsel %vm475_vm9, %v2798_v55, %v7619_v59 }
 0x1d6   : > { %10141 = vst [vmem:[#allocation53_spill] sm:$0xff] %v8064_v37  ;;  %v2787_v34 = vsel %vm478_vm8, %v2785_v22, %v7800_v41  ;;  %v2802_v16 = vsel %vm478_vm8, %v2800_v20, %v7916_v21  ;;  %v10147_v20 = vld [vmem:[#allocation4_spill] sm:$0xff] }
 0x1d7   : > { %v8066_v0 = vpop.permute.xlu1 %1612  ;;  %v2789_v63 = vsel %vm481_vm10, %v2787_v34, %v7984_v38  ;;  %v2804_v51 = vsel %vm481_vm10, %v2802_v16, %v7894_v50  ;;  %v10144_v50 = vld [vmem:[#allocation48_spill] sm:$0xff] }
 0x1d8   : > { %v2791_v61 = vsel %vm484_vm11, %v2789_v63, %v2738_v32  ;;  %v2806_v59 = vsel %vm484_vm11, %v2804_v51, %v7981_v8  ;;  %v1949_v45 = vsel %vm468_vm6, %v10144_v50, %v7803_v54  ;;  %v10148_v63 = vld [vmem:[#allocation30_spill] sm:$0xff] }
 0x1d9   : > { %v8068_v10 = vpop.permute.xlu0 %1607  ;;  %v2793_v41 = vsel %vm487_vm12, %v2791_v61, %v2743_v7  ;;  %v10145_v7 = vld [vmem:[#allocation35_spill] sm:$0xff]  ;;  %v2520_v16 = vsel %vm468_vm6, %v10148_v63, %v10147_v20  ;;  %v1951_v61 = vsel %vm472_vm7, %v1949_v45, %v7791_v44  ;;  %v10152_v45 = vld [vmem:[#allocation33_spill] sm:$0xff] }
 0x1da   : > { %v2875_v21 = vsel %vm2833_vm13, %v2793_v41, 0  ;;  %v2244_v8 = vsel %vm468_vm6, %v10146_v18, %v10145_v7  ;;  %v10149_v41 = vld [vmem:[#allocation7_spill] sm:$0xff]  ;;  %v1953_v54 = vsel %vm475_vm9, %v1951_v61, %v7826_v4 }
 0x1db   : > { %v8070_v3 = vpop.permute.xlu1 %2190  ;;  %v1955_v44 = vsel %vm478_vm8, %v1953_v54, %v7687_v57 }
 0x1dc   : > { %v1957_v4 = vsel %vm481_vm10, %v1955_v44, %v7889_v42 }
 0x1dd   : > { %v8072_v6 = vpop.permute.xlu0 %1895 }
 0x1df   : > { %v2502_v27 = vpop.permute.xlu1 %2501 }
 0x1e1   : > { %v2226_v37 = vpop.permute.xlu0 %2225 }
 0x1e3   : > { %v8088_v53 = vpop.permute.xlu1 %451 }
 0x1e5   : > { %v2497_v2 = vpop.permute.xlu0 %2496 }
 0x1e7   : > { %v8102_v55 = vpop.permute.xlu1 %752 }
 0x1e9   : > { %v2778_v22 = vpop.permute.xlu0 %2777 }
 0x1ea   : > { %v2808_v38 = vsel %vm487_vm12, %v2806_v59, %v2778_v22  ;;  %v2246_v59 = vsel %vm472_vm7, %v2244_v8, %v10149_v41  ;;  %v10150_v22 = vld [vmem:[#allocation24_spill] sm:$0xff]  ;;  %v1959_v41 = vsel %vm484_vm11, %v1957_v4, %v7853_v11  ;;  %v10156_v4 = vld [vmem:[#allocation34_spill] sm:$0xff] }
 0x1eb   : > { %6169 = vmatprep.subr.msk.bf16.mxu0 %vm2833_vm13, %v2808_v38  ;;  %v8115_v34 = vpop.permute.xlu1 %1023  ;;  %v2522_v38 = vsel %vm472_vm7, %v2520_v16, %v10150_v22  ;;  %v2248_v18 = vsel %vm475_vm9, %v2246_v59, %v10152_v45  ;;  %v1961_v54 = vsel %vm487_vm12, %v1959_v41, %v7954_v60  ;;  %v10155_v45 = vld [vmem:[#allocation37_spill] sm:$0xff] }
 0x1ec   : > { %2890 = vmatpush1.bf16.msra.mxu0 %v2875_v21  ;;  %v10151_v21 = vld [vmem:[#allocation41_spill] sm:$0xff]  ;;  %v2524_v7 = vsel %vm475_vm9, %v2522_v38, %v7907_v52  ;;  %v2250_v63 = vsel %vm478_vm8, %v2248_v18, %v7899_v30  ;;  %v1934_v18 = vsel %vm468_vm6, %v10155_v45, %v7738_v13  ;;  %v10161_v13 = vld [vmem:[#allocation44_spill] sm:$0xff] }
 0x1ed   : > { %v8107_v32 = vpop.permute.xlu0 %446  ;;  %v1672_v50 = vsel %vm468_vm6, %v10151_v21, %v7818_v28  ;;  %v10153_v28 = vld [vmem:[#allocation6_spill] sm:$0xff]  ;;  %v2526_v52 = vsel %vm478_vm8, %v2524_v7, %v7884_v12  ;;  %v2252_v42 = vsel %vm481_vm10, %v2250_v63, %v7871_v15  ;;  %v10159_v41 = vld [vmem:[#allocation5_spill] sm:$0xff] }
 0x1ee   : > { %v1674_v16 = vsel %vm472_vm7, %v1672_v50, %v10153_v28  ;;  %v2528_v61 = vsel %vm481_vm10, %v2526_v52, %v7969_v1  ;;  %v2254_v12 = vsel %vm484_vm11, %v2252_v42, %v7961_v9  ;;  %v10157_v63 = vld [vmem:[#allocation22_spill] sm:$0xff]  ;;  %v10158_v52 = vld [vmem:[#allocation47_spill] sm:$0xff]  ;;  %v1936_v42 = vsel %vm472_vm7, %v1934_v18, %v10159_v41 }
 0x1ef   : > { %v8139_v8 = vpop.permute.xlu1 %1361  ;;  %v1676_v57 = vsel %vm475_vm9, %v1674_v16, %v7874_v23  ;;  %v2530_v30 = vsel %vm484_vm11, %v2528_v61, %v2497_v2  ;;  %v2256_v1 = vsel %vm487_vm12, %v2254_v12, %v2226_v37  ;;  %v2824_v2 = vrot.slane %v1961_v54, 6 }
 0x1f0   : > { %v1678_v23 = vsel %vm478_vm8, %v1676_v57, %v7831_v5  ;;  %v2532_v15 = vsel %vm487_vm12, %v2530_v30, %v2502_v27  ;;  %v2828_v60 = vrot.slane %v2256_v1, 4  ;;  %v2229_v28 = vsel %vm468_vm6, %v10157_v63, %v10156_v4  ;;  %v10160_v30 = vld [vmem:[#allocation28_spill] sm:$0xff] }
 0x1f1   : > { %v8122_v51 = vpop.permute.xlu0 %747  ;;  %v1680_v11 = vsel %vm481_vm10, %v1678_v23, %v7939_v24  ;;  %v2832_v5 = vrot.slane %v2532_v15, 2  ;;  %v2505_v57 = vsel %vm468_vm6, %v10158_v52, %v7765_v36  ;;  %v2231_v54 = vsel %vm472_vm7, %v2229_v28, %v10160_v30  ;;  %v10165_v30 = vld [vmem:[#allocation27_spill] sm:$0xff] }
 0x1f2   : > { %v1682_v38 = vsel %vm484_vm11, %v1680_v11, %v8017_v29  ;;  %v2507_v61 = vsel %vm472_vm7, %v2505_v57, %v7786_v39  ;;  %v1656_v12 = vsel %vm468_vm6, %v10161_v13, %v7842_v62  ;;  %v1938_v23 = vsel %vm475_vm9, %v1936_v42, %v7860_v40  ;;  %v10162_v62 = vld [vmem:[#allocation26_spill] sm:$0xff]  ;;  %v10163_v40 = vld [vmem:[#allocation32_spill] sm:$0xff] }
 0x1f3   : > { %v2467_v22 = vpop.permute.xlu1 %2466  ;;  %v2509_v1 = vsel %vm475_vm9, %v2507_v61, %v7976_v58  ;;  %v2233_v36 = vsel %vm475_vm9, %v2231_v54, %v7772_v35  ;;  %v10166_v54 = vld [vmem:[#allocation36_spill] sm:$0xff] }
 0x1f4   : > { %v2511_v39 = vsel %vm478_vm8, %v2509_v1, %v8036_v48  ;;  %v776_v13 = vsel %vm468_vm6, %v10166_v54, %v10165_v30  ;;  %v10182_v30 = vld [vmem:[#allocation53_spill] sm:$0xff]  ;;  %v10183_v54 = vld [vmem:[#allocation31_spill] sm:$0xff] }
 0x1f5   : > { %v8141_v20 = vpop.permute.xlu0 %1018 }
 0x1f7   : > { %v8180_v24 = vpop.permute.xlu1 %456 }
 0x1f9   : > { %v8160_v59 = vpop.permute.xlu0 %1356 }
 0x1fb   : > { %v8185_v44 = vpop.permute.xlu1 %757 }
 0x1fd   : > { %v1653_v21 = vpop.permute.xlu0 %1652 }
 0x1fe   : > { %v8175_v9 = vsel %vm487_vm12, %v1682_v38, %v1653_v21  ;;  %v1658_v38 = vsel %vm472_vm7, %v1656_v12, %v10162_v62  ;;  %v1940_v21 = vsel %vm478_vm8, %v1938_v23, %v10163_v40  ;;  %v10167_v12 = vld [vmem:[#allocation16_spill] sm:$0xff] }
 0x1ff   : > { %10154 = vst [vmem:[#allocation46_spill] sm:$0xff] %v8175_v9  ;;  %v2853_v37 = vsel %vm2833_vm13, %v8175_v9, %v2824_v2  ;;  %v8215_v11 = vpop.permute.xlu1 %1028  ;;  %v2235_v2 = vsel %vm478_vm8, %v2233_v36, %v7966_v46  ;;  %v1660_v35 = vsel %vm475_vm9, %v1658_v38, %v7943_v47  ;;  %v1942_v48 = vsel %vm481_vm10, %v1940_v21, %v7957_v26  ;;  %v10168_v23 = vld [vmem:[#allocation20_spill] sm:$0xff]  ;;  %v10169_v36 = vld [vmem:[#allocation19_spill] sm:$0xff]  ;;  %v10170_v21 = vld [vmem:[#allocation10_spill] sm:$0xff] }
 0x200   : > { %v2857_v50 = vsel %vm2838_vm14, %v2853_v37, %v2828_v60  ;;  %v2237_v58 = vsel %vm481_vm10, %v2235_v2, %v8027_v33  ;;  %v2513_v60 = vsel %vm481_vm10, %v2511_v39, %v8031_v43  ;;  %v1662_v46 = vsel %vm478_vm8, %v1660_v35, %v8015_v25 }
 0x201   : > { %v2462_v27 = vpop.permute.xlu0 %2461  ;;  %v2862_v7 = vsel %vm9978_vm15, %v2857_v50, %v2832_v5  ;;  %v1944_v5 = vsel %vm484_vm11, %v1942_v48, %v8020_v49  ;;  %v1664_v33 = vsel %vm481_vm10, %v1662_v46, %v8068_v10  ;;  %v2239_v47 = vsel %vm484_vm11, %v2237_v58, %v8024_v17  ;;  %v10171_v58 = vld [vmem:[#allocation23_spill] sm:$0xff]  ;;  %v10172_v48 = vld [vmem:[#allocation13_spill] sm:$0xff] }
 0x202   : > { %2891 = vmatprep.subr.bf16.mxu0 %v2862_v7  ;;  %v2515_v37 = vsel %vm484_vm11, %v2513_v60, %v2462_v27  ;;  %v1946_v26 = vsel %vm487_vm12, %v1944_v5, %v8072_v6  ;;  %v2241_v43 = vsel %vm487_vm12, %v2239_v47, %v8070_v3  ;;  %v1666_v27 = vsel %vm484_vm11, %v1664_v33, %v8066_v0  ;;  %v10173_v46 = vld [vmem:[#allocation11_spill] sm:$0xff]  ;;  %v10174_v5 = vld [vmem:[#allocation12_spill] sm:$0xff] }
 0x203   : > { %v1367_v25 = vpop.permute.xlu1 %1366  ;;  %v2517_v7 = vsel %vm487_vm12, %v2515_v37, %v2467_v22  ;;  %v2823_v49 = vrot.slane %v1946_v26, 6  ;;  %v2827_v18 = vrot.slane %v2241_v43, 4  ;;  %v1052_v1 = vsel %vm468_vm6, %v10168_v23, %v10167_v12  ;;  %v10175_v26 = vld [vmem:[#allocation17_spill] sm:$0xff]  ;;  %v10176_v43 = vld [vmem:[#allocation40_spill] sm:$0xff] }
 0x204   : > { %v2831_v4 = vrot.slane %v2517_v7, 2  ;;  %v1395_v39 = vsel %vm468_vm6, %v10169_v36, %v7923_v14  ;;  %v778_v2 = vsel %vm472_vm7, %v776_v13, %v7928_v31  ;;  %v1054_v40 = vsel %vm472_vm7, %v1052_v1, %v8010_v19 }
 0x205   : > { %v8183_v29 = vpop.permute.xlu0 %411  ;;  %v780_v38 = vsel %vm475_vm9, %v778_v2, %v8003_v56  ;;  %v492_v35 = vsel %vm468_vm6, %v10171_v58, %v10170_v21  ;;  %v1397_v60 = vsel %vm472_vm7, %v1395_v39, %v10172_v48  ;;  %v1056_v31 = vsel %vm475_vm9, %v1054_v40, %v10174_v5  ;;  %v10184_v2 = vld [vmem:[#allocation42_spill] sm:$0xff] }
 0x206   : > { %v782_v14 = vsel %vm478_vm8, %v780_v38, %v10173_v46  ;;  %v1399_v37 = vsel %vm475_vm9, %v1397_v60, %v8160_v59  ;;  %v1058_v47 = vsel %vm478_vm8, %v1056_v31, %v8141_v20  ;;  %v761_v7 = vsel %vm468_vm6, %v10176_v43, %v10175_v26  ;;  %v10180_v59 = vld [vmem:[#allocation38_spill] sm:$0xff]  ;;  %v10185_v38 = vld [vmem:[#allocation29_spill] sm:$0xff]  ;;  %v10190_v43 = vld [vmem:[#allocation43_spill] sm:$0xff] }
 0x207   : > { %v462_v63 = vpop.permute.xlu1 %461  ;;  %v784_v19 = vsel %vm481_vm10, %v782_v14, %v8122_v51  ;;  %v1380_v13 = vsel %vm468_vm6, %v10183_v54, %v10182_v30  ;;  %v1060_v23 = vsel %vm481_vm10, %v1058_v47, %v8115_v34 }
 0x208   : > { %v786_v12 = vsel %vm484_vm11, %v784_v19, %v8102_v55  ;;  %v1062_v40 = vsel %vm484_vm11, %v1060_v23, %v8215_v11  ;;  %v10186_v55 = vld [vmem:[#allocation49_spill] sm:$0xff]  ;;  %v10188_v11 = vld [vmem:[#allocation52_spill] sm:$0xff] }
 0x209   : > { %v8193_v16 = vpop.permute.xlu0 %712  ;;  %v1382_v46 = vsel %vm472_vm7, %v1380_v13, %v10188_v11 }
 0x20b   : > { %v994_v52 = vpop.permute.xlu1 %993 }
 0x20d   : > { %v8217_v15 = vpop.permute.xlu0 %983 }
 0x20f   : > { %v8262_v57 = vpop.permute.xlu1 %1331 }
 0x211   : > { %v8238_v50 = vpop.permute.xlu0 %1321 }
 0x213   : > { %v8266_v42 = vpop.permute.xlu1 %426 }
 0x215   : > { %v1618_v45 = vpop.permute.xlu0 %1617 }
 0x216   : > { %v8252_v10 = vsel %vm487_vm12, %v1666_v27, %v1618_v45  ;;  %v10178_v45 = vld [vmem:[#allocation45_spill] sm:$0xff] }
 0x217   : > { %10164 = vst [vmem:[#allocation25_spill] sm:$0xff] %v8252_v10  ;;  %v2851_v17 = vsel %vm2833_vm13, %v8252_v10, %v2823_v49  ;;  %v999_v56 = vpop.permute.xlu1 %998  ;;  %v10177_v49 = vld [vmem:[#allocation39_spill] sm:$0xff] }
 0x218   : > { %v2855_v6 = vsel %vm2838_vm14, %v2851_v17, %v2827_v18  ;;  %v1037_v27 = vsel %vm468_vm6, %v10178_v45, %v10177_v49  ;;  %v10179_v18 = vld [vmem:[#allocation9_spill] sm:$0xff]  ;;  %v763_v17 = vsel %vm472_vm7, %v761_v7, %v10180_v59 }
 0x219   : > { %v8257_v3 = vpop.permute.xlu0 %416  ;;  %v2859_v22 = vsel %vm9978_vm15, %v2855_v6, %v2831_v4  ;;  %v494_v4 = vsel %vm472_vm7, %v492_v35, %v10179_v18  ;;  %v10181_v6 = vld [vmem:[#allocation51_spill] sm:$0xff]  ;;  %v765_v58 = vsel %vm475_vm9, %v763_v17, %v10186_v55 }
 0x21a   : > { %2892 = vmatpush1.bf16.msra.mxu0 %v2859_v22  ;;  %v1039_v51 = vsel %vm472_vm7, %v1037_v27, %v10181_v6  ;;  %v496_v20 = vsel %vm475_vm9, %v494_v4, %v8107_v32  ;;  %v1401_v22 = vsel %vm478_vm8, %v1399_v37, %v8139_v8  ;;  %v471_v32 = vsel %vm468_vm6, %v10185_v38, %v10184_v2 }
 0x21b   : > { %v1403_v1 = vsel %vm481_vm10, %v1401_v22, %v1367_v25  ;;  %v1377_v39 = vpop.permute.xlu1 %1376  ;;  %v788_v8 = vsel %vm487_vm12, %v786_v12, %v8185_v44  ;;  %v498_v34 = vsel %vm478_vm8, %v496_v20, %v8088_v53  ;;  %v10187_v25 = vld [vmem:[#allocation50_spill] sm:$0xff]  ;;  %v1384_v53 = vsel %vm475_vm9, %v1382_v46, %v8238_v50 }
 0x21c   : > { %v1041_v35 = vsel %vm475_vm9, %v1039_v51, %v10187_v25  ;;  %v500_v60 = vsel %vm481_vm10, %v498_v34, %v8180_v24  ;;  %v2812_v5 = vrot.slane %v788_v8, 6  ;;  %v767_v7 = vsel %vm478_vm8, %v765_v58, %v10190_v43  ;;  %v10193_v43 = vld [vmem:[#allocation18_spill] sm:$0xff] }
 0x21d   : > { %v8260_v28 = vpop.permute.xlu0 %717  ;;  %v1043_v44 = vsel %vm478_vm8, %v1041_v35, %v8217_v15  ;;  %v502_v31 = vsel %vm484_vm11, %v500_v60, %v462_v63  ;;  %v10189_v15 = vld [vmem:[#allocation14_spill] sm:$0xff]  ;;  %v10191_v8 = vmov 0   ;;  %v10192_v60 = vld [vmem:[#allocation15_spill] sm:$0xff] }
 0x21e   : > { %v474_v26 = vsel %vm472_vm7, %v471_v32, %v10189_v15  ;;  %2923 = vst.msk [vmem:[#allocation2] sm:$0xf] %vm2922_vm1, %v10191_v8  ;;  %2924 = vst.msk [vmem:[#allocation2 + $0x4] sm:$0xf] %vm2922_vm1, %v10191_v8 }
 0x21f   : > { %v477_v50 = vsel %vm475_vm9, %v474_v26, %v8183_v29  ;;  %v1342_v29 = vpop.permute.xlu1 %1341  ;;  %2927 = vst.msk [vmem:[#allocation2 + $0xc] sm:$0xf] %vm2922_vm1, %v10191_v8  ;;  %2928 = vst.msk [vmem:[#allocation2 + $0x10] sm:$0xf] %vm2922_vm1, %v10191_v8 }
 0x220   : > { %v480_v27 = vsel %vm478_vm8, %v477_v50, %v8257_v3  ;;  %2930 = vst.msk [vmem:[#allocation2 + $0x18] sm:$0xf] %vm2922_vm1, %v10191_v8  ;;  %2931 = vst.msk [vmem:[#allocation2 + $0x1c] sm:$0xf] %vm2922_vm1, %v10191_v8 }
 0x221   : > { %v989_v0 = vpop.permute.xlu0 %988  ;;  %2933 = vst.msk [vmem:[#allocation2 + $0x24] sm:$0xf] %vm2922_vm1, %v10191_v8  ;;  %2934 = vst.msk [vmem:[#allocation2 + $0x28] sm:$0xf] %vm2922_vm1, %v10191_v8  ;;  %vm3141_vm1 = vsmask.f32 4368 }
 0x222   : > { %v1045_v37 = vsel %vm481_vm10, %v1043_v44, %v989_v0  ;;  %v769_v0 = vsel %vm481_vm10, %v767_v7, %v8193_v16  ;;  %2929 = vst.msk [vmem:[#allocation2 + $0x14] sm:$0x1] %vm2925_vm3, %v10191_v8  ;;  %2926 = vst.msk [vmem:[#allocation2 + $0x8] sm:$0x1] %vm2925_vm3, %v10191_v8 }
 0x223   : > { %v771_v18 = vsel %vm484_vm11, %v769_v0, %v8260_v28  ;;  %2932 = vst.msk [vmem:[#allocation2 + $0x20] sm:$0x1] %vm2925_vm3, %v10191_v8  ;;  %2935 = vst.msk [vmem:[#allocation2 + $0x2c] sm:$0x1] %vm2925_vm3, %v10191_v8 }
 0x224   : > { %vm8454_vm3 = vmor %vm3140_vm4, %vm3141_vm1  ;;  %vm3247_vm1 = vcmask 134152  }
 0x225   : > { %v1327_v61 = vpop.permute.xlu0 %1326 }
 0x226   : > { %v1386_v19 = vsel %vm478_vm8, %v1384_v53, %v1327_v61  ;;  %v1047_v61 = vsel %vm484_vm11, %v1045_v37, %v994_v52 }
 0x227   : > { %v1388_v59 = vsel %vm481_vm10, %v1386_v19, %v8262_v57  ;;  %v1049_v3 = vsel %vm487_vm12, %v1047_v61, %v999_v56  ;;  %v2864_v56 = vld [vmem:[%s9910_s1] sm:$0x3] }
 0x228   : > { %v2815_v22 = vrot.slane %v1049_v3, 4 }
 0x229   : > { %v8264_v41 = vpop.permute.xlu0 %421 }
 0x22a   : > { %v483_v16 = vsel %vm481_vm10, %v480_v27, %v8264_v41 }
 0x22b   : > { %v486_v57 = vsel %vm484_vm11, %v483_v16, %v8266_v42 }
 0x22d   : > { %v723_v62 = vpop.permute.xlu0 %722 }
 0x22e   : > { %v773_v52 = vsel %vm487_vm12, %v771_v18, %v723_v62 }
 0x22f   : > { %v2811_v28 = vrot.slane %v773_v52, 6 }
 0x231   : > { %v1034_v33 = vpop.permute.xlu0 %1033 }
 0x232   : > { %v1064_v48 = vsel %vm487_vm12, %v1062_v40, %v1034_v33 }
 0x233   : > { %v2816_v24 = vrot.slane %v1064_v48, 4 }
 0x235   : > { %v1372_v36 = vpop.permute.xlu0 %1371 }
 0x236   : > { %v1405_v21 = vsel %vm484_vm11, %v1403_v1, %v1372_v36 }
 0x237   : > { %v1407_v14 = vsel %vm487_vm12, %v1405_v21, %v1377_v39 }
 0x238   : > { %v2820_v49 = vrot.slane %v1407_v14, 2 }
 0x239   : > { %v467_v33 = vpop.permute.xlu0 %466 }
 0x23a   : > { %v504_v47 = vsel %vm487_vm12, %v502_v31, %v467_v33 }
 0x23b   : > { %v2837_v63 = vsel %vm2833_vm13, %v504_v47, %v2812_v5 }
 0x23c   : > { %v2842_v45 = vsel %vm2838_vm14, %v2837_v63, %v2816_v24 }
 0x23d   : > { %v1337_v4 = vpop.permute.xlu0 %1336  ;;  %v2848_v17 = vsel %vm9978_vm15, %v2842_v45, %v2820_v49 }
 0x23e   : > { %v1390_v6 = vsel %vm484_vm11, %v1388_v59, %v1337_v4  ;;  %2893 = vmatprep.subr.bf16.mxu0 %v2848_v17 }
 0x23f   : > { %v1392_v51 = vsel %vm487_vm12, %v1390_v6, %v1342_v29 }
 0x240   : > { %v2819_v54 = vrot.slane %v1392_v51, 2 }
 0x241   : > { %v432_v20 = vpop.permute.xlu0 %431 }
 0x242   : > { %v489_v30 = vsel %vm487_vm12, %v486_v57, %v432_v20 }
 0x243   : > { %v2835_v41 = vsel %vm2833_vm13, %v489_v30, %v2811_v28 }
 0x244   : > { %v2840_v62 = vsel %vm2838_vm14, %v2835_v41, %v2815_v22 }
 0x245   : > { %v2845_v13 = vsel %vm9978_vm15, %v2840_v62, %v2819_v54 }
 0x246   : > { %2894 = vmatpush1.bf16.msra.mxu0 %v2845_v13 }
 0x249   : > { %6170 = vmatmul.mubr.msk.bf16.vlgmr.msra.gmra.mxu0 %vm9977_vm0, %v2864_v56  ;;  %vm3248_vm0 = vsmask.f32 7938 }
 0x24a   : > { %vm8474_vm15 = vmand %vm3247_vm1, %vm3248_vm0  ;;  %vm3255_vm0 = vcmask 131080  }
 0x24e   : > { %v2869_v12 = vpop.permute.xlu0 %2868 }
 0x309   : > { %v2913_v42 = vpop.f32.mrf.mxu0 }
 0x30a   : > { %v2914_v23 = vadd.f32 %v2913_v42, %v2869_v12 }
 0x30b   : > { %v2915_v1 = vpop.f32.mrf.mxu0 }
 0x30c   : > { %v2920_v36 = vmax.f32 %v2914_v23, 0.0  ;;  %v2916_v38 = vadd.f32 %v2915_v1, %v2869_v12 }
 0x30d   : > { %v2917_v39 = vpop.f32.mrf.mxu0 }
 0x30e   : > { %2943 = vrot.lane.b32.xlu0 %v2920_v36, %s6516_s6  ;;  %2937 = vrot.lane.b32.xlu1 %v2920_v36, %s6517_s7  ;;  %v8390_v32 = vmax.f32 %v2916_v38, 0.0 }
 0x30f   : > { %v2918_v2 = vpop.f32.mrf.mxu0 }
 0x312   : > { %2949 = vrot.lane.b32.xlu0 %v2920_v36, %s6513_s28  ;;  %2940 = vrot.lane.b32.xlu1 %v2920_v36, %s6515_s30 }
 0x316   : > { %2955 = vrot.lane.b32.xlu0 %v2920_v36, %s6511_s26  ;;  %2946 = vrot.lane.b32.xlu1 %v2920_v36, %s6514_s29 }
 0x31a   : > { %2962 = vrot.lane.b32.xlu0 %v8390_v32, %s6515_s30  ;;  %2952 = vrot.lane.b32.xlu1 %v2920_v36, %s6512_s27 }
 0x31e   : > { %2968 = vrot.lane.b32.xlu0 %v8390_v32, %s6514_s29  ;;  %2959 = vrot.lane.b32.xlu1 %v8390_v32, %s6517_s7 }
 0x322   : > { %2974 = vrot.lane.b32.xlu0 %v8390_v32, %s6512_s27  ;;  %2965 = vrot.lane.b32.xlu1 %v8390_v32, %s6516_s6 }
 0x326   : > { %2971 = vrot.lane.b32.xlu1 %v8390_v32, %s6513_s28 }
 0x32a   : > { %2977 = vrot.lane.b32.xlu1 %v8390_v32, %s6511_s26 }
 0x380   : > { %v2944_v40 = vpop.permute.xlu0 %2943  ;;  %v2938_v21 = vpop.permute.xlu1 %2937 }
 0x381   : > { %v2988_v48 = vcombine.low %v2938_v21, %v2944_v40 }
 0x383   : > { %v2995_v5 = vrot.slane %v2988_v48, %v10192_v60 }
 0x384   : > { %v2950_v55 = vpop.permute.xlu0 %2949  ;;  %v2941_v58 = vpop.permute.xlu1 %2940 }
 0x385   : > { %v2980_v34 = vcombine.low %v2920_v36, %v2941_v58 }
 0x387   : > { %v2987_v44 = vrot.slane %v2980_v34, %v10192_v60 }
 0x388   : > { %v2956_v25 = vpop.permute.xlu0 %2955  ;;  %v2947_v35 = vpop.permute.xlu1 %2946 }
 0x389   : > { %v3004_v11 = vcombine.low %v2950_v55, %v2956_v25  ;;  %v3012_v53 = vcombine.low %v2987_v44, %v2995_v5  ;;  %v3013_v37 = vcombine.high %v2987_v44, %v2995_v5 }
 0x38b   : > { %v3011_v33 = vrot.slane %v3004_v11, %v10192_v60  ;;  %v3020_v7 = vrot.slane %v3012_v53, %v10193_v43  ;;  %v3027_v49 = vrot.slane %v3013_v37, %v10193_v43 }
 0x38c   : > { %v2963_v46 = vpop.permute.xlu0 %2962  ;;  %v2953_v14 = vpop.permute.xlu1 %2952 }
 0x38d   : > { %v2996_v31 = vcombine.low %v2947_v35, %v2953_v14  ;;  %v3048_v6 = vcombine.low %v8390_v32, %v2963_v46 }
 0x38f   : > { %v3003_v19 = vrot.slane %v2996_v31, %v10192_v60  ;;  %v3055_v62 = vrot.slane %v3048_v6, %v10192_v60 }
 0x390   : > { %v2960_v24 = vpop.permute.xlu1 %2959  ;;  %v2969_v26 = vpop.permute.xlu0 %2968 }
 0x391   : > { %v3028_v47 = vcombine.low %v3003_v19, %v3011_v33  ;;  %v3029_v15 = vcombine.high %v3003_v19, %v3011_v33 }
 0x393   : > { %v3036_v63 = vrot.slane %v3028_v47, %v10193_v43  ;;  %v3043_v50 = vrot.slane %v3029_v15, %v10193_v43 }
 0x394   : > { %v2966_v0 = vpop.permute.xlu1 %2965  ;;  %v2975_v59 = vpop.permute.xlu0 %2974 }
 0x395   : > { %v3044_v61 = vcombine.low %v3020_v7, %v3036_v63  ;;  %v3045_v45 = vcombine.high %v3020_v7, %v3036_v63  ;;  %v3046_v27 = vcombine.low %v3027_v49, %v3043_v50  ;;  %v3056_v17 = vcombine.low %v2960_v24, %v2966_v0 }
 0x396   : > { %v3047_v29 = vcombine.high %v3027_v49, %v3043_v50  ;;  %v3064_v28 = vcombine.low %v2969_v26, %v2975_v59 }
 0x397   : > { %v6388_v18 = vpack.c.bf16 %v3044_v61, %v3044_v61  ;;  %v6390_v4 = vpack.c.bf16 %v3045_v45, %v3045_v45  ;;  %v6392_v16 = vpack.c.bf16 %v3046_v27, %v3046_v27  ;;  %v3063_v20 = vrot.slane %v3056_v17, %v10192_v60 }
 0x398   : > { %v2972_v52 = vpop.permute.xlu1 %2971  ;;  %v6394_v30 = vpack.c.bf16 %v3047_v29, %v3047_v29  ;;  %v3071_v42 = vrot.slane %v3064_v28, %v10192_v60 }
 0x399   : > { %v3144_v3 = vshrl.u32 %v6388_v18, 16  ;;  %v3161_v51 = vshrl.u32 %v6390_v4, 16  ;;  %v3147_v22 = vshll.u32 %v6388_v18, 16  ;;  %v3178_v41 = vshrl.u32 %v6392_v16, 16 }
 0x39a   : > { %v3164_v23 = vshll.u32 %v6390_v4, 16  ;;  %v3080_v1 = vcombine.low %v3055_v62, %v3063_v20  ;;  %v3081_v36 = vcombine.high %v3055_v62, %v3063_v20  ;;  %v3195_v38 = vshrl.u32 %v6394_v30, 16 }
 0x39b   : > { %v8425_v57 = vrot.slane %v3144_v3, 7  ;;  %v8429_v12 = vrot.slane %v3161_v51, 7  ;;  %v8434_v2 = vrot.slane %v3178_v41, 7  ;;  %v3181_v55 = vshll.u32 %v6392_v16, 16 }
 0x39c   : > { %v2978_v54 = vpop.permute.xlu1 %2977  ;;  %v3088_v58 = vrot.slane %v3080_v1, %v10193_v43  ;;  %v3095_v34 = vrot.slane %v3081_v36, %v10193_v43  ;;  %v3197_v44 = vrot.slane %v3195_v38, 7  ;;  %v3198_v5 = vshll.u32 %v6394_v30, 16  ;;  %v3267_v36 = vld [vmem:[#allocation2 + $0x18] sm:$0xf] }
 0x39d   : > { %v3072_v13 = vcombine.low %v2972_v52, %v2978_v54  ;;  %v3149_v56 = vor.u32 %v3147_v22, %v8425_v57  ;;  %v3166_v21 = vor.u32 %v3164_v23, %v8429_v12  ;;  %v3183_v48 = vor.u32 %v3181_v55, %v8434_v2 }
 0x39e   : > { %v3200_v19 = vor.u32 %v3198_v5, %v3197_v44  ;;  %v3150_v17 = vrot.slane %v8425_v57, 4  ;;  %v3167_v6 = vrot.slane %v8429_v12, 4  ;;  %v3184_v20 = vrot.slane %v8434_v2, 4 }
 0x39f   : > { %v3079_v39 = vrot.slane %v3072_v13, %v10192_v60  ;;  %3211 = vrot.lane.b32.xlu0 %v3149_v56, %s6519_s12  ;;  %v3201_v54 = vrot.slane %v3197_v44, 4  ;;  %v3250_v13 = vld [vmem:[#allocation2] sm:$0xf] }
 0x3a1   : > { %v3096_v32 = vcombine.low %v3071_v42, %v3079_v39  ;;  %v3097_v40 = vcombine.high %v3071_v42, %v3079_v39  ;;  %v3260_v42 = vld [vmem:[#allocation2 + $0xc] sm:$0xf] }
 0x3a3   : > { %v3104_v25 = vrot.slane %v3096_v32, %v10193_v43  ;;  %v3111_v35 = vrot.slane %v3097_v40, %v10193_v43  ;;  %3217 = vrot.lane.b32.xlu0 %v3166_v21, %s6519_s12  ;;  %v3274_v32 = vld [vmem:[#allocation2 + $0x24] sm:$0xf] }
 0x3a5   : > { %v3112_v11 = vcombine.low %v3088_v58, %v3104_v25  ;;  %v3113_v8 = vcombine.high %v3088_v58, %v3104_v25  ;;  %v3114_v46 = vcombine.low %v3095_v34, %v3111_v35  ;;  %v3115_v14 = vcombine.high %v3095_v34, %v3111_v35  ;;  %v3264_v34 = vld [vmem:[#allocation2 + $0x14] sm:$0x1]  ;;  %v3257_v25 = vld [vmem:[#allocation2 + $0x8] sm:$0x1] }
 0x3a7   : > { %v6389_v31 = vpack.c.bf16 %v3112_v11, %v3112_v11  ;;  %v6391_v53 = vpack.c.bf16 %v3113_v8, %v3113_v8  ;;  %v6393_v37 = vpack.c.bf16 %v3114_v46, %v3114_v46  ;;  %v6395_v33 = vpack.c.bf16 %v3115_v14, %v3115_v14  ;;  %3223 = vrot.lane.b32.xlu0 %v3183_v48, %s6519_s12 }
 0x3a9   : > { %v3169_v24 = vshrl.u32 %v6391_v53, 16  ;;  %v3152_v47 = vshrl.u32 %v6389_v31, 16  ;;  %v3203_v15 = vshrl.u32 %v6395_v33, 16  ;;  %v3186_v26 = vshrl.u32 %v6393_v37, 16 }
 0x3aa   : > { %v3155_v45 = vshll.u32 %v6389_v31, 16  ;;  %v3172_v29 = vshll.u32 %v6391_v53, 16  ;;  %v3189_v3 = vshll.u32 %v6393_v37, 16  ;;  %v3206_v22 = vshll.u32 %v6395_v33, 16  ;;  %v3278_v53 = vld [vmem:[#allocation2 + $0x2c] sm:$0x1] }
 0x3ab   : > { %3229 = vrot.lane.b32.xlu0 %v3200_v19, %s6519_s12  ;;  %v3171_v7 = vrot.slane %v3169_v24, 7  ;;  %v3154_v49 = vrot.slane %v3152_v47, 7  ;;  %v3205_v0 = vrot.slane %v3203_v15, 7  ;;  %v3188_v61 = vrot.slane %v3186_v26, 7  ;;  %v3271_v37 = vld [vmem:[#allocation2 + $0x20] sm:$0x1] }
 0x3ad   : > { %v3176_v63 = vrot.slane %v3171_v7, 4  ;;  %v3159_v50 = vrot.slane %v3154_v49, 4  ;;  %v3210_v27 = vrot.slane %v3205_v0, 4  ;;  %v3193_v18 = vrot.slane %v3188_v61, 4 }
 0x3ae   : > { %v3157_v4 = vor.u32 %v3155_v45, %v3154_v49  ;;  %v3174_v52 = vor.u32 %v3172_v29, %v3171_v7  ;;  %v3191_v28 = vor.u32 %v3189_v3, %v3188_v61  ;;  %v3208_v30 = vor.u32 %v3206_v22, %v3205_v0 }
 0x3af   : > { %3221 = vrot.lane.b32.xlu1 %v3176_v63, %s6519_s12  ;;  %3215 = vrot.lane.b32.xlu0 %v3159_v50, %s6519_s12 }
 0x3b0   : > { %v3158_v16 = vsel %vm8454_vm3, %v3150_v17, %v3157_v4  ;;  %v3175_v51 = vsel %vm8454_vm3, %v3167_v6, %v3174_v52  ;;  %v3192_v57 = vsel %vm8454_vm3, %v3184_v20, %v3191_v28  ;;  %v3209_v41 = vsel %vm8454_vm3, %v3201_v54, %v3208_v30  ;;  %vm8495_vm3 = vmand %vm3255_vm0, %vm3140_vm4 }
 0x3b3   : > { %3233 = vrot.lane.b32.xlu1 %v3210_v27, %s6519_s12  ;;  %3227 = vrot.lane.b32.xlu0 %v3193_v18, %s6519_s12 }
 0x3b7   : > { %3213 = vrot.lane.b32.xlu1 %v3158_v16, %s6519_s12 }
 0x3bb   : > { %3219 = vrot.lane.b32.xlu1 %v3175_v51, %s6519_s12 }
 0x3bf   : > { %3225 = vrot.lane.b32.xlu1 %v3192_v57, %s6519_s12 }
 0x3c3   : > { %3231 = vrot.lane.b32.xlu1 %v3209_v41, %s6519_s12 }
 0x411   : > { %v3212_v56 = vpop.permute.xlu0 %3211 }
 0x412   : > { %v3251_v12 = vsel %vm8474_vm15, %v3212_v56, %v3250_v13 }
 0x413   : > { %3252 = vst [vmem:[#allocation2] sm:$0xf] %v3251_v12 }
 0x415   : > { %v3218_v23 = vpop.permute.xlu0 %3217 }
 0x416   : > { %v3261_v1 = vsel %vm8474_vm15, %v3218_v23, %v3260_v42 }
 0x417   : > { %3262 = vst [vmem:[#allocation2 + $0xc] sm:$0xf] %v3261_v1 }
 0x419   : > { %v3224_v39 = vpop.permute.xlu0 %3223 }
 0x41a   : > { %v3268_v2 = vsel %vm8474_vm15, %v3224_v39, %v3267_v36  ;;  %v8484_v38 = vld [vmem:[#allocation2] sm:$0xf] }
 0x41b   : > { %3269 = vst [vmem:[#allocation2 + $0x18] sm:$0xf] %v3268_v2  ;;  %3561 = vrot.lane.b32.xlu1 %v8484_v38, %s6508_s25  ;;  %v3296_v35 = vshrl.u32 %v8484_v38, 16  ;;  %v4115_v26 = vshll.u32 %v8484_v38, 16  ;;  %v6263_v56 = vrot.slane %v8484_v38, 9 }
 0x41d   : > { %v3230_v40 = vpop.permute.xlu0 %3229  ;;  %v4114_v61 = vrot.slane %v3296_v35, 4  ;;  %v4117_v45 = vrot.slane %v4115_v26, 5 }
 0x41e   : > { %v3275_v21 = vsel %vm8474_vm15, %v3230_v40, %v3274_v32  ;;  %v8490_v55 = vld [vmem:[#allocation2 + $0xc] sm:$0xf] }
 0x41f   : > { %3276 = vst [vmem:[#allocation2 + $0x24] sm:$0xf] %v3275_v21  ;;  %3565 = vrot.lane.b32.xlu0 %v8490_v55, %s6508_s25  ;;  %v3297_v48 = vshrl.u32 %v8490_v55, 16  ;;  %v3295_v44 = vpack.i.b16 %v8490_v55, %v8484_v38  ;;  %v4135_v63 = vshll.u32 %v8490_v55, 16  ;;  %v4118_v3 = vor.u32 %v4117_v45, %v4114_v61 }
 0x420   : > { %v6264_v12 = vrot.slane %v8490_v55, 9 }
 0x421   : > { %v3222_v11 = vpop.permute.xlu1 %3221  ;;  %v3216_v8 = vpop.permute.xlu0 %3215  ;;  %v8503_v46 = vpack.i.b16 %v3297_v48, %v3296_v35  ;;  %v8529_v50 = vrot.slane %v3295_v44, %v10192_v60  ;;  %v4134_v59 = vrot.slane %v3297_v48, 4  ;;  %v4137_v17 = vrot.slane %v4135_v63, 5 }
 0x422   : > { %v3265_v14 = vsel %vm8495_vm3, %v3222_v11, %v3264_v34  ;;  %v3258_v5 = vsel %vm8495_vm3, %v3216_v8, %v3257_v25  ;;  %v8509_v31 = vld [vmem:[#allocation2 + $0x18] sm:$0xf]  ;;  %v4119_v1 = vrot.slane %v4118_v3, 4 }
 0x423   : > { %3266 = vst [vmem:[#allocation2 + $0x14] sm:$0x1] %v3265_v14  ;;  %3259 = vst [vmem:[#allocation2 + $0x8] sm:$0x1] %v3258_v5  ;;  %3569 = vrot.lane.b32.xlu1 %v8509_v31, %s6508_s25  ;;  %v9982_v29 = vshrl.u32 %v8509_v31, 16  ;;  %v4155_v16 = vshll.u32 %v8509_v31, 16  ;;  %v4138_v20 = vor.u32 %v4137_v17, %v4134_v59 }
 0x424   : > { %v6265_v2 = vrot.slane %v8509_v31, 9 }
 0x425   : > { %v3234_v33 = vpop.permute.xlu1 %3233  ;;  %v3228_v19 = vpop.permute.xlu0 %3227  ;;  %v4154_v54 = vrot.slane %v9982_v29, 4  ;;  %v4157_v41 = vrot.slane %v4155_v16, 5  ;;  %v4139_v21 = vrot.slane %v4138_v20, 4 }
 0x426   : > { %v3279_v24 = vsel %vm8495_vm3, %v3234_v33, %v3278_v53  ;;  %v3272_v47 = vsel %vm8495_vm3, %v3228_v19, %v3271_v37  ;;  %v8517_v15 = vld [vmem:[#allocation2 + $0x24] sm:$0xf] }
 0x427   : > { %3280 = vst [vmem:[#allocation2 + $0x2c] sm:$0x1] %v3279_v24  ;;  %3273 = vst [vmem:[#allocation2 + $0x20] sm:$0x1] %v3272_v47  ;;  %3573 = vrot.lane.b32.xlu0 %v8517_v15, %s6508_s25  ;;  %3837 = vrot.lane.b32.xlu1 %v8484_v38, %s6507_s24  ;;  %v3301_v7 = vpack.i.b16 %v8517_v15, %v8509_v31  ;;  %v9981_v52 = vshrl.u32 %v8517_v15, 16  ;;  %v4175_v6 = vshll.u32 %v8517_v15, 16 }
 0x428   : > { %v6266_v34 = vrot.slane %v8517_v15, 9  ;;  %v4158_v44 = vor.u32 %v4157_v41, %v4154_v54 }
 0x429   : > { %v3214_v49 = vpop.permute.xlu1 %3213  ;;  %v8532_v0 = vrot.slane %v3301_v7, %v10192_v60  ;;  %v8562_v62 = vrot.slane %v9981_v52, 4  ;;  %v8564_v13 = vrot.slane %v4175_v6, 5 }
 0x42a   : > { %3254 = vst.msk [vmem:[#allocation2 + $0x4] sm:$0xf] %vm3247_vm1, %v3214_v49  ;;  %v8555_v57 = vld [vmem:[#allocation2 + $0x8] sm:$0x1]  ;;  %v8568_v23 = vld [vmem:[#allocation2 + $0x14] sm:$0x1] }
 0x42b   : > { %3841 = vrot.lane.b32.xlu0 %v8490_v55, %s6507_s24  ;;  %3845 = vrot.lane.b32.xlu1 %v8509_v31, %s6507_s24  ;;  %v3333_v27 = vcombine.low %v8529_v50, %v8532_v0  ;;  %v5014_v32 = vrot.slane %v8555_v57, 5  ;;  %v5021_v48 = vrot.slane %v8568_v23, 5  ;;  %v4178_v11 = vor.u32 %v8564_v13, %v8562_v62 }
 0x42c   : > { %v4159_v62 = vrot.slane %v4158_v44, 4 }
 0x42d   : > { %v3220_v4 = vpop.permute.xlu1 %3219 }
 0x42e   : > { %3263 = vst.msk [vmem:[#allocation2 + $0x10] sm:$0xf] %vm3247_vm1, %v3220_v4  ;;  %v8620_v61 = vld [vmem:[#allocation2 + $0x20] sm:$0x1]  ;;  %v3292_v41 = vld [vmem:[#allocation2 + $0x2c] sm:$0x1] }
 0x42f   : > { %3849 = vrot.lane.b32.xlu0 %v8517_v15, %s6507_s24  ;;  %v5028_v54 = vrot.slane %v8620_v61, 5 }
 0x431   : > { %v3226_v51 = vpop.permute.xlu1 %3225  ;;  %v8549_v28 = vld [vmem:[#allocation2 + $0x4] sm:$0xf] }
 0x432   : > { %3270 = vst.msk [vmem:[#allocation2 + $0x1c] sm:$0xf] %vm3247_vm1, %v3226_v51  ;;  %3563 = vrot.lane.b32.xlu1 %v8549_v28, %s6508_s25  ;;  %v5011_v22 = vrot.slane %v8549_v28, 5  ;;  %v4120_v30 = vshll.u32 %v8549_v28, 16 }
 0x434   : > { %v5013_v42 = vrot.slane %v5011_v22, 4  ;;  %v8574_v40 = vrot.slane %v4120_v30, 5  ;;  %v8581_v55 = vsel %vm6566_vm2, %v6263_v56, %v5011_v22 }
 0x435   : > { %v3232_v36 = vpop.permute.xlu1 %3231  ;;  %v8570_v39 = vld [vmem:[#allocation2 + $0x10] sm:$0xf]  ;;  %v5040_v33 = vshrl.u32 %v8581_v55, 16 }
 0x436   : > { %3277 = vst.msk [vmem:[#allocation2 + $0x28] sm:$0xf] %vm3247_vm1, %v3232_v36  ;;  %3567 = vrot.lane.b32.xlu0 %v8570_v39, %s6508_s25  ;;  %v5018_v58 = vrot.slane %v8570_v39, 5  ;;  %v4140_v25 = vshll.u32 %v8570_v39, 16  ;;  %v8588_v35 = vsel %vm6566_vm2, %v5013_v42, %v5014_v32  ;;  %v3307_v53 = vpack.i.b16 %v8570_v39, %v8549_v28 }
 0x437   : > { %v8610_v26 = vsel %vm6631_vm5, %v4119_v1, %v8574_v40  ;;  %v5052_v49 = vshrl.u32 %v8588_v35, 16  ;;  %v9980_v42 = vshrl.u32 %v8549_v28, 16 }
 0x438   : > { %v8595_v8 = vsel %vm6566_vm2, %v6264_v12, %v5018_v58  ;;  %v5020_v14 = vrot.slane %v5018_v58, 4  ;;  %v8597_v5 = vrot.slane %v4140_v25, 5  ;;  %v4196_v3 = vshrl.u32 %v8610_v26, 16 }
 0x439   : > { %v8601_v37 = vld [vmem:[#allocation2 + $0x1c] sm:$0xf]  ;;  %v5039_v19 = vpack.i.b16 %v8595_v8, %v8581_v55  ;;  %v5041_v24 = vshrl.u32 %v8595_v8, 16  ;;  %v5035_v25 = vrot.slane %v3292_v41, 5 }
 0x43a   : > { %3571 = vrot.lane.b32.xlu1 %v8601_v37, %s6508_s25  ;;  %v5025_v7 = vrot.slane %v8601_v37, 5  ;;  %v8618_v63 = vsel %vm6566_vm2, %v5020_v14, %v5021_v48  ;;  %v8625_v45 = vsel %vm6631_vm5, %v4139_v21, %v8597_v5  ;;  %v4160_v16 = vshll.u32 %v8601_v37, 16 }
 0x43b   : > { %v8627_v4 = vpack.i.b16 %v5041_v24, %v5040_v33  ;;  %v5051_v59 = vpack.i.b16 %v8618_v63, %v8588_v35  ;;  %v5053_v17 = vshrl.u32 %v8618_v63, 16  ;;  %v4195_v51 = vpack.i.b16 %v8625_v45, %v8610_v26 }
 0x43c   : > { %v5027_v6 = vrot.slane %v5025_v7, 4  ;;  %v4197_v20 = vshrl.u32 %v8625_v45, 16  ;;  %v8648_v13 = vsel %vm6566_vm2, %v6265_v2, %v5025_v7  ;;  %v4162_v36 = vrot.slane %v4160_v16, 5 }
 0x43d   : > { %v8637_v22 = vld [vmem:[#allocation2 + $0x28] sm:$0xf]  ;;  %v8639_v30 = vpack.i.b16 %v5053_v17, %v5052_v49  ;;  %v9979_v21 = vshrl.u32 %v8570_v39, 16  ;;  %v4179_v48 = vrot.slane %v4178_v11, 4  ;;  %v5046_v44 = vshrl.u32 %v8648_v13, 16 }
 0x43e   : > { %3839 = vrot.lane.b32.xlu1 %v8549_v28, %s6507_s24  ;;  %3575 = vrot.lane.b32.xlu0 %v8637_v22, %s6508_s25  ;;  %v5032_v56 = vrot.slane %v8637_v22, 5  ;;  %v8651_v12 = vpack.i.b16 %v4197_v20, %v4196_v3  ;;  %v8656_v1 = vsel %vm6566_vm2, %v5027_v6, %v5028_v54  ;;  %v4180_v32 = vshll.u32 %v8637_v22, 16 }
 0x43f   : > { %v8679_v11 = vsel %vm6631_vm5, %v4159_v62, %v4162_v36  ;;  %v4125_v49 = vrot.slane %v9980_v42, 4  ;;  %v4145_v3 = vrot.slane %v9979_v21, 4  ;;  %v9983_v20 = vshrl.u32 %v8601_v37, 16 }
 0x440   : > { %v8662_v58 = vsel %vm6566_vm2, %v6266_v34, %v5032_v56  ;;  %v5034_v2 = vrot.slane %v5032_v56, 4  ;;  %v4182_v24 = vrot.slane %v4180_v32, 5  ;;  %v5058_v34 = vshrl.u32 %v8656_v1, 16 }
 0x441   : > { %v5045_v14 = vpack.i.b16 %v8662_v58, %v8648_v13  ;;  %v5047_v33 = vshrl.u32 %v8662_v58, 16  ;;  %v3315_v54 = vshrl.u32 %v8637_v22, 16  ;;  %v4169_v32 = vshll.u32 %v8620_v61, 16 }
 0x442   : > { %3847 = vrot.lane.b32.xlu1 %v8601_v37, %s6507_s24  ;;  %3843 = vrot.lane.b32.xlu0 %v8570_v39, %s6507_s24  ;;  %v8675_v7 = vsel %vm6566_vm2, %v5034_v2, %v5035_v25  ;;  %v8690_v38 = vsel %vm6631_vm5, %v4179_v48, %v4182_v24  ;;  %v4189_v2 = vshll.u32 %v3292_v41, 16  ;;  %v4202_v25 = vshrl.u32 %v8679_v11, 16 }
 0x443   : > { %v5048_v17 = vpack.i.b16 %v5047_v33, %v5046_v44  ;;  %v5057_v16 = vpack.i.b16 %v8675_v7, %v8656_v1  ;;  %v5059_v6 = vshrl.u32 %v8675_v7, 16  ;;  %v4201_v56 = vpack.i.b16 %v8690_v38, %v8679_v11 }
 0x444   : > { %v4203_v48 = vshrl.u32 %v8690_v38, 16  ;;  %v4165_v44 = vrot.slane %v9983_v20, 4  ;;  %v4185_v33 = vrot.slane %v3315_v54, 4  ;;  %v4129_v61 = vshll.u32 %v8555_v57, 16 }
 0x445   : > { %v5060_v62 = vpack.i.b16 %v5059_v6, %v5058_v34  ;;  %v4126_v34 = vor.u32 %v4125_v49, %v8574_v40  ;;  %v4146_v41 = vor.u32 %v4145_v3, %v8597_v5  ;;  %v3313_v6 = vpack.i.b16 %v8637_v22, %v8601_v37 }
 0x446   : > { %5573 = vrot.lane.b32.xlu1 %v8581_v55, %s6507_s24  ;;  %3851 = vrot.lane.b32.xlu0 %v8637_v22, %s6507_s24  ;;  %v8713_v21 = vrot.slane %v5048_v17, %v10192_v60  ;;  %v4204_v42 = vpack.i.b16 %v4203_v48, %v4202_v25  ;;  %v4166_v52 = vor.u32 %v4165_v44, %v4162_v36  ;;  %v4149_v20 = vshll.u32 %v8568_v23, 16 }
 0x447   : > { %v4186_v29 = vor.u32 %v4185_v33, %v4182_v24  ;;  %v4171_v18 = vrot.slane %v4169_v32, 5  ;;  %v8720_v40 = vrot.slane %v3307_v53, %v10192_v60  ;;  %v8723_v57 = vrot.slane %v3313_v6, %v10192_v60 }
 0x448   : > { %v8727_v5 = vrot.slane %v8627_v4, %v10192_v60  ;;  %v4167_v23 = vrot.slane %v4166_v52, 4  ;;  %v4191_v24 = vrot.slane %v4189_v2, 5  ;;  %v4147_v49 = vrot.slane %v4146_v41, 4 }
 0x449   : > { %v4187_v36 = vrot.slane %v4186_v29, 4  ;;  %v3401_v53 = vcombine.low %v8720_v40, %v8723_v57  ;;  %v3402_v17 = vcombine.high %v8720_v40, %v8723_v57  ;;  %v4127_v3 = vrot.slane %v4126_v34, 4 }
 0x44a   : > { %5577 = vrot.lane.b32.xlu1 %v8595_v8, %s6507_s24  ;;  %5301 = vrot.lane.b32.xlu0 %v8595_v8, %s6508_s25  ;;  %v8739_v4 = vsel %vm6631_vm5, %v4167_v23, %v4171_v18  ;;  %v5111_v29 = vcombine.low %v8727_v5, %v8713_v21  ;;  %v8748_v52 = vrot.slane %v5045_v14, %v10192_v60  ;;  %v4151_v2 = vrot.slane %v4149_v20, 5 }
 0x44b   : > { %v8743_v32 = vsel %vm6631_vm5, %v4187_v36, %v4191_v24  ;;  %v4214_v25 = vshrl.u32 %v8739_v4, 16  ;;  %v4131_v18 = vrot.slane %v4129_v61, 5  ;;  %v8760_v44 = vrot.slane %v5039_v19, %v10192_v60 }
 0x44c   : > { %v4215_v48 = vshrl.u32 %v8743_v32, 16  ;;  %v8764_v14 = vsel %vm6631_vm5, %v4147_v49, %v4151_v2  ;;  %v8767_v33 = vrot.slane %v5057_v16, %v10192_v60  ;;  %v8770_v34 = vrot.slane %v5060_v62, %v10192_v60 }
 0x44d   : > { %v8774_v61 = vsel %vm6631_vm5, %v4127_v3, %v4131_v18  ;;  %v8777_v41 = vrot.slane %v4201_v56, %v10192_v60  ;;  %v5077_v8 = vcombine.low %v8760_v44, %v8748_v52  ;;  %v8789_v19 = vrot.slane %v5051_v59, %v10192_v60 }
 0x44e   : > { %5581 = vrot.lane.b32.xlu1 %v8648_v13, %s6507_s24  ;;  %5309 = vrot.lane.b32.xlu0 %v8662_v58, %s6508_s25  ;;  %v4216_v20 = vpack.i.b16 %v4215_v48, %v4214_v25  ;;  %v8793_v47 = vrot.slane %v8639_v30, %v10192_v60  ;;  %v4209_v16 = vshrl.u32 %v8764_v14, 16  ;;  %v8800_v62 = vrot.slane %v4195_v51, %v10192_v60 }
 0x44f   : > { %v5078_v56 = vcombine.high %v8760_v44, %v8748_v52  ;;  %v5146_v59 = vcombine.high %v8789_v19, %v8767_v33  ;;  %v5145_v6 = vcombine.low %v8789_v19, %v8767_v33  ;;  %v5112_v51 = vcombine.high %v8727_v5, %v8713_v21 }
 0x450   : > { %v5179_v30 = vcombine.low %v8793_v47, %v8770_v34  ;;  %v5180_v23 = vcombine.high %v8793_v47, %v8770_v34  ;;  %v4234_v36 = vcombine.high %v8800_v62, %v8777_v41  ;;  %v8822_v49 = vrot.slane %v4204_v42, %v10192_v60 }
 0x451   : > { %v8825_v3 = vrot.slane %v4216_v20, %v10192_v60  ;;  %v8829_v2 = vrot.slane %v8651_v12, %v10192_v60  ;;  %vm10249_vm2 = vcmask 1045504  }
 0x452   : > { %5575 = vrot.lane.b32.xlu0 %v8588_v35, %s6507_s24  ;;  %5585 = vrot.lane.b32.xlu1 %v8662_v58, %s6507_s24  ;;  %v4208_v58 = vshrl.u32 %v8774_v61, 16  ;;  %vm10259_vm5 = vmmov %vm10249_vm2 }
 0x453   : > { %v4267_v42 = vcombine.low %v8829_v2, %v8822_v49  ;;  %v4268_v48 = vcombine.high %v8829_v2, %v8822_v49 }
 0x454   : > { %v4210_v24 = vpack.i.b16 %v4209_v16, %v4208_v58  ;;  %v8917_v16 = vrot.slane %v3401_v53, %v10193_v43  ;;  %v10208_v58 = vshrl.u32 %v8570_v39, 16  ;;  %v3416_v53 = vrot.slane %v3402_v17, %v10193_v43 }
 0x456   : > { %5579 = vrot.lane.b32.xlu0 %v8618_v63, %s6507_s24  ;;  %5297 = vrot.lane.b32.xlu1 %v8581_v55, %s6508_s25  ;;  %v8836_v25 = vrot.slane %v4210_v24, %v10192_v60  ;;  %v4233_v55 = vcombine.low %v8800_v62, %v8777_v41  ;;  %v6402_v17 = vcombine.high %v3416_v53, %v3416_v53 }
 0x458   : > { %v4335_v12 = vcombine.low %v8836_v25, %v8825_v3  ;;  %v4336_v18 = vcombine.high %v8836_v25, %v8825_v3 }
 0x45a   : > { %5583 = vrot.lane.b32.xlu0 %v8656_v1, %s6507_s24  ;;  %5305 = vrot.lane.b32.xlu1 %v8648_v13, %s6508_s25  ;;  %v4343_v49 = vrot.slane %v4335_v12, %v10193_v43  ;;  %v9118_v2 = vrot.slane %v4336_v18, %v10193_v43 }
 0x45e   : > { %5587 = vrot.lane.b32.xlu0 %v8675_v7, %s6507_s24  ;;  %5299 = vrot.lane.b32.xlu1 %v8588_v35, %s6508_s25  ;;  %v8872_v35 = vrot.slane %v3333_v27, %v10193_v43 }
 0x460   : > { %10202 = vst [vmem:[#allocation48_spill] sm:$0xff] %v8872_v35 }
 0x462   : > { %5303 = vrot.lane.b32.xlu0 %v8618_v63, %s6508_s25  ;;  %5307 = vrot.lane.b32.xlu1 %v8656_v1, %s6508_s25  ;;  %v6396_v63 = vcombine.high %v8872_v35, %v8872_v35 }
 0x466   : > { %5311 = vrot.lane.b32.xlu0 %v8675_v7, %s6508_s25  ;;  %4729 = vrot.lane.b32.xlu1 %v8610_v26, %s6507_s24  ;;  %v10205_v7 = vshrl.u32 %v8517_v15, 16  ;;  %v10206_v15 = vshrl.u32 %v8601_v37, 16 }
 0x46a   : > { %4733 = vrot.lane.b32.xlu0 %v8625_v45, %s6507_s24  ;;  %4737 = vrot.lane.b32.xlu1 %v8679_v11, %s6507_s24 }
 0x46e   : > { %4453 = vrot.lane.b32.xlu1 %v8610_v26, %s6508_s25  ;;  %4741 = vrot.lane.b32.xlu0 %v8690_v38, %s6507_s24  ;;  %v10203_v26 = vcombine.high %v8529_v50, %v8532_v0 }
 0x470   : > { %v3348_v13 = vrot.slane %v10203_v26, %v10193_v43  ;;  %v6189_v26 = vcombine.low %v3416_v53, %v3416_v53 }
 0x472   : > { %4461 = vrot.lane.b32.xlu1 %v8679_v11, %s6508_s25  ;;  %4457 = vrot.lane.b32.xlu0 %v8625_v45, %s6508_s25  ;;  %v6398_v27 = vcombine.high %v3348_v13, %v3348_v13  ;;  %v6182_v1 = vcombine.low %v3348_v13, %v3348_v13  ;;  %v10204_v45 = vshrl.u32 %v8509_v31, 16  ;;  %v3358_v31 = vrot.slane %v8503_v46, %v10192_v60 }
 0x473   : > { %v10207_v46 = vshrl.u32 %v8549_v28, 16 }
 0x474   : > { %v3304_v11 = vpack.i.b16 %v10205_v7, %v10204_v45 }
 0x475   : > { %v3310_v24 = vpack.i.b16 %v10208_v58, %v10207_v46  ;;  %v8966_v58 = vrot.slane %v5077_v8, %v10193_v43 }
 0x476   : > { %3461 = vrot.lane.b32.xlu1 %v6396_v63, %s6512_s27  ;;  %4465 = vrot.lane.b32.xlu0 %v8690_v38, %s6508_s25  ;;  %v3366_v50 = vrot.slane %v3304_v11, %v10192_v60  ;;  %v3316_v38 = vpack.i.b16 %v3315_v54, %v10206_v15  ;;  %v6400_v54 = vcombine.high %v8917_v16, %v8917_v16 }
 0x477   : > { %v3426_v39 = vrot.slane %v3310_v24, %v10192_v60  ;;  %10210 = vst [vmem:[#allocation21_spill] sm:$0xff] %v8966_v58 }
 0x478   : > { %v3367_v0 = vcombine.low %v3358_v31, %v3366_v50  ;;  %v3368_v37 = vcombine.high %v3358_v31, %v3366_v50  ;;  %v3434_v28 = vrot.slane %v3316_v38, %v10192_v60 }
 0x47a   : > { %3481 = vrot.lane.b32.xlu1 %v6398_v27, %s6515_s30  ;;  %3471 = vrot.lane.b32.xlu0 %v6182_v1, %s6514_s29  ;;  %v3375_v20 = vrot.slane %v3367_v0, %v10193_v43  ;;  %v8938_v13 = vrot.slane %v3368_v37, %v10193_v43  ;;  %v3435_v27 = vcombine.low %v3426_v39, %v3434_v28 }
 0x47b   : > { %v3436_v45 = vcombine.high %v3426_v39, %v3434_v28  ;;  %v5160_v28 = vrot.slane %v5146_v59, %v10193_v43  ;;  %v9002_v59 = vrot.slane %v5145_v6, %v10193_v43  ;;  %v5194_v6 = vrot.slane %v5180_v23, %v10193_v43 }
 0x47c   : > { %v6179_v22 = vcombine.low %v3375_v20, %v3375_v20  ;;  %v6397_v63 = vcombine.high %v3375_v20, %v3375_v20  ;;  %10209 = vst [vmem:[#allocation35_spill] sm:$0xff] %v8938_v13  ;;  %v6183_v57 = vcombine.low %v8938_v13, %v8938_v13  ;;  %v3443_v1 = vrot.slane %v3435_v27, %v10193_v43 }
 0x47d   : > { %v3450_v0 = vrot.slane %v3436_v45, %v10193_v43  ;;  %v5119_v20 = vrot.slane %v5111_v29, %v10193_v43  ;;  %v5092_v29 = vrot.slane %v5078_v56, %v10193_v43  ;;  %v6450_v56 = vcombine.high %v5160_v28, %v5160_v28  ;;  %10211 = vst [vmem:[#allocation4_spill] sm:$0xff] %v9002_v59 }
 0x47e   : > { %4731 = vrot.lane.b32.xlu1 %v8774_v61, %s6507_s24  ;;  %4735 = vrot.lane.b32.xlu0 %v8764_v14, %s6507_s24  ;;  %v6401_v50 = vcombine.high %v3443_v1, %v3443_v1  ;;  %v6186_v31 = vcombine.low %v3443_v1, %v3443_v1  ;;  %v6448_v1 = vcombine.high %v9002_v59, %v9002_v59 }
 0x47f   : > { %v6403_v38 = vcombine.high %v3450_v0, %v3450_v0  ;;  %v6190_v46 = vcombine.low %v3450_v0, %v3450_v0  ;;  %v6267_v37 = vcombine.low %v5119_v20, %v5119_v20  ;;  %v6445_v53 = vcombine.high %v5119_v20, %v5119_v20 }
 0x480   : > { %v6270_v39 = vcombine.low %v5092_v29, %v5092_v29  ;;  %v4213_v45 = vpack.i.b16 %v8743_v32, %v8739_v4  ;;  %v4207_v0 = vpack.i.b16 %v8764_v14, %v8774_v61  ;;  %v6278_v47 = vcombine.low %v5194_v6, %v5194_v6 }
 0x481   : > { %v9054_v20 = vrot.slane %v4233_v55, %v10193_v43 }
 0x482   : > { %4739 = vrot.lane.b32.xlu1 %v8739_v4, %s6507_s24  ;;  %4743 = vrot.lane.b32.xlu0 %v8743_v32, %s6507_s24  ;;  %v4292_v21 = vrot.slane %v4207_v0, %v10192_v60 }
 0x483   : > { %v6420_v41 = vcombine.high %v9054_v20, %v9054_v20 }
 0x486   : > { %4455 = vrot.lane.b32.xlu1 %v8774_v61, %s6508_s25  ;;  %4459 = vrot.lane.b32.xlu0 %v8764_v14, %s6508_s25  ;;  %v6451_v14 = vcombine.high %v5194_v6, %v5194_v6  ;;  %v9048_v61 = vrot.slane %v4234_v36, %v10193_v43 }
 0x488   : > { %10212 = vst [vmem:[#allocation30_spill] sm:$0xff] %v9048_v61  ;;  %v6224_v36 = vcombine.low %v9048_v61, %v9048_v61 }
 0x48a   : > { %4463 = vrot.lane.b32.xlu1 %v8739_v4, %s6508_s25  ;;  %4467 = vrot.lane.b32.xlu0 %v8743_v32, %s6508_s25  ;;  %v4300_v4 = vrot.slane %v4213_v45, %v10192_v60 }
 0x48c   : > { %v4302_v55 = vcombine.high %v4292_v21, %v4300_v4 }
 0x48d   : > { %v8942_v40 = vpop.permute.xlu1 %3561 }
 0x48e   : > { %3456 = vrot.lane.b32.xlu0 %v6179_v22, %s6511_s26  ;;  %3496 = vrot.lane.b32.xlu1 %v6400_v54, %s6512_s27  ;;  %v6444_v22 = vcombine.high %v8966_v58, %v8966_v58 }
 0x491   : > { %v8949_v7 = vpop.permute.xlu0 %3565 }
 0x492   : > { %3466 = vrot.lane.b32.xlu0 %v6397_v63, %s6513_s28  ;;  %3506 = vrot.lane.b32.xlu1 %v6189_v26, %s6514_s29  ;;  %v5187_v63 = vrot.slane %v5179_v30, %v10193_v43  ;;  %v6446_v26 = vcombine.high %v5092_v29, %v5092_v29  ;;  %v4275_v29 = vrot.slane %v4267_v42, %v10193_v43 }
 0x494   : > { %v6449_v19 = vcombine.high %v5187_v63, %v5187_v63 }
 0x495   : > { %v8951_v11 = vpop.permute.xlu1 %3569 }
 0x496   : > { %3476 = vrot.lane.b32.xlu0 %v6183_v57, %s6516_s6  ;;  %3516 = vrot.lane.b32.xlu1 %v6402_v17, %s6515_s30  ;;  %v6274_v17 = vcombine.low %v5187_v63, %v5187_v63  ;;  %v4316_v63 = vrot.slane %v4302_v55, %v10193_v43 }
 0x499   : > { %v8956_v15 = vpop.permute.xlu0 %3573  ;;  %v8968_v24 = vpop.permute.xlu1 %3837 }
 0x49a   : > { %3501 = vrot.lane.b32.xlu0 %v6401_v50, %s6513_s28  ;;  %3491 = vrot.lane.b32.xlu1 %v6186_v31, %s6511_s26  ;;  %v6277_v50 = vcombine.low %v5160_v28, %v5160_v28  ;;  %v5126_v31 = vrot.slane %v5112_v51, %v10193_v43 }
 0x49c   : > { %v6271_v32 = vcombine.low %v5126_v31, %v5126_v31  ;;  %v6447_v51 = vcombine.high %v5126_v31, %v5126_v31  ;;  %v9099_v31 = vrot.slane %v4268_v48, %v10193_v43 }
 0x49d   : > { %v8978_v54 = vpop.permute.xlu0 %3841  ;;  %v8982_v8 = vpop.permute.xlu1 %3845 }
 0x49e   : > { %3521 = vrot.lane.b32.xlu0 %v6403_v38, %s6517_s7  ;;  %3511 = vrot.lane.b32.xlu1 %v6190_v46, %s6516_s6  ;;  %v4301_v46 = vcombine.low %v4292_v21, %v4300_v4  ;;  %10213 = vst [vmem:[#allocation7_spill] sm:$0xff] %v9099_v31  ;;  %v6426_v21 = vcombine.high %v4316_v63, %v4316_v63 }
 0x4a0   : > { %v9071_v62 = vrot.slane %v4301_v46, %v10193_v43  ;;  %v6225_v46 = vcombine.low %v9099_v31, %v9099_v31 }
 0x4a1   : > { %v8990_v52 = vpop.permute.xlu0 %3849 }
 0x4a2   : > { %5200 = vrot.lane.b32.xlu0 %v6267_v37, %s6511_s26  ;;  %5205 = vrot.lane.b32.xlu1 %v6444_v22, %s6512_s27  ;;  %v6424_v42 = vcombine.high %v9071_v62, %v9071_v62  ;;  %v3861_v45 = vpack.i.b16 %v8990_v52, %v8982_v8 }
 0x4a4   : > { %v8992_v44 = vpop.permute.xlu1 %3563 }
 0x4a5   : > { %v3592_v9 = vshrl.u32 %v8992_v44, 16 }
 0x4a6   : > { %5210 = vrot.lane.b32.xlu0 %v6445_v53, %s6513_s28  ;;  %5215 = vrot.lane.b32.xlu1 %v6270_v39, %s6514_s29  ;;  %v6221_v39 = vcombine.low %v4275_v29, %v4275_v29 }
 0x4a8   : > { %v9006_v27 = vpop.permute.xlu0 %3567 }
 0x4a9   : > { %v3591_v12 = vpack.i.b16 %v9006_v27, %v8992_v44 }
 0x4aa   : > { %5260 = vrot.lane.b32.xlu0 %v6450_v56, %s6515_s30  ;;  %5225 = vrot.lane.b32.xlu1 %v6446_v26, %s6515_s30  ;;  %v3585_v56 = vpack.i.b16 %v8956_v15, %v8951_v11  ;;  %v3579_v26 = vpack.i.b16 %v8949_v7, %v8942_v40 }
 0x4ac   : > { %v9008_v57 = vpop.permute.xlu1 %3571  ;;  %v3616_v6 = vrot.slane %v3585_v56, %v10192_v60  ;;  %v3608_v0 = vrot.slane %v3579_v26, %v10192_v60 }
 0x4ae   : > { %5235 = vrot.lane.b32.xlu0 %v6274_v17, %s6511_s26  ;;  %5240 = vrot.lane.b32.xlu1 %v6448_v1, %s6512_s27  ;;  %v3618_v48 = vcombine.high %v3608_v0, %v3616_v6  ;;  %v3617_v3 = vcombine.low %v3608_v0, %v3616_v6  ;;  %v3587_v6 = vshrl.u32 %v8956_v15, 16  ;;  %v3581_v15 = vshrl.u32 %v8949_v7, 16 }
 0x4b0   : > { %v9014_v30 = vpop.permute.xlu0 %3575  ;;  %v9016_v33 = vpop.permute.xlu1 %3839 }
 0x4b2   : > { %5245 = vrot.lane.b32.xlu0 %v6449_v19, %s6513_s28  ;;  %5250 = vrot.lane.b32.xlu1 %v6277_v50, %s6514_s29  ;;  %v6421_v19 = vcombine.high %v4275_v29, %v4275_v29  ;;  %v6231_v50 = vcombine.low %v4316_v63, %v4316_v63  ;;  %v6228_v29 = vcombine.low %v4343_v49, %v4343_v49 }
 0x4b3   : > { %v3676_v63 = vrot.slane %v3591_v12, %v10192_v60  ;;  %v3862_v12 = vshrl.u32 %v8982_v8, 16 }
 0x4b4   : > { %v9032_v38 = vpop.permute.xlu0 %3843  ;;  %v9034_v34 = vpop.permute.xlu1 %3847 }
 0x4b5   : > { %v3867_v26 = vpack.i.b16 %v9032_v38, %v9016_v33 }
 0x4b6   : > { %5255 = vrot.lane.b32.xlu0 %v6278_v47, %s6516_s6  ;;  %5220 = vrot.lane.b32.xlu1 %v6271_v32, %s6516_s6  ;;  %v3855_v47 = vpack.i.b16 %v8978_v54, %v8968_v24 }
 0x4b8   : > { %v9040_v5 = vpop.permute.xlu0 %3851  ;;  %v9042_v23 = vpop.permute.xlu1 %5573 }
 0x4b9   : > { %v3873_v56 = vpack.i.b16 %v9040_v5, %v9034_v34 }
 0x4ba   : > { %5265 = vrot.lane.b32.xlu0 %v6451_v14, %s6517_s7  ;;  %5230 = vrot.lane.b32.xlu1 %v6447_v51, %s6517_s7  ;;  %v3892_v14 = vrot.slane %v3861_v45, %v10192_v60  ;;  %v3597_v51 = vpack.i.b16 %v9014_v30, %v9008_v57  ;;  %v3863_v45 = vshrl.u32 %v8990_v52, 16  ;;  %v3586_v52 = vshrl.u32 %v8951_v11, 16 }
 0x4bc   : > { %v9058_v37 = vpop.permute.xlu0 %5301  ;;  %v9060_v22 = vpop.permute.xlu1 %5577 }
 0x4be   : > { %4371 = vrot.lane.b32.xlu0 %v6224_v36, %s6514_s29  ;;  %4361 = vrot.lane.b32.xlu1 %v6420_v41, %s6512_s27  ;;  %v3884_v36 = vrot.slane %v3855_v47, %v10192_v60  ;;  %v6232_v41 = vcombine.low %v9118_v2, %v9118_v2 }
 0x4c0   : > { %v9075_v53 = vpop.permute.xlu0 %5309  ;;  %v9077_v28 = vpop.permute.xlu1 %5581  ;;  %v3894_v55 = vcombine.high %v3884_v36, %v3892_v14 }
 0x4c1   : > { %v5598_v59 = vshrl.u32 %v9077_v28, 16 }
 0x4c2   : > { %4356 = vrot.lane.b32.xlu0 %v6221_v39, %s6511_s26  ;;  %4396 = vrot.lane.b32.xlu1 %v6424_v42, %s6512_s27  ;;  %v3684_v39 = vrot.slane %v3597_v51, %v10192_v60  ;;  %v9140_v42 = vrot.slane %v3618_v48, %v10193_v43  ;;  %v9157_v51 = vrot.slane %v3873_v56, %v10192_v60 }
 0x4c4   : > { %v9088_v17 = vpop.permute.xlu0 %5575  ;;  %v9090_v1 = vpop.permute.xlu1 %5585  ;;  %v3685_v48 = vcombine.low %v3676_v63, %v3684_v39 }
 0x4c6   : > { %4366 = vrot.lane.b32.xlu0 %v6421_v19, %s6513_s28  ;;  %4406 = vrot.lane.b32.xlu1 %v6231_v50, %s6514_s29  ;;  %v6425_v19 = vcombine.high %v4343_v49, %v4343_v49  ;;  %v3893_v50 = vcombine.low %v3884_v36, %v3892_v14  ;;  %v3908_v49 = vrot.slane %v3894_v55, %v10193_v43  ;;  %v3580_v14 = vshrl.u32 %v8942_v40, 16 }
 0x4c7   : > { %v3857_v36 = vshrl.u32 %v8978_v54, 16  ;;  %v3864_v54 = vpack.i.b16 %v3863_v45, %v3862_v12 }
 0x4c8   : > { %v9106_v4 = vpop.permute.xlu0 %5579  ;;  %v9108_v32 = vpop.permute.xlu1 %5297  ;;  %v9180_v40 = vrot.slane %v3893_v50, %v10193_v43  ;;  %v6414_v56 = vcombine.high %v3908_v49, %v3908_v49 }
 0x4ca   : > { %4416 = vrot.lane.b32.xlu0 %v6426_v21, %s6515_s30  ;;  %4376 = vrot.lane.b32.xlu1 %v6225_v46, %s6516_s6  ;;  %v9154_v21 = vrot.slane %v3617_v3, %v10193_v43  ;;  %v6196_v46 = vcombine.low %v9140_v42, %v9140_v42  ;;  %v9169_v3 = vrot.slane %v3867_v26, %v10192_v60 }
 0x4cb   : > { %v9185_v26 = vrot.slane %v3685_v48, %v10193_v43  ;;  %v6412_v45 = vcombine.high %v9180_v40, %v9180_v40  ;;  %v3686_v48 = vcombine.high %v3676_v63, %v3684_v39 }
 0x4cc   : > { %v9130_v25 = vpop.permute.xlu0 %5583  ;;  %v9132_v18 = vpop.permute.xlu1 %5305  ;;  %v6404_v11 = vcombine.high %v9154_v21, %v9154_v21  ;;  %v3961_v8 = vcombine.low %v9169_v3, %v9157_v51  ;;  %v3962_v44 = vcombine.high %v9169_v3, %v9157_v51 }
 0x4cd   : > { %v5322_v31 = vshrl.u32 %v9132_v18, 16 }
 0x4ce   : > { %4391 = vrot.lane.b32.xlu0 %v6228_v29, %s6511_s26  ;;  %4411 = vrot.lane.b32.xlu1 %v6232_v41, %s6516_s6  ;;  %v3588_v29 = vpack.i.b16 %v3587_v6, %v3586_v52  ;;  %v3856_v41 = vshrl.u32 %v8968_v24, 16  ;;  %v9199_v52 = vrot.slane %v3864_v54, %v10192_v60  ;;  %v3599_v54 = vshrl.u32 %v9014_v30, 16 }
 0x4cf   : > { %v6406_v30 = vcombine.high %v9140_v42, %v9140_v42 }
 0x4d0   : > { %v9149_v0 = vpop.permute.xlu0 %5587  ;;  %v9151_v47 = vpop.permute.xlu1 %5299  ;;  %v3858_v24 = vpack.i.b16 %v3857_v36, %v3856_v41  ;;  %v9190_v6 = vrot.slane %v3588_v29, %v10192_v60  ;;  %v6210_v41 = vcombine.low %v3908_v49, %v3908_v49 }
 0x4d2   : > { %4401 = vrot.lane.b32.xlu0 %v6425_v19, %s6513_s28  ;;  %3755 = vrot.lane.b32.xlu1 %v6196_v46, %s6514_s29  ;;  %v3582_v19 = vpack.i.b16 %v3581_v15, %v3580_v14  ;;  %v6408_v15 = vcombine.high %v9185_v26, %v9185_v26  ;;  %v9204_v14 = vrot.slane %v3961_v8, %v10193_v43 }
 0x4d3   : > { %v9211_v12 = vrot.slane %v3858_v24, %v10192_v60  ;;  %v3598_v24 = vshrl.u32 %v9008_v57, 16 }
 0x4d4   : > { %v9173_v55 = vpop.permute.xlu0 %5303  ;;  %v9175_v7 = vpop.permute.xlu1 %5307  ;;  %v9207_v36 = vrot.slane %v3582_v19, %v10192_v60  ;;  %v6416_v8 = vcombine.high %v9204_v14, %v9204_v14  ;;  %v3593_v19 = vshrl.u32 %v9006_v27, 16 }
 0x4d6   : > { %3745 = vrot.lane.b32.xlu0 %v6404_v11, %s6512_s27  ;;  %4041 = vrot.lane.b32.xlu1 %v6414_v56, %s6515_s30  ;;  %v3651_v29 = vcombine.low %v9207_v36, %v9190_v6  ;;  %v3927_v11 = vcombine.low %v9211_v12, %v9199_v52  ;;  %v3700_v56 = vrot.slane %v3686_v48, %v10193_v43 }
 0x4d7   : > { %v3600_v48 = vpack.i.b16 %v3599_v54, %v3598_v24  ;;  %v3594_v27 = vpack.i.b16 %v3593_v19, %v3592_v9  ;;  %v3868_v19 = vshrl.u32 %v9016_v33, 16 }
 0x4d8   : > { %v9192_v46 = vpop.permute.xlu0 %5311  ;;  %v9194_v50 = vpop.permute.xlu1 %4729  ;;  %v6203_v10 = vcombine.low %v3700_v56, %v3700_v56 }
 0x4d9   : > { %v9246_v42 = vrot.slane %v3600_v48, %v10192_v60  ;;  %v3710_v9 = vrot.slane %v3594_v27, %v10192_v60  ;;  %v6410_v48 = vcombine.high %v3700_v56, %v3700_v56 }
 0x4da   : > { %4021 = vrot.lane.b32.xlu0 %v6412_v45, %s6512_s27  ;;  %3780 = vrot.lane.b32.xlu1 %v6408_v15, %s6512_s27  ;;  %v3659_v15 = vrot.slane %v3651_v29, %v10193_v43  ;;  %v3875_v29 = vshrl.u32 %v9040_v5, 16 }
 0x4db   : > { %v3719_v51 = vcombine.low %v3710_v9, %v9246_v42 }
 0x4dc   : > { %v9216_v39 = vpop.permute.xlu0 %4733  ;;  %v9218_v63 = vpop.permute.xlu1 %4737  ;;  %v6193_v35 = vcombine.low %v3659_v15, %v3659_v15 }
 0x4dd   : > { %v3727_v56 = vrot.slane %v3719_v51, %v10193_v43 }
 0x4de   : > { %4031 = vrot.lane.b32.xlu0 %v6210_v41, %s6514_s29  ;;  %4056 = vrot.lane.b32.xlu1 %v6416_v8, %s6512_s27  ;;  %v3935_v41 = vrot.slane %v3927_v11, %v10193_v43  ;;  %v3874_v11 = vshrl.u32 %v9034_v34, 16  ;;  %v3652_v34 = vcombine.high %v9207_v36, %v9190_v6 }
 0x4e0   : > { %v9230_v45 = vpop.permute.xlu0 %4741  ;;  %v9232_v49 = vpop.permute.xlu1 %4453  ;;  %v6413_v54 = vcombine.high %v3935_v41, %v3935_v41  ;;  %v6207_v5 = vcombine.low %v3935_v41, %v3935_v41  ;;  %v3876_v3 = vpack.i.b16 %v3875_v29, %v3874_v11 }
 0x4e2   : > { %3765 = vrot.lane.b32.xlu0 %v6406_v30, %s6515_s30  ;;  %3790 = vrot.lane.b32.xlu1 %v6203_v10, %s6514_s29  ;;  %v3869_v10 = vshrl.u32 %v9032_v38, 16  ;;  %v3994_v41 = vrot.slane %v3876_v3, %v10192_v60  ;;  %v5597_v3 = vpack.i.b16 %v9090_v1, %v9077_v28 }
 0x4e4   : > { %v9241_v57 = vpop.permute.xlu0 %4457  ;;  %v9243_v8 = vpop.permute.xlu1 %4461  ;;  %v3870_v38 = vpack.i.b16 %v3869_v10, %v3868_v19  ;;  %v6200_v19 = vcombine.low %v3727_v56, %v3727_v56 }
 0x4e6   : > { %3740 = vrot.lane.b32.xlu0 %v6193_v35, %s6511_s26  ;;  %4026 = vrot.lane.b32.xlu1 %v6413_v54, %s6513_s28  ;;  %v3976_v35 = vrot.slane %v3962_v44, %v10193_v43  ;;  %v6405_v54 = vcombine.high %v3659_v15, %v3659_v15  ;;  %v3986_v29 = vrot.slane %v3870_v38, %v10192_v60 }
 0x4e7   : > { %v3928_v44 = vcombine.high %v9211_v12, %v9199_v52  ;;  %v3666_v15 = vrot.slane %v3652_v34, %v10193_v43  ;;  %v5591_v38 = vpack.i.b16 %v9060_v22, %v9042_v23  ;;  %v3720_v34 = vcombine.high %v3710_v9, %v9246_v42 }
 0x4e8   : > { %v9257_v24 = vpop.permute.xlu0 %4465  ;;  %v9259_v30 = vpop.permute.xlu1 %3461  ;;  %v6217_v10 = vcombine.low %v3976_v35, %v3976_v35  ;;  %v3995_v11 = vcombine.low %v3986_v29, %v3994_v41  ;;  %v3996_v12 = vcombine.high %v3986_v29, %v3994_v41  ;;  %v5321_v29 = vpack.i.b16 %v9075_v53, %v9132_v18 }
 0x4e9   : > { %10214 = vst [vmem:[#allocation24_spill] sm:$0xff] %v9259_v30  ;;  %v6418_v30 = vcombine.high %v3976_v35, %v3976_v35  ;;  %v9290_v52 = vrot.slane %v3928_v44, %v10193_v43  ;;  %v5315_v42 = vpack.i.b16 %v9058_v37, %v9108_v32 }
 0x4ea   : > { %4016 = vrot.lane.b32.xlu0 %v6207_v5, %s6511_s26  ;;  %3800 = vrot.lane.b32.xlu1 %v6410_v48, %s6515_s30  ;;  %v6409_v48 = vcombine.high %v3727_v56, %v3727_v56  ;;  %v4003_v35 = vrot.slane %v3995_v11, %v10193_v43  ;;  %v5628_v56 = vrot.slane %v5597_v3, %v10192_v60 }
 0x4eb   : > { %v6211_v41 = vcombine.low %v9290_v52, %v9290_v52  ;;  %v4010_v11 = vrot.slane %v3996_v12, %v10193_v43  ;;  %v6407_v3 = vcombine.high %v3666_v15, %v3666_v15  ;;  %v5352_v12 = vrot.slane %v5321_v29, %v10192_v60 }
 0x4ec   : > { %v9267_v33 = vpop.permute.xlu0 %3471  ;;  %v9269_v27 = vpop.permute.xlu1 %3481 }
 0x4ed   : > { %10215 = vst [vmem:[#allocation41_spill] sm:$0xff] %v9267_v33  ;;  %10216 = vst [vmem:[#allocation33_spill] sm:$0xff] %v9269_v27  ;;  %v5599_v27 = vshrl.u32 %v9090_v1, 16  ;;  %v6214_v1 = vcombine.low %v4003_v35, %v4003_v35 }
 0x4ee   : > { %3750 = vrot.lane.b32.xlu0 %v6405_v54, %s6513_s28  ;;  %4076 = vrot.lane.b32.xlu1 %v6418_v30, %s6515_s30  ;;  %v6197_v30 = vcombine.low %v3666_v15, %v3666_v15  ;;  %v5592_v15 = vshrl.u32 %v9042_v23, 16  ;;  %v5316_v23 = vshrl.u32 %v9108_v32, 16 }
 0x4ef   : > { %v5600_v29 = vpack.i.b16 %v5599_v27, %v5598_v59 }
 0x4f0   : > { %v9278_v6 = vpop.permute.xlu0 %4735  ;;  %v9280_v36 = vpop.permute.xlu1 %4731 }
 0x4f2   : > { %4066 = vrot.lane.b32.xlu0 %v6217_v10, %s6514_s29  ;;  %3775 = vrot.lane.b32.xlu1 %v6200_v19, %s6511_s26  ;;  %v6417_v10 = vcombine.high %v4003_v35, %v4003_v35  ;;  %v5620_v19 = vrot.slane %v5591_v38, %v10192_v60  ;;  %v5593_v38 = vshrl.u32 %v9060_v22, 16 }
 0x4f4   : > { %v9285_v5 = vpop.permute.xlu0 %4743  ;;  %v9287_v51 = vpop.permute.xlu1 %4739  ;;  %v5629_v33 = vcombine.low %v5620_v19, %v5628_v56  ;;  %v5594_v28 = vpack.i.b16 %v5593_v38, %v5592_v15  ;;  %v5630_v35 = vcombine.high %v5620_v19, %v5628_v56  ;;  %v5609_v56 = vpack.i.b16 %v9149_v0, %v9130_v25 }
 0x4f6   : > { %3760 = vrot.lane.b32.xlu0 %v6197_v30, %s6516_s6  ;;  %3785 = vrot.lane.b32.xlu1 %v6409_v48, %s6513_s28  ;;  %v3734_v48 = vrot.slane %v3720_v34, %v10193_v43  ;;  %v9334_v22 = vrot.slane %v5629_v33, %v10193_v43  ;;  %v9346_v33 = vrot.slane %v5600_v29, %v10192_v60 }
 0x4f7   : > { %v5644_v29 = vrot.slane %v5630_v35, %v10193_v43 }
 0x4f8   : > { %v9300_v54 = vpop.permute.xlu0 %4459  ;;  %v9302_v44 = vpop.permute.xlu1 %4455  ;;  %v6411_v13 = vcombine.high %v3734_v48, %v3734_v48  ;;  %10218 = vst [vmem:[#allocation37_spill] sm:$0xff] %v9334_v22  ;;  %v6204_v27 = vcombine.low %v3734_v48, %v3734_v48 }
 0x4fa   : > { %4036 = vrot.lane.b32.xlu0 %v6211_v41, %s6516_s6  ;;  %4061 = vrot.lane.b32.xlu1 %v6417_v10, %s6513_s28  ;;  %v6218_v41 = vcombine.low %v4010_v11, %v4010_v11  ;;  %v5344_v10 = vrot.slane %v5315_v42, %v10192_v60  ;;  %v5323_v42 = vshrl.u32 %v9075_v53, 16  ;;  %v6460_v53 = vcombine.high %v9334_v22, %v9334_v22 }
 0x4fc   : > { %v9315_v9 = vpop.permute.xlu0 %4467  ;;  %v9317_v30 = vpop.permute.xlu1 %4463 }
 0x4fe   : > { %3770 = vrot.lane.b32.xlu0 %v6407_v3, %s6517_s7  ;;  %4071 = vrot.lane.b32.xlu1 %v6218_v41, %s6516_s6  ;;  %v5354_v3 = vcombine.high %v5344_v10, %v5352_v12  ;;  %v5317_v41 = vshrl.u32 %v9058_v37, 16 }
 0x500   : > { %v9328_v58 = vpop.permute.xlu0 %3456  ;;  %v9330_v34 = vpop.permute.xlu1 %3496  ;;  %v5368_v32 = vrot.slane %v5354_v3, %v10193_v43  ;;  %v5318_v37 = vpack.i.b16 %v5317_v41, %v5316_v23  ;;  %v5603_v3 = vpack.i.b16 %v9106_v4, %v9088_v17 }
 0x501   : > { %10217 = vst [vmem:[#allocation6_spill] sm:$0xff] %v9328_v58  ;;  %v5353_v58 = vcombine.low %v5344_v10, %v5352_v12 }
 0x502   : > { %4051 = vrot.lane.b32.xlu0 %v6214_v1, %s6511_s26  ;;  %3805 = vrot.lane.b32.xlu1 %v6411_v13, %s6517_s7  ;;  %v5324_v1 = vpack.i.b16 %v5323_v42, %v5322_v31  ;;  %v9353_v13 = vrot.slane %v5594_v28, %v10192_v60  ;;  %v6419_v31 = vcombine.high %v4010_v11, %v4010_v11 }
 0x503   : > { %v9363_v12 = vrot.slane %v5353_v58, %v10193_v43  ;;  %v6284_v15 = vcombine.low %v5368_v32, %v5368_v32  ;;  %v9375_v28 = vrot.slane %v5318_v37, %v10192_v60  ;;  %v5696_v58 = vrot.slane %v5609_v56, %v10192_v60 }
 0x504   : > { %v9341_v59 = vpop.permute.xlu0 %3466  ;;  %v9343_v18 = vpop.permute.xlu1 %3506  ;;  %v5663_v38 = vcombine.low %v9353_v13, %v9346_v33  ;;  %v9368_v10 = vrot.slane %v5324_v1, %v10192_v60  ;;  %v5333_v11 = vpack.i.b16 %v9192_v46, %v9175_v7  ;;  %v5327_v37 = vpack.i.b16 %v9173_v55, %v9151_v47 }
 0x505   : > { %10219 = vst [vmem:[#allocation34_spill] sm:$0xff] %v9341_v59  ;;  %10221 = vst [vmem:[#allocation47_spill] sm:$0xff] %v9363_v12  ;;  %v6452_v41 = vcombine.high %v9363_v12, %v9363_v12 }
 0x506   : > { %3795 = vrot.lane.b32.xlu0 %v6204_v27, %s6516_s6  ;;  %5757 = vrot.lane.b32.xlu1 %v6460_v53, %s6512_s27  ;;  %v5387_v35 = vcombine.low %v9375_v28, %v9368_v10  ;;  %v6462_v27 = vcombine.high %v5644_v29, %v5644_v29  ;;  %v5671_v1 = vrot.slane %v5663_v38, %v10193_v43 }
 0x507   : > { %v5688_v53 = vrot.slane %v5603_v3, %v10192_v60  ;;  %v5412_v3 = vrot.slane %v5327_v37, %v10192_v60 }
 0x508   : > { %v9358_v19 = vpop.permute.xlu0 %3476  ;;  %v9360_v48 = vpop.permute.xlu1 %3516  ;;  %v6295_v22 = vcombine.low %v5671_v1, %v5671_v1  ;;  %v5395_v38 = vrot.slane %v5387_v35, %v10193_v43  ;;  %v5611_v35 = vshrl.u32 %v9149_v0, 16  ;;  %v5604_v0 = vshrl.u32 %v9088_v17, 16 }
 0x509   : > { %10220 = vst [vmem:[#allocation22_spill] sm:$0xff] %v9358_v19  ;;  %v5697_v56 = vcombine.low %v5688_v53, %v5696_v58  ;;  %v6298_v19 = vcombine.low %v5644_v29, %v5644_v29 }
 0x50a   : > { %4081 = vrot.lane.b32.xlu0 %v6419_v31, %s6517_s7  ;;  %5491 = vrot.lane.b32.xlu1 %v6284_v15, %s6514_s29  ;;  %v5420_v31 = vrot.slane %v5333_v11, %v10192_v60  ;;  %v6281_v61 = vcombine.low %v5395_v38, %v5395_v38 }
 0x50b   : > { %v9407_v11 = vrot.slane %v5697_v56, %v10193_v43 }
 0x50c   : > { %v9381_v42 = vpop.permute.xlu0 %3501  ;;  %v9383_v23 = vpop.permute.xlu1 %3491 }
 0x50e   : > { %5481 = vrot.lane.b32.xlu0 %v6452_v41, %s6512_s27  ;;  %5777 = vrot.lane.b32.xlu1 %v6462_v27, %s6515_s30  ;;  %v5421_v41 = vcombine.low %v5412_v3, %v5420_v31  ;;  %v6454_v27 = vcombine.high %v5368_v32, %v5368_v32 }
 0x510   : > { %v9396_v15 = vpop.permute.xlu0 %3521  ;;  %v9398_v59 = vpop.permute.xlu1 %3511  ;;  %v9419_v32 = vrot.slane %v5421_v41, %v10193_v43 }
 0x511   : > { %10222 = vst [vmem:[#allocation5_spill] sm:$0xff] %v9396_v15  ;;  %v5698_v15 = vcombine.high %v5688_v53, %v5696_v58  ;;  %v6461_v58 = vcombine.high %v5671_v1, %v5671_v1 }
 0x512   : > { %5767 = vrot.lane.b32.xlu0 %v6298_v19, %s6514_s29  ;;  %5752 = vrot.lane.b32.xlu1 %v6295_v22, %s6511_s26  ;;  %v5422_v19 = vcombine.high %v5412_v3, %v5420_v31  ;;  %v6464_v22 = vcombine.high %v9407_v11, %v9407_v11  ;;  %v6456_v41 = vcombine.high %v9419_v32, %v9419_v32 }
 0x513   : > { %v5712_v53 = vrot.slane %v5698_v15, %v10193_v43  ;;  %v5664_v15 = vcombine.high %v9353_v13, %v9346_v33  ;;  %v5388_v33 = vcombine.high %v9375_v28, %v9368_v10 }
 0x514   : > { %v9404_v12 = vpop.permute.xlu0 %5200  ;;  %v9409_v29 = vpop.permute.xlu1 %5205  ;;  %v5436_v1 = vrot.slane %v5422_v19, %v10193_v43 }
 0x516   : > { %5501 = vrot.lane.b32.xlu0 %v6454_v27, %s6515_s30  ;;  %5476 = vrot.lane.b32.xlu1 %v6281_v61, %s6511_s26  ;;  %v5605_v27 = vshrl.u32 %v9106_v4, 16  ;;  %v5610_v61 = vshrl.u32 %v9130_v25, 16  ;;  %v6305_v25 = vcombine.low %v5712_v53, %v5712_v53 }
 0x518   : > { %v9414_v37 = vpop.permute.xlu0 %5210  ;;  %v9421_v56 = vpop.permute.xlu1 %5215  ;;  %v5612_v31 = vpack.i.b16 %v5611_v35, %v5610_v61  ;;  %v5335_v35 = vshrl.u32 %v9192_v46, 16  ;;  %v5678_v61 = vrot.slane %v5664_v15, %v10193_v43  ;;  %v5334_v46 = vshrl.u32 %v9175_v7, 16 }
 0x519   : > { %10223 = vst [vmem:[#allocation28_spill] sm:$0xff] %v9421_v56  ;;  %v5606_v56 = vpack.i.b16 %v5605_v27, %v5604_v0  ;;  %v6453_v27 = vcombine.high %v5395_v38, %v5395_v38 }
 0x51a   : > { %5792 = vrot.lane.b32.xlu0 %v6464_v22, %s6512_s27  ;;  %5762 = vrot.lane.b32.xlu1 %v6461_v58, %s6513_s28  ;;  %v9441_v17 = vrot.slane %v5612_v31, %v10192_v60  ;;  %v4753_v22 = vpack.i.b16 %v9230_v45, %v9218_v63  ;;  %v6291_v58 = vcombine.low %v5436_v1, %v5436_v1  ;;  %v5329_v31 = vshrl.u32 %v9173_v55, 16 }
 0x51b   : > { %v9454_v0 = vrot.slane %v5606_v56, %v10192_v60  ;;  %v5336_v28 = vpack.i.b16 %v5335_v35, %v5334_v46  ;;  %v6466_v55 = vcombine.high %v5712_v53, %v5712_v53  ;;  %v6299_v7 = vcombine.low %v5678_v61, %v5678_v61 }
 0x51c   : > { %v9429_v3 = vpop.permute.xlu0 %5260  ;;  %v9436_v4 = vpop.permute.xlu1 %5225  ;;  %v4784_v38 = vrot.slane %v4753_v22, %v10192_v60  ;;  %v4477_v46 = vpack.i.b16 %v9257_v24, %v9243_v8 }
 0x51d   : > { %10224 = vst [vmem:[#allocation44_spill] sm:$0xff] %v9429_v3  ;;  %10225 = vst [vmem:[#allocation26_spill] sm:$0xff] %v9436_v4  ;;  %v5731_v10 = vcombine.low %v9454_v0, %v9441_v17  ;;  %v5402_v3 = vrot.slane %v5388_v33, %v10193_v43 }
 0x51e   : > { %5516 = vrot.lane.b32.xlu0 %v6456_v41, %s6512_s27  ;;  %5802 = vrot.lane.b32.xlu1 %v6305_v25, %s6514_s29  ;;  %v4747_v41 = vpack.i.b16 %v9216_v39, %v9194_v50  ;;  %v5328_v25 = vshrl.u32 %v9151_v47, 16  ;;  %v9475_v47 = vrot.slane %v5336_v28, %v10192_v60 }
 0x51f   : > { %v5739_v53 = vrot.slane %v5731_v10, %v10193_v43  ;;  %v6455_v4 = vcombine.high %v5402_v3, %v5402_v3 }
 0x520   : > { %v9446_v19 = vpop.permute.xlu0 %5235  ;;  %v9450_v13 = vpop.permute.xlu1 %5240 }
 0x521   : > { %10226 = vst [vmem:[#allocation32_spill] sm:$0xff] %v9446_v19  ;;  %10227 = vst [vmem:[#allocation27_spill] sm:$0xff] %v9450_v13  ;;  %v5330_v13 = vpack.i.b16 %v5329_v31, %v5328_v25  ;;  %v6285_v31 = vcombine.low %v5402_v3, %v5402_v3  ;;  %v4471_v25 = vpack.i.b16 %v9241_v57, %v9232_v49 }
 0x522   : > { %5526 = vrot.lane.b32.xlu0 %v6291_v58, %s6514_s29  ;;  %5486 = vrot.lane.b32.xlu1 %v6453_v27, %s6513_s28  ;;  %v4776_v58 = vrot.slane %v4747_v41, %v10192_v60  ;;  %v6458_v27 = vcombine.high %v5436_v1, %v5436_v1  ;;  %v6302_v28 = vcombine.low %v5739_v53, %v5739_v53 }
 0x523   : > { %v9485_v41 = vrot.slane %v5330_v13, %v10192_v60 }
 0x524   : > { %v9466_v56 = vpop.permute.xlu0 %5245  ;;  %v9468_v15 = vpop.permute.xlu1 %5250  ;;  %v4785_v35 = vcombine.low %v4776_v58, %v4784_v38 }
 0x525   : > { %10228 = vst [vmem:[#allocation36_spill] sm:$0xff] %v9466_v56  ;;  %10229 = vst [vmem:[#allocation16_spill] sm:$0xff] %v9468_v15  ;;  %v5455_v1 = vcombine.low %v9485_v41, %v9475_v47 }
 0x526   : > { %5812 = vrot.lane.b32.xlu0 %v6466_v55, %s6515_s30  ;;  %5772 = vrot.lane.b32.xlu1 %v6299_v7, %s6516_s6  ;;  %v9496_v55 = vrot.slane %v4785_v35, %v10193_v43  ;;  %v4508_v7 = vrot.slane %v4477_v46, %v10192_v60 }
 0x528   : > { %v9477_v22 = vpop.permute.xlu0 %5255  ;;  %v9482_v33 = vpop.permute.xlu1 %5220  ;;  %v6436_v15 = vcombine.high %v9496_v55, %v9496_v55 }
 0x529   : > { %10230 = vst [vmem:[#allocation20_spill] sm:$0xff] %v9477_v22  ;;  %10231 = vst [vmem:[#allocation19_spill] sm:$0xff] %v9482_v33  ;;  %v6463_v22 = vcombine.high %v5678_v61, %v5678_v61  ;;  %v4786_v61 = vcombine.high %v4776_v58, %v4784_v38  ;;  %v4479_v58 = vshrl.u32 %v9257_v24, 16  ;;  %v5456_v24 = vcombine.high %v9485_v41, %v9475_v47 }
 0x52a   : > { %5536 = vrot.lane.b32.xlu0 %v6458_v27, %s6515_s30  ;;  %5496 = vrot.lane.b32.xlu1 %v6285_v31, %s6516_s6  ;;  %v4500_v27 = vrot.slane %v4471_v25, %v10192_v60  ;;  %v4754_v47 = vshrl.u32 %v9218_v63, 16 }
 0x52b   : > { %v4800_v38 = vrot.slane %v4786_v61, %v10193_v43  ;;  %v4472_v61 = vshrl.u32 %v9232_v49, 16  ;;  %v4748_v49 = vshrl.u32 %v9194_v50, 16  ;;  %v5470_v63 = vrot.slane %v5456_v24, %v10193_v43 }
 0x52c   : > { %v9493_v10 = vpop.permute.xlu0 %5265  ;;  %v9499_v13 = vpop.permute.xlu1 %5230  ;;  %v4510_v56 = vcombine.high %v4500_v27, %v4508_v7  ;;  %v4509_v46 = vcombine.low %v4500_v27, %v4508_v7  ;;  %v4759_v27 = vpack.i.b16 %v9278_v6, %v9280_v36  ;;  %v4489_v24 = vpack.i.b16 %v9315_v9, %v9317_v30 }
 0x52d   : > { %10232 = vst [vmem:[#allocation10_spill] sm:$0xff] %v9493_v10  ;;  %10233 = vst [vmem:[#allocation23_spill] sm:$0xff] %v9499_v13  ;;  %v5463_v10 = vrot.slane %v5455_v1, %v10193_v43  ;;  %v6465_v1 = vcombine.high %v5739_v53, %v5739_v53  ;;  %v4473_v53 = vshrl.u32 %v9241_v57, 16 }
 0x52e   : > { %5787 = vrot.lane.b32.xlu0 %v6302_v28, %s6511_s26  ;;  %5782 = vrot.lane.b32.xlu1 %v6463_v22, %s6517_s7  ;;  %v4524_v33 = vrot.slane %v4510_v56, %v10193_v43 }
 0x52f   : > { %v6288_v13 = vcombine.low %v5463_v10, %v5463_v10  ;;  %v6457_v19 = vcombine.high %v5463_v10, %v5463_v10  ;;  %v4474_v41 = vpack.i.b16 %v4473_v53, %v4472_v61 }
 0x530   : > { %v4372_v31 = vpop.permute.xlu0 %4371  ;;  %v4362_v35 = vpop.permute.xlu1 %4361  ;;  %v6238_v7 = vcombine.low %v4524_v33, %v4524_v33  ;;  %v6430_v53 = vcombine.high %v4524_v33, %v4524_v33 }
 0x532   : > { %4913 = vrot.lane.b32.xlu0 %v6436_v15, %s6512_s27  ;;  %5506 = vrot.lane.b32.xlu1 %v6455_v4, %s6517_s7  ;;  %v9516_v4 = vrot.slane %v4509_v46, %v10193_v43 }
 0x534   : > { %v4357_v28 = vpop.permute.xlu0 %4356  ;;  %v4397_v25 = vpop.permute.xlu1 %4396 }
 0x535   : > { %v4425_v22 = vsel %vm468_vm6, %v9054_v20, %v4357_v28  ;;  %v4765_v20 = vpack.i.b16 %v9285_v5, %v9287_v51 }
 0x536   : > { %5511 = vrot.lane.b32.xlu0 %v6288_v13, %s6511_s26  ;;  %5521 = vrot.lane.b32.xlu1 %v6457_v19, %s6513_s28  ;;  %v4427_v15 = vsel %vm472_vm7, %v4425_v22, %v4362_v35  ;;  %v5732_v19 = vcombine.high %v9454_v0, %v9441_v17  ;;  %v4478_v13 = vshrl.u32 %v9243_v8, 16  ;;  %v4755_v35 = vshrl.u32 %v9230_v45, 16 }
 0x537   : > { %v6428_v17 = vcombine.high %v9516_v4, %v9516_v4  ;;  %v9538_v57 = vrot.slane %v4765_v20, %v10192_v60  ;;  %v6438_v22 = vcombine.high %v4800_v38, %v4800_v38 }
 0x538   : > { %v4367_v3 = vpop.permute.xlu0 %4366  ;;  %v4407_v10 = vpop.permute.xlu1 %4406  ;;  %v4480_v0 = vpack.i.b16 %v4479_v58, %v4478_v13  ;;  %v6252_v58 = vcombine.low %v4800_v38, %v4800_v38 }
 0x539   : > { %v4429_v56 = vsel %vm475_vm9, %v4427_v15, %v4367_v3  ;;  %v4749_v3 = vshrl.u32 %v9216_v39, 16  ;;  %v9549_v15 = vrot.slane %v4759_v27, %v10192_v60  ;;  %v5746_v39 = vrot.slane %v5732_v19, %v10193_v43 }
 0x53a   : > { %5797 = vrot.lane.b32.xlu0 %v6465_v1, %s6513_s28  ;;  %4647 = vrot.lane.b32.xlu1 %v6238_v7, %s6514_s29  ;;  %v4431_v8 = vsel %vm478_vm8, %v4429_v56, %v4372_v31  ;;  %v4756_v31 = vpack.i.b16 %v4755_v35, %v4754_v47  ;;  %v9555_v20 = vrot.slane %v4480_v0, %v10192_v60 }
 0x53b   : > { %v4853_v56 = vcombine.low %v9549_v15, %v9538_v57  ;;  %v4750_v13 = vpack.i.b16 %v4749_v3, %v4748_v49  ;;  %v9564_v19 = vrot.slane %v4474_v41, %v10192_v60  ;;  %v6306_v61 = vcombine.low %v5746_v39, %v5746_v39 }
 0x53c   : > { %v4417_v46 = vpop.permute.xlu0 %4416  ;;  %v4377_v28 = vpop.permute.xlu1 %4376  ;;  %v4818_v27 = vrot.slane %v4756_v31, %v10192_v60  ;;  %v4576_v49 = vrot.slane %v4489_v24, %v10192_v60  ;;  %v6292_v31 = vcombine.low %v5470_v63, %v5470_v63 }
 0x53d   : > { %v9544_v45 = vsel %vm481_vm10, %v4431_v8, %v4377_v28  ;;  %v9576_v0 = vrot.slane %v4853_v56, %v10193_v43  ;;  %v4810_v8 = vrot.slane %v4750_v13, %v10192_v60  ;;  %v4483_v28 = vpack.i.b16 %v9300_v54, %v9302_v44 }
 0x53e   : > { %4637 = vrot.lane.b32.xlu0 %v6428_v17, %s6512_s27  ;;  %4933 = vrot.lane.b32.xlu1 %v6438_v22, %s6515_s30  ;;  %v6467_v13 = vcombine.high %v5746_v39, %v5746_v39  ;;  %v4854_v39 = vcombine.high %v9549_v15, %v9538_v57  ;;  %v4484_v57 = vshrl.u32 %v9302_v44, 16 }
 0x53f   : > { %v4819_v47 = vcombine.low %v4810_v8, %v4818_v27  ;;  %v6440_v56 = vcombine.high %v9576_v0, %v9576_v0 }
 0x540   : > { %v4392_v1 = vpop.permute.xlu0 %4391  ;;  %v4412_v7 = vpop.permute.xlu1 %4411 }
 0x541   : > { %v4440_v50 = vsel %vm468_vm6, %v9071_v62, %v4392_v1  ;;  %v4543_v62 = vcombine.low %v9564_v19, %v9555_v20 }
 0x542   : > { %4923 = vrot.lane.b32.xlu0 %v6252_v58, %s6514_s29  ;;  %v4442_v38 = vsel %vm472_vm7, %v4440_v50, %v4397_v25  ;;  %4657 = vrot.lane.b32.xlu1 %v6430_v53, %s6515_s30  ;;  %v6459_v25 = vcombine.high %v5470_v63, %v5470_v63  ;;  %v4568_v50 = vrot.slane %v4483_v28, %v10192_v60 }
 0x543   : > { %v4827_v63 = vrot.slane %v4819_v47, %v10193_v43 }
 0x544   : > { %v4402_v35 = vpop.permute.xlu0 %4401  ;;  %v9573_v17 = vpop.permute.xlu1 %3755  ;;  %v4578_v15 = vcombine.high %v4568_v50, %v4576_v49 }
 0x545   : > { %v4444_v33 = vsel %vm475_vm9, %v4442_v38, %v4402_v35  ;;  %v4766_v38 = vshrl.u32 %v9287_v51, 16  ;;  %v6249_v28 = vcombine.low %v4827_v63, %v4827_v63 }
 0x546   : > { %v4446_v22 = vsel %vm478_vm8, %v4444_v33, %v4407_v10  ;;  %5807 = vrot.lane.b32.xlu0 %v6306_v61, %s6516_s6  ;;  %5541 = vrot.lane.b32.xlu1 %v6459_v25, %s6517_s7  ;;  %v4551_v10 = vrot.slane %v4543_v62, %v10193_v43  ;;  %v4761_v61 = vshrl.u32 %v9278_v6, 16  ;;  %v4760_v62 = vshrl.u32 %v9280_v36, 16 }
 0x547   : > { %v4448_v3 = vsel %vm481_vm10, %v4446_v22, %v4412_v7  ;;  %v4577_v7 = vcombine.low %v4568_v50, %v4576_v49  ;;  %v4820_v33 = vcombine.high %v4810_v8, %v4818_v27  ;;  %v4491_v22 = vshrl.u32 %v9315_v9, 16 }
 0x548   : > { %v3746_v41 = vpop.permute.xlu0 %3745  ;;  %v9587_v1 = vsel %vm484_vm11, %v4448_v3, %v4417_v46  ;;  %v9589_v58 = vpop.permute.xlu1 %4041  ;;  %v4767_v46 = vshrl.u32 %v9285_v5, 16  ;;  %v6235_v35 = vcombine.low %v4551_v10, %v4551_v10  ;;  %v4490_v3 = vshrl.u32 %v9317_v30, 16 }
 0x549   : > { %v9609_v5 = vrot.slane %v4577_v7, %v10193_v43  ;;  %v6437_v6 = vcombine.high %v4827_v63, %v4827_v63  ;;  %v4762_v36 = vpack.i.b16 %v4761_v61, %v4760_v62  ;;  %v4485_v27 = vshrl.u32 %v9300_v54, 16 }
 0x54a   : > { %5531 = vrot.lane.b32.xlu0 %v6292_v31, %s6516_s6  ;;  %4948 = vrot.lane.b32.xlu1 %v6440_v56, %s6512_s27  ;;  %v4768_v51 = vpack.i.b16 %v4767_v46, %v4766_v38  ;;  %v4868_v30 = vrot.slane %v4854_v39, %v10193_v43  ;;  %v4492_v56 = vpack.i.b16 %v4491_v22, %v4490_v3 }
 0x54b   : > { %v6432_v9 = vcombine.high %v9609_v5, %v9609_v5  ;;  %v4834_v54 = vrot.slane %v4820_v33, %v10193_v43  ;;  %v9632_v44 = vrot.slane %v4762_v36, %v10192_v60  ;;  %v4486_v49 = vpack.i.b16 %v4485_v27, %v4484_v57 }
 0x54c   : > { %v4022_v53 = vpop.permute.xlu0 %4021  ;;  %v9600_v24 = vpop.permute.xlu1 %3780  ;;  %v9625_v31 = vrot.slane %v4768_v51, %v10192_v60  ;;  %v6259_v63 = vcombine.low %v4868_v30, %v4868_v30  ;;  %v4592_v46 = vrot.slane %v4578_v15, %v10193_v43 }
 0x54d   : > { %v6253_v62 = vcombine.low %v4834_v54, %v4834_v54  ;;  %v4602_v39 = vrot.slane %v4486_v49, %v10192_v60 }
 0x54e   : > { %5817 = vrot.lane.b32.xlu0 %v6467_v13, %s6517_s7  ;;  %4632 = vrot.lane.b32.xlu1 %v6235_v35, %s6511_s26  ;;  %v6429_v13 = vcombine.high %v4551_v10, %v4551_v10  ;;  %v4887_v38 = vcombine.low %v9632_v44, %v9625_v31  ;;  %v4610_v35 = vrot.slane %v4492_v56, %v10192_v60 }
 0x54f   : > { %v6245_v22 = vcombine.low %v4592_v46, %v4592_v46  ;;  %v6434_v36 = vcombine.high %v4592_v46, %v4592_v46 }
 0x550   : > { %v4032_v25 = vpop.permute.xlu0 %4031  ;;  %v9613_v47 = vpop.permute.xlu1 %4056  ;;  %v4611_v3 = vcombine.low %v4602_v39, %v4610_v35  ;;  %v4895_v27 = vrot.slane %v4887_v38, %v10193_v43  ;;  %v4612_v38 = vcombine.high %v4602_v39, %v4610_v35 }
 0x552   : > { %4908 = vrot.lane.b32.xlu0 %v6249_v28, %s6511_s26  ;;  %4918 = vrot.lane.b32.xlu1 %v6437_v6, %s6513_s28  ;;  %v4544_v28 = vcombine.high %v9564_v19, %v9555_v20  ;;  %v6442_v19 = vcombine.high %v4868_v30, %v4868_v30  ;;  %v6256_v56 = vcombine.low %v4895_v27, %v4895_v27 }
 0x553   : > { %v4626_v35 = vrot.slane %v4612_v38, %v10193_v43  ;;  %v10235_v38 = vld [vmem:[#allocation5_spill] sm:$0xff] }
 0x554   : > { %v9619_v8 = vpop.permute.xlu0 %3765  ;;  %v9627_v7 = vpop.permute.xlu1 %3790  ;;  %v4558_v57 = vrot.slane %v4544_v28, %v10193_v43  ;;  %v6441_v28 = vcombine.high %v4895_v27, %v4895_v27 }
 0x556   : > { %4672 = vrot.lane.b32.xlu0 %v6432_v9, %s6512_s27  ;;  %4642 = vrot.lane.b32.xlu1 %v6429_v13, %s6513_s28  ;;  %v4619_v13 = vrot.slane %v4611_v3, %v10193_v43  ;;  %v6239_v30 = vcombine.low %v4558_v57, %v4558_v57 }
 0x558   : > { %v3741_v50 = vpop.permute.xlu0 %3740  ;;  %v4027_v61 = vpop.permute.xlu1 %4026  ;;  %v6433_v3 = vcombine.high %v4619_v13, %v4619_v13 }
 0x559   : > { %v3809_v10 = vsel %vm468_vm6, %v9154_v21, %v3741_v50 }
 0x55a   : > { %4958 = vrot.lane.b32.xlu0 %v6259_v63, %s6514_s29  ;;  %v3811_v33 = vsel %vm472_vm7, %v3809_v10, %v3746_v41  ;;  %4928 = vrot.lane.b32.xlu1 %v6253_v62, %s6516_s6  ;;  %v6242_v63 = vcombine.low %v4619_v13, %v4619_v13 }
 0x55c   : > { %v4017_v51 = vpop.permute.xlu0 %4016  ;;  %v9649_v21 = vpop.permute.xlu1 %3800 }
 0x55d   : > { %v4085_v6 = vsel %vm468_vm6, %v9180_v40, %v4017_v51 }
 0x55e   : > { %v4087_v41 = vsel %vm472_vm7, %v4085_v6, %v4022_v53  ;;  %4682 = vrot.lane.b32.xlu0 %v6245_v22, %s6514_s29  ;;  %4692 = vrot.lane.b32.xlu1 %v6434_v36, %s6515_s30 }
 0x55f   : > { %v4089_v60 = vsel %vm475_vm9, %v4087_v41, %v4027_v61  ;;  %v6439_v61 = vcombine.high %v4834_v54, %v4834_v54 }
 0x560   : > { %v3751_v20 = vpop.permute.xlu0 %3750  ;;  %v4091_v15 = vsel %vm478_vm8, %v4089_v60, %v4032_v25  ;;  %v9659_v9 = vpop.permute.xlu1 %4076 }
 0x561   : > { %v3813_v40 = vsel %vm475_vm9, %v3811_v33, %v3751_v20 }
 0x562   : > { %4968 = vrot.lane.b32.xlu0 %v6442_v19, %s6515_s30  ;;  %v3815_v53 = vsel %vm478_vm8, %v3813_v40, %v9573_v17  ;;  %4943 = vrot.lane.b32.xlu1 %v6256_v56, %s6511_s26  ;;  %v4888_v17 = vcombine.high %v9632_v44, %v9625_v31  ;;  %v6431_v44 = vcombine.high %v4558_v57, %v4558_v57 }
 0x563   : > { %v6435_v56 = vcombine.high %v4626_v35, %v4626_v35 }
 0x564   : > { %v4067_v49 = vpop.permute.xlu0 %4066  ;;  %v3776_v50 = vpop.permute.xlu1 %3775  ;;  %v4902_v6 = vrot.slane %v4888_v17, %v10193_v43 }
 0x565   : > { %v3824_v25 = vsel %vm468_vm6, %v9185_v26, %v3776_v50 }
 0x566   : > { %4652 = vrot.lane.b32.xlu0 %v6239_v30, %s6516_s6  ;;  %4667 = vrot.lane.b32.xlu1 %v6242_v63, %s6511_s26  ;;  %v3826_v46 = vsel %vm472_vm7, %v3824_v25, %v9600_v24  ;;  %v3540_v24 = vsel %vm468_vm6, %v8917_v16, %v9383_v23  ;;  %v6260_v41 = vcombine.low %v4902_v6, %v4902_v6 }
 0x567   : > { %v6443_v60 = vcombine.high %v4902_v6, %v4902_v6 }
 0x568   : > { %v3761_v10 = vpop.permute.xlu0 %3760  ;;  %v3786_v33 = vpop.permute.xlu1 %3785 }
 0x569   : > { %v3817_v62 = vsel %vm481_vm10, %v3815_v53, %v3761_v10  ;;  %v3828_v51 = vsel %vm475_vm9, %v3826_v46, %v3786_v33 }
 0x56a   : > { %4938 = vrot.lane.b32.xlu0 %v6439_v61, %s6517_s7  ;;  %v3819_v26 = vsel %vm484_vm11, %v3817_v62, %v9619_v8  ;;  %4953 = vrot.lane.b32.xlu1 %v6441_v28, %s6513_s28  ;;  %v3830_v31 = vsel %vm478_vm8, %v3828_v51, %v9627_v7  ;;  %v3542_v8 = vsel %vm472_vm7, %v3540_v24, %v9330_v34  ;;  %v10236_v61 = vld [vmem:[#allocation7_spill] sm:$0xff] }
 0x56b   : > { %v6246_v7 = vcombine.low %v4626_v35, %v4626_v35  ;;  %v3544_v36 = vsel %vm475_vm9, %v3542_v8, %v9381_v42  ;;  %v6415_v42 = vcombine.high %v9290_v52, %v9290_v52  ;;  %v6427_v52 = vcombine.high %v9118_v2, %v9118_v2  ;;  %v10234_v2 = vld [vmem:[#allocation30_spill] sm:$0xff]  ;;  %v10237_v28 = vld [vmem:[#allocation35_spill] sm:$0xff] }
 0x56c   : > { %v4037_v54 = vpop.permute.xlu0 %4036  ;;  %v4062_v22 = vpop.permute.xlu1 %4061  ;;  %v3546_v34 = vsel %vm478_vm8, %v3544_v36, %v9343_v18  ;;  %v6422_v46 = vcombine.high %v10234_v2, %v10234_v2  ;;  %v6423_v17 = vcombine.high %v10236_v61, %v10236_v61  ;;  %v6399_v51 = vcombine.high %v10237_v28, %v10237_v28 }
 0x56d   : > { %v4093_v39 = vsel %vm481_vm10, %v4091_v15, %v4037_v54  ;;  %v3548_v15 = vsel %vm481_vm10, %v3546_v34, %v9398_v59 }
 0x56e   : > { %4662 = vrot.lane.b32.xlu0 %v6431_v44, %s6517_s7  ;;  %v9693_v16 = vsel %vm484_vm11, %v4093_v39, %v9589_v58  ;;  %4677 = vrot.lane.b32.xlu1 %v6433_v3, %s6513_s28  ;;  %v3550_v59 = vsel %vm484_vm11, %v3548_v15, %v9360_v48 }
 0x56f   : > { %v3552_v48 = vsel %vm487_vm12, %v3550_v59, %v10235_v38  ;;  %v10239_v38 = vld [vmem:[#allocation37_spill] sm:$0xff] }
 0x570   : > { %v3771_v23 = vpop.permute.xlu0 %3770  ;;  %v4072_v43 = vpop.permute.xlu1 %4071 }
 0x571   : > { %v9699_v27 = vsel %vm487_vm12, %v3819_v26, %v3771_v23 }
 0x572   : > { %4687 = vrot.lane.b32.xlu0 %v6246_v7, %s6516_s6  ;;  %4963 = vrot.lane.b32.xlu1 %v6260_v41, %s6516_s6 }
 0x574   : > { %v4052_v58 = vpop.permute.xlu0 %4051  ;;  %v3806_v19 = vpop.permute.xlu1 %3805 }
 0x575   : > { %v4100_v20 = vsel %vm468_vm6, %v9204_v14, %v4052_v58 }
 0x576   : > { %v4102_v57 = vsel %vm472_vm7, %v4100_v20, %v9613_v47  ;;  %4973 = vrot.lane.b32.xlu0 %v6443_v60, %s6517_s7  ;;  %4046 = vrot.lane.b32.xlu1 %v6415_v42, %s6517_s7 }
 0x577   : > { %v4104_v40 = vsel %vm475_vm9, %v4102_v57, %v4062_v22  ;;  %v10238_v22 = vld [vmem:[#allocation47_spill] sm:$0xff] }
 0x578   : > { %v3796_v18 = vpop.permute.xlu0 %3795  ;;  %v4106_v14 = vsel %vm478_vm8, %v4104_v40, %v4067_v49  ;;  %v9718_v53 = vpop.permute.xlu1 %5757 }
 0x579   : > { %v3832_v13 = vsel %vm481_vm10, %v3830_v31, %v3796_v18  ;;  %v4108_v47 = vsel %vm481_vm10, %v4106_v14, %v4072_v43  ;;  %v5902_v31 = vld [vmem:[%s9913_s4] sm:$0xf] }
 0x57a   : > { %v3834_v30 = vsel %vm484_vm11, %v3832_v13, %v9649_v21  ;;  %4697 = vrot.lane.b32.xlu0 %v6435_v56, %s6517_s7  ;;  %v4110_v49 = vsel %vm484_vm11, %v4108_v47, %v9659_v9  ;;  %4421 = vrot.lane.b32.xlu1 %v6427_v52, %s6517_s7 }
 0x57b   : > { %v3836_v50 = vsel %vm487_vm12, %v3834_v30, %v3806_v19 }
 0x57c   : > { %v5852_v63 = vrot.slane %v3836_v50, 6  ;;  %v4082_v25 = vpop.permute.xlu0 %4081  ;;  %v5492_v21 = vpop.permute.xlu1 %5491 }
 0x57d   : > { %v4112_v10 = vsel %vm487_vm12, %v4110_v49, %v4082_v25 }
 0x57e   : > { %v5856_v62 = vrot.slane %v4112_v10, 4  ;;  %4381 = vrot.lane.b32.xlu0 %v6422_v46, %s6515_s30  ;;  %v5876_v9 = vsel %vm2833_vm13, %v3552_v48, %v5852_v63  ;;  %4386 = vrot.lane.b32.xlu1 %v6423_v17, %s6517_s7 }
 0x580   : > { %v5482_v33 = vpop.permute.xlu0 %5481  ;;  %v9745_v26 = vsel %vm2838_vm14, %v5876_v9, %v5856_v62  ;;  %v5778_v24 = vpop.permute.xlu1 %5777 }
 0x582   : > { %3486 = vrot.lane.b32.xlu0 %v6399_v51, %s6517_s7 }
 0x584   : > { %v5768_v54 = vpop.permute.xlu0 %5767  ;;  %v5753_v44 = vpop.permute.xlu1 %5752 }
 0x585   : > { %v5821_v48 = vsel %vm468_vm6, %v10239_v38, %v5753_v44 }
 0x586   : > { %5905 = vperm.xlu0 %6490, %v5902_v31  }
 0x588   : > { %v5502_v35 = vpop.permute.xlu0 %5501  ;;  %v5477_v39 = vpop.permute.xlu1 %5476 }
 0x589   : > { %v5545_v3 = vsel %vm468_vm6, %v10238_v22, %v5477_v39 }
 0x58a   : > { %v5547_v6 = vsel %vm472_vm7, %v5545_v3, %v5482_v33 }
 0x58c   : > { %v5793_v8 = vpop.permute.xlu0 %5792  ;;  %v5763_v23 = vpop.permute.xlu1 %5762 }
 0x590   : > { %v5517_v7 = vpop.permute.xlu0 %5516  ;;  %v5803_v36 = vpop.permute.xlu1 %5802 }
 0x594   : > { %v5527_v43 = vpop.permute.xlu0 %5526  ;;  %v5487_v41 = vpop.permute.xlu1 %5486 }
 0x595   : > { %v5549_v34 = vsel %vm475_vm9, %v5547_v6, %v5487_v41 }
 0x596   : > { %v5551_v58 = vsel %vm478_vm8, %v5549_v34, %v5492_v21 }
 0x598   : > { %v5813_v60 = vpop.permute.xlu0 %5812  ;;  %v5773_v20 = vpop.permute.xlu1 %5772 }
 0x59c   : > { %v5537_v19 = vpop.permute.xlu0 %5536  ;;  %v5497_v42 = vpop.permute.xlu1 %5496 }
 0x59d   : > { %v5553_v57 = vsel %vm481_vm10, %v5551_v58, %v5497_v42 }
 0x59e   : > { %v5555_v15 = vsel %vm484_vm11, %v5553_v57, %v5502_v35 }
 0x5a0   : > { %v5788_v40 = vpop.permute.xlu0 %5787  ;;  %v5783_v18 = vpop.permute.xlu1 %5782 }
 0x5a1   : > { %v5836_v21 = vsel %vm468_vm6, %v9407_v11, %v5788_v40 }
 0x5a2   : > { %v5838_v62 = vsel %vm472_vm7, %v5836_v21, %v5793_v8 }
 0x5a4   : > { %v4914_v56 = vpop.permute.xlu0 %4913  ;;  %v5507_v14 = vpop.permute.xlu1 %5506 }
 0x5a5   : > { %v9759_v13 = vsel %vm487_vm12, %v5555_v15, %v5507_v14 }
 0x5a8   : > { %v5512_v52 = vpop.permute.xlu0 %5511  ;;  %v5522_v59 = vpop.permute.xlu1 %5521 }
 0x5a9   : > { %v5560_v47 = vsel %vm468_vm6, %v9419_v32, %v5512_v52  ;;  %v5823_v32 = vsel %vm472_vm7, %v5821_v48, %v9718_v53 }
 0x5aa   : > { %v5562_v30 = vsel %vm472_vm7, %v5560_v47, %v5517_v7  ;;  %v5825_v17 = vsel %vm475_vm9, %v5823_v32, %v5763_v23 }
 0x5ab   : > { %v5564_v49 = vsel %vm475_vm9, %v5562_v30, %v5522_v59  ;;  %v5827_v51 = vsel %vm478_vm8, %v5825_v17, %v5768_v54  ;;  %v10244_v17 = vld [vmem:[#allocation4_spill] sm:$0xff] }
 0x5ac   : > { %v5798_v50 = vpop.permute.xlu0 %5797  ;;  %v5566_v63 = vsel %vm478_vm8, %v5564_v49, %v5527_v43  ;;  %v4648_v25 = vpop.permute.xlu1 %4647  ;;  %v5829_v31 = vsel %vm481_vm10, %v5827_v51, %v5773_v20 }
 0x5ad   : > { %v5840_v33 = vsel %vm475_vm9, %v5838_v62, %v5798_v50  ;;  %v5831_v3 = vsel %vm484_vm11, %v5829_v31, %v5778_v24  ;;  %v10241_v50 = vld [vmem:[#allocation28_spill] sm:$0xff]  ;;  %v10245_v62 = vld [vmem:[#allocation26_spill] sm:$0xff] }
 0x5ae   : > { %v5842_v11 = vsel %vm478_vm8, %v5840_v33, %v5803_v36  ;;  %v5833_v6 = vsel %vm487_vm12, %v5831_v3, %v5783_v18 }
 0x5af   : > { %v5911_v36 = vsel %vm2833_vm13, %v5833_v6, 0 }
 0x5b0   : > { %v4638_v2 = vpop.permute.xlu0 %4637  ;;  %v4934_v46 = vpop.permute.xlu1 %4933 }
 0x5b4   : > { %v4924_v10 = vpop.permute.xlu0 %4923  ;;  %v9770_v61 = vpop.permute.xlu1 %4657 }
 0x5b8   : > { %v5808_v9 = vpop.permute.xlu0 %5807  ;;  %v9777_v28 = vpop.permute.xlu1 %5541 }
 0x5b9   : > { %v5844_v35 = vsel %vm481_vm10, %v5842_v11, %v5808_v9  ;;  %v10246_v11 = vld [vmem:[#allocation23_spill] sm:$0xff] }
 0x5ba   : > { %v5846_v54 = vsel %vm484_vm11, %v5844_v35, %v5813_v60  ;;  %v10240_v60 = vld [vmem:[#allocation21_spill] sm:$0xff]  ;;  %v10247_v35 = vld [vmem:[#allocation27_spill] sm:$0xff] }
 0x5bb   : > { %v5269_v15 = vsel %vm468_vm6, %v10240_v60, %v9404_v12 }
 0x5bc   : > { %v5532_v44 = vpop.permute.xlu0 %5531  ;;  %v4949_v39 = vpop.permute.xlu1 %4948  ;;  %v5271_v14 = vsel %vm472_vm7, %v5269_v15, %v9409_v29 }
 0x5bd   : > { %v5568_v53 = vsel %vm481_vm10, %v5566_v63, %v5532_v44 }
 0x5be   : > { %v9785_v22 = vsel %vm484_vm11, %v5568_v53, %v5537_v19 }
 0x5c0   : > { %v5818_v8 = vpop.permute.xlu0 %5817  ;;  %v4633_v23 = vpop.permute.xlu1 %4632 }
 0x5c1   : > { %v5848_v7 = vsel %vm487_vm12, %v5846_v54, %v5818_v8  ;;  %v4701_v52 = vsel %vm468_vm6, %v9516_v4, %v4633_v23  ;;  %v10242_v4 = vld [vmem:[#allocation19_spill] sm:$0xff] }
 0x5c2   : > { %6309 = vmatprep.subr.msk.bf16.mxu1 %vm2833_vm13, %v5848_v7  ;;  %v4703_v30 = vsel %vm472_vm7, %v4701_v52, %v4638_v2  ;;  %v10243_v2 = vld [vmem:[#allocation32_spill] sm:$0xff] }
 0x5c3   : > { %5926 = vmatpush1.bf16.msra.mxu1 %v5911_v36 }
 0x5c4   : > { %v4909_v43 = vpop.permute.xlu0 %4908  ;;  %v4919_v41 = vpop.permute.xlu1 %4918 }
 0x5c5   : > { %v4977_v24 = vsel %vm468_vm6, %v9496_v55, %v4909_v43  ;;  %v5273_v55 = vsel %vm475_vm9, %v5271_v14, %v9414_v37  ;;  %v10248_v43 = vld [vmem:[#allocation36_spill] sm:$0xff] }
 0x5c6   : > { %v4979_v40 = vsel %vm472_vm7, %v4977_v24, %v4914_v56  ;;  %v5275_v56 = vsel %vm478_vm8, %v5273_v55, %v10241_v50 }
 0x5c7   : > { %v4981_v47 = vsel %vm475_vm9, %v4979_v40, %v4919_v41  ;;  %v5277_v48 = vsel %vm481_vm10, %v5275_v56, %v10242_v4  ;;  %v5871_v41 = vrot.slane %v9759_v13, 2  ;;  %v10251_v13 = vld [vmem:[#allocation20_spill] sm:$0xff]  ;;  %v10255_v4 = vld [vmem:[#allocation10_spill] sm:$0xff] }
 0x5c8   : > { %v4673_v34 = vpop.permute.xlu0 %4672  ;;  %v4643_v58 = vpop.permute.xlu1 %4642  ;;  %v4983_v49 = vsel %vm478_vm8, %v4981_v47, %v4924_v10  ;;  %v5284_v10 = vsel %vm468_vm6, %v10244_v17, %v10243_v2  ;;  %v5279_v9 = vsel %vm484_vm11, %v5277_v48, %v10245_v62  ;;  %v10254_v56 = vld [vmem:[#allocation44_spill] sm:$0xff]  ;;  %v10257_v17 = vld [vmem:[#allocation34_spill] sm:$0xff] }
 0x5c9   : > { %v4705_v63 = vsel %vm475_vm9, %v4703_v30, %v4643_v58  ;;  %v5281_v44 = vsel %vm487_vm12, %v5279_v9, %v10246_v11 }
 0x5ca   : > { %v4707_v21 = vsel %vm478_vm8, %v4705_v63, %v4648_v25  ;;  %v5867_v8 = vrot.slane %v5281_v44, 4  ;;  %v10258_v44 = vld [vmem:[#allocation41_spill] sm:$0xff] }
 0x5cc   : > { %v4959_v20 = vpop.permute.xlu0 %4958  ;;  %v4929_v19 = vpop.permute.xlu1 %4928 }
 0x5cd   : > { %v4985_v29 = vsel %vm481_vm10, %v4983_v49, %v4929_v19  ;;  %v10252_v49 = vld [vmem:[#allocation6_spill] sm:$0xff] }
 0x5ce   : > { %v4987_v37 = vsel %vm484_vm11, %v4985_v29, %v4934_v46  ;;  %v5286_v46 = vsel %vm472_vm7, %v5284_v10, %v10247_v35 }
 0x5d0   : > { %v4683_v42 = vpop.permute.xlu0 %4682  ;;  %v9795_v57 = vpop.permute.xlu1 %4692 }
 0x5d4   : > { %v4969_v18 = vpop.permute.xlu0 %4968  ;;  %v4944_v59 = vpop.permute.xlu1 %4943 }
 0x5d5   : > { %v4992_v25 = vsel %vm468_vm6, %v9576_v0, %v4944_v59  ;;  %v5288_v0 = vsel %vm475_vm9, %v5286_v46, %v10248_v43  ;;  %v10260_v46 = vld [vmem:[#allocation22_spill] sm:$0xff] }
 0x5d6   : > { %v4994_v23 = vsel %vm472_vm7, %v4992_v25, %v4949_v39  ;;  %v10250_v39 = vld [vmem:[#allocation16_spill] sm:$0xff] }
 0x5d7   : > { %v5290_v15 = vsel %vm478_vm8, %v5288_v0, %v10250_v39 }
 0x5d8   : > { %v4653_v12 = vpop.permute.xlu0 %4652  ;;  %v4668_v38 = vpop.permute.xlu1 %4667  ;;  %v5292_v47 = vsel %vm481_vm10, %v5290_v15, %v10251_v13  ;;  %v10266_v15 = vld [vmem:[#allocation46_spill] sm:$0xff] }
 0x5d9   : > { %v4709_v33 = vsel %vm481_vm10, %v4707_v21, %v4653_v12  ;;  %v4716_v54 = vsel %vm468_vm6, %v9609_v5, %v4668_v38  ;;  %v10253_v12 = vld [vmem:[#allocation48_spill] sm:$0xff]  ;;  %v5294_v63 = vsel %vm484_vm11, %v5292_v47, %v10254_v56 }
 0x5da   : > { %v4711_v6 = vsel %vm484_vm11, %v4709_v33, %v9770_v61  ;;  %v4718_v24 = vsel %vm472_vm7, %v4716_v54, %v4673_v34  ;;  %v3525_v50 = vsel %vm468_vm6, %v10253_v12, %v10252_v49  ;;  %v5296_v48 = vsel %vm487_vm12, %v5294_v63, %v10255_v4  ;;  %vm10261_vm6 = vmmov %vm10249_vm2 }
 0x5db   : > { %v5868_v62 = vrot.slane %v5296_v48, 4 }
 0x5dc   : > { %v4939_v32 = vpop.permute.xlu0 %4938  ;;  %v4954_v31 = vpop.permute.xlu1 %4953 }
 0x5dd   : > { %v4989_v51 = vsel %vm487_vm12, %v4987_v37, %v4939_v32  ;;  %v4996_v58 = vsel %vm475_vm9, %v4994_v23, %v4954_v31  ;;  %v5851_v23 = vrot.slane %v9699_v27, 6  ;;  %v5901_v27 = vld [vmem:[%s9912_s3] sm:$0x3] }
 0x5de   : > { %v5863_v53 = vrot.slane %v4989_v51, 6  ;;  %v4998_v14 = vsel %vm478_vm8, %v4996_v58, %v4959_v20 }
 0x5e0   : > { %v4663_v3 = vpop.permute.xlu0 %4662  ;;  %v4678_v36 = vpop.permute.xlu1 %4677 }
 0x5e1   : > { %v4713_v7 = vsel %vm487_vm12, %v4711_v6, %v4663_v3  ;;  %v4720_v40 = vsel %vm475_vm9, %v4718_v24, %v4678_v36  ;;  %v10265_v24 = vld [vmem:[#allocation25_spill] sm:$0xff] }
 0x5e2   : > { %v5888_v19 = vsel %vm2833_vm13, %v4713_v7, %v5863_v53  ;;  %v4722_v55 = vsel %vm478_vm8, %v4720_v40, %v4683_v42  ;;  %v5572_v42 = vsel %vm487_vm12, %v9785_v22, %v9777_v28  ;;  %v10262_v7 = vld [vmem:[#allocation33_spill] sm:$0xff]  ;;  %v5957_v40 = vunpack.c.l.bf16 %v10266_v15 }
 0x5e3   : > { %v5892_v61 = vsel %vm2838_vm14, %v5888_v19, %v5867_v8  ;;  %v5872_v22 = vrot.slane %v5572_v42, 2 }
 0x5e4   : > { %v4688_v60 = vpop.permute.xlu0 %4687  ;;  %v5896_v5 = vsel %vm10249_vm2, %v5892_v61, %v5871_v41  ;;  %v4964_v52 = vpop.permute.xlu1 %4963 }
 0x5e5   : > { %v5000_v59 = vsel %vm481_vm10, %v4998_v14, %v4964_v52  ;;  %v4724_v20 = vsel %vm481_vm10, %v4722_v55, %v4688_v60  ;;  %v5956_v60 = vunpack.c.l.bf16 %v10265_v24 }
 0x5e6   : > { %v5002_v34 = vsel %vm484_vm11, %v5000_v59, %v4969_v18  ;;  %v10256_v18 = vld [vmem:[#allocation24_spill] sm:$0xff]  ;;  %v4726_v2 = vsel %vm484_vm11, %v4724_v20, %v9795_v57 }
 0x5e7   : > { %v3527_v21 = vsel %vm472_vm7, %v3525_v50, %v10256_v18  ;;  %vm10263_vm7 = vmmov %vm10249_vm2 }
 0x5e8   : > { %v4974_v30 = vpop.permute.xlu0 %4973  ;;  %v4047_v38 = vpop.permute.xlu1 %4046  ;;  %v3529_v10 = vsel %vm475_vm9, %v3527_v21, %v10257_v17 }
 0x5e9   : > { %v5004_v29 = vsel %vm487_vm12, %v5002_v34, %v4974_v30  ;;  %v3531_v25 = vsel %vm478_vm8, %v3529_v10, %v10258_v44  ;;  %v4097_v8 = vsel %vm487_vm12, %v9693_v16, %v4047_v38  ;;  %vm10264_vm8 = vcmask 293888  }
 0x5ea   : > { %v5864_v32 = vrot.slane %v5004_v29, 6  ;;  %v3533_v53 = vsel %vm481_vm10, %v3531_v25, %v10260_v46  ;;  %v5855_v0 = vrot.slane %v4097_v8, 4 }
 0x5eb   : > { %v3535_v36 = vsel %vm484_vm11, %v3533_v53, %v10262_v7 }
 0x5ec   : > { %v4698_v37 = vpop.permute.xlu0 %4697  ;;  %v4422_v33 = vpop.permute.xlu1 %4421 }
 0x5ed   : > { %v4728_v9 = vsel %vm487_vm12, %v4726_v2, %v4698_v37  ;;  %v4452_v28 = vsel %vm487_vm12, %v9587_v1, %v4422_v33 }
 0x5ee   : > { %v5890_v51 = vsel %vm2833_vm13, %v4728_v9, %v5864_v32  ;;  %v5860_v31 = vrot.slane %v4452_v28, 2 }
 0x5ef   : > { %v5894_v11 = vsel %vm2838_vm14, %v5890_v51, %v5868_v62 }
 0x5f0   : > { %v4382_v57 = vpop.permute.xlu0 %4381  ;;  %v5899_v35 = vsel %vm10259_vm5, %v5894_v11, %v5872_v22  ;;  %v4387_v6 = vpop.permute.xlu1 %4386  ;;  %v5885_v1 = vsel %vm10261_vm6, %v9745_v26, %v5860_v31 }
 0x5f1   : > { %v4435_v3 = vsel %vm484_vm11, %v9544_v45, %v4382_v57  ;;  %5927 = vmatprep.subr.bf16.mxu1 %v5899_v35 }
 0x5f2   : > { %5928 = vmatpush1.bf16.msra.mxu1 %v5896_v5  ;;  %v4437_v54 = vsel %vm487_vm12, %v4435_v3, %v4387_v6 }
 0x5f3   : > { %5929 = vmatprep.subr.bf16.mxu1 %v5885_v1  ;;  %v5859_v41 = vrot.slane %v4437_v54, 2 }
 0x5f4   : > { %v3487_v43 = vpop.permute.xlu0 %3486 }
 0x5f5   : > { %v3537_v45 = vsel %vm487_vm12, %v3535_v36, %v3487_v43 }
 0x5f6   : > { %v5874_v26 = vsel %vm2833_vm13, %v3537_v45, %v5851_v23 }
 0x5f7   : > { %v5878_v58 = vsel %vm2838_vm14, %v5874_v26, %v5855_v0 }
 0x5f8   : > { %v5882_v16 = vsel %vm10263_vm7, %v5878_v58, %v5859_v41 }
 0x5f9   : > { %5930 = vmatpush1.bf16.msra.mxu1 %v5882_v16 }
 0x5fc   : > { %6310 = vmatmul.mubr.msk.bf16.vlgmr.msra.gmra.mxu1 %vm10264_vm8, %v5901_v27 }
 0x601   : > { %v5906_v19 = vpop.permute.xlu0 %5905 }
 0x6bc   : > { %v5949_v61 = vpop.f32.mrf.mxu1 }
 0x6bd   : > { %v5950_v5 = vadd.f32 %v5949_v61, %v5906_v19 }
 0x6be   : > { %v5951_v39 = vpop.f32.mrf.mxu1 }
 0x6bf   : > { %v5958_v14 = vadd.f32 %v5956_v60, %v5950_v5  ;;  %v5952_v52 = vadd.f32 %v5951_v39, %v5906_v19 }
 0x6c0   : > { %v5953_v13 = vpop.f32.mrf.mxu1 }
 0x6c1   : > { %v5959_v47 = vadd.f32 %v5957_v40, %v5952_v52  ;;  %v5960_v55 = vmax.f32 %v5958_v14, 0.0 }
 0x6c2   : > { %v5954_v59 = vpop.f32.mrf.mxu1 }
 0x6c3   : > { %v5961_v30 = vmax.f32 %v5959_v47, 0.0 }
 0x6c5   : > { %v6311_v34 = vpack.c.bf16 %v5961_v30, %v5960_v55 }
 0x6c7   : > { %6312 = vst.sshfl [vmem:[%s224_s22] sm:$0x33 pattern:$0x76325410] %v6311_v34 }
 0x6c8 PF: > { %s15_s18 = sadd.s32 1, %s6505_s18  }
 0x6c9   : > { %p12_p4 = scmp.ge.s32.totalorder %s15_s18, 4  }
 0x6cb   :  { %14 = sbr.rel (!%p12_p4) target bundleno = 1 (0x1), region = 70 }

</bundles_post_ra>
